<compile_context>
chip_gen: v7x
topology: tpu7x:2x2x1
jax: 0.10.0
libtpu: 0.0.40
codegen_flags: <defaults>
</compile_context>

<pallas_src>
import functools

import jax
import jax.numpy as jnp
from jax.experimental import pallas as pl
from jax.experimental.pallas import tpu as pltpu


CHANS = [64, 128, 256, 256, 128, 64]   # conv channels: 64->128->256->256->128->64
NUM_LAYERS = 5


def fused_residual_block_kernel(x_ref, *rest, H, W):
    """Fused 5x(conv3x3 + bias + ReLU) + residual add for one batch element.

    rest = (w1, b1, ..., w5, b5, o_ref, xw_c64, xw_c128, xw_c256)
      w_i  : (3, 3*Cin_i, Cout_i) bf16  -- kw and cin folded into the contraction dim
      b_i  : (1, Cout_i)          f32
      o    : (1, H, W, 64)        f32
      xw_* : (H+2, W, 3*Cin) bf16 VMEM scratch (im2col-lite buffer, zero border = padding)
    """
    wb_refs = rest[:2 * NUM_LAYERS]
    o_ref = rest[2 * NUM_LAYERS]
    xw_scratch = {64: rest[2 * NUM_LAYERS + 1],
                  128: rest[2 * NUM_LAYERS + 2],
                  256: rest[2 * NUM_LAYERS + 3]}

    # Zero only the top/bottom padding rows. The interior (rows 1..H) is fully
    # overwritten by the per-layer slab store below, so this is all the (re)zeroing
    # that is needed; doing it every grid step keeps it correct when the batch grid
    # axis is split across TensorCores (megacore).
    for s_ref in xw_scratch.values():
        zrow = jnp.zeros((1,) + tuple(s_ref.shape[1:]), s_ref.dtype)
        s_ref[0:1] = zrow
        s_ref[H + 1:H + 2] = zrow

    x = x_ref[0]                 # (H, W, 64) f32 -- kept around for the residual add
    a = x                        # current activation (f32 between layers)

    for li in range(NUM_LAYERS):
        w_ref = wb_refs[2 * li]
        b_ref = wb_refs[2 * li + 1]
        cin = a.shape[-1]
        xw = xw_scratch[cin]     # (H+2, W, 3*cin) bf16

        # Build the (H, W, 3*cin) im2col slab in registers and store it ONCE,
        # lane-dense, into the scratch interior:
        #   xw[i, w, kw*cin + c] == padded_input[i, w + kw, c]
        # After this, each of the 3 kh taps is a free slice along the leading axis.
        a16 = a.astype(jnp.bfloat16)                         # one cast per layer
        zcol = jnp.zeros((H, 1, cin), jnp.bfloat16)
        left = jnp.concatenate([zcol, a16[:, :W - 1, :]], axis=1)   # kw = 0 tap
        right = jnp.concatenate([a16[:, 1:, :], zcol], axis=1)      # kw = 2 tap
        xw[1:H + 1] = jnp.concatenate([left, a16, right], axis=-1)

        # 3 MXU matmuls with K = 3*cin (bf16 operands, f32 accumulation).
        acc = jnp.dot(xw[0:H].reshape(H * W, 3 * cin), w_ref[0],
                      preferred_element_type=jnp.float32)
        for kh in (1, 2):
            acc = acc + jnp.dot(xw[kh:kh + H].reshape(H * W, 3 * cin), w_ref[kh],
                                preferred_element_type=jnp.float32)

        cout = acc.shape[-1]
        y = jnp.maximum(acc + b_ref[...], 0.0)               # bias + ReLU (f32)
        a = y.reshape(H, W, cout)

    o_ref[0] = (x + a).astype(o_ref.dtype)                   # residual add (f32)


@jax.jit
def residual_block(x_nchw, params):
    """Forward pass matching ResidualBlock.forward: y = conv_stack(x); return x + y."""
    x = jnp.transpose(x_nchw, (0, 2, 3, 1)).astype(jnp.float32)  # NCHW -> NHWC
    N, H, W_, C = x.shape
    assert C == CHANS[0]

    args = [x]
    in_specs = [pl.BlockSpec((1, H, W_, C), lambda n: (n, 0, 0, 0))]
    for (w, b) in params:
        _, _, cin, cout = w.shape
        # Fold (kw, cin) into the contraction dim; pre-cast weights to bf16.
        args.append(w.reshape(3, 3 * cin, cout).astype(jnp.bfloat16))
        args.append(b.reshape(1, cout).astype(jnp.float32))
        in_specs.append(pl.BlockSpec((3, 3 * cin, cout), lambda n: (0, 0, 0)))
        in_specs.append(pl.BlockSpec((1, cout), lambda n: (0, 0)))

    kernel = functools.partial(fused_residual_block_kernel, H=H, W=W_)

    out = pl.pallas_call(
        kernel,
        out_shape=jax.ShapeDtypeStruct((N, H, W_, C), jnp.float32),
        grid=(N,),
        in_specs=in_specs,
        out_specs=pl.BlockSpec((1, H, W_, C), lambda n: (n, 0, 0, 0)),
        scratch_shapes=[
            pltpu.VMEM((H + 2, W_, 3 * 64), jnp.bfloat16),
            pltpu.VMEM((H + 2, W_, 3 * 128), jnp.bfloat16),
            pltpu.VMEM((H + 2, W_, 3 * 256), jnp.bfloat16),
        ],
        compiler_params=pltpu.CompilerParams(
            dimension_semantics=("parallel",),
            vmem_limit_bytes=32 * 1024 * 1024),
    )(*args)
    # TODO(synk): for large images on v7x (64 MiB VMEM), add an H-tile grid axis with a
    # 5-row halo per side (11x11 receptive field of the 5 chained 3x3 convs), sized so
    # H_tile*W is a multiple of 256 to fill the MXU and feed both TensorCores.
    # TODO(synk): on v5e small-batch serving, hide the ~2.6 MiB step-0 weight DMA
    # (memory_space=pl.ANY + manual make_async_copy of layer k+1 weights during layer k)
    # and single-buffer the constant-index weight blocks (pipeline_mode=pl.Buffered(1)).
    return jnp.transpose(out, (0, 3, 1, 2)).astype(x_nchw.dtype)   # NHWC -> NCHW


def init_params(key):
    """Deterministic weights for the 5 conv layers (HWIO layout)."""
    params = []
    for i in range(NUM_LAYERS):
        cin, cout = CHANS[i], CHANS[i + 1]
        key, kw, kb = jax.random.split(key, 3)
        w = jax.random.normal(kw, (3, 3, cin, cout), jnp.float32) * (1.0 / (3 * 3 * cin)) ** 0.5
        b = jax.random.normal(kb, (cout,), jnp.float32) * 0.01
        params.append((w, b))
    return params


def reference_residual_block_f32(x_nchw, params):
    """Pure-JAX f32 reference (lax.conv)."""
    x = jnp.transpose(x_nchw, (0, 2, 3, 1))
    h = x
    for (w, b) in params:
        h = jax.lax.conv_general_dilated(
            h, w, window_strides=(1, 1), padding="SAME",
            dimension_numbers=("NHWC", "HWIO", "NHWC"))
        h = jnp.maximum(h + b, 0.0)
    return jnp.transpose(x + h, (0, 3, 1, 2))


def reference_residual_block_bf16(x_nchw, params):
    """Reference with the kernel's numerics: bf16 conv operands, f32 accumulation."""
    x = jnp.transpose(x_nchw, (0, 2, 3, 1))
    h = x
    for (w, b) in params:
        h = jax.lax.conv_general_dilated(
            h.astype(jnp.bfloat16), w.astype(jnp.bfloat16),
            window_strides=(1, 1), padding="SAME",
            dimension_numbers=("NHWC", "HWIO", "NHWC"),
            preferred_element_type=jnp.float32)
        h = jnp.maximum(h + b, 0.0)
    return jnp.transpose(x + h, (0, 3, 1, 2))


if __name__ == "__main__":
    key = jax.random.PRNGKey(0)
    kx, kp = jax.random.split(key)
    # Channels fixed at 64 by the module; small batch / spatial, NCHW like PyTorch.
    x = jax.random.normal(kx, (2, 64, 16, 16), jnp.float32)
    params = init_params(kp)

    out = jax.block_until_ready(residual_block(x, params))
    ref_bf16 = jax.block_until_ready(reference_residual_block_bf16(x, params))
    ref_f32 = jax.block_until_ready(reference_residual_block_f32(x, params))

    assert out.shape == x.shape and out.dtype == x.dtype
    # Tight check vs a reference with matching bf16-operand / f32-accum numerics.
    assert jnp.allclose(out, ref_bf16, atol=5e-3, rtol=5e-3), "mismatch vs bf16 reference"
    # Loose sanity check vs the pure-f32 reference (difference = bf16 MXU rounding only).
    assert jnp.allclose(out, ref_f32, atol=1e-1, rtol=1e-1), "mismatch vs f32 reference"
    print("KERNEL_OK")
</pallas_src>

<mosaic_0001>
module attributes {stable_mosaic.version = 11 : i64} {
  func.func @fused_residual_block_kernel(%arg0: i32, %arg1: memref<1x16x16x64xf32, #tpu.memory_space<vmem>>, %arg2: memref<3x192x128xbf16, #tpu.memory_space<vmem>>, %arg3: memref<1x128xf32, #tpu.memory_space<vmem>>, %arg4: memref<3x384x256xbf16, #tpu.memory_space<vmem>>, %arg5: memref<1x256xf32, #tpu.memory_space<vmem>>, %arg6: memref<3x768x256xbf16, #tpu.memory_space<vmem>>, %arg7: memref<1x256xf32, #tpu.memory_space<vmem>>, %arg8: memref<3x768x128xbf16, #tpu.memory_space<vmem>>, %arg9: memref<1x128xf32, #tpu.memory_space<vmem>>, %arg10: memref<3x384x64xbf16, #tpu.memory_space<vmem>>, %arg11: memref<1x64xf32, #tpu.memory_space<vmem>>, %arg12: memref<1x16x16x64xf32, #tpu.memory_space<vmem>>, %arg13: memref<18x16x192xbf16, #tpu.memory_space<vmem>>, %arg14: memref<18x16x384xbf16, #tpu.memory_space<vmem>>, %arg15: memref<18x16x768xbf16, #tpu.memory_space<vmem>>) attributes {dimension_semantics = [#tpu.dimension_semantics<parallel>], iteration_bounds = array<i64: 2>, scalar_prefetch = 0 : i64, scratch_operands = 3 : i64, tpu.core_type = #tpu.core_type<tc>, window_params = [{transform_indices = @transform_0, window_bounds = array<i64: 1, 16, 16, 64>}, {pipeline_mode = #tpu.pipeline_mode<synchronous>, transform_indices = @transform_1, window_bounds = array<i64: 3, 192, 128>}, {pipeline_mode = #tpu.pipeline_mode<synchronous>, transform_indices = @transform_2, window_bounds = array<i64: 1, 128>}, {pipeline_mode = #tpu.pipeline_mode<synchronous>, transform_indices = @transform_3, window_bounds = array<i64: 3, 384, 256>}, {pipeline_mode = #tpu.pipeline_mode<synchronous>, transform_indices = @transform_4, window_bounds = array<i64: 1, 256>}, {pipeline_mode = #tpu.pipeline_mode<synchronous>, transform_indices = @transform_5, window_bounds = array<i64: 3, 768, 256>}, {pipeline_mode = #tpu.pipeline_mode<synchronous>, transform_indices = @transform_6, window_bounds = array<i64: 1, 256>}, {pipeline_mode = #tpu.pipeline_mode<synchronous>, transform_indices = @transform_7, window_bounds = array<i64: 3, 768, 128>}, {pipeline_mode = #tpu.pipeline_mode<synchronous>, transform_indices = @transform_8, window_bounds = array<i64: 1, 128>}, {pipeline_mode = #tpu.pipeline_mode<synchronous>, transform_indices = @transform_9, window_bounds = array<i64: 3, 384, 64>}, {pipeline_mode = #tpu.pipeline_mode<synchronous>, transform_indices = @transform_10, window_bounds = array<i64: 1, 64>}, {transform_indices = @transform_11, window_bounds = array<i64: 1, 16, 16, 64>}]} {
    %cst = arith.constant 0.000000e+00 : bf16
    %0 = vector.broadcast %cst : bf16 to vector<1x16x192xbf16>
    %c0 = arith.constant 0 : index
    %c0_0 = arith.constant 0 : index
    %c0_1 = arith.constant 0 : index
    %1 = vector.load %arg13[%c0, %c0_0, %c0_1] : memref<18x16x192xbf16, #tpu.memory_space<vmem>>, vector<1x16x192xbf16>
    tpu.vector_store %arg13[%c0, %c0_0, %c0_1], %0 {strides = array<i32>} : memref<18x16x192xbf16, #tpu.memory_space<vmem>>, vector<1x16x192xbf16>,
    %c17 = arith.constant 17 : index
    %c0_2 = arith.constant 0 : index
    %c0_3 = arith.constant 0 : index
    %2 = vector.load %arg13[%c17, %c0_2, %c0_3] : memref<18x16x192xbf16, #tpu.memory_space<vmem>>, vector<1x16x192xbf16>
    tpu.vector_store %arg13[%c17, %c0_2, %c0_3], %0 {strides = array<i32>} : memref<18x16x192xbf16, #tpu.memory_space<vmem>>, vector<1x16x192xbf16>,
    %cst_4 = arith.constant 0.000000e+00 : bf16
    %3 = vector.broadcast %cst_4 : bf16 to vector<1x16x384xbf16>
    %c0_5 = arith.constant 0 : index
    %c0_6 = arith.constant 0 : index
    %c0_7 = arith.constant 0 : index
    %4 = vector.load %arg14[%c0_5, %c0_6, %c0_7] : memref<18x16x384xbf16, #tpu.memory_space<vmem>>, vector<1x16x384xbf16>
    tpu.vector_store %arg14[%c0_5, %c0_6, %c0_7], %3 {strides = array<i32>} : memref<18x16x384xbf16, #tpu.memory_space<vmem>>, vector<1x16x384xbf16>,
    %c17_8 = arith.constant 17 : index
    %c0_9 = arith.constant 0 : index
    %c0_10 = arith.constant 0 : index
    %5 = vector.load %arg14[%c17_8, %c0_9, %c0_10] : memref<18x16x384xbf16, #tpu.memory_space<vmem>>, vector<1x16x384xbf16>
    tpu.vector_store %arg14[%c17_8, %c0_9, %c0_10], %3 {strides = array<i32>} : memref<18x16x384xbf16, #tpu.memory_space<vmem>>, vector<1x16x384xbf16>,
    %cst_11 = arith.constant 0.000000e+00 : bf16
    %6 = vector.broadcast %cst_11 : bf16 to vector<1x16x768xbf16>
    %c0_12 = arith.constant 0 : index
    %c0_13 = arith.constant 0 : index
    %c0_14 = arith.constant 0 : index
    %7 = vector.load %arg15[%c0_12, %c0_13, %c0_14] : memref<18x16x768xbf16, #tpu.memory_space<vmem>>, vector<1x16x768xbf16>
    tpu.vector_store %arg15[%c0_12, %c0_13, %c0_14], %6 {strides = array<i32>} : memref<18x16x768xbf16, #tpu.memory_space<vmem>>, vector<1x16x768xbf16>,
    %c17_15 = arith.constant 17 : index
    %c0_16 = arith.constant 0 : index
    %c0_17 = arith.constant 0 : index
    %8 = vector.load %arg15[%c17_15, %c0_16, %c0_17] : memref<18x16x768xbf16, #tpu.memory_space<vmem>>, vector<1x16x768xbf16>
    tpu.vector_store %arg15[%c17_15, %c0_16, %c0_17], %6 {strides = array<i32>} : memref<18x16x768xbf16, #tpu.memory_space<vmem>>, vector<1x16x768xbf16>,
    %c0_18 = arith.constant 0 : index
    %c0_19 = arith.constant 0 : index
    %c0_20 = arith.constant 0 : index
    %c0_21 = arith.constant 0 : index
    %9 = vector.load %arg1[%c0_18, %c0_19, %c0_20, %c0_21] : memref<1x16x16x64xf32, #tpu.memory_space<vmem>>, vector<1x16x16x64xf32>
    %10 = vector.shape_cast %9 : vector<1x16x16x64xf32> to vector<16x16x64xf32>
    %11 = arith.truncf %10 : vector<16x16x64xf32> to vector<16x16x64xbf16>
    %cst_22 = arith.constant 0.000000e+00 : bf16
    %12 = vector.broadcast %cst_22 : bf16 to vector<16x1x64xbf16>
    %13 = vector.extract_strided_slice %11 {offsets = [0, 0, 0], sizes = [16, 15, 64], strides = [1, 1, 1]} : vector<16x16x64xbf16> to vector<16x15x64xbf16>
    %14 = tpu.concatenate %12, %13 in 1 : vector<16x1x64xbf16>, vector<16x15x64xbf16> -> vector<16x16x64xbf16>
    %15 = vector.extract_strided_slice %11 {offsets = [0, 1, 0], sizes = [16, 15, 64], strides = [1, 1, 1]} : vector<16x16x64xbf16> to vector<16x15x64xbf16>
    %16 = tpu.concatenate %15, %12 in 1 : vector<16x15x64xbf16>, vector<16x1x64xbf16> -> vector<16x16x64xbf16>
    %17 = tpu.concatenate %14, %11, %16 in 2 : vector<16x16x64xbf16>, vector<16x16x64xbf16>, vector<16x16x64xbf16> -> vector<16x16x192xbf16>
    %c1 = arith.constant 1 : index
    %c0_23 = arith.constant 0 : index
    %c0_24 = arith.constant 0 : index
    %18 = vector.load %arg13[%c1, %c0_23, %c0_24] : memref<18x16x192xbf16, #tpu.memory_space<vmem>>, vector<16x16x192xbf16>
    tpu.vector_store %arg13[%c1, %c0_23, %c0_24], %17 {strides = array<i32>} : memref<18x16x192xbf16, #tpu.memory_space<vmem>>, vector<16x16x192xbf16>,
    %c0_25 = arith.constant 0 : index
    %c0_26 = arith.constant 0 : index
    %c0_27 = arith.constant 0 : index
    %19 = vector.load %arg13[%c0_25, %c0_26, %c0_27] : memref<18x16x192xbf16, #tpu.memory_space<vmem>>, vector<16x16x192xbf16>
    %20 = vector.shape_cast %19 : vector<16x16x192xbf16> to vector<256x192xbf16>
    %c0_28 = arith.constant 0 : index
    %c0_29 = arith.constant 0 : index
    %c0_30 = arith.constant 0 : index
    %21 = vector.load %arg2[%c0_28, %c0_29, %c0_30] : memref<3x192x128xbf16, #tpu.memory_space<vmem>>, vector<1x192x128xbf16>
    %22 = vector.shape_cast %21 : vector<1x192x128xbf16> to vector<192x128xbf16>
    %cst_31 = arith.constant dense<0.000000e+00> : vector<256x128xf32>
    %23 = tpu.matmul %20, %22, %cst_31 {dimension_numbers = #tpu.dot_dimension_numbers<[1], [0], [0], [1], [0, 0, 1, 1], [], []>} : vector<256x192xbf16>, vector<192x128xbf16>, vector<256x128xf32> -> vector<256x128xf32>
    %c1_32 = arith.constant 1 : index
    %c0_33 = arith.constant 0 : index
    %c0_34 = arith.constant 0 : index
    %24 = vector.load %arg13[%c1_32, %c0_33, %c0_34] : memref<18x16x192xbf16, #tpu.memory_space<vmem>>, vector<16x16x192xbf16>
    %25 = vector.shape_cast %24 : vector<16x16x192xbf16> to vector<256x192xbf16>
    %c1_35 = arith.constant 1 : index
    %c0_36 = arith.constant 0 : index
    %c0_37 = arith.constant 0 : index
    %26 = vector.load %arg2[%c1_35, %c0_36, %c0_37] : memref<3x192x128xbf16, #tpu.memory_space<vmem>>, vector<1x192x128xbf16>
    %27 = vector.shape_cast %26 : vector<1x192x128xbf16> to vector<192x128xbf16>
    %cst_38 = arith.constant dense<0.000000e+00> : vector<256x128xf32>
    %28 = tpu.matmul %25, %27, %cst_38 {dimension_numbers = #tpu.dot_dimension_numbers<[1], [0], [0], [1], [0, 0, 1, 1], [], []>} : vector<256x192xbf16>, vector<192x128xbf16>, vector<256x128xf32> -> vector<256x128xf32>
    %29 = arith.addf %23, %28 : vector<256x128xf32>
    %c2 = arith.constant 2 : index
    %c0_39 = arith.constant 0 : index
    %c0_40 = arith.constant 0 : index
    %30 = vector.load %arg13[%c2, %c0_39, %c0_40] : memref<18x16x192xbf16, #tpu.memory_space<vmem>>, vector<16x16x192xbf16>
    %31 = vector.shape_cast %30 : vector<16x16x192xbf16> to vector<256x192xbf16>
    %c2_41 = arith.constant 2 : index
    %c0_42 = arith.constant 0 : index
    %c0_43 = arith.constant 0 : index
    %32 = vector.load %arg2[%c2_41, %c0_42, %c0_43] : memref<3x192x128xbf16, #tpu.memory_space<vmem>>, vector<1x192x128xbf16>
    %33 = vector.shape_cast %32 : vector<1x192x128xbf16> to vector<192x128xbf16>
    %cst_44 = arith.constant dense<0.000000e+00> : vector<256x128xf32>
    %34 = tpu.matmul %31, %33, %cst_44 {dimension_numbers = #tpu.dot_dimension_numbers<[1], [0], [0], [1], [0, 0, 1, 1], [], []>} : vector<256x192xbf16>, vector<192x128xbf16>, vector<256x128xf32> -> vector<256x128xf32>
    %35 = arith.addf %29, %34 : vector<256x128xf32>
    %c0_45 = arith.constant 0 : index
    %c0_46 = arith.constant 0 : index
    %36 = vector.load %arg3[%c0_45, %c0_46] : memref<1x128xf32, #tpu.memory_space<vmem>>, vector<1x128xf32>
    %37 = vector.broadcast %36 : vector<1x128xf32> to vector<256x128xf32>
    %38 = arith.addf %35, %37 : vector<256x128xf32>
    %cst_47 = arith.constant 0.000000e+00 : f32
    %39 = vector.broadcast %cst_47 : f32 to vector<256x128xf32>
    %40 = arith.maximumf %38, %39 : vector<256x128xf32>
    %41 = vector.shape_cast %40 : vector<256x128xf32> to vector<16x16x128xf32>
    %42 = arith.truncf %41 : vector<16x16x128xf32> to vector<16x16x128xbf16>
    %cst_48 = arith.constant 0.000000e+00 : bf16
    %43 = vector.broadcast %cst_48 : bf16 to vector<16x1x128xbf16>
    %44 = vector.extract_strided_slice %42 {offsets = [0, 0, 0], sizes = [16, 15, 128], strides = [1, 1, 1]} : vector<16x16x128xbf16> to vector<16x15x128xbf16>
    %45 = tpu.concatenate %43, %44 in 1 : vector<16x1x128xbf16>, vector<16x15x128xbf16> -> vector<16x16x128xbf16>
    %46 = vector.extract_strided_slice %42 {offsets = [0, 1, 0], sizes = [16, 15, 128], strides = [1, 1, 1]} : vector<16x16x128xbf16> to vector<16x15x128xbf16>
    %47 = tpu.concatenate %46, %43 in 1 : vector<16x15x128xbf16>, vector<16x1x128xbf16> -> vector<16x16x128xbf16>
    %48 = tpu.concatenate %45, %42, %47 in 2 : vector<16x16x128xbf16>, vector<16x16x128xbf16>, vector<16x16x128xbf16> -> vector<16x16x384xbf16>
    %c1_49 = arith.constant 1 : index
    %c0_50 = arith.constant 0 : index
    %c0_51 = arith.constant 0 : index
    %49 = vector.load %arg14[%c1_49, %c0_50, %c0_51] : memref<18x16x384xbf16, #tpu.memory_space<vmem>>, vector<16x16x384xbf16>
    tpu.vector_store %arg14[%c1_49, %c0_50, %c0_51], %48 {strides = array<i32>} : memref<18x16x384xbf16, #tpu.memory_space<vmem>>, vector<16x16x384xbf16>,
    %c0_52 = arith.constant 0 : index
    %c0_53 = arith.constant 0 : index
    %c0_54 = arith.constant 0 : index
    %50 = vector.load %arg14[%c0_52, %c0_53, %c0_54] : memref<18x16x384xbf16, #tpu.memory_space<vmem>>, vector<16x16x384xbf16>
    %51 = vector.shape_cast %50 : vector<16x16x384xbf16> to vector<256x384xbf16>
    %c0_55 = arith.constant 0 : index
    %c0_56 = arith.constant 0 : index
    %c0_57 = arith.constant 0 : index
    %52 = vector.load %arg4[%c0_55, %c0_56, %c0_57] : memref<3x384x256xbf16, #tpu.memory_space<vmem>>, vector<1x384x256xbf16>
    %53 = vector.shape_cast %52 : vector<1x384x256xbf16> to vector<384x256xbf16>
    %cst_58 = arith.constant dense<0.000000e+00> : vector<256x256xf32>
    %54 = tpu.matmul %51, %53, %cst_58 {dimension_numbers = #tpu.dot_dimension_numbers<[1], [0], [0], [1], [0, 0, 1, 1], [], []>} : vector<256x384xbf16>, vector<384x256xbf16>, vector<256x256xf32> -> vector<256x256xf32>
    %c1_59 = arith.constant 1 : index
    %c0_60 = arith.constant 0 : index
    %c0_61 = arith.constant 0 : index
    %55 = vector.load %arg14[%c1_59, %c0_60, %c0_61] : memref<18x16x384xbf16, #tpu.memory_space<vmem>>, vector<16x16x384xbf16>
    %56 = vector.shape_cast %55 : vector<16x16x384xbf16> to vector<256x384xbf16>
    %c1_62 = arith.constant 1 : index
    %c0_63 = arith.constant 0 : index
    %c0_64 = arith.constant 0 : index
    %57 = vector.load %arg4[%c1_62, %c0_63, %c0_64] : memref<3x384x256xbf16, #tpu.memory_space<vmem>>, vector<1x384x256xbf16>
    %58 = vector.shape_cast %57 : vector<1x384x256xbf16> to vector<384x256xbf16>
    %cst_65 = arith.constant dense<0.000000e+00> : vector<256x256xf32>
    %59 = tpu.matmul %56, %58, %cst_65 {dimension_numbers = #tpu.dot_dimension_numbers<[1], [0], [0], [1], [0, 0, 1, 1], [], []>} : vector<256x384xbf16>, vector<384x256xbf16>, vector<256x256xf32> -> vector<256x256xf32>
    %60 = arith.addf %54, %59 : vector<256x256xf32>
    %c2_66 = arith.constant 2 : index
    %c0_67 = arith.constant 0 : index
    %c0_68 = arith.constant 0 : index
    %61 = vector.load %arg14[%c2_66, %c0_67, %c0_68] : memref<18x16x384xbf16, #tpu.memory_space<vmem>>, vector<16x16x384xbf16>
    %62 = vector.shape_cast %61 : vector<16x16x384xbf16> to vector<256x384xbf16>
    %c2_69 = arith.constant 2 : index
    %c0_70 = arith.constant 0 : index
    %c0_71 = arith.constant 0 : index
    %63 = vector.load %arg4[%c2_69, %c0_70, %c0_71] : memref<3x384x256xbf16, #tpu.memory_space<vmem>>, vector<1x384x256xbf16>
    %64 = vector.shape_cast %63 : vector<1x384x256xbf16> to vector<384x256xbf16>
    %cst_72 = arith.constant dense<0.000000e+00> : vector<256x256xf32>
    %65 = tpu.matmul %62, %64, %cst_72 {dimension_numbers = #tpu.dot_dimension_numbers<[1], [0], [0], [1], [0, 0, 1, 1], [], []>} : vector<256x384xbf16>, vector<384x256xbf16>, vector<256x256xf32> -> vector<256x256xf32>
    %66 = arith.addf %60, %65 : vector<256x256xf32>
    %c0_73 = arith.constant 0 : index
    %c0_74 = arith.constant 0 : index
    %67 = vector.load %arg5[%c0_73, %c0_74] : memref<1x256xf32, #tpu.memory_space<vmem>>, vector<1x256xf32>
    %68 = vector.broadcast %67 : vector<1x256xf32> to vector<256x256xf32>
    %69 = arith.addf %66, %68 : vector<256x256xf32>
    %cst_75 = arith.constant 0.000000e+00 : f32
    %70 = vector.broadcast %cst_75 : f32 to vector<256x256xf32>
    %71 = arith.maximumf %69, %70 : vector<256x256xf32>
    %72 = vector.shape_cast %71 : vector<256x256xf32> to vector<16x16x256xf32>
    %73 = arith.truncf %72 : vector<16x16x256xf32> to vector<16x16x256xbf16>
    %cst_76 = arith.constant 0.000000e+00 : bf16
    %74 = vector.broadcast %cst_76 : bf16 to vector<16x1x256xbf16>
    %75 = vector.extract_strided_slice %73 {offsets = [0, 0, 0], sizes = [16, 15, 256], strides = [1, 1, 1]} : vector<16x16x256xbf16> to vector<16x15x256xbf16>
    %76 = tpu.concatenate %74, %75 in 1 : vector<16x1x256xbf16>, vector<16x15x256xbf16> -> vector<16x16x256xbf16>
    %77 = vector.extract_strided_slice %73 {offsets = [0, 1, 0], sizes = [16, 15, 256], strides = [1, 1, 1]} : vector<16x16x256xbf16> to vector<16x15x256xbf16>
    %78 = tpu.concatenate %77, %74 in 1 : vector<16x15x256xbf16>, vector<16x1x256xbf16> -> vector<16x16x256xbf16>
    %79 = tpu.concatenate %76, %73, %78 in 2 : vector<16x16x256xbf16>, vector<16x16x256xbf16>, vector<16x16x256xbf16> -> vector<16x16x768xbf16>
    %c1_77 = arith.constant 1 : index
    %c0_78 = arith.constant 0 : index
    %c0_79 = arith.constant 0 : index
    %80 = vector.load %arg15[%c1_77, %c0_78, %c0_79] : memref<18x16x768xbf16, #tpu.memory_space<vmem>>, vector<16x16x768xbf16>
    tpu.vector_store %arg15[%c1_77, %c0_78, %c0_79], %79 {strides = array<i32>} : memref<18x16x768xbf16, #tpu.memory_space<vmem>>, vector<16x16x768xbf16>,
    %c0_80 = arith.constant 0 : index
    %c0_81 = arith.constant 0 : index
    %c0_82 = arith.constant 0 : index
    %81 = vector.load %arg15[%c0_80, %c0_81, %c0_82] : memref<18x16x768xbf16, #tpu.memory_space<vmem>>, vector<16x16x768xbf16>
    %82 = vector.shape_cast %81 : vector<16x16x768xbf16> to vector<256x768xbf16>
    %c0_83 = arith.constant 0 : index
    %c0_84 = arith.constant 0 : index
    %c0_85 = arith.constant 0 : index
    %83 = vector.load %arg6[%c0_83, %c0_84, %c0_85] : memref<3x768x256xbf16, #tpu.memory_space<vmem>>, vector<1x768x256xbf16>
    %84 = vector.shape_cast %83 : vector<1x768x256xbf16> to vector<768x256xbf16>
    %cst_86 = arith.constant dense<0.000000e+00> : vector<256x256xf32>
    %85 = tpu.matmul %82, %84, %cst_86 {dimension_numbers = #tpu.dot_dimension_numbers<[1], [0], [0], [1], [0, 0, 1, 1], [], []>} : vector<256x768xbf16>, vector<768x256xbf16>, vector<256x256xf32> -> vector<256x256xf32>
    %c1_87 = arith.constant 1 : index
    %c0_88 = arith.constant 0 : index
    %c0_89 = arith.constant 0 : index
    %86 = vector.load %arg15[%c1_87, %c0_88, %c0_89] : memref<18x16x768xbf16, #tpu.memory_space<vmem>>, vector<16x16x768xbf16>
    %87 = vector.shape_cast %86 : vector<16x16x768xbf16> to vector<256x768xbf16>
    %c1_90 = arith.constant 1 : index
    %c0_91 = arith.constant 0 : index
    %c0_92 = arith.constant 0 : index
    %88 = vector.load %arg6[%c1_90, %c0_91, %c0_92] : memref<3x768x256xbf16, #tpu.memory_space<vmem>>, vector<1x768x256xbf16>
    %89 = vector.shape_cast %88 : vector<1x768x256xbf16> to vector<768x256xbf16>
    %cst_93 = arith.constant dense<0.000000e+00> : vector<256x256xf32>
    %90 = tpu.matmul %87, %89, %cst_93 {dimension_numbers = #tpu.dot_dimension_numbers<[1], [0], [0], [1], [0, 0, 1, 1], [], []>} : vector<256x768xbf16>, vector<768x256xbf16>, vector<256x256xf32> -> vector<256x256xf32>
    %91 = arith.addf %85, %90 : vector<256x256xf32>
    %c2_94 = arith.constant 2 : index
    %c0_95 = arith.constant 0 : index
    %c0_96 = arith.constant 0 : index
    %92 = vector.load %arg15[%c2_94, %c0_95, %c0_96] : memref<18x16x768xbf16, #tpu.memory_space<vmem>>, vector<16x16x768xbf16>
    %93 = vector.shape_cast %92 : vector<16x16x768xbf16> to vector<256x768xbf16>
    %c2_97 = arith.constant 2 : index
    %c0_98 = arith.constant 0 : index
    %c0_99 = arith.constant 0 : index
    %94 = vector.load %arg6[%c2_97, %c0_98, %c0_99] : memref<3x768x256xbf16, #tpu.memory_space<vmem>>, vector<1x768x256xbf16>
    %95 = vector.shape_cast %94 : vector<1x768x256xbf16> to vector<768x256xbf16>
    %cst_100 = arith.constant dense<0.000000e+00> : vector<256x256xf32>
    %96 = tpu.matmul %93, %95, %cst_100 {dimension_numbers = #tpu.dot_dimension_numbers<[1], [0], [0], [1], [0, 0, 1, 1], [], []>} : vector<256x768xbf16>, vector<768x256xbf16>, vector<256x256xf32> -> vector<256x256xf32>
    %97 = arith.addf %91, %96 : vector<256x256xf32>
    %c0_101 = arith.constant 0 : index
    %c0_102 = arith.constant 0 : index
    %98 = vector.load %arg7[%c0_101, %c0_102] : memref<1x256xf32, #tpu.memory_space<vmem>>, vector<1x256xf32>
    %99 = vector.broadcast %98 : vector<1x256xf32> to vector<256x256xf32>
    %100 = arith.addf %97, %99 : vector<256x256xf32>
    %cst_103 = arith.constant 0.000000e+00 : f32
    %101 = vector.broadcast %cst_103 : f32 to vector<256x256xf32>
    %102 = arith.maximumf %100, %101 : vector<256x256xf32>
    %103 = vector.shape_cast %102 : vector<256x256xf32> to vector<16x16x256xf32>
    %104 = arith.truncf %103 : vector<16x16x256xf32> to vector<16x16x256xbf16>
    %cst_104 = arith.constant 0.000000e+00 : bf16
    %105 = vector.broadcast %cst_104 : bf16 to vector<16x1x256xbf16>
    %106 = vector.extract_strided_slice %104 {offsets = [0, 0, 0], sizes = [16, 15, 256], strides = [1, 1, 1]} : vector<16x16x256xbf16> to vector<16x15x256xbf16>
    %107 = tpu.concatenate %105, %106 in 1 : vector<16x1x256xbf16>, vector<16x15x256xbf16> -> vector<16x16x256xbf16>
    %108 = vector.extract_strided_slice %104 {offsets = [0, 1, 0], sizes = [16, 15, 256], strides = [1, 1, 1]} : vector<16x16x256xbf16> to vector<16x15x256xbf16>
    %109 = tpu.concatenate %108, %105 in 1 : vector<16x15x256xbf16>, vector<16x1x256xbf16> -> vector<16x16x256xbf16>
    %110 = tpu.concatenate %107, %104, %109 in 2 : vector<16x16x256xbf16>, vector<16x16x256xbf16>, vector<16x16x256xbf16> -> vector<16x16x768xbf16>
    %c1_105 = arith.constant 1 : index
    %c0_106 = arith.constant 0 : index
    %c0_107 = arith.constant 0 : index
    %111 = vector.load %arg15[%c1_105, %c0_106, %c0_107] : memref<18x16x768xbf16, #tpu.memory_space<vmem>>, vector<16x16x768xbf16>
    tpu.vector_store %arg15[%c1_105, %c0_106, %c0_107], %110 {strides = array<i32>} : memref<18x16x768xbf16, #tpu.memory_space<vmem>>, vector<16x16x768xbf16>,
    %c0_108 = arith.constant 0 : index
    %c0_109 = arith.constant 0 : index
    %c0_110 = arith.constant 0 : index
    %112 = vector.load %arg15[%c0_108, %c0_109, %c0_110] : memref<18x16x768xbf16, #tpu.memory_space<vmem>>, vector<16x16x768xbf16>
    %113 = vector.shape_cast %112 : vector<16x16x768xbf16> to vector<256x768xbf16>
    %c0_111 = arith.constant 0 : index
    %c0_112 = arith.constant 0 : index
    %c0_113 = arith.constant 0 : index
    %114 = vector.load %arg8[%c0_111, %c0_112, %c0_113] : memref<3x768x128xbf16, #tpu.memory_space<vmem>>, vector<1x768x128xbf16>
    %115 = vector.shape_cast %114 : vector<1x768x128xbf16> to vector<768x128xbf16>
    %cst_114 = arith.constant dense<0.000000e+00> : vector<256x128xf32>
    %116 = tpu.matmul %113, %115, %cst_114 {dimension_numbers = #tpu.dot_dimension_numbers<[1], [0], [0], [1], [0, 0, 1, 1], [], []>} : vector<256x768xbf16>, vector<768x128xbf16>, vector<256x128xf32> -> vector<256x128xf32>
    %c1_115 = arith.constant 1 : index
    %c0_116 = arith.constant 0 : index
    %c0_117 = arith.constant 0 : index
    %117 = vector.load %arg15[%c1_115, %c0_116, %c0_117] : memref<18x16x768xbf16, #tpu.memory_space<vmem>>, vector<16x16x768xbf16>
    %118 = vector.shape_cast %117 : vector<16x16x768xbf16> to vector<256x768xbf16>
    %c1_118 = arith.constant 1 : index
    %c0_119 = arith.constant 0 : index
    %c0_120 = arith.constant 0 : index
    %119 = vector.load %arg8[%c1_118, %c0_119, %c0_120] : memref<3x768x128xbf16, #tpu.memory_space<vmem>>, vector<1x768x128xbf16>
    %120 = vector.shape_cast %119 : vector<1x768x128xbf16> to vector<768x128xbf16>
    %cst_121 = arith.constant dense<0.000000e+00> : vector<256x128xf32>
    %121 = tpu.matmul %118, %120, %cst_121 {dimension_numbers = #tpu.dot_dimension_numbers<[1], [0], [0], [1], [0, 0, 1, 1], [], []>} : vector<256x768xbf16>, vector<768x128xbf16>, vector<256x128xf32> -> vector<256x128xf32>
    %122 = arith.addf %116, %121 : vector<256x128xf32>
    %c2_122 = arith.constant 2 : index
    %c0_123 = arith.constant 0 : index
    %c0_124 = arith.constant 0 : index
    %123 = vector.load %arg15[%c2_122, %c0_123, %c0_124] : memref<18x16x768xbf16, #tpu.memory_space<vmem>>, vector<16x16x768xbf16>
    %124 = vector.shape_cast %123 : vector<16x16x768xbf16> to vector<256x768xbf16>
    %c2_125 = arith.constant 2 : index
    %c0_126 = arith.constant 0 : index
    %c0_127 = arith.constant 0 : index
    %125 = vector.load %arg8[%c2_125, %c0_126, %c0_127] : memref<3x768x128xbf16, #tpu.memory_space<vmem>>, vector<1x768x128xbf16>
    %126 = vector.shape_cast %125 : vector<1x768x128xbf16> to vector<768x128xbf16>
    %cst_128 = arith.constant dense<0.000000e+00> : vector<256x128xf32>
    %127 = tpu.matmul %124, %126, %cst_128 {dimension_numbers = #tpu.dot_dimension_numbers<[1], [0], [0], [1], [0, 0, 1, 1], [], []>} : vector<256x768xbf16>, vector<768x128xbf16>, vector<256x128xf32> -> vector<256x128xf32>
    %128 = arith.addf %122, %127 : vector<256x128xf32>
    %c0_129 = arith.constant 0 : index
    %c0_130 = arith.constant 0 : index
    %129 = vector.load %arg9[%c0_129, %c0_130] : memref<1x128xf32, #tpu.memory_space<vmem>>, vector<1x128xf32>
    %130 = vector.broadcast %129 : vector<1x128xf32> to vector<256x128xf32>
    %131 = arith.addf %128, %130 : vector<256x128xf32>
    %cst_131 = arith.constant 0.000000e+00 : f32
    %132 = vector.broadcast %cst_131 : f32 to vector<256x128xf32>
    %133 = arith.maximumf %131, %132 : vector<256x128xf32>
    %134 = vector.shape_cast %133 : vector<256x128xf32> to vector<16x16x128xf32>
    %135 = arith.truncf %134 : vector<16x16x128xf32> to vector<16x16x128xbf16>
    %cst_132 = arith.constant 0.000000e+00 : bf16
    %136 = vector.broadcast %cst_132 : bf16 to vector<16x1x128xbf16>
    %137 = vector.extract_strided_slice %135 {offsets = [0, 0, 0], sizes = [16, 15, 128], strides = [1, 1, 1]} : vector<16x16x128xbf16> to vector<16x15x128xbf16>
    %138 = tpu.concatenate %136, %137 in 1 : vector<16x1x128xbf16>, vector<16x15x128xbf16> -> vector<16x16x128xbf16>
    %139 = vector.extract_strided_slice %135 {offsets = [0, 1, 0], sizes = [16, 15, 128], strides = [1, 1, 1]} : vector<16x16x128xbf16> to vector<16x15x128xbf16>
    %140 = tpu.concatenate %139, %136 in 1 : vector<16x15x128xbf16>, vector<16x1x128xbf16> -> vector<16x16x128xbf16>
    %141 = tpu.concatenate %138, %135, %140 in 2 : vector<16x16x128xbf16>, vector<16x16x128xbf16>, vector<16x16x128xbf16> -> vector<16x16x384xbf16>
    %c1_133 = arith.constant 1 : index
    %c0_134 = arith.constant 0 : index
    %c0_135 = arith.constant 0 : index
    %142 = vector.load %arg14[%c1_133, %c0_134, %c0_135] : memref<18x16x384xbf16, #tpu.memory_space<vmem>>, vector<16x16x384xbf16>
    tpu.vector_store %arg14[%c1_133, %c0_134, %c0_135], %141 {strides = array<i32>} : memref<18x16x384xbf16, #tpu.memory_space<vmem>>, vector<16x16x384xbf16>,
    %c0_136 = arith.constant 0 : index
    %c0_137 = arith.constant 0 : index
    %c0_138 = arith.constant 0 : index
    %143 = vector.load %arg14[%c0_136, %c0_137, %c0_138] : memref<18x16x384xbf16, #tpu.memory_space<vmem>>, vector<16x16x384xbf16>
    %144 = vector.shape_cast %143 : vector<16x16x384xbf16> to vector<256x384xbf16>
    %c0_139 = arith.constant 0 : index
    %c0_140 = arith.constant 0 : index
    %c0_141 = arith.constant 0 : index
    %145 = vector.load %arg10[%c0_139, %c0_140, %c0_141] : memref<3x384x64xbf16, #tpu.memory_space<vmem>>, vector<1x384x64xbf16>
    %146 = vector.shape_cast %145 : vector<1x384x64xbf16> to vector<384x64xbf16>
    %cst_142 = arith.constant dense<0.000000e+00> : vector<256x64xf32>
    %147 = tpu.matmul %144, %146, %cst_142 {dimension_numbers = #tpu.dot_dimension_numbers<[1], [0], [0], [1], [0, 0, 1, 1], [], []>} : vector<256x384xbf16>, vector<384x64xbf16>, vector<256x64xf32> -> vector<256x64xf32>
    %c1_143 = arith.constant 1 : index
    %c0_144 = arith.constant 0 : index
    %c0_145 = arith.constant 0 : index
    %148 = vector.load %arg14[%c1_143, %c0_144, %c0_145] : memref<18x16x384xbf16, #tpu.memory_space<vmem>>, vector<16x16x384xbf16>
    %149 = vector.shape_cast %148 : vector<16x16x384xbf16> to vector<256x384xbf16>
    %c1_146 = arith.constant 1 : index
    %c0_147 = arith.constant 0 : index
    %c0_148 = arith.constant 0 : index
    %150 = vector.load %arg10[%c1_146, %c0_147, %c0_148] : memref<3x384x64xbf16, #tpu.memory_space<vmem>>, vector<1x384x64xbf16>
    %151 = vector.shape_cast %150 : vector<1x384x64xbf16> to vector<384x64xbf16>
    %cst_149 = arith.constant dense<0.000000e+00> : vector<256x64xf32>
    %152 = tpu.matmul %149, %151, %cst_149 {dimension_numbers = #tpu.dot_dimension_numbers<[1], [0], [0], [1], [0, 0, 1, 1], [], []>} : vector<256x384xbf16>, vector<384x64xbf16>, vector<256x64xf32> -> vector<256x64xf32>
    %153 = arith.addf %147, %152 : vector<256x64xf32>
    %c2_150 = arith.constant 2 : index
    %c0_151 = arith.constant 0 : index
    %c0_152 = arith.constant 0 : index
    %154 = vector.load %arg14[%c2_150, %c0_151, %c0_152] : memref<18x16x384xbf16, #tpu.memory_space<vmem>>, vector<16x16x384xbf16>
    %155 = vector.shape_cast %154 : vector<16x16x384xbf16> to vector<256x384xbf16>
    %c2_153 = arith.constant 2 : index
    %c0_154 = arith.constant 0 : index
    %c0_155 = arith.constant 0 : index
    %156 = vector.load %arg10[%c2_153, %c0_154, %c0_155] : memref<3x384x64xbf16, #tpu.memory_space<vmem>>, vector<1x384x64xbf16>
    %157 = vector.shape_cast %156 : vector<1x384x64xbf16> to vector<384x64xbf16>
    %cst_156 = arith.constant dense<0.000000e+00> : vector<256x64xf32>
    %158 = tpu.matmul %155, %157, %cst_156 {dimension_numbers = #tpu.dot_dimension_numbers<[1], [0], [0], [1], [0, 0, 1, 1], [], []>} : vector<256x384xbf16>, vector<384x64xbf16>, vector<256x64xf32> -> vector<256x64xf32>
    %159 = arith.addf %153, %158 : vector<256x64xf32>
    %c0_157 = arith.constant 0 : index
    %c0_158 = arith.constant 0 : index
    %160 = vector.load %arg11[%c0_157, %c0_158] : memref<1x64xf32, #tpu.memory_space<vmem>>, vector<1x64xf32>
    %161 = vector.broadcast %160 : vector<1x64xf32> to vector<256x64xf32>
    %162 = arith.addf %159, %161 : vector<256x64xf32>
    %cst_159 = arith.constant 0.000000e+00 : f32
    %163 = vector.broadcast %cst_159 : f32 to vector<256x64xf32>
    %164 = arith.maximumf %162, %163 : vector<256x64xf32>
    %165 = vector.shape_cast %164 : vector<256x64xf32> to vector<16x16x64xf32>
    %166 = arith.addf %10, %165 : vector<16x16x64xf32>
    %c0_160 = arith.constant 0 : index
    %c0_161 = arith.constant 0 : index
    %c0_162 = arith.constant 0 : index
    %c0_163 = arith.constant 0 : index
    %167 = vector.load %arg12[%c0_160, %c0_161, %c0_162, %c0_163] : memref<1x16x16x64xf32, #tpu.memory_space<vmem>>, vector<1x16x16x64xf32>
    %168 = vector.shape_cast %167 : vector<1x16x16x64xf32> to vector<16x16x64xf32>
    %169 = vector.shape_cast %166 : vector<16x16x64xf32> to vector<1x16x16x64xf32>
    tpu.vector_store %arg12[%c0_160, %c0_161, %c0_162, %c0_163], %169 {strides = array<i32>} : memref<1x16x16x64xf32, #tpu.memory_space<vmem>>, vector<1x16x16x64xf32>,
    return
  }
  func.func @transform_0(%arg0: i32) -> (i32, i32, i32, i32) {
    %c0_i32 = arith.constant 0 : i32
    %c0_i32_0 = arith.constant 0 : i32
    %c0_i32_1 = arith.constant 0 : i32
    %c0_i32_2 = arith.constant 0 : i32
    return %arg0, %c0_i32, %c0_i32_0, %c0_i32_1 : i32, i32, i32, i32
  }
  func.func @transform_1(%arg0: i32) -> (i32, i32, i32) {
    %c0_i32 = arith.constant 0 : i32
    %c0_i32_0 = arith.constant 0 : i32
    %c0_i32_1 = arith.constant 0 : i32
    %c0_i32_2 = arith.constant 0 : i32
    return %c0_i32, %c0_i32_0, %c0_i32_1 : i32, i32, i32
  }
  func.func @transform_2(%arg0: i32) -> (i32, i32) {
    %c0_i32 = arith.constant 0 : i32
    %c0_i32_0 = arith.constant 0 : i32
    %c0_i32_1 = arith.constant 0 : i32
    return %c0_i32, %c0_i32_0 : i32, i32
  }
  func.func @transform_3(%arg0: i32) -> (i32, i32, i32) {
    %c0_i32 = arith.constant 0 : i32
    %c0_i32_0 = arith.constant 0 : i32
    %c0_i32_1 = arith.constant 0 : i32
    %c0_i32_2 = arith.constant 0 : i32
    return %c0_i32, %c0_i32_0, %c0_i32_1 : i32, i32, i32
  }
  func.func @transform_4(%arg0: i32) -> (i32, i32) {
    %c0_i32 = arith.constant 0 : i32
    %c0_i32_0 = arith.constant 0 : i32
    %c0_i32_1 = arith.constant 0 : i32
    return %c0_i32, %c0_i32_0 : i32, i32
  }
  func.func @transform_5(%arg0: i32) -> (i32, i32, i32) {
    %c0_i32 = arith.constant 0 : i32
    %c0_i32_0 = arith.constant 0 : i32
    %c0_i32_1 = arith.constant 0 : i32
    %c0_i32_2 = arith.constant 0 : i32
    return %c0_i32, %c0_i32_0, %c0_i32_1 : i32, i32, i32
  }
  func.func @transform_6(%arg0: i32) -> (i32, i32) {
    %c0_i32 = arith.constant 0 : i32
    %c0_i32_0 = arith.constant 0 : i32
    %c0_i32_1 = arith.constant 0 : i32
    return %c0_i32, %c0_i32_0 : i32, i32
  }
  func.func @transform_7(%arg0: i32) -> (i32, i32, i32) {
    %c0_i32 = arith.constant 0 : i32
    %c0_i32_0 = arith.constant 0 : i32
    %c0_i32_1 = arith.constant 0 : i32
    %c0_i32_2 = arith.constant 0 : i32
    return %c0_i32, %c0_i32_0, %c0_i32_1 : i32, i32, i32
  }
  func.func @transform_8(%arg0: i32) -> (i32, i32) {
    %c0_i32 = arith.constant 0 : i32
    %c0_i32_0 = arith.constant 0 : i32
    %c0_i32_1 = arith.constant 0 : i32
    return %c0_i32, %c0_i32_0 : i32, i32
  }
  func.func @transform_9(%arg0: i32) -> (i32, i32, i32) {
    %c0_i32 = arith.constant 0 : i32
    %c0_i32_0 = arith.constant 0 : i32
    %c0_i32_1 = arith.constant 0 : i32
    %c0_i32_2 = arith.constant 0 : i32
    return %c0_i32, %c0_i32_0, %c0_i32_1 : i32, i32, i32
  }
  func.func @transform_10(%arg0: i32) -> (i32, i32) {
    %c0_i32 = arith.constant 0 : i32
    %c0_i32_0 = arith.constant 0 : i32
    %c0_i32_1 = arith.constant 0 : i32
    return %c0_i32, %c0_i32_0 : i32, i32
  }
  func.func @transform_11(%arg0: i32) -> (i32, i32, i32, i32) {
    %c0_i32 = arith.constant 0 : i32
    %c0_i32_0 = arith.constant 0 : i32
    %c0_i32_1 = arith.constant 0 : i32
    %c0_i32_2 = arith.constant 0 : i32
    return %arg0, %c0_i32, %c0_i32_0, %c0_i32_1 : i32, i32, i32, i32
  }
}

</mosaic_0001>

<bundles_post_ra>
// kernel: residual_block.1
= control target key start
LH: loop header
LB: loop body
LE: loop exit
PB: predicated region body
PF: predicated region fallthrough
CT: control target
= control target key end

     0   :  { %s26852_s0 = inlined_call_operand.vmem [shape: f32[2,16,16,64], index: 0, kind: input, shape index: {}]   ;;  %s26853_s1 = inlined_call_operand.vmem [shape: bf16[3,192,128], index: 1, kind: input, shape index: {}]   ;;  %s26854_s2 = inlined_call_operand.vmem [shape: f32[1,128], index: 2, kind: input, shape index: {}]   ;;  %s26855_s3 = inlined_call_operand.vmem [shape: bf16[3,384,256], index: 3, kind: input, shape index: {}]   ;;  %s26856_s4 = inlined_call_operand.vmem [shape: f32[1,256], index: 4, kind: input, shape index: {}]   ;;  %s26857_s5 = inlined_call_operand.vmem [shape: bf16[3,768,256], index: 5, kind: input, shape index: {}]   ;;  %s26858_s6 = inlined_call_operand.vmem [shape: f32[1,256], index: 6, kind: input, shape index: {}]   ;;  %s26859_s7 = inlined_call_operand.vmem [shape: bf16[3,768,128], index: 7, kind: input, shape index: {}]   ;;  %s26860_s8 = inlined_call_operand.vmem [shape: f32[1,128], index: 8, kind: input, shape index: {}]   ;;  %s26861_s9 = inlined_call_operand.vmem [shape: bf16[3,384,64], index: 9, kind: input, shape index: {}]   ;;  %s26862_s10 = inlined_call_operand.vmem [shape: f32[1,64], index: 10, kind: input, shape index: {}]   ;;  %s26863_s11 = inlined_call_operand.hbm [shape: f32[2,16,16,64], index: 11, kind: output, shape index: {}]  }
   0x1   :  { %27114 = sst [smem:[#allocation149_spill]] %s26852_s0 }
   0x2   :  { %16 = vsyncpa [#allocation6], 0 }
   0x3   :  { %18 = vsyncpa [#allocation6 + $0x1], 0  ;;  %s19947_s17 = smov 0   ;;  %s19949_s18 = smov 0  }
   0x4   :  { %s19951_s19 = smov 0   ;;  %s19953_s20 = smov 0  }
   0x5 LB: > { %s19968_s21 = sadd.s32 4294967295, %s19880_s20   ;;  %s14828_s22 = sadd.s32 4294967294, %s19880_s20   ;;  %s19880_s20 = sphi %s19953_s20, %s27819_s20   ;;  %s19876_s19 = sphi %s19951_s19, %s27818_s19   ;;  %s19872_s18 = sphi %s19949_s18, %s27817_s18   ;;  %s19868_s17 = sphi %s19947_s17, %s27816_s17  }
   0x6   : > { %s19972_s23 = sadd.s32 1, %s19880_s20   ;;  %s267_s24 = sadd.s32 1, %s19876_s19 }
   0x7   : > { %s264_s25 = ssub.s32 %s19880_s20, %s19972_s23  ;;  %p277_p0 = scmp.ne.s32.totalorder %s19876_s19, %s19872_s18 }
   0x8   : > { %p265_p1 = scmp.eq.s32.totalorder %s264_s25, 0  ;;  %p278_p2 = scmp.eq.s32.totalorder %s19968_s21, 1 }
   0x9   : > { %p283_p3 = scmp.ne.s32.totalorder %s19872_s18, %s19868_s17  ;;  %p284_p4 = scmp.eq.s32.totalorder %s14828_s22, 1 }
   0xa   : > { %s19983_s26 = scalar_select %p265_p1, %s19876_s19, %s267_s24  }
   0xb   : > { %p19985_p5 = por %p278_p2, %p277_p0  ;;  %p19989_p6 = por %p284_p4, %p283_p3 }
   0xc   : > { %p14831_p7 = scmp.ge.s32.totalorder %s19880_s20, 1  ;;  %p340_p8 = scmp.lt.s32.totalorder %s19880_s20, 3 }
   0xe   : > { %p341_p9 = pnand %p14831_p7, %p340_p8 }
  0x10   : > { %344 = sbr.rel (%p341_p9) target bundleno = 4119 (0x1017), region = 64 }
  0x17   : > { %p380_p10 = scmp.lt.s32.totalorder %s19968_s21, 1  ;;  %v18828_v0 = vld [vmem:[%s26853_s1] sm:$0xff]   ;;  %v19882_v1 = vmov 0   ;;  %v18829_v2 = vld [vmem:[%s26853_s1 + $0x8] sm:$0xff]   ;;  %vm387_vm0 = vcmask 523264   ;;  %v18831_v4 = vld [vmem:[%s26853_s1 + $0x10] sm:$0xff]  }
  0x18   : > { %1333 = vmatprep.subr.bf16.mxu1 %v19882_v1  ;;  %386 = vst [vmem:[#allocation2] sm:$0xff] %v19882_v1  ;;  %1052 = vmatprep.subr.bf16.mxu0 %v19882_v1  ;;  %v18830_v3 = vld [vmem:[%s26853_s1 + $0x60] sm:$0xff]   ;;  %388 = vst.msk [vmem:[#allocation2 + $0x8] sm:$0xff] %vm387_vm0, %v19882_v1  ;;  %s27117_s0 = sld [smem:[#allocation149_spill]]  ;;  %v18832_v5 = vld [vmem:[%s26853_s1 + $0x68] sm:$0xff]   ;;  %s19883_s15 = smov 64  }
  0x19   : > { %s381_s12 = scalar_select %p380_p10, %s19968_s21, 1  ;;  %1334 = vmatpush1.bf16.msra.mxu1 %v18828_v0  ;;  %391 = vst.msk [vmem:[#allocation2 + $0x118] sm:$0xff] %vm387_vm0, %v19882_v1  ;;  %1053 = vmatpush1.bf16.msra.mxu0 %v18830_v3  ;;  %v18833_v29 = vld [vmem:[%s26853_s1 + $0x18] sm:$0xff]   ;;  %v18834_v34 = vld [vmem:[%s26853_s1 + $0x70] sm:$0xff]   ;;  %v18835_v36 = vld [vmem:[%s26853_s1 + $0x20] sm:$0xff]   ;;  %vm655_vm1 = vcmask 1047552  }
  0x1a   : > { %1335 = vmatprep.subr.bf16.mxu1 %v19882_v1  ;;  %1054 = vmatprep.subr.bf16.mxu0 %v19882_v1  ;;  %v18836_v40 = vld [vmem:[%s26853_s1 + $0x78] sm:$0xff]   ;;  %v18837_v47 = vld [vmem:[%s26853_s1 + $0x28] sm:$0xff]   ;;  %v18838_v50 = vld [vmem:[%s26853_s1 + $0x80] sm:$0xff]   ;;  %vm656_vm2 = vsmask.f32 7424  ;;  %vm588_vm4 = vcmask 1040384  }
  0x1b   : > { %s16199_s22 = sshll.u32 %s381_s12, 8  ;;  %v18839_v60 = vld [vmem:[%s26853_s1 + $0x30] sm:$0xff]   ;;  %v18840_v63 = vld [vmem:[%s26853_s1 + $0x88] sm:$0xff]   ;;  %vm20207_vm3 = vmand %vm655_vm1, %vm656_vm2  ;;  %vm589_vm5 = vsmask.f32 256  ;;  %s377_s29 = sand.u32 1, %s19872_s18  }
  0x1c   : > { %vm20354_vm6 = vmand %vm588_vm4, %vm589_vm5  ;;  %s14832_s12 = sshll.u32 %s377_s29, 8  ;;  %s16200_s14 = sshll.u32 %s19968_s21, 12 }
  0x1d   : > { %1336 = vmatpush1.bf16.msra.mxu1 %v18829_v2  ;;  %1055 = vmatpush1.bf16.msra.mxu0 %v18832_v5  ;;  %s26798_s25 = scalar_lea.hbm %s26863_s11, %s16200_s14  ;;  %s26811_s21 = scalar_lea.sflag [#allocation6], %s377_s29 }
  0x1e   : > { %s20020_s13 = scalar_lea.vmem %s27117_s0, %s16199_s22  ;;  %1337 = vmatprep.subr.bf16.mxu1 %v19882_v1  ;;  %1056 = vmatprep.subr.bf16.mxu0 %v19882_v1  ;;  %s26648_s0 = scalar_lea.vmem [#allocation5], %s14832_s12 }
  0x1f   : > { %v412_v6 = vld [vmem:[%s20020_s13] sm:$0xff]  ;;  %v413_v7 = vld [vmem:[%s20020_s13 + $0x8] sm:$0xff]  ;;  %v414_v8 = vld [vmem:[%s20020_s13 + $0x10] sm:$0xff]  ;;  %s14766_s16 = sshll.u32 %s26648_s0, 4  ;;  %s26800_s16 = int_to_ptr.vmem [resolvable:$true] %s14766_s16 }
  0x20   : > { %v20029_v9 = vpack.c.bf16 %v413_v7, %v412_v6  ;;  %v415_v10 = vld [vmem:[%s20020_s13 + $0x18] sm:$0xff]  ;;  %v416_v11 = vld [vmem:[%s20020_s13 + $0x20] sm:$0xff]  ;;  %v417_v12 = vld [vmem:[%s20020_s13 + $0x28] sm:$0xff]  ;;  %s19818_s30 = scalar_lea.vmem %s26800_s16, 4096 }
  0x21   : > { %v20035_v13 = vpack.c.bf16 %v417_v12, %v416_v11  ;;  %v418_v14 = vld [vmem:[%s20020_s13 + $0x30] sm:$0xff]  ;;  %v419_v15 = vld [vmem:[%s20020_s13 + $0x38] sm:$0xff]  ;;  %v20042_v17 = vpack.c.bf16 %v415_v10, %v414_v8  ;;  %v420_v19 = vld [vmem:[%s20020_s13 + $0x40] sm:$0xff]  ;;  %1338 = vmatpush1.bf16.msra.mxu1 %v18831_v4  ;;  %1057 = vmatpush1.bf16.msra.mxu0 %v18834_v34  ;;  %p19819_p11 = scmp.ne.s32.totalorder %s26800_s16, %s19818_s30 }
  0x22   : > { %690 = vrot.lane.b32.xlu0 %v20029_v9, %s19883_s15  ;;  %v461_v16 = vshrl.u32 %v20029_v9, 16  ;;  %v20046_v18 = vpack.c.bf16 %v419_v15, %v418_v14  ;;  %v421_v20 = vld [vmem:[%s20020_s13 + $0x48] sm:$0xff]  ;;  %v422_v21 = vld [vmem:[%s20020_s13 + $0x50] sm:$0xff]  ;;  %v423_v22 = vld [vmem:[%s20020_s13 + $0x58] sm:$0xff]  ;;  %1339 = vmatprep.subr.bf16.mxu1 %v19882_v1  ;;  %v464_v24 = vshll.u32 %v20029_v9, 16 }
  0x23   : > { %694 = vrot.lane.b32.xlu1 %v20035_v13, %s19883_s15  ;;  %v424_v25 = vld [vmem:[%s20020_s13 + $0x60] sm:$0xff]  ;;  %v425_v26 = vld [vmem:[%s20020_s13 + $0x68] sm:$0xff]  ;;  %v20061_v27 = vpack.c.bf16 %v421_v20, %v420_v19  ;;  %v426_v28 = vld [vmem:[%s20020_s13 + $0x70] sm:$0xff]  ;;  %v468_v31 = vshrl.u32 %v20042_v17, 16  ;;  %v20072_v32 = vpack.c.bf16 %v423_v22, %v422_v21  ;;  %v475_v35 = vshrl.u32 %v20035_v13, 16  ;;  %1058 = vmatprep.subr.bf16.mxu0 %v19882_v1  ;;  %p19820_p12 = pnand %p19819_p11, %p19985_p5 }
  0x24   : > { %v463_v23 = vrot.slane %v461_v16, 7  ;;  %v427_v33 = vld [vmem:[%s20020_s13 + $0x78] sm:$0xff]  ;;  %v482_v37 = vshrl.u32 %v20046_v18, 16  ;;  %v428_v38 = vld [vmem:[%s20020_s13 + $0x80] sm:$0xff]  ;;  %v429_v39 = vld [vmem:[%s20020_s13 + $0x88] sm:$0xff]  ;;  %v20091_v41 = vpack.c.bf16 %v425_v26, %v424_v25  ;;  %v471_v46 = vshll.u32 %v20042_v17, 16 }
  0x25   : > { %1340 = vmatpush1.bf16.msra.mxu1 %v18833_v29  ;;  %v430_v42 = vld [vmem:[%s20020_s13 + $0x90] sm:$0xff]  ;;  %v470_v43 = vrot.slane %v468_v31, 7  ;;  %v20099_v44 = vpack.c.bf16 %v427_v33, %v426_v28  ;;  %v431_v45 = vld [vmem:[%s20020_s13 + $0x98] sm:$0xff]  ;;  %v477_v48 = vrot.slane %v475_v35, 7  ;;  %v432_v49 = vld [vmem:[%s20020_s13 + $0xa0] sm:$0xff]  ;;  %1059 = vmatpush1.bf16.msra.mxu0 %v18836_v40  ;;  %v20117_v52 = vpack.c.bf16 %v429_v39, %v428_v38  ;;  %p19821_p13 = pneg %p19820_p12 }
  0x26   : > { %692 = vrot.lane.b32.xlu0 %v20042_v17, %s19883_s15  ;;  %v20067_v30 = vor.u32 %v464_v24, %v463_v23  ;;  %1341 = vmatprep.subr.bf16.mxu1 %v19882_v1  ;;  %v433_v53 = vld [vmem:[%s20020_s13 + $0xa8] sm:$0xff]  ;;  %v434_v54 = vld [vmem:[%s20020_s13 + $0xb0] sm:$0xff]  ;;  %v435_v55 = vld [vmem:[%s20020_s13 + $0xb8] sm:$0xff]  ;;  %v607_v56 = vrot.slane %v464_v24, 1  ;;  %v478_v57 = vshll.u32 %v20035_v13, 16  ;;  %v484_v58 = vrot.slane %v482_v37, 7 }
  0x27   : > { %696 = vrot.lane.b32.xlu1 %v20046_v18, %s19883_s15  ;;  %v20113_v51 = vor.u32 %v471_v46, %v470_v43  ;;  %1060 = vmatprep.subr.bf16.mxu0 %v19882_v1  ;;  %v20128_v59 = vpack.c.bf16 %v431_v45, %v430_v42  ;;  %v485_v61 = vshll.u32 %v20046_v18, 16  ;;  %v489_v62 = vshrl.u32 %v20061_v27, 16  ;;  %v436_v3 = vld [vmem:[%s20020_s13 + $0xc0] sm:$0xff]  ;;  %v437_v4 = vld [vmem:[%s20020_s13 + $0xc8] sm:$0xff]  ;;  %v18841_v8 = vld [vmem:[%s26853_s1 + $0x38] sm:$0xff]  }
  0x28   : > { %v20138_v0 = vor.u32 %v478_v57, %v477_v48  ;;  %v496_v2 = vshrl.u32 %v20072_v32, 16  ;;  %v503_v6 = vshrl.u32 %v20091_v41, 16  ;;  %v20149_v7 = vpack.c.bf16 %v433_v53, %v432_v49  ;;  %v18842_v11 = vld [vmem:[%s26853_s1 + $0x90] sm:$0xff]   ;;  %v439_v19 = vld [vmem:[%s20020_s13 + $0xd8] sm:$0xff]  ;;  %v18843_v25 = vld [vmem:[%s26853_s1 + $0x40] sm:$0xff]  }
  0x29   : > { %1342 = vmatpush1.bf16.msra.mxu1 %v18835_v36  ;;  %1061 = vmatpush1.bf16.msra.mxu0 %v18838_v50  ;;  %v20144_v5 = vor.u32 %v485_v61, %v484_v58  ;;  %v20157_v10 = vpack.c.bf16 %v435_v55, %v434_v54  ;;  %v438_v12 = vld [vmem:[%s20020_s13 + $0xd0] sm:$0xff]  ;;  %v491_v14 = vrot.slane %v489_v62, 7  ;;  %v492_v15 = vshll.u32 %v20061_v27, 16  ;;  %v440_v29 = vld [vmem:[%s20020_s13 + $0xe0] sm:$0xff]  ;;  %v441_v38 = vld [vmem:[%s20020_s13 + $0xe8] sm:$0xff] }
  0x2a   : > { %698 = vrot.lane.b32.xlu0 %v20061_v27, %s19883_s15  ;;  %1343 = vmatprep.subr.bf16.mxu1 %v19882_v1  ;;  %v609_v20 = vrot.slane %v471_v46, 1  ;;  %v611_v21 = vrot.slane %v478_v57, 1  ;;  %v498_v23 = vrot.slane %v496_v2, 7  ;;  %v20172_v24 = vpack.c.bf16 %v437_v4, %v436_v3  ;;  %v820_v40 = vld [vmem:[#allocation2 + $0x8] sm:$0xff]  ;;  %v442_v49 = vld [vmem:[%s20020_s13 + $0xf0] sm:$0xff]  ;;  %v443_v50 = vld [vmem:[%s20020_s13 + $0xf8] sm:$0xff] }
  0x2b   : > { %700 = vrot.lane.b32.xlu1 %v20072_v32, %s19883_s15  ;;  %1062 = vmatprep.subr.bf16.mxu0 %v19882_v1  ;;  %v20166_v22 = vor.u32 %v492_v15, %v491_v14  ;;  %v608_v26 = vor.u32 %v607_v56, %v461_v16  ;;  %v613_v27 = vrot.slane %v485_v61, 1  ;;  %v20182_v28 = vpack.c.bf16 %v439_v19, %v438_v12  ;;  %v18844_v16 = vld [vmem:[%s26853_s1 + $0x98] sm:$0xff]   ;;  %v18846_v18 = vld [vmem:[%s26853_s1 + $0xa0] sm:$0xff]   ;;  %v18847_v58 = vld [vmem:[%s26853_s1 + $0x50] sm:$0xff]  }
  0x2c   : > { %v615_v33 = vrot.slane %v492_v15, 1  ;;  %v499_v34 = vshll.u32 %v20072_v32, 16  ;;  %v505_v36 = vrot.slane %v503_v6, 7  ;;  %v610_v39 = vor.u32 %v609_v20, %v468_v31  ;;  %14899 = vmatprep.mubr.msk.bf16.mxu1 %vm387_vm0, %v820_v40  ;;  %v18848_v61 = vld [vmem:[%s26853_s1 + $0xa8] sm:$0xff]   ;;  %v18850_v12 = vld [vmem:[%s26853_s1 + $0xb0] sm:$0xff]   ;;  %v18851_v20 = vld [vmem:[%s26853_s1 + $0xb8] sm:$0xff]  }
  0x2d   : > { %1344 = vmatpush1.bf16.msra.mxu1 %v18837_v47  ;;  %1063 = vmatpush1.bf16.msra.mxu0 %v18840_v63  ;;  %v506_v9 = vshll.u32 %v20091_v41, 16  ;;  %v612_v42 = vor.u32 %v611_v21, %v475_v35  ;;  %v20203_v17 = vpack.c.bf16 %v441_v38, %v440_v29  ;;  %v27118_v31 = vmov 0  ;;  %v18845_v35 = vld [vmem:[%s26853_s1 + $0x48] sm:$0xff]  }
  0x2e   : > { %702 = vrot.lane.b32.xlu0 %v20091_v41, %s19883_s15  ;;  %1345 = vmatprep.subr.bf16.mxu1 %v19882_v1  ;;  %v20198_v43 = vor.u32 %v499_v34, %v498_v23  ;;  %v617_v45 = vrot.slane %v499_v34, 1  ;;  %v27119_v31 = vsel %vm20207_vm3, 4294967295, %v27118_v31  ;;  %v658_v46 = vsel %vm20207_vm3, %v608_v26, 0 }
  0x2f   : > { %704 = vrot.lane.b32.xlu1 %v20099_v44, %s19883_s15  ;;  %1064 = vmatprep.subr.bf16.mxu0 %v19882_v1  ;;  %27120 = vst [vmem:[#allocation8_spill] sm:$0xff] %v27119_v31  ;;  %v20211_v13 = vor.u32 %v506_v9, %v505_v36  ;;  %v614_v47 = vor.u32 %v613_v27, %v482_v37  ;;  %788 = vst.msk [vmem:[#allocation2 + $0x18] sm:$0xff] %vm387_vm0, %v658_v46  ;;  %v659_v53 = vsel %vm20207_vm3, %v610_v39, 0 }
  0x30   : > { %v616_v48 = vor.u32 %v615_v33, %v489_v62  ;;  %v618_v54 = vor.u32 %v617_v45, %v496_v2  ;;  %v20234_v37 = vpack.c.bf16 %v443_v50, %v442_v49  ;;  %790 = vst.msk [vmem:[#allocation2 + $0x28] sm:$0xff] %vm387_vm0, %v659_v53  ;;  %v660_v55 = vsel %vm20207_vm3, %v612_v42, 0 }
  0x31   : > { %1346 = vmatpush1.bf16.msra.mxu1 %v18839_v60  ;;  %1065 = vmatpush1.bf16.msra.mxu0 %v18842_v11  ;;  %792 = vst.msk [vmem:[#allocation2 + $0x38] sm:$0xff] %vm387_vm0, %v660_v55  ;;  %v661_v32 = vsel %vm20207_vm3, %v614_v47, 0  ;;  %v510_v57 = vshrl.u32 %v20099_v44, 16  ;;  %v619_v62 = vrot.slane %v506_v9, 1  ;;  %v513_v4 = vshll.u32 %v20099_v44, 16  ;;  %v18849_v11 = vld [vmem:[%s26853_s1 + $0x58] sm:$0xff]  }
  0x32   : > { %706 = vrot.lane.b32.xlu0 %v20117_v52, %s19883_s15  ;;  %1347 = vmatprep.subr.bf16.mxu1 %v19882_v1  ;;  %v662_v56 = vsel %vm20207_vm3, %v616_v48, 0  ;;  %794 = vst.msk [vmem:[#allocation2 + $0x48] sm:$0xff] %vm387_vm0, %v661_v32  ;;  %v663_v60 = vsel %vm20207_vm3, %v618_v54, 0  ;;  %v520_v15 = vshll.u32 %v20117_v52, 16  ;;  %v527_v33 = vshll.u32 %v20128_v59, 16 }
  0x33   : > { %708 = vrot.lane.b32.xlu1 %v20128_v59, %s19883_s15  ;;  %1066 = vmatprep.subr.bf16.mxu0 %v19882_v1  ;;  %796 = vst.msk [vmem:[#allocation2 + $0x58] sm:$0xff] %vm387_vm0, %v662_v56  ;;  %798 = vst.msk [vmem:[#allocation2 + $0x68] sm:$0xff] %vm387_vm0, %v663_v60  ;;  %v512_v63 = vrot.slane %v510_v57, 7  ;;  %v620_v3 = vor.u32 %v619_v62, %v503_v6  ;;  %v621_v6 = vrot.slane %v513_v4, 1  ;;  %v531_v39 = vshrl.u32 %v20149_v7, 16 }
  0x34   : > { %v623_v23 = vrot.slane %v520_v15, 1  ;;  %v625_v36 = vrot.slane %v527_v33, 1  ;;  %v534_v40 = vshll.u32 %v20149_v7, 16  ;;  %v541_v47 = vshll.u32 %v20157_v10, 16 }
  0x35   : > { %1348 = vmatpush1.bf16.msra.mxu1 %v18841_v8  ;;  %1067 = vmatpush1.bf16.msra.mxu0 %v18844_v16  ;;  %v517_v8 = vshrl.u32 %v20117_v52, 16  ;;  %v664_v41 = vsel %vm20207_vm3, %v620_v3, 0  ;;  %v20277_v44 = vor.u32 %v513_v4, %v512_v63  ;;  %v622_v19 = vor.u32 %v621_v6, %v510_v57 }
  0x36   : > { %710 = vrot.lane.b32.xlu0 %v20149_v7, %s19883_s15  ;;  %1349 = vmatprep.subr.bf16.mxu1 %v19882_v1  ;;  %v876_v2 = vld [vmem:[#allocation2 + $0x18] sm:$0xff]  ;;  %800 = vst.msk [vmem:[#allocation2 + $0x78] sm:$0xff] %vm387_vm0, %v664_v41  ;;  %v524_v52 = vshrl.u32 %v20128_v59, 16  ;;  %v533_v16 = vrot.slane %v531_v39, 7  ;;  %v538_v59 = vshrl.u32 %v20157_v10, 16  ;;  %v629_v49 = vrot.slane %v541_v47, 1 }
  0x37   : > { %712 = vrot.lane.b32.xlu1 %v20157_v10, %s19883_s15  ;;  %1068 = vmatprep.subr.bf16.mxu0 %v19882_v1  ;;  %v519_v14 = vrot.slane %v517_v8, 7  ;;  %v624_v26 = vor.u32 %v623_v23, %v517_v8  ;;  %v545_v53 = vshrl.u32 %v20172_v24, 16  ;;  %v548_v54 = vshll.u32 %v20172_v24, 16 }
  0x38   : > { %14871 = vmatprep.mubr.msk.bf16.mxu0 %vm387_vm0, %v876_v2  ;;  %v526_v29 = vrot.slane %v524_v52, 7  ;;  %v626_v38 = vor.u32 %v625_v36, %v524_v52  ;;  %v20306_v42 = vor.u32 %v534_v40, %v533_v16  ;;  %v540_v46 = vrot.slane %v538_v59, 7  ;;  %v18853_v52 = vld [vmem:[%s26853_s1 + $0xc8] sm:$0xff]  }
  0x39   : > { %1350 = vmatpush1.bf16.msra.mxu1 %v18843_v25  ;;  %1069 = vmatpush1.bf16.msra.mxu0 %v18846_v18  ;;  %v20285_v21 = vor.u32 %v520_v15, %v519_v14  ;;  %v665_v25 = vsel %vm20207_vm3, %v622_v19, 0  ;;  %v666_v27 = vsel %vm20207_vm3, %v624_v26, 0  ;;  %v630_v50 = vor.u32 %v629_v49, %v538_v59  ;;  %v18852_v14 = vld [vmem:[%s26853_s1 + $0xc0] sm:$0xff]   ;;  %v878_v19 = vld [vmem:[#allocation2 + $0x28] sm:$0xff]  ;;  %v18855_v59 = vld [vmem:[%s26853_s1 + $0xd8] sm:$0xff]  }
  0x3a   : > { %714 = vrot.lane.b32.xlu0 %v20172_v24, %s19883_s15  ;;  %1351 = vmatprep.subr.bf16.mxu1 %v19882_v1  ;;  %802 = vst.msk [vmem:[#allocation2 + $0x88] sm:$0xff] %vm387_vm0, %v665_v25  ;;  %804 = vst.msk [vmem:[#allocation2 + $0x98] sm:$0xff] %vm387_vm0, %v666_v27  ;;  %v20299_v34 = vor.u32 %v527_v33, %v526_v29  ;;  %v667_v9 = vsel %vm20207_vm3, %v626_v38, 0  ;;  %v20313_v48 = vor.u32 %v541_v47, %v540_v46  ;;  %v27121_v6 = vmov 0  ;;  %v20380_v33 = vld [vmem:[#allocation2] sm:$0xff] }
  0x3b   : > { %716 = vrot.lane.b32.xlu1 %v20182_v28, %s19883_s15  ;;  %1070 = vmatprep.subr.bf16.mxu0 %v19882_v1  ;;  %806 = vst.msk [vmem:[#allocation2 + $0xa8] sm:$0xff] %vm387_vm0, %v667_v9  ;;  %v669_v7 = vsel %vm20207_vm3, %v630_v50, 0  ;;  %v631_v18 = vrot.slane %v548_v54, 1  ;;  %v552_v32 = vshrl.u32 %v20182_v28, 16  ;;  %v555_v56 = vshll.u32 %v20182_v28, 16  ;;  %v882_v50 = vld [vmem:[#allocation2 + $0x48] sm:$0xff] }
  0x3c   : > { %810 = vst.msk [vmem:[#allocation2 + $0xc8] sm:$0xff] %vm387_vm0, %v669_v7  ;;  %v562_v62 = vshll.u32 %v20203_v17, 16  ;;  %v566_v4 = vshrl.u32 %v20234_v37, 16  ;;  %v569_v8 = vshll.u32 %v20234_v37, 16  ;;  %v27122_v6 = vsel %vm20354_vm6, 4294967295, %v27121_v6 }
  0x3d   : > { %1352 = vmatpush1.bf16.msra.mxu1 %v18845_v35  ;;  %1071 = vmatpush1.bf16.msra.mxu0 %v18848_v61  ;;  %v632_v55 = vor.u32 %v631_v18, %v545_v53  ;;  %v633_v57 = vrot.slane %v555_v56, 1  ;;  %v559_v61 = vshrl.u32 %v20203_v17, 16  ;;  %27123 = vst [vmem:[#allocation9_spill] sm:$0xff] %v27122_v6  ;;  %v591_v15 = vsel %vm20354_vm6, 0, %v20067_v30 }
  0x3e   : > { %718 = vrot.lane.b32.xlu0 %v20203_v17, %s19883_s15  ;;  %1353 = vmatprep.subr.bf16.mxu1 %v19882_v1  ;;  %v635_v63 = vrot.slane %v562_v62, 1  ;;  %v592_v27 = vsel %vm20354_vm6, 0, %v20113_v51  ;;  %v595_v9 = vsel %vm20354_vm6, 0, %v20166_v22  ;;  %v596_v16 = vsel %vm20354_vm6, 0, %v20198_v43  ;;  %v18859_v17 = vld [vmem:[%s26853_s1 + $0xf8] sm:$0xff]  }
  0x3f   : > { %720 = vrot.lane.b32.xlu1 %v20234_v37, %s19883_s15  ;;  %1072 = vmatprep.subr.bf16.mxu0 %v19882_v1  ;;  %v670_v10 = vsel %vm20207_vm3, %v632_v55, 0  ;;  %v597_v43 = vsel %vm20354_vm6, 0, %v20211_v13  ;;  %v18856_v13 = vld [vmem:[%s26853_s1 + $0xe0] sm:$0xff]   ;;  %v547_v18 = vrot.slane %v545_v53, 7  ;;  %v600_v55 = vsel %vm20354_vm6, 0, %v20299_v34  ;;  %v18857_v53 = vld [vmem:[%s26853_s1 + $0xe8] sm:$0xff]  }
  0x40   : > { %812 = vst.msk [vmem:[#allocation2 + $0xd8] sm:$0xff] %vm387_vm0, %v670_v10  ;;  %v554_v10 = vrot.slane %v552_v32, 7  ;;  %v568_v24 = vrot.slane %v566_v4, 7  ;;  %s19884_s15 = smov [#allocation5]  }
  0x41   : > { %1354 = vmatpush1.bf16.msra.mxu1 %v18847_v58  ;;  %1073 = vmatpush1.bf16.msra.mxu0 %v18850_v12  ;;  %v634_v58 = vor.u32 %v633_v57, %v552_v32  ;;  %v601_v32 = vsel %vm20354_vm6, 0, %v20306_v42  ;;  %s19822_s12 = sshll.u32 %s19884_s15, 4  ;;  %s19823_s12 = int_to_ptr.vmem [resolvable:$false] %s19822_s12 }
  0x42   : > { %1355 = vmatprep.subr.bf16.mxu1 %v19882_v1  ;;  %1074 = vmatprep.subr.bf16.mxu0 %v19882_v1  ;;  %s19824_s14 = scalar_lea.vmem %s19823_s12, 8192  ;;  %p19825_p0 = scmp.lt.s32.totalorder %s26800_s16, %s19823_s12 }
  0x43   : > { %v671_v60 = vsel %vm20207_vm3, %v634_v58, 0  ;;  %p19826_p1 = scmp.lt.s32.totalorder %s19824_s14, %s19818_s30 }
  0x44   : > { %814 = vst.msk [vmem:[#allocation2 + $0xe8] sm:$0xff] %vm387_vm0, %v671_v60  ;;  %v550_v60 = vor.u32 %v548_v54, %v547_v18  ;;  %v18878_v18 = vld [vmem:[%s26855_s3 + $0x1c4] ss:$8 sps:$4 sm:$0xff]  }
  0x45   : > { %1356 = vmatpush1.bf16.msra.mxu1 %v18849_v11  ;;  %1075 = vmatpush1.bf16.msra.mxu0 %v18851_v20  ;;  %v637_v11 = vrot.slane %v569_v8, 1  ;;  %v593_v20 = vsel %vm20354_vm6, 0, %v20138_v0  ;;  %v594_v0 = vsel %vm20354_vm6, 0, %v20144_v5  ;;  %v18854_v5 = vld [vmem:[%s26853_s1 + $0xd0] sm:$0xff]   ;;  %p19827_p2 = por %p19826_p1, %p19825_p0 }
  0x46   : > { %1672 = vmatprep.subr.bf16.mxu0 %v19882_v1 }
  0x47   : > { %v638_v12 = vor.u32 %v637_v11, %v566_v4  ;;  %v20471_v11 = vld [vmem:[#allocation2 + $0x58] sm:$0xff]  ;;  %p19828_p3 = pnand %p19827_p2, %p19821_p13 }
  0x48   : > { %1366 = vmatmul.mubr.bf16.vlgmr.msra.gmra.mrb[0].mxu1 %v19882_v1  ;;  %v627_v1 = vrot.slane %v534_v40, 1 }
  0x49   : > { %14900 = vmatprep.mubr.msk.bf16.mxu1 %vm387_vm0, %v876_v2  ;;  %v636_v2 = vor.u32 %v635_v63, %v559_v61  ;;  %v673_v41 = vsel %vm20207_vm3, %v638_v12, 0  ;;  %v561_v63 = vrot.slane %v559_v61, 7 }
  0x4a   : > { %v628_v45 = vor.u32 %v627_v1, %v531_v39  ;;  %818 = vst.msk [vmem:[#allocation2 + $0x108] sm:$0xff] %vm387_vm0, %v673_v41  ;;  %v880_v39 = vld [vmem:[#allocation2 + $0x38] sm:$0xff]  ;;  %v571_v41 = vor.u32 %v569_v8, %v568_v24 }
  0x4b   : > { %v672_v3 = vsel %vm20207_vm3, %v636_v2, 0  ;;  %v602_v2 = vsel %vm20354_vm6, 0, %v20313_v48  ;;  %v18858_v48 = vld [vmem:[%s26853_s1 + $0xf0] sm:$0xff]   ;;  %v564_v4 = vor.u32 %v562_v62, %v561_v63  ;;  %v18882_v63 = vld [vmem:[%s26855_s3 + $0x1e0] ss:$8 sps:$4 sm:$0xff]  }
  0x4c   : > { %v668_v35 = vsel %vm20207_vm3, %v628_v45, 0  ;;  %816 = vst.msk [vmem:[#allocation2 + $0xf8] sm:$0xff] %vm387_vm0, %v672_v3  ;;  %v557_v3 = vor.u32 %v555_v56, %v554_v10  ;;  %v603_v56 = vsel %vm20354_vm6, 0, %v550_v60  ;;  %v606_v8 = vsel %vm20354_vm6, 0, %v571_v41  ;;  %v18885_v24 = vld [vmem:[%s26855_s3 + $0x1f0] ss:$8 sps:$4 sm:$0xff]  }
  0x4d   : > { %808 = vst.msk [vmem:[#allocation2 + $0xb8] sm:$0xff] %vm387_vm0, %v668_v35  ;;  %v598_v35 = vsel %vm20354_vm6, 0, %v20277_v44  ;;  %v599_v44 = vsel %vm20354_vm6, 0, %v20285_v21  ;;  %v605_v62 = vsel %vm20354_vm6, 0, %v564_v4  ;;  %v18896_v41 = vld [vmem:[%s26855_s3 + $0x224] ss:$8 sps:$4 sm:$0xff]  }
  0x4e   : > { %v604_v12 = vsel %vm20354_vm6, 0, %v557_v3 }
  0x94   : > { %v691_v23 = vpop.permute.xlu0 %690 }
  0x95   : > { %v724_v25 = vsel %vm387_vm0, %v591_v15, %v691_v23  ;;  %v695_v26 = vpop.permute.xlu1 %694 }
  0x96   : > { %1085 = vmatmul.mubr.bf16.vlgmr.msra.gmra.mrb[0].mxu0 %v724_v25  ;;  %1374 = vmatmul.mubr.bf16.gmra.mrb[4].mxu1 %v724_v25  ;;  %v732_v30 = vsel %vm387_vm0, %v593_v20, %v695_v26  ;;  %v20515_v26 = vld [vmem:[#allocation2 + $0x68] sm:$0xff] }
  0x97   : > { %1673 = vmatpush1.bf16.msra.mxu0 %v18852_v14  ;;  %791 = vst [vmem:[#allocation2 + $0x30] sm:$0xff] %v732_v30  ;;  %14872 = vmatprep.mubr.msk.bf16.mxu0 %vm387_vm0, %v878_v19 }
  0x98   : > { %v693_v29 = vpop.permute.xlu0 %692  ;;  %14901 = vmatprep.mubr.msk.bf16.mxu1 %vm387_vm0, %v878_v19  ;;  %1674 = vmatprep.subr.bf16.mxu0 %v20380_v33 }
  0x99   : > { %v728_v51 = vsel %vm387_vm0, %v592_v27, %v693_v29  ;;  %v697_v36 = vpop.permute.xlu1 %696  ;;  %v18862_v29 = vld [vmem:[%s26853_s1 + $0x110] sm:$0xff]  }
  0x9a   : > { %789 = vst [vmem:[#allocation2 + $0x20] sm:$0xff] %v728_v51  ;;  %v20385_v38 = vsel %vm387_vm0, %v594_v0, %v697_v36  ;;  %v20536_v0 = vld [vmem:[#allocation2 + $0x78] sm:$0xff]  ;;  %v20552_v36 = vld [vmem:[#allocation2 + $0x88] sm:$0xff] }
  0x9b   : > { %1675 = vmatpush1.bf16.msra.mxu0 %v18853_v52  ;;  %793 = vst [vmem:[#allocation2 + $0x40] sm:$0xff] %v20385_v38  ;;  %v18860_v52 = vld [vmem:[%s26853_s1 + $0x100] sm:$0xff]  }
  0x9c   : > { %1676 = vmatprep.subr.bf16.mxu0 %v20380_v33  ;;  %v699_v40 = vpop.permute.xlu0 %698 }
  0x9d   : > { %v20399_v1 = vsel %vm387_vm0, %v595_v9, %v699_v40  ;;  %v701_v45 = vpop.permute.xlu1 %700  ;;  %v20584_v9 = vld [vmem:[#allocation2 + $0xc8] sm:$0xff]  ;;  %v20608_v40 = vld [vmem:[#allocation2 + $0xf8] sm:$0xff] }
  0x9e   : > { %1093 = vmatmul.mubr.bf16.gmra.mrb[4].mxu0 %v728_v51  ;;  %1382 = vmatmul.mubr.bf16.gmra.mrb[8].mxu1 %v728_v51  ;;  %795 = vst [vmem:[#allocation2 + $0x50] sm:$0xff] %v20399_v1  ;;  %v20403_v22 = vsel %vm387_vm0, %v596_v16, %v701_v45  ;;  %v18863_v51 = vld [vmem:[%s26853_s1 + $0x118] sm:$0xff]   ;;  %v20600_v16 = vld [vmem:[#allocation2 + $0xe8] sm:$0xff] }
  0x9f   : > { %14873 = vmatprep.mubr.msk.bf16.mxu0 %vm387_vm0, %v880_v39  ;;  %14902 = vmatprep.mubr.msk.bf16.mxu1 %vm387_vm0, %v880_v39  ;;  %797 = vst [vmem:[#allocation2 + $0x60] sm:$0xff] %v20403_v22  ;;  %v20576_v39 = vld [vmem:[#allocation2 + $0xb8] sm:$0xff]  ;;  %v18866_v45 = vld [vmem:[%s26855_s3 + $0x184] ss:$8 sps:$4 sm:$0xff]  }
  0xa0   : > { %1677 = vmatpush1.bf16.msra.mxu0 %v18854_v5  ;;  %v703_v46 = vpop.permute.xlu0 %702  ;;  %v20592_v5 = vld [vmem:[#allocation2 + $0xd8] sm:$0xff]  ;;  %2642 = vmatprep.subr.bf16.mxu1 %v18866_v45 }
  0xa1   : > { %1678 = vmatprep.subr.bf16.mxu0 %v20380_v33  ;;  %v20419_v47 = vsel %vm387_vm0, %v597_v43, %v703_v46  ;;  %v705_v49 = vpop.permute.xlu1 %704  ;;  %v18869_v43 = vld [vmem:[%s26855_s3 + $0x194] ss:$8 sps:$4 sm:$0xff]   ;;  %v18872_v46 = vld [vmem:[%s26855_s3 + $0x1a4] ss:$8 sps:$4 sm:$0xff]  }
  0xa2   : > { %799 = vst [vmem:[#allocation2 + $0x70] sm:$0xff] %v20419_v47  ;;  %v20426_v7 = vsel %vm387_vm0, %v598_v35, %v705_v49  ;;  %v18870_v35 = vld [vmem:[%s26855_s3 + $0x1a0] ss:$8 sps:$4 sm:$0xff]   ;;  %v18873_v49 = vld [vmem:[%s26855_s3 + $0x1b0] ss:$8 sps:$4 sm:$0xff]  }
  0xa3   : > { %801 = vst [vmem:[#allocation2 + $0x80] sm:$0xff] %v20426_v7  ;;  %v19734_v60 = vld [vmem:[#allocation2 + $0x40] sm:$0xff] }
  0xa4   : > { %1679 = vmatpush1.bf16.msra.mxu0 %v18855_v59  ;;  %v707_v57 = vpop.permute.xlu0 %706  ;;  %v18867_v59 = vld [vmem:[%s26855_s3 + $0x190] ss:$8 sps:$4 sm:$0xff]  }
  0xa5   : > { %1680 = vmatprep.subr.bf16.mxu0 %v20380_v33  ;;  %v20441_v58 = vsel %vm387_vm0, %v599_v44, %v707_v57  ;;  %v709_v21 = vpop.permute.xlu1 %708  ;;  %v18876_v44 = vld [vmem:[%s26855_s3 + $0x1c0] ss:$8 sps:$4 sm:$0xff]   ;;  %v19735_v3 = vld [vmem:[#allocation2 + $0x50] sm:$0xff] }
  0xa6   : > { %1101 = vmatmul.mubr.bf16.gmra.mrb[8].mxu0 %v732_v30  ;;  %1390 = vmatmul.mubr.bf16.gmra.mrb[12].mxu1 %v732_v30  ;;  %803 = vst [vmem:[#allocation2 + $0x90] sm:$0xff] %v20441_v58  ;;  %v20448_v34 = vsel %vm387_vm0, %v600_v55, %v709_v21  ;;  %v18861_v30 = vld [vmem:[%s26853_s1 + $0x108] sm:$0xff]   ;;  %v19732_v55 = vld [vmem:[#allocation2 + $0x30] sm:$0xff] }
  0xa7   : > { %14874 = vmatprep.mubr.msk.bf16.mxu0 %vm387_vm0, %v882_v50  ;;  %14903 = vmatprep.mubr.msk.bf16.mxu1 %vm387_vm0, %v882_v50  ;;  %805 = vst [vmem:[#allocation2 + $0xa0] sm:$0xff] %v20448_v34  ;;  %v18875_v50 = vld [vmem:[%s26855_s3 + $0x1b4] ss:$8 sps:$4 sm:$0xff]   ;;  %v19733_v57 = vld [vmem:[#allocation2 + $0x48] sm:$0xff] }
  0xa8   : > { %1681 = vmatpush1.bf16.msra.mxu0 %v18856_v13  ;;  %v711_v42 = vpop.permute.xlu0 %710  ;;  %v19730_v13 = vld [vmem:[#allocation2 + $0x20] sm:$0xff] }
  0xa9   : > { %1682 = vmatprep.subr.bf16.mxu0 %v20380_v33  ;;  %v20469_v54 = vsel %vm387_vm0, %v601_v32, %v711_v42  ;;  %v713_v61 = vpop.permute.xlu1 %712  ;;  %v18881_v32 = vld [vmem:[%s26855_s3 + $0x1d4] ss:$8 sps:$4 sm:$0xff]  }
  0xaa   : > { %807 = vst [vmem:[#allocation2 + $0xb0] sm:$0xff] %v20469_v54  ;;  %v20478_v28 = vsel %vm387_vm0, %v602_v2, %v713_v61  ;;  %v18884_v2 = vld [vmem:[%s26855_s3 + $0x1e4] ss:$8 sps:$4 sm:$0xff]   ;;  %v18887_v42 = vld [vmem:[%s26855_s3 + $0x1f4] ss:$8 sps:$4 sm:$0xff]  }
  0xab   : > { %809 = vst [vmem:[#allocation2 + $0xc0] sm:$0xff] %v20478_v28  ;;  %v18888_v61 = vld [vmem:[%s26855_s3 + $0x200] ss:$8 sps:$4 sm:$0xff]  }
  0xac   : > { %1683 = vmatpush1.bf16.msra.mxu0 %v18857_v53  ;;  %v715_v14 = vpop.permute.xlu0 %714  ;;  %v19738_v4 = vld [vmem:[#allocation2 + $0x80] sm:$0xff] }
  0xad   : > { %1684 = vmatprep.subr.bf16.mxu0 %v20380_v33  ;;  %v20491_v15 = vsel %vm387_vm0, %v603_v56, %v715_v14  ;;  %v717_v19 = vpop.permute.xlu1 %716  ;;  %v18893_v56 = vld [vmem:[%s26855_s3 + $0x214] ss:$8 sps:$4 sm:$0xff]  }
  0xae   : > { %1109 = vmatmul.mubr.bf16.gmra.mrb[12].mxu0 %v20385_v38  ;;  %1398 = vmatmul.mubr.bf16.gmra.mrb[16].mxu1 %v20385_v38  ;;  %811 = vst [vmem:[#allocation2 + $0xd0] sm:$0xff] %v20491_v15  ;;  %v20500_v37 = vsel %vm387_vm0, %v604_v12, %v717_v19  ;;  %v20560_v38 = vld [vmem:[#allocation2 + $0x98] sm:$0xff]  ;;  %v18894_v12 = vld [vmem:[%s26855_s3 + $0x220] ss:$8 sps:$4 sm:$0xff]   ;;  %v19739_v14 = vld [vmem:[#allocation2 + $0x90] sm:$0xff] }
  0xaf   : > { %14875 = vmatprep.mubr.msk.bf16.mxu0 %vm387_vm0, %v20471_v11  ;;  %14904 = vmatprep.mubr.msk.bf16.mxu1 %vm387_vm0, %v20471_v11  ;;  %813 = vst [vmem:[#allocation2 + $0xe0] sm:$0xff] %v20500_v37  ;;  %v18899_v19 = vld [vmem:[%s26855_s3 + $0x234] ss:$8 sps:$4 sm:$0xff]  }
  0xb0   : > { %1685 = vmatpush1.bf16.msra.mxu0 %v18858_v48  ;;  %v719_v20 = vpop.permute.xlu0 %718  ;;  %v19737_v48 = vld [vmem:[#allocation2 + $0x70] sm:$0xff] }
  0xb1   : > { %1686 = vmatprep.subr.bf16.mxu0 %v20380_v33  ;;  %v20513_v23 = vsel %vm387_vm0, %v605_v62, %v719_v20  ;;  %v721_v25 = vpop.permute.xlu1 %720  ;;  %v18902_v62 = vld [vmem:[%s26855_s3 + $0x244] ss:$8 sps:$4 sm:$0xff]   ;;  %v18903_v20 = vld [vmem:[%s26855_s3 + $0x250] ss:$8 sps:$4 sm:$0xff]  }
  0xb2   : > { %815 = vst [vmem:[#allocation2 + $0xf0] sm:$0xff] %v20513_v23  ;;  %v20522_v27 = vsel %vm387_vm0, %v606_v8, %v721_v25  ;;  %v19741_v8 = vld [vmem:[#allocation2 + $0xb0] sm:$0xff]  ;;  %v19742_v25 = vld [vmem:[#allocation2 + $0xc0] sm:$0xff] }
  0xb3   : > { %817 = vst [vmem:[#allocation2 + $0x100] sm:$0xff] %v20522_v27 }
  0xb4   : > { %1687 = vmatpush1.bf16.msra.mxu0 %v18859_v17  ;;  %v19740_v17 = vld [vmem:[#allocation2 + $0xa0] sm:$0xff] }
  0xb5   : > { %1688 = vmatprep.subr.bf16.mxu0 %v20380_v33 }
  0xb6   : > { %1117 = vmatmul.mubr.bf16.gmra.mrb[16].mxu0 %v20399_v1  ;;  %1406 = vmatmul.mubr.bf16.gmra.mrb[20].mxu1 %v20399_v1  ;;  %v18864_v1 = vld [vmem:[%s26855_s3 + $0x180] ss:$8 sps:$4 sm:$0xff]  }
  0xb7   : > { %14876 = vmatprep.mubr.msk.bf16.mxu0 %vm387_vm0, %v20515_v26  ;;  %14905 = vmatprep.mubr.msk.bf16.mxu1 %vm387_vm0, %v20515_v26 }
  0xb8   : > { %1689 = vmatpush1.bf16.msra.mxu0 %v18860_v52  ;;  %2643 = vmatpush1.bf16.msra.mxu1 %v18864_v1 }
  0xb9   : > { %1690 = vmatprep.subr.bf16.mxu0 %v20380_v33  ;;  %2644 = vmatprep.subr.bf16.mxu1 %v18869_v43 }
  0xbc   : > { %1691 = vmatpush1.bf16.msra.mxu0 %v18861_v30  ;;  %2645 = vmatpush1.bf16.msra.mxu1 %v18867_v59 }
  0xbd   : > { %1692 = vmatprep.subr.bf16.mxu0 %v20380_v33  ;;  %2646 = vmatprep.subr.bf16.mxu1 %v18872_v46 }
  0xbe   : > { %1125 = vmatmul.mubr.bf16.gmra.mrb[20].mxu0 %v20403_v22  ;;  %1414 = vmatmul.mubr.bf16.gmra.mrb[24].mxu1 %v20403_v22  ;;  %v20622_v22 = vld [vmem:[#allocation2 + $0x108] sm:$0xff] }
  0xbf   : > { %14877 = vmatprep.mubr.msk.bf16.mxu0 %vm387_vm0, %v20536_v0  ;;  %14906 = vmatprep.mubr.msk.bf16.mxu1 %vm387_vm0, %v20536_v0 }
  0xc0   : > { %1693 = vmatpush1.bf16.msra.mxu0 %v18862_v29  ;;  %2647 = vmatpush1.bf16.msra.mxu1 %v18870_v35 }
  0xc1   : > { %1694 = vmatprep.subr.bf16.mxu0 %v20380_v33  ;;  %v20568_v33 = vld [vmem:[#allocation2 + $0xa8] sm:$0xff]  ;;  %2648 = vmatprep.subr.bf16.mxu1 %v18875_v50 }
  0xc4   : > { %1695 = vmatpush1.bf16.msra.mxu0 %v18863_v51  ;;  %2649 = vmatpush1.bf16.msra.mxu1 %v18873_v49 }
  0xc5   : > { %2650 = vmatprep.subr.bf16.mxu1 %v18878_v18 }
  0xc6   : > { %1133 = vmatmul.mubr.bf16.gmra.mrb[24].mxu0 %v20419_v47  ;;  %1422 = vmatmul.mubr.bf16.gmra.mrb[28].mxu1 %v20419_v47  ;;  %v19729_v47 = vld [vmem:[#allocation2 + $0x28] sm:$0xff] }
  0xc7   : > { %14878 = vmatprep.mubr.msk.bf16.mxu0 %vm387_vm0, %v20552_v36  ;;  %14907 = vmatprep.mubr.msk.bf16.mxu1 %vm387_vm0, %v20552_v36 }
  0xc8   : > { %2651 = vmatpush1.bf16.msra.mxu1 %v18876_v44  ;;  %v19744_v44 = vld [vmem:[#allocation2 + $0xe0] sm:$0xff] }
  0xc9   : > { %2652 = vmatprep.subr.bf16.mxu1 %v18881_v32 }
  0xce   : > { %1141 = vmatmul.mubr.bf16.gmra.mrb[28].mxu0 %v20426_v7  ;;  %1430 = vmatmul.mubr.bf16.gmra.mrb[32].mxu1 %v20426_v7  ;;  %v19731_v7 = vld [vmem:[#allocation2 + $0x38] sm:$0xff] }
  0xcf   : > { %14879 = vmatprep.mubr.msk.bf16.mxu0 %vm387_vm0, %v20560_v38  ;;  %14908 = vmatprep.mubr.msk.bf16.mxu1 %vm387_vm0, %v20560_v38 }
  0xd6   : > { %1149 = vmatmul.mubr.bf16.gmra.mrb[32].mxu0 %v20441_v58  ;;  %1438 = vmatmul.mubr.bf16.gmra.mrb[36].mxu1 %v20441_v58 }
  0xd7   : > { %14880 = vmatprep.mubr.msk.bf16.mxu0 %vm387_vm0, %v20568_v33  ;;  %14909 = vmatprep.mubr.msk.bf16.mxu1 %vm387_vm0, %v20568_v33 }
  0xde   : > { %1157 = vmatmul.mubr.bf16.gmra.mrb[36].mxu0 %v20448_v34  ;;  %1446 = vmatmul.mubr.bf16.gmra.mrb[40].mxu1 %v20448_v34  ;;  %v18879_v34 = vld [vmem:[%s26855_s3 + $0x1d0] ss:$8 sps:$4 sm:$0xff]  }
  0xdf   : > { %14881 = vmatprep.mubr.msk.bf16.mxu0 %vm387_vm0, %v20576_v39  ;;  %14910 = vmatprep.mubr.msk.bf16.mxu1 %vm387_vm0, %v20576_v39 }
  0xe0   : > { %2653 = vmatpush1.bf16.msra.mxu1 %v18879_v34 }
  0xe1   : > { %2654 = vmatprep.subr.bf16.mxu1 %v18884_v2 }
  0xe4   : > { %2655 = vmatpush1.bf16.msra.mxu1 %v18882_v63  ;;  %v19745_v63 = vld [vmem:[#allocation2 + $0xf0] sm:$0xff] }
  0xe5   : > { %2656 = vmatprep.subr.bf16.mxu1 %v18887_v42 }
  0xe6   : > { %1165 = vmatmul.mubr.bf16.gmra.mrb[40].mxu0 %v20469_v54  ;;  %1454 = vmatmul.mubr.bf16.gmra.mrb[44].mxu1 %v20469_v54  ;;  %v19736_v54 = vld [vmem:[#allocation2 + $0x60] sm:$0xff] }
  0xe7   : > { %14882 = vmatprep.mubr.msk.bf16.mxu0 %vm387_vm0, %v20584_v9  ;;  %14911 = vmatprep.mubr.msk.bf16.mxu1 %vm387_vm0, %v20584_v9 }
  0xe8   : > { %2657 = vmatpush1.bf16.msra.mxu1 %v18885_v24 }
  0xee   : > { %1173 = vmatmul.mubr.bf16.gmra.mrb[44].mxu0 %v20478_v28  ;;  %1462 = vmatmul.mubr.bf16.gmra.mrb[48].mxu1 %v20478_v28  ;;  %v18891_v28 = vld [vmem:[%s26855_s3 + $0x210] ss:$8 sps:$4 sm:$0xff]  }
  0xef   : > { %14883 = vmatprep.mubr.msk.bf16.mxu0 %vm387_vm0, %v20592_v5  ;;  %14912 = vmatprep.mubr.msk.bf16.mxu1 %vm387_vm0, %v20592_v5 }
  0xf6   : > { %1181 = vmatmul.mubr.bf16.gmra.mrb[48].mxu0 %v20491_v15  ;;  %1470 = vmatmul.mubr.bf16.gmra.mrb[52].mxu1 %v20491_v15  ;;  %v18897_v15 = vld [vmem:[%s26855_s3 + $0x230] ss:$8 sps:$4 sm:$0xff]  }
  0xf7   : > { %14884 = vmatprep.mubr.msk.bf16.mxu0 %vm387_vm0, %v20600_v16  ;;  %14913 = vmatprep.mubr.msk.bf16.mxu1 %vm387_vm0, %v20600_v16 }
  0xfe   : > { %1189 = vmatmul.mubr.bf16.gmra.mrb[52].mxu0 %v20500_v37  ;;  %1478 = vmatmul.mubr.bf16.gmra.mrb[56].mxu1 %v20500_v37  ;;  %v18900_v37 = vld [vmem:[%s26855_s3 + $0x240] ss:$8 sps:$4 sm:$0xff]  }
  0xff   : > { %14885 = vmatprep.mubr.msk.bf16.mxu0 %vm387_vm0, %v20608_v40  ;;  %14914 = vmatprep.mubr.msk.bf16.mxu1 %vm387_vm0, %v20608_v40 }
 0x106   : > { %1197 = vmatmul.mubr.bf16.gmra.mrb[56].mxu0 %v20513_v23  ;;  %1486 = vmatmul.mubr.bf16.gmra.mrb[60].mxu1 %v20513_v23  ;;  %v18905_v23 = vld [vmem:[%s26855_s3 + $0x254] ss:$8 sps:$4 sm:$0xff]  }
 0x107   : > { %14886 = vmatprep.mubr.msk.bf16.mxu0 %vm387_vm0, %v20622_v22 }
 0x10e   : > { %1205 = vmatmul.mubr.bf16.gmra.mrb[60].mxu0 %v20522_v27 }
 0x10f   : > { %14951 = vmatprep.mubr.msk.bf16.mxu0 %vm387_vm0, %v19729_v47 }
 0x116   : > { %1705 = vmatmul.mubr.bf16.vlgmr.msra.gmra.mrb[64].mxu0 %v19730_v13 }
 0x117   : > { %14952 = vmatprep.mubr.msk.bf16.mxu0 %vm387_vm0, %v19731_v7  ;;  %v18911_v7 = vld [vmem:[%s26855_s3 + $0x274] ss:$8 sps:$4 sm:$0xff]  }
 0x11b   : > { %v20655_v10 = vpop.f32.mrb[0].mxu1 }
 0x11c   : > { %v1369_v58 = vpop.f32.mrb[1].mxu1 }
 0x11d   : > { %v20658_v21 = vpop.f32.mrb[2].mxu1 }
 0x11e   : > { %1713 = vmatmul.mubr.bf16.gmra.mrb[68].mxu0 %v19732_v55  ;;  %v1372_v53 = vpop.f32.mrb[3].mxu1 }
 0x11f   : > { %14953 = vmatprep.mubr.msk.bf16.mxu0 %vm387_vm0, %v19733_v57 }
 0x126   : > { %1721 = vmatmul.mubr.bf16.gmra.mrb[72].mxu0 %v19734_v60 }
 0x127   : > { %14954 = vmatprep.mubr.msk.bf16.mxu0 %vm387_vm0, %v20471_v11  ;;  %v18890_v11 = vld [vmem:[%s26855_s3 + $0x204] ss:$8 sps:$4 sm:$0xff]  }
 0x128   : > { %2658 = vmatprep.subr.bf16.mxu1 %v18890_v11 }
 0x129   : > { %2659 = vmatpush1.bf16.msra.mxu1 %v18888_v61 }
 0x12a   : > { %2660 = vmatprep.subr.bf16.mxu1 %v18893_v56 }
 0x12d   : > { %2661 = vmatpush1.bf16.msra.mxu1 %v18891_v28 }
 0x12e   : > { %1729 = vmatmul.mubr.bf16.gmra.mrb[76].mxu0 %v19735_v3  ;;  %2662 = vmatprep.subr.bf16.mxu1 %v18896_v41 }
 0x12f   : > { %14955 = vmatprep.mubr.msk.bf16.mxu0 %vm387_vm0, %v20515_v26 }
 0x131   : > { %2663 = vmatpush1.bf16.msra.mxu1 %v18894_v12  ;;  %v19746_v12 = vld [vmem:[#allocation2 + $0x100] sm:$0xff] }
 0x132   : > { %2664 = vmatprep.subr.bf16.mxu1 %v18899_v19 }
 0x135   : > { %2665 = vmatpush1.bf16.msra.mxu1 %v18897_v15 }
 0x136   : > { %1737 = vmatmul.mubr.bf16.gmra.mrb[80].mxu0 %v19736_v54  ;;  %2666 = vmatprep.subr.bf16.mxu1 %v18902_v62 }
 0x137   : > { %14956 = vmatprep.mubr.msk.bf16.mxu0 %vm387_vm0, %v20536_v0 }
 0x139   : > { %2667 = vmatpush1.bf16.msra.mxu1 %v18900_v37 }
 0x13a   : > { %2668 = vmatprep.subr.bf16.mxu1 %v18905_v23  ;;  %v20776_v23 = vld [vmem:[#allocation2] sm:$0xff] }
 0x13d   : > { %2669 = vmatpush1.bf16.msra.mxu1 %v18903_v20 }
 0x13e   : > { %1745 = vmatmul.mubr.bf16.gmra.mrb[84].mxu0 %v19737_v48 }
 0x13f   : > { %14957 = vmatprep.mubr.msk.bf16.mxu0 %vm387_vm0, %v20552_v36 }
 0x146   : > { %1753 = vmatmul.mubr.bf16.gmra.mrb[88].mxu0 %v19738_v4  ;;  %v1526_v4 = vld [vmem:[#allocation2 + $0x118] sm:$0xff] }
 0x147   : > { %14958 = vmatprep.mubr.msk.bf16.mxu0 %vm387_vm0, %v20560_v38 }
 0x14e   : > { %1761 = vmatmul.mubr.bf16.gmra.mrb[92].mxu0 %v19739_v14 }
 0x14f   : > { %14959 = vmatprep.mubr.msk.bf16.mxu0 %vm387_vm0, %v20568_v33 }
 0x156   : > { %1769 = vmatmul.mubr.bf16.gmra.mrb[96].mxu0 %v19740_v17 }
 0x157   : > { %14960 = vmatprep.mubr.msk.bf16.mxu0 %vm387_vm0, %v20576_v39  ;;  %v19743_v39 = vld [vmem:[#allocation2 + $0xd0] sm:$0xff] }
 0x15e   : > { %1777 = vmatmul.mubr.bf16.gmra.mrb[100].mxu0 %v19741_v8 }
 0x15f   : > { %14961 = vmatprep.mubr.msk.bf16.mxu0 %vm387_vm0, %v20584_v9  ;;  %v18906_v9 = vld [vmem:[%s26855_s3 + $0x260] ss:$8 sps:$4 sm:$0xff]  }
 0x166   : > { %1785 = vmatmul.mubr.bf16.gmra.mrb[104].mxu0 %v19742_v25 }
 0x167   : > { %14962 = vmatprep.mubr.msk.bf16.mxu0 %vm387_vm0, %v20592_v5  ;;  %v18908_v5 = vld [vmem:[%s26855_s3 + $0x264] ss:$8 sps:$4 sm:$0xff]  }
 0x168   : > { %2670 = vmatprep.subr.bf16.mxu1 %v18908_v5 }
 0x169   : > { %v1086_v26 = vpop.f32.mrb[0].mxu0  ;;  %v1375_v52 = vpop.f32.mrb[4].mxu1  ;;  %2671 = vmatpush1.bf16.msra.mxu1 %v18906_v9 }
 0x16a   : > { %v20733_v27 = vadd.f32 %v20655_v10, %v1086_v26  ;;  %v1088_v30 = vpop.f32.mrb[1].mxu0  ;;  %v1377_v0 = vpop.f32.mrb[5].mxu1  ;;  %2672 = vmatprep.subr.bf16.mxu1 %v18911_v7 }
 0x16b   : > { %v1089_v29 = vpop.f32.mrb[2].mxu0  ;;  %v1378_v51 = vpop.f32.mrb[6].mxu1 }
 0x16c   : > { %v20736_v36 = vadd.f32 %v20658_v21, %v1089_v29  ;;  %v1091_v38 = vpop.f32.mrb[3].mxu0  ;;  %v1380_v33 = vpop.f32.mrb[7].mxu1 }
 0x16e   : > { %1793 = vmatmul.mubr.bf16.gmra.mrb[108].mxu0 %v19743_v39 }
 0x16f   : > { %14963 = vmatprep.mubr.msk.bf16.mxu0 %vm387_vm0, %v20600_v16  ;;  %v18909_v16 = vld [vmem:[%s26855_s3 + $0x270] ss:$8 sps:$4 sm:$0xff]  }
 0x170   : > { %2673 = vmatpush1.bf16.msra.mxu1 %v18909_v16 }
 0x171   : > { %v1094_v1 = vpop.f32.mrb[4].mxu0  ;;  %v1383_v45 = vpop.f32.mrb[8].mxu1 }
 0x172   : > { %v20746_v59 = vadd.f32 %v1375_v52, %v1094_v1  ;;  %v1096_v43 = vpop.f32.mrb[5].mxu0  ;;  %v1385_v35 = vpop.f32.mrb[9].mxu1 }
 0x173   : > { %v1097_v46 = vpop.f32.mrb[6].mxu0  ;;  %v1386_v47 = vpop.f32.mrb[10].mxu1 }
 0x174   : > { %v20748_v49 = vadd.f32 %v1378_v51, %v1097_v46  ;;  %v1099_v50 = vpop.f32.mrb[7].mxu0  ;;  %v1388_v13 = vpop.f32.mrb[11].mxu1 }
 0x176   : > { %1801 = vmatmul.mubr.bf16.gmra.mrb[112].mxu0 %v19744_v44 }
 0x177   : > { %14964 = vmatprep.mubr.msk.bf16.mxu0 %vm387_vm0, %v20608_v40  ;;  %v18914_v40 = vld [vmem:[%s26855_s3 + $0x284] ss:$8 sps:$4 sm:$0xff]  }
 0x178   : > { %2835 = vmatprep.subr.bf16.mxu1 %v18914_v40 }
 0x179   : > { %v1102_v18 = vpop.f32.mrb[8].mxu0  ;;  %v1391_v55 = vpop.f32.mrb[12].mxu1 }
 0x17a   : > { %v20758_v10 = vadd.f32 %v1383_v45, %v1102_v18  ;;  %v1104_v57 = vpop.f32.mrb[9].mxu0  ;;  %v1393_v58 = vpop.f32.mrb[13].mxu1 }
 0x17b   : > { %v1105_v21 = vpop.f32.mrb[10].mxu0  ;;  %v1394_v53 = vpop.f32.mrb[14].mxu1 }
 0x17c   : > { %v20760_v34 = vadd.f32 %v1386_v47, %v1105_v21  ;;  %v1107_v32 = vpop.f32.mrb[11].mxu0  ;;  %v1396_v60 = vpop.f32.mrb[15].mxu1 }
 0x17e   : > { %1809 = vmatmul.mubr.bf16.gmra.mrb[116].mxu0 %v19745_v63 }
 0x17f   : > { %14965 = vmatprep.mubr.msk.bf16.mxu0 %vm387_vm0, %v20622_v22 }
 0x181   : > { %v1110_v2 = vpop.f32.mrb[12].mxu0  ;;  %v1399_v3 = vpop.f32.mrb[16].mxu1 }
 0x182   : > { %v20767_v24 = vadd.f32 %v1391_v55, %v1110_v2  ;;  %v1112_v42 = vpop.f32.mrb[13].mxu0  ;;  %v1401_v54 = vpop.f32.mrb[17].mxu1 }
 0x183   : > { %v1113_v61 = vpop.f32.mrb[14].mxu0  ;;  %v1402_v11 = vpop.f32.mrb[18].mxu1 }
 0x184   : > { %v20769_v48 = vadd.f32 %v1394_v53, %v1113_v61  ;;  %v1115_v28 = vpop.f32.mrb[15].mxu0  ;;  %v1404_v56 = vpop.f32.mrb[19].mxu1 }
 0x186   : > { %1817 = vmatmul.mubr.bf16.gmra.mrb[120].mxu0 %v19746_v12 }
 0x187   : > { %14966 = vmatprep.mubr.msk.bf16.mxu0 %vm387_vm0, %v1526_v4 }
 0x189   : > { %v1118_v41 = vpop.f32.mrb[16].mxu0  ;;  %v1407_v22 = vpop.f32.mrb[20].mxu1 }
 0x18a   : > { %v20772_v14 = vadd.f32 %v1399_v3, %v1118_v41  ;;  %v1120_v15 = vpop.f32.mrb[17].mxu0  ;;  %v1409_v19 = vpop.f32.mrb[21].mxu1 }
 0x18b   : > { %v1121_v17 = vpop.f32.mrb[18].mxu0  ;;  %v1410_v37 = vpop.f32.mrb[22].mxu1 }
 0x18c   : > { %v20774_v62 = vadd.f32 %v1402_v11, %v1121_v17  ;;  %v1123_v8 = vpop.f32.mrb[19].mxu0  ;;  %v1412_v20 = vpop.f32.mrb[23].mxu1 }
 0x18e   : > { %1825 = vmatmul.mubr.bf16.gmra.mrb[124].mxu0 %v20776_v23 }
 0x191   : > { %v1126_v25 = vpop.f32.mrb[20].mxu0  ;;  %v1415_v26 = vpop.f32.mrb[24].mxu1 }
 0x192   : > { %v20779_v52 = vadd.f32 %v1407_v22, %v1126_v25  ;;  %v1128_v30 = vpop.f32.mrb[21].mxu0  ;;  %v1417_v0 = vpop.f32.mrb[25].mxu1 }
 0x193   : > { %v1129_v29 = vpop.f32.mrb[22].mxu0  ;;  %v1418_v51 = vpop.f32.mrb[26].mxu1 }
 0x194   : > { %v20781_v38 = vadd.f32 %v1410_v37, %v1129_v29  ;;  %v1131_v33 = vpop.f32.mrb[23].mxu0  ;;  %v1420_v39 = vpop.f32.mrb[27].mxu1 }
 0x199   : > { %v1134_v9 = vpop.f32.mrb[24].mxu0  ;;  %v1423_v5 = vpop.f32.mrb[28].mxu1 }
 0x19a   : > { %v20783_v1 = vadd.f32 %v1415_v26, %v1134_v9  ;;  %v1136_v45 = vpop.f32.mrb[25].mxu0  ;;  %v1425_v43 = vpop.f32.mrb[29].mxu1 }
 0x19b   : > { %v1137_v35 = vpop.f32.mrb[26].mxu0  ;;  %v1426_v46 = vpop.f32.mrb[30].mxu1 }
 0x19c   : > { %v20785_v47 = vadd.f32 %v1418_v51, %v1137_v35  ;;  %v1139_v50 = vpop.f32.mrb[27].mxu0  ;;  %v1428_v13 = vpop.f32.mrb[31].mxu1 }
 0x1a1   : > { %v1142_v7 = vpop.f32.mrb[28].mxu0  ;;  %v1431_v44 = vpop.f32.mrb[32].mxu1 }
 0x1a2   : > { %v20787_v16 = vadd.f32 %v1423_v5, %v1142_v7  ;;  %v1144_v18 = vpop.f32.mrb[29].mxu0  ;;  %v1433_v55 = vpop.f32.mrb[33].mxu1 }
 0x1a3   : > { %v1145_v57 = vpop.f32.mrb[30].mxu0  ;;  %v1434_v58 = vpop.f32.mrb[34].mxu1 }
 0x1a4   : > { %v20789_v21 = vadd.f32 %v1426_v46, %v1145_v57  ;;  %v1147_v53 = vpop.f32.mrb[31].mxu0  ;;  %v1436_v32 = vpop.f32.mrb[35].mxu1 }
 0x1a9   : > { %v1150_v60 = vpop.f32.mrb[32].mxu0  ;;  %v1439_v63 = vpop.f32.mrb[36].mxu1 }
 0x1aa   : > { %v20791_v40 = vadd.f32 %v1431_v44, %v1150_v60  ;;  %v1152_v2 = vpop.f32.mrb[33].mxu0  ;;  %v1441_v3 = vpop.f32.mrb[37].mxu1 }
 0x1ab   : > { %v1153_v42 = vpop.f32.mrb[34].mxu0  ;;  %v1442_v54 = vpop.f32.mrb[38].mxu1 }
 0x1ac   : > { %v20793_v61 = vadd.f32 %v1434_v58, %v1153_v42  ;;  %v1155_v11 = vpop.f32.mrb[35].mxu0  ;;  %v1444_v28 = vpop.f32.mrb[39].mxu1 }
 0x1b1   : > { %v1158_v56 = vpop.f32.mrb[36].mxu0  ;;  %v1447_v4 = vpop.f32.mrb[40].mxu1 }
 0x1b2   : > { %v20795_v12 = vadd.f32 %v1439_v63, %v1158_v56  ;;  %v1160_v41 = vpop.f32.mrb[37].mxu0  ;;  %v1449_v22 = vpop.f32.mrb[41].mxu1 }
 0x1b3   : > { %v1161_v15 = vpop.f32.mrb[38].mxu0  ;;  %v1450_v19 = vpop.f32.mrb[42].mxu1 }
 0x1b4   : > { %v20797_v17 = vadd.f32 %v1442_v54, %v1161_v15  ;;  %v1163_v37 = vpop.f32.mrb[39].mxu0  ;;  %v1452_v8 = vpop.f32.mrb[43].mxu1 }
 0x1b9   : > { %v1166_v20 = vpop.f32.mrb[40].mxu0  ;;  %v1455_v25 = vpop.f32.mrb[44].mxu1 }
 0x1ba   : > { %v20799_v26 = vadd.f32 %v1447_v4, %v1166_v20  ;;  %v1168_v30 = vpop.f32.mrb[41].mxu0  ;;  %v1457_v0 = vpop.f32.mrb[45].mxu1 }
 0x1bb   : > { %v1169_v29 = vpop.f32.mrb[42].mxu0  ;;  %v1458_v51 = vpop.f32.mrb[46].mxu1 }
 0x1bc   : > { %v20801_v33 = vadd.f32 %v1450_v19, %v1169_v29  ;;  %v1171_v39 = vpop.f32.mrb[43].mxu0  ;;  %v1460_v9 = vpop.f32.mrb[47].mxu1 }
 0x1c1   : > { %v1174_v5 = vpop.f32.mrb[44].mxu0  ;;  %v1463_v45 = vpop.f32.mrb[48].mxu1 }
 0x1c2   : > { %v20803_v43 = vadd.f32 %v1455_v25, %v1174_v5  ;;  %v1176_v35 = vpop.f32.mrb[45].mxu0  ;;  %v1465_v46 = vpop.f32.mrb[49].mxu1 }
 0x1c3   : > { %v1177_v50 = vpop.f32.mrb[46].mxu0  ;;  %v1466_v13 = vpop.f32.mrb[50].mxu1 }
 0x1c4   : > { %v20805_v7 = vadd.f32 %v1458_v51, %v1177_v50  ;;  %v1179_v44 = vpop.f32.mrb[47].mxu0  ;;  %v1468_v18 = vpop.f32.mrb[51].mxu1 }
 0x1c9   : > { %v1182_v55 = vpop.f32.mrb[48].mxu0  ;;  %v1471_v57 = vpop.f32.mrb[52].mxu1 }
 0x1ca   : > { %v20807_v58 = vadd.f32 %v1463_v45, %v1182_v55  ;;  %v1184_v53 = vpop.f32.mrb[49].mxu0  ;;  %v1473_v32 = vpop.f32.mrb[53].mxu1  ;;  %v20826_v55 = vld [vmem:[%s26854_s2] ss:$0 sm:$0xff] }
 0x1cb   : > { %v1185_v60 = vpop.f32.mrb[50].mxu0  ;;  %v1474_v63 = vpop.f32.mrb[54].mxu1 }
 0x1cc   : > { %v20809_v2 = vadd.f32 %v1466_v13, %v1185_v60  ;;  %v1187_v3 = vpop.f32.mrb[51].mxu0  ;;  %v1476_v42 = vpop.f32.mrb[55].mxu1 }
 0x1d1   : > { %v1190_v54 = vpop.f32.mrb[52].mxu0  ;;  %v1479_v11 = vpop.f32.mrb[56].mxu1 }
 0x1d2   : > { %v20811_v28 = vadd.f32 %v1471_v57, %v1190_v54  ;;  %v1192_v56 = vpop.f32.mrb[53].mxu0  ;;  %v1481_v4 = vpop.f32.mrb[57].mxu1 }
 0x1d3   : > { %v1193_v41 = vpop.f32.mrb[54].mxu0  ;;  %v1482_v22 = vpop.f32.mrb[58].mxu1 }
 0x1d4   : > { %v20813_v15 = vadd.f32 %v1474_v63, %v1193_v41  ;;  %v1195_v19 = vpop.f32.mrb[55].mxu0  ;;  %v1484_v37 = vpop.f32.mrb[59].mxu1 }
 0x1d9   : > { %v1198_v8 = vpop.f32.mrb[56].mxu0  ;;  %v1487_v20 = vpop.f32.mrb[60].mxu1 }
 0x1da   : > { %v20815_v25 = vadd.f32 %v1479_v11, %v1198_v8  ;;  %v1200_v30 = vpop.f32.mrb[57].mxu0  ;;  %v1489_v0 = vpop.f32.mrb[61].mxu1 }
 0x1db   : > { %v1201_v29 = vpop.f32.mrb[58].mxu0  ;;  %v1490_v51 = vpop.f32.mrb[62].mxu1 }
 0x1dc   : > { %v20817_v39 = vadd.f32 %v1482_v22, %v1201_v29  ;;  %v1203_v9 = vpop.f32.mrb[59].mxu0  ;;  %v1492_v5 = vpop.f32.mrb[63].mxu1 }
 0x1dd   : > { %v18912_v9 = vld [vmem:[%s26855_s3 + $0x280] ss:$8 sps:$4 sm:$0xff]  }
 0x1e1   : > { %v1206_v45 = vpop.f32.mrb[60].mxu0 }
 0x1e2   : > { %v20819_v35 = vadd.f32 %v1487_v20, %v1206_v45  ;;  %v1208_v46 = vpop.f32.mrb[61].mxu0 }
 0x1e3   : > { %v1209_v50 = vpop.f32.mrb[62].mxu0  ;;  %v18917_v46 = vld [vmem:[%s26855_s3 + $0x294] ss:$8 sps:$4 sm:$0xff]  }
 0x1e4   : > { %v20821_v13 = vadd.f32 %v1490_v51, %v1209_v50  ;;  %v1211_v44 = vpop.f32.mrb[63].mxu0 }
 0x1e9   : > { %v1706_v18 = vpop.f32.mrb[64].mxu0 }
 0x1ea   : > { %v1833_v57 = vadd.f32 %v1706_v18, %v20733_v27  ;;  %v1708_v53 = vpop.f32.mrb[65].mxu0 }
 0x1eb   : > { %v1709_v32 = vpop.f32.mrb[66].mxu0 }
 0x1ec   : > { %v1872_v60 = vadd.f32 %v20826_v55, %v1833_v57  ;;  %v1834_v63 = vadd.f32 %v1709_v32, %v20736_v36  ;;  %v1711_v3 = vpop.f32.mrb[67].mxu0 }
 0x1ee   : > { %v1873_v42 = vadd.f32 %v20826_v55, %v1834_v63  ;;  %v1904_v54 = vmax.f32 %v1872_v60, 0.0 }
 0x1f0   : > { %v1905_v11 = vmax.f32 %v1873_v42, 0.0  ;;  %v18915_v42 = vld [vmem:[%s26855_s3 + $0x290] ss:$8 sps:$4 sm:$0xff]  }
 0x1f1   : > { %v1714_v56 = vpop.f32.mrb[68].mxu0 }
 0x1f2   : > { %v1835_v4 = vadd.f32 %v1714_v56, %v20746_v59  ;;  %v1716_v41 = vpop.f32.mrb[69].mxu0  ;;  %v20833_v22 = vpack.c.bf16 %v1905_v11, %v1904_v54  ;;  %v18920_v54 = vld [vmem:[%s26855_s3 + $0x2a4] ss:$8 sps:$4 sm:$0xff]  }
 0x1f3   : > { %v1717_v19 = vpop.f32.mrb[70].mxu0 }
 0x1f4   : > { %v1874_v27 = vadd.f32 %v20826_v55, %v1835_v4  ;;  %v1836_v37 = vadd.f32 %v1717_v19, %v20748_v49  ;;  %v1719_v8 = vpop.f32.mrb[71].mxu0  ;;  %2674 = vmatprep.mubr.bf16.mxu1 %v20833_v22  ;;  %v1953_v36 = vshrl.u32 %v20833_v22, 16  ;;  %v1956_v20 = vshll.u32 %v20833_v22, 16 }
 0x1f6   : > { %v1875_v30 = vadd.f32 %v20826_v55, %v1836_v37  ;;  %v1955_v0 = vrot.slane %v1953_v36, 7  ;;  %v2096_v29 = vrot.slane %v1956_v20, 1  ;;  %v1906_v59 = vmax.f32 %v1874_v27, 0.0  ;;  %v18918_v27 = vld [vmem:[%s26855_s3 + $0x2a0] ss:$8 sps:$4 sm:$0xff]  }
 0x1f8   : > { %v1907_v51 = vmax.f32 %v1875_v30, 0.0  ;;  %v1958_v5 = vor.u32 %v1956_v20, %v1955_v0  ;;  %v20844_v45 = vor.u32 %v2096_v29, %v1953_v36  ;;  %v18923_v36 = vld [vmem:[%s26855_s3 + $0x2b4] ss:$8 sps:$4 sm:$0xff]  }
 0x1f9   : > { %v1722_v49 = vpop.f32.mrb[72].mxu0 }
 0x1fa   : > { %v20849_v50 = vpack.c.bf16 %v1907_v51, %v1906_v59  ;;  %v1837_v44 = vadd.f32 %v1722_v49, %v20758_v10  ;;  %v1724_v18 = vpop.f32.mrb[73].mxu0  ;;  %v20854_v57 = vsel %vm20354_vm6, 0, %v1958_v5 }
 0x1fb   : > { %v1725_v53 = vpop.f32.mrb[74].mxu0  ;;  %2675 = vmatmul.mubr.bf16.vlgmr.msra.gmra.mrb[64].mxu1 %v20854_v57 }
 0x1fc   : > { %v1876_v32 = vadd.f32 %v20826_v55, %v1837_v44  ;;  %v1838_v60 = vadd.f32 %v1725_v53, %v20760_v34  ;;  %2836 = vmatpush1.bf16.msra.mxu1 %v18912_v9  ;;  %v1727_v63 = vpop.f32.mrb[75].mxu0  ;;  %2684 = vmatprep.mubr.bf16.mxu1 %v20849_v50  ;;  %v1960_v3 = vshrl.u32 %v20849_v50, 16  ;;  %v1963_v10 = vshll.u32 %v20849_v50, 16  ;;  %v18926_v44 = vld [vmem:[%s26855_s3 + $0x2c4] ss:$8 sps:$4 sm:$0xff]  }
 0x1fd   : > { %2837 = vmatprep.subr.bf16.mxu1 %v18917_v46 }
 0x1fe   : > { %v1877_v11 = vadd.f32 %v20826_v55, %v1838_v60  ;;  %v1962_v34 = vrot.slane %v1960_v3, 7  ;;  %v2098_v56 = vrot.slane %v1963_v10, 1  ;;  %v1908_v4 = vmax.f32 %v1876_v32, 0.0 }
 0x200   : > { %v1909_v41 = vmax.f32 %v1877_v11, 0.0  ;;  %v1965_v19 = vor.u32 %v1963_v10, %v1962_v34  ;;  %2838 = vmatpush1.bf16.msra.mxu1 %v18915_v42  ;;  %v20872_v37 = vor.u32 %v2098_v56, %v1960_v3  ;;  %v18924_v3 = vld [vmem:[%s26855_s3 + $0x2c0] ss:$8 sps:$4 sm:$0xff]  }
 0x201   : > { %v1730_v8 = vpop.f32.mrb[76].mxu0  ;;  %2839 = vmatprep.subr.bf16.mxu1 %v18920_v54  ;;  %v18929_v54 = vld [vmem:[%s26855_s3 + $0x2d4] ss:$8 sps:$4 sm:$0xff]  }
 0x202   : > { %v20877_v20 = vpack.c.bf16 %v1909_v41, %v1908_v4  ;;  %v1839_v30 = vadd.f32 %v1730_v8, %v20767_v24  ;;  %v1732_v0 = vpop.f32.mrb[77].mxu0  ;;  %v20882_v29 = vsel %vm20354_vm6, 0, %v1965_v19  ;;  %v18921_v24 = vld [vmem:[%s26855_s3 + $0x2b0] ss:$8 sps:$4 sm:$0xff]  }
 0x203   : > { %v1733_v59 = vpop.f32.mrb[78].mxu0  ;;  %2685 = vmatmul.mubr.bf16.gmra.mrb[68].mxu1 %v20882_v29  ;;  %v18932_v0 = vld [vmem:[%s26855_s3 + $0x2e4] ss:$8 sps:$4 sm:$0xff]  }
 0x204   : > { %v1878_v51 = vadd.f32 %v20826_v55, %v1839_v30  ;;  %v1840_v9 = vadd.f32 %v1733_v59, %v20769_v48  ;;  %v1735_v5 = vpop.f32.mrb[79].mxu0  ;;  %2694 = vmatprep.mubr.bf16.mxu1 %v20877_v20  ;;  %v1967_v49 = vshrl.u32 %v20877_v20, 16  ;;  %v1970_v46 = vshll.u32 %v20877_v20, 16  ;;  %2840 = vmatpush1.bf16.msra.mxu1 %v18918_v27 }
 0x205   : > { %2841 = vmatprep.subr.bf16.mxu1 %v18923_v36 }
 0x206   : > { %v1879_v18 = vadd.f32 %v20826_v55, %v1840_v9  ;;  %v1969_v48 = vrot.slane %v1967_v49, 7  ;;  %v2100_v53 = vrot.slane %v1970_v46, 1  ;;  %v1910_v32 = vmax.f32 %v1878_v51, 0.0 }
 0x208   : > { %v1911_v60 = vmax.f32 %v1879_v18, 0.0  ;;  %v1972_v63 = vor.u32 %v1970_v46, %v1969_v48  ;;  %2842 = vmatpush1.bf16.msra.mxu1 %v18921_v24  ;;  %v20900_v10 = vor.u32 %v2100_v53, %v1967_v49  ;;  %v18930_v46 = vld [vmem:[%s26855_s3 + $0x2e0] ss:$8 sps:$4 sm:$0xff]   ;;  %v18935_v18 = vld [vmem:[%s26855_s3 + $0x2f4] ss:$8 sps:$4 sm:$0xff]  }
 0x209   : > { %v1738_v42 = vpop.f32.mrb[80].mxu0  ;;  %2843 = vmatprep.subr.bf16.mxu1 %v18926_v44 }
 0x20a   : > { %v20905_v11 = vpack.c.bf16 %v1911_v60, %v1910_v32  ;;  %v1841_v34 = vadd.f32 %v1738_v42, %v20772_v14  ;;  %v1740_v56 = vpop.f32.mrb[81].mxu0  ;;  %v20910_v4 = vsel %vm20354_vm6, 0, %v1972_v63  ;;  %v18927_v14 = vld [vmem:[%s26855_s3 + $0x2d0] ss:$8 sps:$4 sm:$0xff]  }
 0x20b   : > { %v1741_v41 = vpop.f32.mrb[82].mxu0  ;;  %2695 = vmatmul.mubr.bf16.gmra.mrb[72].mxu1 %v20910_v4 }
 0x20c   : > { %v1880_v19 = vadd.f32 %v20826_v55, %v1841_v34  ;;  %v1842_v27 = vadd.f32 %v1741_v41, %v20774_v62  ;;  %v1743_v8 = vpop.f32.mrb[83].mxu0  ;;  %2704 = vmatprep.mubr.bf16.mxu1 %v20905_v11  ;;  %v1974_v36 = vshrl.u32 %v20905_v11, 16  ;;  %v1977_v30 = vshll.u32 %v20905_v11, 16  ;;  %2844 = vmatpush1.bf16.msra.mxu1 %v18924_v3  ;;  %v18938_v41 = vld [vmem:[%s26855_s3 + $0x4] ss:$8 sps:$4 sm:$0xff]  }
 0x20d   : > { %2845 = vmatprep.subr.bf16.mxu1 %v18929_v54 }
 0x20e   : > { %v1881_v59 = vadd.f32 %v20826_v55, %v1842_v27  ;;  %v1976_v62 = vrot.slane %v1974_v36, 7  ;;  %v2102_v51 = vrot.slane %v1977_v30, 1  ;;  %v1912_v9 = vmax.f32 %v1880_v19, 0.0 }
 0x210   : > { %v1913_v5 = vmax.f32 %v1881_v59, 0.0  ;;  %v1979_v49 = vor.u32 %v1977_v30, %v1976_v62  ;;  %2846 = vmatpush1.bf16.msra.mxu1 %v18927_v14  ;;  %v20928_v24 = vor.u32 %v2102_v51, %v1974_v36 }
 0x211   : > { %v1746_v44 = vpop.f32.mrb[84].mxu0  ;;  %2847 = vmatprep.subr.bf16.mxu1 %v18932_v0 }
 0x212   : > { %v20933_v48 = vpack.c.bf16 %v1913_v5, %v1912_v9  ;;  %v1843_v53 = vadd.f32 %v1746_v44, %v20779_v52  ;;  %v1748_v32 = vpop.f32.mrb[85].mxu0  ;;  %v20938_v60 = vsel %vm20354_vm6, 0, %v1979_v49  ;;  %v18933_v52 = vld [vmem:[%s26855_s3 + $0x2f0] ss:$8 sps:$4 sm:$0xff]  }
 0x213   : > { %v1749_v63 = vpop.f32.mrb[86].mxu0  ;;  %2705 = vmatmul.mubr.bf16.gmra.mrb[76].mxu1 %v20938_v60 }
 0x214   : > { %v1882_v3 = vadd.f32 %v20826_v55, %v1843_v53  ;;  %v1844_v42 = vadd.f32 %v1749_v63, %v20781_v38  ;;  %v1751_v54 = vpop.f32.mrb[87].mxu0  ;;  %2714 = vmatprep.mubr.bf16.mxu1 %v20933_v48  ;;  %v1981_v34 = vshrl.u32 %v20933_v48, 16  ;;  %v1984_v56 = vshll.u32 %v20933_v48, 16  ;;  %2848 = vmatpush1.bf16.msra.mxu1 %v18930_v46 }
 0x215   : > { %2849 = vmatprep.subr.bf16.mxu1 %v18935_v18 }
 0x216   : > { %v1883_v19 = vadd.f32 %v20826_v55, %v1844_v42  ;;  %v1983_v38 = vrot.slane %v1981_v34, 7  ;;  %v2104_v27 = vrot.slane %v1984_v56, 1  ;;  %v1914_v8 = vmax.f32 %v1882_v3, 0.0 }
 0x218   : > { %v1915_v36 = vmax.f32 %v1883_v19, 0.0  ;;  %v1986_v30 = vor.u32 %v1984_v56, %v1983_v38  ;;  %2850 = vmatpush1.bf16.msra.mxu1 %v18933_v52  ;;  %v20953_v14 = vor.u32 %v2104_v27, %v1981_v34 }
 0x219   : > { %v1754_v0 = vpop.f32.mrb[88].mxu0  ;;  %3268 = vmatprep.subr.bf16.mxu1 %v18938_v41 }
 0x21a   : > { %v20955_v59 = vpack.c.bf16 %v1915_v36, %v1914_v8  ;;  %v1845_v62 = vadd.f32 %v1754_v0, %v20783_v1  ;;  %v1756_v51 = vpop.f32.mrb[89].mxu0  ;;  %v20960_v9 = vsel %vm20354_vm6, 0, %v1986_v30 }
 0x21b   : > { %v1757_v5 = vpop.f32.mrb[90].mxu0  ;;  %2715 = vmatmul.mubr.bf16.gmra.mrb[80].mxu1 %v20960_v9 }
 0x21c   : > { %v1884_v49 = vadd.f32 %v20826_v55, %v1845_v62  ;;  %v1846_v46 = vadd.f32 %v1757_v5, %v20785_v47  ;;  %v1759_v44 = vpop.f32.mrb[91].mxu0  ;;  %2724 = vmatprep.mubr.bf16.mxu1 %v20955_v59  ;;  %v1988_v18 = vshrl.u32 %v20955_v59, 16  ;;  %v1991_v53 = vshll.u32 %v20955_v59, 16 }
 0x21e   : > { %v1885_v1 = vadd.f32 %v20826_v55, %v1846_v46  ;;  %v1990_v32 = vrot.slane %v1988_v18, 7  ;;  %v2106_v63 = vrot.slane %v1991_v53, 1  ;;  %v1916_v3 = vmax.f32 %v1884_v49, 0.0 }
 0x220   : > { %v1917_v42 = vmax.f32 %v1885_v1, 0.0  ;;  %v1993_v54 = vor.u32 %v1991_v53, %v1990_v32  ;;  %v20969_v34 = vor.u32 %v2106_v63, %v1988_v18 }
 0x221   : > { %v1762_v56 = vpop.f32.mrb[92].mxu0 }
 0x222   : > { %v20971_v52 = vpack.c.bf16 %v1917_v42, %v1916_v3  ;;  %v1847_v47 = vadd.f32 %v1762_v56, %v20787_v16  ;;  %v1764_v41 = vpop.f32.mrb[93].mxu0  ;;  %v20976_v19 = vsel %vm20354_vm6, 0, %v1993_v54 }
 0x223   : > { %v1765_v38 = vpop.f32.mrb[94].mxu0  ;;  %2725 = vmatmul.mubr.bf16.gmra.mrb[84].mxu1 %v20976_v19 }
 0x224   : > { %v1886_v27 = vadd.f32 %v20826_v55, %v1847_v47  ;;  %v1848_v8 = vadd.f32 %v1765_v38, %v20789_v21  ;;  %v1767_v36 = vpop.f32.mrb[95].mxu0  ;;  %2734 = vmatprep.mubr.bf16.mxu1 %v20971_v52  ;;  %v1995_v30 = vshrl.u32 %v20971_v52, 16  ;;  %v1998_v0 = vshll.u32 %v20971_v52, 16 }
 0x226   : > { %v1887_v16 = vadd.f32 %v20826_v55, %v1848_v8  ;;  %v1997_v62 = vrot.slane %v1995_v30, 7  ;;  %v2108_v51 = vrot.slane %v1998_v0, 1  ;;  %v1918_v5 = vmax.f32 %v1886_v27, 0.0 }
 0x228   : > { %v1919_v49 = vmax.f32 %v1887_v16, 0.0  ;;  %v2000_v46 = vor.u32 %v1998_v0, %v1997_v62  ;;  %v20985_v44 = vor.u32 %v2108_v51, %v1995_v30 }
 0x229   : > { %v1770_v18 = vpop.f32.mrb[96].mxu0 }
 0x22a   : > { %v20987_v53 = vpack.c.bf16 %v1919_v49, %v1918_v5  ;;  %v1849_v21 = vadd.f32 %v1770_v18, %v20791_v40  ;;  %v1772_v1 = vpop.f32.mrb[97].mxu0  ;;  %v20992_v32 = vsel %vm20354_vm6, 0, %v2000_v46 }
 0x22b   : > { %v1773_v63 = vpop.f32.mrb[98].mxu0  ;;  %2735 = vmatmul.mubr.bf16.gmra.mrb[88].mxu1 %v20992_v32 }
 0x22c   : > { %v1888_v3 = vadd.f32 %v20826_v55, %v1849_v21  ;;  %v1850_v42 = vadd.f32 %v1773_v63, %v20793_v61  ;;  %v1775_v54 = vpop.f32.mrb[99].mxu0  ;;  %2744 = vmatprep.mubr.bf16.mxu1 %v20987_v53  ;;  %v2002_v56 = vshrl.u32 %v20987_v53, 16  ;;  %v2005_v47 = vshll.u32 %v20987_v53, 16 }
 0x22e   : > { %v1889_v40 = vadd.f32 %v20826_v55, %v1850_v42  ;;  %v2004_v41 = vrot.slane %v2002_v56, 7  ;;  %v2110_v38 = vrot.slane %v2005_v47, 1  ;;  %v1920_v27 = vmax.f32 %v1888_v3, 0.0 }
 0x230   : > { %v1921_v8 = vmax.f32 %v1889_v40, 0.0  ;;  %v2007_v36 = vor.u32 %v2005_v47, %v2004_v41  ;;  %v21001_v30 = vor.u32 %v2110_v38, %v2002_v56 }
 0x231   : > { %v1778_v0 = vpop.f32.mrb[100].mxu0 }
 0x232   : > { %v21003_v16 = vpack.c.bf16 %v1921_v8, %v1920_v27  ;;  %v1851_v61 = vadd.f32 %v1778_v0, %v20795_v12  ;;  %v1780_v62 = vpop.f32.mrb[101].mxu0  ;;  %v21008_v51 = vsel %vm20354_vm6, 0, %v2007_v36 }
 0x233   : > { %v1781_v5 = vpop.f32.mrb[102].mxu0  ;;  %2745 = vmatmul.mubr.bf16.gmra.mrb[92].mxu1 %v21008_v51 }
 0x234   : > { %v1890_v49 = vadd.f32 %v20826_v55, %v1851_v61  ;;  %v1852_v46 = vadd.f32 %v1781_v5, %v20797_v17  ;;  %v1783_v18 = vpop.f32.mrb[103].mxu0  ;;  %2754 = vmatprep.mubr.bf16.mxu1 %v21003_v16  ;;  %v2009_v21 = vshrl.u32 %v21003_v16, 16  ;;  %v2012_v1 = vshll.u32 %v21003_v16, 16 }
 0x236   : > { %v1891_v12 = vadd.f32 %v20826_v55, %v1852_v46  ;;  %v2011_v63 = vrot.slane %v2009_v21, 7  ;;  %v2112_v3 = vrot.slane %v2012_v1, 1  ;;  %v1922_v42 = vmax.f32 %v1890_v49, 0.0 }
 0x238   : > { %v1923_v54 = vmax.f32 %v1891_v12, 0.0  ;;  %v2014_v56 = vor.u32 %v2012_v1, %v2011_v63  ;;  %v21017_v47 = vor.u32 %v2112_v3, %v2009_v21 }
 0x239   : > { %v1786_v40 = vpop.f32.mrb[104].mxu0 }
 0x23a   : > { %v21019_v41 = vpack.c.bf16 %v1923_v54, %v1922_v42  ;;  %v1853_v17 = vadd.f32 %v1786_v40, %v20799_v26  ;;  %v1788_v38 = vpop.f32.mrb[105].mxu0  ;;  %v21024_v27 = vsel %vm20354_vm6, 0, %v2014_v56 }
 0x23b   : > { %v1789_v8 = vpop.f32.mrb[106].mxu0  ;;  %2755 = vmatmul.mubr.bf16.gmra.mrb[96].mxu1 %v21024_v27 }
 0x23c   : > { %v1892_v36 = vadd.f32 %v20826_v55, %v1853_v17  ;;  %v1854_v0 = vadd.f32 %v1789_v8, %v20801_v33  ;;  %v1791_v61 = vpop.f32.mrb[107].mxu0  ;;  %2764 = vmatprep.mubr.bf16.mxu1 %v21019_v41  ;;  %v2016_v62 = vshrl.u32 %v21019_v41, 16  ;;  %v2019_v5 = vshll.u32 %v21019_v41, 16 }
 0x23e   : > { %v1893_v26 = vadd.f32 %v20826_v55, %v1854_v0  ;;  %v2018_v49 = vrot.slane %v2016_v62, 7  ;;  %v2114_v46 = vrot.slane %v2019_v5, 1  ;;  %v1924_v18 = vmax.f32 %v1892_v36, 0.0 }
 0x240   : > { %v1925_v21 = vmax.f32 %v1893_v26, 0.0  ;;  %v2021_v1 = vor.u32 %v2019_v5, %v2018_v49  ;;  %v21033_v12 = vor.u32 %v2114_v46, %v2016_v62 }
 0x241   : > { %v1794_v63 = vpop.f32.mrb[108].mxu0 }
 0x242   : > { %v21035_v3 = vpack.c.bf16 %v1925_v21, %v1924_v18  ;;  %v1855_v33 = vadd.f32 %v1794_v63, %v20803_v43  ;;  %v1796_v42 = vpop.f32.mrb[109].mxu0  ;;  %v21040_v54 = vsel %vm20354_vm6, 0, %v2021_v1 }
 0x243   : > { %v1797_v56 = vpop.f32.mrb[110].mxu0  ;;  %2765 = vmatmul.mubr.bf16.gmra.mrb[100].mxu1 %v21040_v54 }
 0x244   : > { %v1894_v40 = vadd.f32 %v20826_v55, %v1855_v33  ;;  %v1856_v17 = vadd.f32 %v1797_v56, %v20805_v7  ;;  %v1799_v38 = vpop.f32.mrb[111].mxu0  ;;  %2774 = vmatprep.mubr.bf16.mxu1 %v21035_v3  ;;  %v2023_v8 = vshrl.u32 %v21035_v3, 16  ;;  %v2026_v36 = vshll.u32 %v21035_v3, 16 }
 0x246   : > { %v1895_v43 = vadd.f32 %v20826_v55, %v1856_v17  ;;  %v2025_v0 = vrot.slane %v2023_v8, 7  ;;  %v2116_v61 = vrot.slane %v2026_v36, 1  ;;  %v1926_v62 = vmax.f32 %v1894_v40, 0.0 }
 0x248   : > { %v1927_v5 = vmax.f32 %v1895_v43, 0.0  ;;  %v2028_v26 = vor.u32 %v2026_v36, %v2025_v0  ;;  %v21049_v49 = vor.u32 %v2116_v61, %v2023_v8 }
 0x249   : > { %v1802_v46 = vpop.f32.mrb[112].mxu0 }
 0x24a   : > { %v21051_v18 = vpack.c.bf16 %v1927_v5, %v1926_v62  ;;  %v1857_v7 = vadd.f32 %v1802_v46, %v20807_v58  ;;  %v1804_v21 = vpop.f32.mrb[113].mxu0  ;;  %v21056_v1 = vsel %vm20354_vm6, 0, %v2028_v26 }
 0x24b   : > { %v1805_v63 = vpop.f32.mrb[114].mxu0  ;;  %2775 = vmatmul.mubr.bf16.gmra.mrb[104].mxu1 %v21056_v1 }
 0x24c   : > { %v1896_v33 = vadd.f32 %v20826_v55, %v1857_v7  ;;  %v1858_v42 = vadd.f32 %v1805_v63, %v20809_v2  ;;  %v1807_v56 = vpop.f32.mrb[115].mxu0  ;;  %2784 = vmatprep.mubr.bf16.mxu1 %v21051_v18  ;;  %v2030_v40 = vshrl.u32 %v21051_v18, 16  ;;  %v2033_v17 = vshll.u32 %v21051_v18, 16 }
 0x24e   : > { %v1897_v58 = vadd.f32 %v20826_v55, %v1858_v42  ;;  %v2032_v38 = vrot.slane %v2030_v40, 7  ;;  %v2118_v8 = vrot.slane %v2033_v17, 1  ;;  %v1928_v36 = vmax.f32 %v1896_v33, 0.0 }
 0x250   : > { %v1929_v43 = vmax.f32 %v1897_v58, 0.0  ;;  %v2035_v0 = vor.u32 %v2033_v17, %v2032_v38  ;;  %v21065_v61 = vor.u32 %v2118_v8, %v2030_v40 }
 0x251   : > { %v1810_v62 = vpop.f32.mrb[116].mxu0 }
 0x252   : > { %v21067_v5 = vpack.c.bf16 %v1929_v43, %v1928_v36  ;;  %v1859_v2 = vadd.f32 %v1810_v62, %v20811_v28  ;;  %v1812_v26 = vpop.f32.mrb[117].mxu0  ;;  %v21072_v46 = vsel %vm20354_vm6, 0, %v2035_v0 }
 0x253   : > { %v1813_v7 = vpop.f32.mrb[118].mxu0  ;;  %2785 = vmatmul.mubr.bf16.gmra.mrb[108].mxu1 %v21072_v46 }
 0x254   : > { %v1898_v21 = vadd.f32 %v20826_v55, %v1859_v2  ;;  %v1860_v63 = vadd.f32 %v1813_v7, %v20813_v15  ;;  %v1815_v33 = vpop.f32.mrb[119].mxu0  ;;  %2794 = vmatprep.mubr.bf16.mxu1 %v21067_v5  ;;  %v2037_v42 = vshrl.u32 %v21067_v5, 16  ;;  %v2040_v56 = vshll.u32 %v21067_v5, 16 }
 0x256   : > { %v1899_v28 = vadd.f32 %v20826_v55, %v1860_v63  ;;  %v2039_v40 = vrot.slane %v2037_v42, 7  ;;  %v2120_v17 = vrot.slane %v2040_v56, 1  ;;  %v1930_v58 = vmax.f32 %v1898_v21, 0.0 }
 0x258   : > { %v1931_v38 = vmax.f32 %v1899_v28, 0.0  ;;  %v2042_v8 = vor.u32 %v2040_v56, %v2039_v40  ;;  %v21081_v36 = vor.u32 %v2120_v17, %v2037_v42 }
 0x259   : > { %v1818_v43 = vpop.f32.mrb[120].mxu0 }
 0x25a   : > { %v21083_v0 = vpack.c.bf16 %v1931_v38, %v1930_v58  ;;  %v1861_v15 = vadd.f32 %v1818_v43, %v20815_v25  ;;  %v1820_v62 = vpop.f32.mrb[121].mxu0  ;;  %v21088_v2 = vsel %vm20354_vm6, 0, %v2042_v8 }
 0x25b   : > { %v1821_v26 = vpop.f32.mrb[122].mxu0  ;;  %2795 = vmatmul.mubr.bf16.gmra.mrb[112].mxu1 %v21088_v2 }
 0x25c   : > { %v1900_v7 = vadd.f32 %v20826_v55, %v1861_v15  ;;  %v1862_v21 = vadd.f32 %v1821_v26, %v20817_v39  ;;  %v1823_v63 = vpop.f32.mrb[123].mxu0  ;;  %2804 = vmatprep.mubr.bf16.mxu1 %v21083_v0  ;;  %v2044_v33 = vshrl.u32 %v21083_v0, 16  ;;  %v2047_v42 = vshll.u32 %v21083_v0, 16 }
 0x25e   : > { %v1901_v25 = vadd.f32 %v20826_v55, %v1862_v21  ;;  %v2046_v56 = vrot.slane %v2044_v33, 7  ;;  %v2122_v28 = vrot.slane %v2047_v42, 1  ;;  %v1932_v40 = vmax.f32 %v1900_v7, 0.0 }
 0x260   : > { %v1933_v17 = vmax.f32 %v1901_v25, 0.0  ;;  %v2049_v58 = vor.u32 %v2047_v42, %v2046_v56  ;;  %v21097_v38 = vor.u32 %v2122_v28, %v2044_v33 }
 0x261   : > { %v1826_v8 = vpop.f32.mrb[124].mxu0 }
 0x262   : > { %v21099_v43 = vpack.c.bf16 %v1933_v17, %v1932_v40  ;;  %v1863_v39 = vadd.f32 %v1826_v8, %v20819_v35  ;;  %v1828_v15 = vpop.f32.mrb[125].mxu0  ;;  %v21104_v62 = vsel %vm20354_vm6, 0, %v2049_v58 }
 0x263   : > { %v1829_v26 = vpop.f32.mrb[126].mxu0  ;;  %2805 = vmatmul.mubr.bf16.gmra.mrb[116].mxu1 %v21104_v62 }
 0x264   : > { %v1902_v21 = vadd.f32 %v20826_v55, %v1863_v39  ;;  %v1864_v7 = vadd.f32 %v1829_v26, %v20821_v13  ;;  %v1831_v63 = vpop.f32.mrb[127].mxu0  ;;  %2814 = vmatprep.mubr.bf16.mxu1 %v21099_v43  ;;  %v2051_v33 = vshrl.u32 %v21099_v43, 16  ;;  %v2054_v42 = vshll.u32 %v21099_v43, 16 }
 0x266   : > { %v1903_v35 = vadd.f32 %v20826_v55, %v1864_v7  ;;  %v2053_v25 = vrot.slane %v2051_v33, 7  ;;  %v2124_v56 = vrot.slane %v2054_v42, 1  ;;  %v1934_v28 = vmax.f32 %v1902_v21, 0.0 }
 0x268   : > { %v1935_v40 = vmax.f32 %v1903_v35, 0.0  ;;  %v2056_v17 = vor.u32 %v2054_v42, %v2053_v25  ;;  %v21113_v58 = vor.u32 %v2124_v56, %v2051_v33  ;;  %v18936_v33 = vld [vmem:[%s26855_s3] ss:$8 sps:$4 sm:$0xff]   ;;  %v18941_v42 = vld [vmem:[%s26855_s3 + $0x14] ss:$8 sps:$4 sm:$0xff]   ;;  %v21142_v35 = vsel %vm20207_vm3, %v20844_v45, 0 }
 0x269   : > { %v18939_v25 = vld [vmem:[%s26855_s3 + $0x10] ss:$8 sps:$4 sm:$0xff]   ;;  %v18944_v56 = vld [vmem:[%s26855_s3 + $0x24] ss:$8 sps:$4 sm:$0xff]   ;;  %v18942_v45 = vld [vmem:[%s26855_s3 + $0x20] ss:$8 sps:$4 sm:$0xff]  }
 0x26a   : > { %v21117_v8 = vsel %vm20354_vm6, 0, %v2056_v17  ;;  %v21119_v13 = vpack.c.bf16 %v1935_v40, %v1934_v28  ;;  %v18947_v28 = vld [vmem:[%s26855_s3 + $0x34] ss:$8 sps:$4 sm:$0xff]   ;;  %v21161_v40 = vsel %vm20207_vm3, %v20872_v37, 0  ;;  %v18945_v17 = vld [vmem:[%s26855_s3 + $0x30] ss:$8 sps:$4 sm:$0xff]  }
 0x26b   : > { %2815 = vmatmul.mubr.bf16.gmra.mrb[120].mxu1 %v21117_v8  ;;  %v18948_v37 = vld [vmem:[%s26855_s3 + $0x40] ss:$8 sps:$4 sm:$0xff]  }
 0x26c   : > { %2824 = vmatprep.mubr.bf16.mxu1 %v21119_v13  ;;  %v2058_v39 = vshrl.u32 %v21119_v13, 16  ;;  %v2061_v55 = vshll.u32 %v21119_v13, 16 }
 0x26e   : > { %v2060_v15 = vrot.slane %v2058_v39, 7  ;;  %v2126_v26 = vrot.slane %v2061_v55, 1 }
 0x270   : > { %v2063_v21 = vor.u32 %v2061_v55, %v2060_v15  ;;  %v21125_v7 = vor.u32 %v2126_v26, %v2058_v39  ;;  %v18950_v39 = vld [vmem:[%s26855_s3 + $0x44] ss:$8 sps:$4 sm:$0xff]   ;;  %v18953_v55 = vld [vmem:[%s26855_s3 + $0x54] ss:$8 sps:$4 sm:$0xff]   ;;  %v21180_v15 = vsel %vm20207_vm3, %v20900_v10, 0 }
 0x271   : > { %v18951_v26 = vld [vmem:[%s26855_s3 + $0x50] ss:$8 sps:$4 sm:$0xff]   ;;  %v18954_v10 = vld [vmem:[%s26855_s3 + $0x60] ss:$8 sps:$4 sm:$0xff]  }
 0x272   : > { %v21129_v63 = vsel %vm20354_vm6, 0, %v2063_v21  ;;  %v18956_v21 = vld [vmem:[%s26855_s3 + $0x64] ss:$8 sps:$4 sm:$0xff]  }
 0x273   : > { %2825 = vmatmul.mubr.bf16.gmra.mrb[124].mxu1 %v21129_v63 }
 0x274   : > { %2867 = vmatprep.mubr.bf16.mxu1 %v20776_v23 }
 0x27b   : > { %2868 = vmatmul.mubr.bf16.vlgmr.msra.gmra.mrb[64].mxu1 %v21142_v35 }
 0x27c   : > { %3269 = vmatpush1.bf16.msra.mxu1 %v18936_v33  ;;  %2877 = vmatprep.mubr.bf16.mxu1 %v20776_v23  ;;  %v18959_v33 = vld [vmem:[%s26855_s3 + $0x74] ss:$8 sps:$4 sm:$0xff]  }
 0x27d   : > { %3270 = vmatprep.subr.bf16.mxu1 %v18941_v42  ;;  %v21199_v42 = vsel %vm20207_vm3, %v20928_v24, 0  ;;  %v18960_v24 = vld [vmem:[%s26855_s3 + $0x80] ss:$8 sps:$4 sm:$0xff]  }
 0x280   : > { %3271 = vmatpush1.bf16.msra.mxu1 %v18939_v25  ;;  %v18957_v25 = vld [vmem:[%s26855_s3 + $0x70] ss:$8 sps:$4 sm:$0xff]  }
 0x281   : > { %3272 = vmatprep.subr.bf16.mxu1 %v18944_v56  ;;  %v18962_v56 = vld [vmem:[%s26855_s3 + $0x84] ss:$8 sps:$4 sm:$0xff]  }
 0x283   : > { %2878 = vmatmul.mubr.bf16.gmra.mrb[68].mxu1 %v21161_v40 }
 0x284   : > { %2887 = vmatprep.mubr.bf16.mxu1 %v20776_v23  ;;  %3273 = vmatpush1.bf16.msra.mxu1 %v18942_v45  ;;  %v18965_v45 = vld [vmem:[%s26855_s3 + $0x94] ss:$8 sps:$4 sm:$0xff]  }
 0x285   : > { %3274 = vmatprep.subr.bf16.mxu1 %v18947_v28  ;;  %v21218_v28 = vsel %vm20207_vm3, %v20953_v14, 0  ;;  %v18966_v14 = vld [vmem:[%s26855_s3 + $0xa0] ss:$8 sps:$4 sm:$0xff]  }
 0x288   : > { %3275 = vmatpush1.bf16.msra.mxu1 %v18945_v17  ;;  %v18963_v17 = vld [vmem:[%s26855_s3 + $0x90] ss:$8 sps:$4 sm:$0xff]  }
 0x289   : > { %3276 = vmatprep.subr.bf16.mxu1 %v18950_v39  ;;  %v18968_v39 = vld [vmem:[%s26855_s3 + $0xa4] ss:$8 sps:$4 sm:$0xff]  }
 0x28b   : > { %2888 = vmatmul.mubr.bf16.gmra.mrb[72].mxu1 %v21180_v15 }
 0x28c   : > { %2897 = vmatprep.mubr.bf16.mxu1 %v20776_v23  ;;  %3277 = vmatpush1.bf16.msra.mxu1 %v18948_v37  ;;  %v21237_v37 = vsel %vm20207_vm3, %v20969_v34, 0  ;;  %v18972_v34 = vld [vmem:[%s26855_s3 + $0xc0] ss:$8 sps:$4 sm:$0xff]  }
 0x28d   : > { %3278 = vmatprep.subr.bf16.mxu1 %v18953_v55  ;;  %v21240_v55 = vld [vmem:[#allocation2] sm:$0xff] }
 0x290   : > { %3279 = vmatpush1.bf16.msra.mxu1 %v18951_v26  ;;  %v18969_v26 = vld [vmem:[%s26855_s3 + $0xb0] ss:$8 sps:$4 sm:$0xff]  }
 0x291   : > { %3280 = vmatprep.subr.bf16.mxu1 %v18956_v21  ;;  %v18974_v21 = vld [vmem:[%s26855_s3 + $0xc4] ss:$8 sps:$4 sm:$0xff]  }
 0x293   : > { %2898 = vmatmul.mubr.bf16.gmra.mrb[76].mxu1 %v21199_v42 }
 0x294   : > { %2907 = vmatprep.mubr.bf16.mxu1 %v20776_v23  ;;  %3281 = vmatpush1.bf16.msra.mxu1 %v18954_v10  ;;  %v18977_v10 = vld [vmem:[%s26855_s3 + $0xd4] ss:$8 sps:$4 sm:$0xff]  }
 0x295   : > { %3282 = vmatprep.subr.bf16.mxu1 %v18959_v33  ;;  %v21258_v33 = vsel %vm20207_vm3, %v20985_v44, 0  ;;  %v18978_v44 = vld [vmem:[%s26855_s3 + $0xe0] ss:$8 sps:$4 sm:$0xff]  }
 0x298   : > { %3283 = vmatpush1.bf16.msra.mxu1 %v18957_v25  ;;  %v18975_v25 = vld [vmem:[%s26855_s3 + $0xd0] ss:$8 sps:$4 sm:$0xff]  }
 0x299   : > { %3284 = vmatprep.subr.bf16.mxu1 %v18962_v56  ;;  %v18980_v56 = vld [vmem:[%s26855_s3 + $0xe4] ss:$8 sps:$4 sm:$0xff]  }
 0x29b   : > { %2908 = vmatmul.mubr.bf16.gmra.mrb[80].mxu1 %v21218_v28 }
 0x29c   : > { %2917 = vmatprep.mubr.bf16.mxu1 %v20776_v23  ;;  %3285 = vmatpush1.bf16.msra.mxu1 %v18960_v24  ;;  %v18971_v23 = vld [vmem:[%s26855_s3 + $0xb4] ss:$8 sps:$4 sm:$0xff]  }
 0x29d   : > { %3286 = vmatprep.subr.bf16.mxu1 %v18965_v45  ;;  %v18983_v24 = vld [vmem:[%s26855_s3 + $0xf4] ss:$8 sps:$4 sm:$0xff]   ;;  %v21277_v45 = vsel %vm20207_vm3, %v21001_v30, 0  ;;  %v21290_v30 = vsel %vm20207_vm3, %v21017_v47, 0  ;;  %v21311_v47 = vsel %vm20207_vm3, %v21065_v61, 0  ;;  %v21332_v61 = vsel %vm20207_vm3, %v21113_v58, 0 }
 0x29e   : > { %v18989_v58 = vld [vmem:[%s26855_s3 + $0x114] ss:$8 sps:$4 sm:$0xff]  }
 0x2a0   : > { %3287 = vmatpush1.bf16.msra.mxu1 %v18963_v17  ;;  %v18981_v17 = vld [vmem:[%s26855_s3 + $0xf0] ss:$8 sps:$4 sm:$0xff]  }
 0x2a1   : > { %3288 = vmatprep.subr.bf16.mxu1 %v18968_v39  ;;  %v18986_v39 = vld [vmem:[%s26855_s3 + $0x104] ss:$8 sps:$4 sm:$0xff]  }
 0x2a3   : > { %2918 = vmatmul.mubr.bf16.gmra.mrb[84].mxu1 %v21237_v37 }
 0x2a4   : > { %2927 = vmatprep.mubr.bf16.mxu1 %v21240_v55  ;;  %3289 = vmatpush1.bf16.msra.mxu1 %v18966_v14  ;;  %v21297_v14 = vsel %vm20207_vm3, %v21033_v12, 0  ;;  %v21318_v12 = vsel %vm20207_vm3, %v21081_v36, 0  ;;  %v21339_v36 = vsel %vm20207_vm3, %v21125_v7, 0  ;;  %v18987_v7 = vld [vmem:[%s26855_s3 + $0x110] ss:$8 sps:$4 sm:$0xff]  }
 0x2a5   : > { %3290 = vmatprep.subr.bf16.mxu1 %v18971_v23  ;;  %v21304_v23 = vsel %vm20207_vm3, %v21049_v49, 0  ;;  %v21325_v49 = vsel %vm20207_vm3, %v21097_v38, 0  ;;  %v18984_v38 = vld [vmem:[%s26855_s3 + $0x100] ss:$8 sps:$4 sm:$0xff]  }
 0x2a8   : > { %3291 = vmatpush1.bf16.msra.mxu1 %v18969_v26  ;;  %v18992_v26 = vld [vmem:[%s26855_s3 + $0x124] ss:$8 sps:$4 sm:$0xff]  }
 0x2a9   : > { %3292 = vmatprep.subr.bf16.mxu1 %v18974_v21  ;;  %v18990_v21 = vld [vmem:[%s26855_s3 + $0x120] ss:$8 sps:$4 sm:$0xff]  }
 0x2ab   : > { %2928 = vmatmul.mubr.bf16.gmra.mrb[88].mxu1 %v21258_v33 }
 0x2ac   : > { %2937 = vmatprep.mubr.bf16.mxu1 %v21240_v55  ;;  %3293 = vmatpush1.bf16.msra.mxu1 %v18972_v34  ;;  %v18995_v34 = vld [vmem:[%s26855_s3 + $0x134] ss:$8 sps:$4 sm:$0xff]  }
 0x2ad   : > { %3294 = vmatprep.subr.bf16.mxu1 %v18977_v10  ;;  %v18998_v10 = vld [vmem:[%s26855_s3 + $0x144] ss:$8 sps:$4 sm:$0xff]  }
 0x2b0   : > { %3295 = vmatpush1.bf16.msra.mxu1 %v18975_v25  ;;  %v18996_v25 = vld [vmem:[%s26855_s3 + $0x140] ss:$8 sps:$4 sm:$0xff]  }
 0x2b1   : > { %3296 = vmatprep.subr.bf16.mxu1 %v18980_v56  ;;  %v18999_v56 = vld [vmem:[%s26855_s3 + $0x150] ss:$8 sps:$4 sm:$0xff]  }
 0x2b3   : > { %2938 = vmatmul.mubr.bf16.gmra.mrb[92].mxu1 %v21277_v45 }
 0x2b4   : > { %2947 = vmatprep.mubr.bf16.mxu1 %v21240_v55  ;;  %3297 = vmatpush1.bf16.msra.mxu1 %v18978_v44  ;;  %v19004_v44 = vld [vmem:[%s26855_s3 + $0x164] ss:$8 sps:$4 sm:$0xff]  }
 0x2b5   : > { %3298 = vmatprep.subr.bf16.mxu1 %v18983_v24  ;;  %v19002_v24 = vld [vmem:[%s26855_s3 + $0x160] ss:$8 sps:$4 sm:$0xff]  }
 0x2b8   : > { %3299 = vmatpush1.bf16.msra.mxu1 %v18981_v17  ;;  %v19007_v17 = vld [vmem:[%s26855_s3 + $0x174] ss:$8 sps:$4 sm:$0xff]  }
 0x2b9   : > { %3461 = vmatprep.subr.bf16.mxu1 %v18986_v39  ;;  %v19005_v39 = vld [vmem:[%s26855_s3 + $0x170] ss:$8 sps:$4 sm:$0xff]  }
 0x2bb   : > { %2948 = vmatmul.mubr.bf16.gmra.mrb[96].mxu1 %v21290_v30 }
 0x2bc   : > { %2957 = vmatprep.mubr.bf16.mxu1 %v21240_v55 }
 0x2c3   : > { %2958 = vmatmul.mubr.bf16.gmra.mrb[100].mxu1 %v21297_v14 }
 0x2c4   : > { %2967 = vmatprep.mubr.bf16.mxu1 %v21240_v55 }
 0x2cb   : > { %2968 = vmatmul.mubr.bf16.gmra.mrb[104].mxu1 %v21304_v23 }
 0x2cc   : > { %2977 = vmatprep.mubr.bf16.mxu1 %v21240_v55 }
 0x2d3   : > { %2978 = vmatmul.mubr.bf16.gmra.mrb[108].mxu1 %v21311_v47 }
 0x2d4   : > { %2987 = vmatprep.mubr.bf16.mxu1 %v21240_v55 }
 0x2db   : > { %2988 = vmatmul.mubr.bf16.gmra.mrb[112].mxu1 %v21318_v12 }
 0x2dc   : > { %2997 = vmatprep.mubr.bf16.mxu1 %v21240_v55 }
 0x2e3   : > { %2998 = vmatmul.mubr.bf16.gmra.mrb[116].mxu1 %v21325_v49 }
 0x2e4   : > { %3007 = vmatprep.mubr.bf16.mxu1 %v21240_v55 }
 0x2eb   : > { %3008 = vmatmul.mubr.bf16.gmra.mrb[120].mxu1 %v21332_v61 }
 0x2ec   : > { %3017 = vmatprep.mubr.bf16.mxu1 %v21240_v55 }
 0x2f3   : > { %3018 = vmatmul.mubr.bf16.gmra.mrb[124].mxu1 %v21339_v36 }
 0x2f4   : > { %3300 = vmatprep.mubr.bf16.mxu1 %v21240_v55 }
 0x2fb   : > { %3301 = vmatmul.mubr.bf16.vlgmr.msra.gmra.mrb[64].mxu1 %v21240_v55 }
 0x2fc   : > { %3462 = vmatpush1.bf16.msra.mxu1 %v18984_v38  ;;  %3310 = vmatprep.mubr.bf16.mxu1 %v20833_v22  ;;  %v18993_v22 = vld [vmem:[%s26855_s3 + $0x130] ss:$8 sps:$4 sm:$0xff]   ;;  %v19010_v38 = vld [vmem:[%s26855_s3 + $0x304] ss:$8 sps:$4 sm:$0xff]  }
 0x2fd   : > { %3463 = vmatprep.subr.bf16.mxu1 %v18989_v58  ;;  %v19008_v58 = vld [vmem:[%s26855_s3 + $0x300] ss:$8 sps:$4 sm:$0xff]  }
 0x300   : > { %3464 = vmatpush1.bf16.msra.mxu1 %v18987_v7  ;;  %v19013_v7 = vld [vmem:[%s26855_s3 + $0x314] ss:$8 sps:$4 sm:$0xff]  }
 0x301   : > { %3465 = vmatprep.subr.bf16.mxu1 %v18992_v26  ;;  %v19011_v26 = vld [vmem:[%s26855_s3 + $0x310] ss:$8 sps:$4 sm:$0xff]  }
 0x303   : > { %3311 = vmatmul.mubr.bf16.gmra.mrb[68].mxu1 %v20854_v57  ;;  %v19001_v57 = vld [vmem:[%s26855_s3 + $0x154] ss:$8 sps:$4 sm:$0xff]  }
 0x304   : > { %3320 = vmatprep.mubr.bf16.mxu1 %v20849_v50  ;;  %3466 = vmatpush1.bf16.msra.mxu1 %v18990_v21  ;;  %v19016_v21 = vld [vmem:[%s26855_s3 + $0x324] ss:$8 sps:$4 sm:$0xff]  }
 0x305   : > { %3467 = vmatprep.subr.bf16.mxu1 %v18995_v34  ;;  %v19014_v34 = vld [vmem:[%s26855_s3 + $0x320] ss:$8 sps:$4 sm:$0xff]  }
 0x308   : > { %3468 = vmatpush1.bf16.msra.mxu1 %v18993_v22  ;;  %v19019_v22 = vld [vmem:[%s26855_s3 + $0x334] ss:$8 sps:$4 sm:$0xff]  }
 0x309   : > { %3469 = vmatprep.subr.bf16.mxu1 %v18998_v10  ;;  %v19017_v10 = vld [vmem:[%s26855_s3 + $0x330] ss:$8 sps:$4 sm:$0xff]  }
 0x30b   : > { %3321 = vmatmul.mubr.bf16.gmra.mrb[72].mxu1 %v20882_v29 }
 0x30c   : > { %3330 = vmatprep.mubr.bf16.mxu1 %v20877_v20  ;;  %3470 = vmatpush1.bf16.msra.mxu1 %v18996_v25  ;;  %v19022_v25 = vld [vmem:[%s26855_s3 + $0x344] ss:$8 sps:$4 sm:$0xff]  }
 0x30d   : > { %3471 = vmatprep.subr.bf16.mxu1 %v19001_v57  ;;  %v19020_v57 = vld [vmem:[%s26855_s3 + $0x340] ss:$8 sps:$4 sm:$0xff]  }
 0x310   : > { %3472 = vmatpush1.bf16.msra.mxu1 %v18999_v56  ;;  %v19023_v56 = vld [vmem:[%s26855_s3 + $0x350] ss:$8 sps:$4 sm:$0xff]  }
 0x311   : > { %3473 = vmatprep.subr.bf16.mxu1 %v19004_v44  ;;  %v19028_v44 = vld [vmem:[%s26855_s3 + $0x364] ss:$8 sps:$4 sm:$0xff]  }
 0x313   : > { %3331 = vmatmul.mubr.bf16.gmra.mrb[76].mxu1 %v20910_v4 }
 0x314   : > { %3340 = vmatprep.mubr.bf16.mxu1 %v20905_v11  ;;  %3474 = vmatpush1.bf16.msra.mxu1 %v19002_v24  ;;  %v19026_v24 = vld [vmem:[%s26855_s3 + $0x360] ss:$8 sps:$4 sm:$0xff]  }
 0x315   : > { %3475 = vmatprep.subr.bf16.mxu1 %v19007_v17  ;;  %v19031_v17 = vld [vmem:[%s26855_s3 + $0x374] ss:$8 sps:$4 sm:$0xff]  }
 0x318   : > { %3476 = vmatpush1.bf16.msra.mxu1 %v19005_v39  ;;  %v19029_v39 = vld [vmem:[%s26855_s3 + $0x370] ss:$8 sps:$4 sm:$0xff]  }
 0x319   : > { %3992 = vmatprep.subr.bf16.mxu1 %v19010_v38  ;;  %v19034_v38 = vld [vmem:[%s26855_s3 + $0x384] ss:$8 sps:$4 sm:$0xff]  }
 0x31b   : > { %3341 = vmatmul.mubr.bf16.gmra.mrb[80].mxu1 %v20938_v60 }
 0x31c   : > { %3350 = vmatprep.mubr.bf16.mxu1 %v20933_v48 }
 0x323   : > { %3351 = vmatmul.mubr.bf16.gmra.mrb[84].mxu1 %v20960_v9 }
 0x324   : > { %3360 = vmatprep.mubr.bf16.mxu1 %v20955_v59 }
 0x32b   : > { %3361 = vmatmul.mubr.bf16.gmra.mrb[88].mxu1 %v20976_v19 }
 0x32c   : > { %3370 = vmatprep.mubr.bf16.mxu1 %v20971_v52 }
 0x333   : > { %3371 = vmatmul.mubr.bf16.gmra.mrb[92].mxu1 %v20992_v32 }
 0x334   : > { %3380 = vmatprep.mubr.bf16.mxu1 %v20987_v53 }
 0x33b   : > { %3381 = vmatmul.mubr.bf16.gmra.mrb[96].mxu1 %v21008_v51 }
 0x33c   : > { %3390 = vmatprep.mubr.bf16.mxu1 %v21003_v16 }
 0x343   : > { %3391 = vmatmul.mubr.bf16.gmra.mrb[100].mxu1 %v21024_v27 }
 0x344   : > { %3400 = vmatprep.mubr.bf16.mxu1 %v21019_v41 }
 0x34b   : > { %3401 = vmatmul.mubr.bf16.gmra.mrb[104].mxu1 %v21040_v54 }
 0x34c   : > { %3410 = vmatprep.mubr.bf16.mxu1 %v21035_v3 }
 0x353   : > { %3411 = vmatmul.mubr.bf16.gmra.mrb[108].mxu1 %v21056_v1 }
 0x354   : > { %3420 = vmatprep.mubr.bf16.mxu1 %v21051_v18 }
 0x35b   : > { %3421 = vmatmul.mubr.bf16.gmra.mrb[112].mxu1 %v21072_v46 }
 0x35c   : > { %3430 = vmatprep.mubr.bf16.mxu1 %v21067_v5 }
 0x363   : > { %3431 = vmatmul.mubr.bf16.gmra.mrb[116].mxu1 %v21088_v2 }
 0x364   : > { %3440 = vmatprep.mubr.bf16.mxu1 %v21083_v0 }
 0x36b   : > { %3441 = vmatmul.mubr.bf16.gmra.mrb[120].mxu1 %v21104_v62 }
 0x36c   : > { %3450 = vmatprep.mubr.bf16.mxu1 %v21099_v43 }
 0x373   : > { %3451 = vmatmul.mubr.bf16.gmra.mrb[124].mxu1 %v21117_v8 }
 0x374   : > { %3493 = vmatprep.mubr.bf16.mxu1 %v21240_v55 }
 0x37b   : > { %3494 = vmatmul.mubr.bf16.vlgmr.msra.gmra.mrb[64].mxu1 %v21240_v55 }
 0x37c   : > { %3993 = vmatpush1.bf16.msra.mxu1 %v19008_v58  ;;  %3503 = vmatprep.mubr.bf16.mxu1 %v21240_v55  ;;  %v19032_v58 = vld [vmem:[%s26855_s3 + $0x380] ss:$8 sps:$4 sm:$0xff]  }
 0x37d   : > { %3994 = vmatprep.subr.bf16.mxu1 %v19013_v7  ;;  %v19037_v7 = vld [vmem:[%s26855_s3 + $0x394] ss:$8 sps:$4 sm:$0xff]  }
 0x380   : > { %3995 = vmatpush1.bf16.msra.mxu1 %v19011_v26  ;;  %v19035_v26 = vld [vmem:[%s26855_s3 + $0x390] ss:$8 sps:$4 sm:$0xff]  }
 0x381   : > { %3996 = vmatprep.subr.bf16.mxu1 %v19016_v21  ;;  %v19040_v21 = vld [vmem:[%s26855_s3 + $0x3a4] ss:$8 sps:$4 sm:$0xff]  }
 0x383   : > { %3504 = vmatmul.mubr.bf16.gmra.mrb[68].mxu1 %v21142_v35  ;;  %v19025_v35 = vld [vmem:[%s26855_s3 + $0x354] ss:$8 sps:$4 sm:$0xff]  }
 0x384   : > { %3513 = vmatprep.mubr.bf16.mxu1 %v21240_v55  ;;  %3997 = vmatpush1.bf16.msra.mxu1 %v19014_v34  ;;  %v19038_v34 = vld [vmem:[%s26855_s3 + $0x3a0] ss:$8 sps:$4 sm:$0xff]  }
 0x385   : > { %3998 = vmatprep.subr.bf16.mxu1 %v19019_v22  ;;  %v19043_v22 = vld [vmem:[%s26855_s3 + $0x3b4] ss:$8 sps:$4 sm:$0xff]  }
 0x388   : > { %3999 = vmatpush1.bf16.msra.mxu1 %v19017_v10  ;;  %v19041_v10 = vld [vmem:[%s26855_s3 + $0x3b0] ss:$8 sps:$4 sm:$0xff]  }
 0x389   : > { %4000 = vmatprep.subr.bf16.mxu1 %v19022_v25  ;;  %v19046_v25 = vld [vmem:[%s26855_s3 + $0x3c4] ss:$8 sps:$4 sm:$0xff]  }
 0x38b   : > { %3514 = vmatmul.mubr.bf16.gmra.mrb[72].mxu1 %v21161_v40 }
 0x38c   : > { %3523 = vmatprep.mubr.bf16.mxu1 %v21240_v55  ;;  %4001 = vmatpush1.bf16.msra.mxu1 %v19020_v57  ;;  %v19044_v57 = vld [vmem:[%s26855_s3 + $0x3c0] ss:$8 sps:$4 sm:$0xff]  }
 0x38d   : > { %4002 = vmatprep.subr.bf16.mxu1 %v19025_v35  ;;  %v19049_v35 = vld [vmem:[%s26855_s3 + $0x3d4] ss:$8 sps:$4 sm:$0xff]  }
 0x390   : > { %4003 = vmatpush1.bf16.msra.mxu1 %v19023_v56  ;;  %v19047_v56 = vld [vmem:[%s26855_s3 + $0x3d0] ss:$8 sps:$4 sm:$0xff]  }
 0x391   : > { %4004 = vmatprep.subr.bf16.mxu1 %v19028_v44  ;;  %v19052_v44 = vld [vmem:[%s26855_s3 + $0x3e4] ss:$8 sps:$4 sm:$0xff]  }
 0x393   : > { %3524 = vmatmul.mubr.bf16.gmra.mrb[76].mxu1 %v21180_v15 }
 0x394   : > { %3533 = vmatprep.mubr.bf16.mxu1 %v21240_v55  ;;  %4005 = vmatpush1.bf16.msra.mxu1 %v19026_v24  ;;  %v19050_v24 = vld [vmem:[%s26855_s3 + $0x3e0] ss:$8 sps:$4 sm:$0xff]  }
 0x395   : > { %4006 = vmatprep.subr.bf16.mxu1 %v19031_v17  ;;  %v19055_v17 = vld [vmem:[%s26855_s3 + $0x3f4] ss:$8 sps:$4 sm:$0xff]  }
 0x398   : > { %4007 = vmatpush1.bf16.msra.mxu1 %v19029_v39  ;;  %v19053_v39 = vld [vmem:[%s26855_s3 + $0x3f0] ss:$8 sps:$4 sm:$0xff]  }
 0x399   : > { %4008 = vmatprep.subr.bf16.mxu1 %v19034_v38  ;;  %v19058_v38 = vld [vmem:[%s26855_s3 + $0x404] ss:$8 sps:$4 sm:$0xff]  }
 0x39b   : > { %3534 = vmatmul.mubr.bf16.gmra.mrb[80].mxu1 %v21199_v42 }
 0x39c   : > { %3543 = vmatprep.mubr.bf16.mxu1 %v21240_v55  ;;  %4009 = vmatpush1.bf16.msra.mxu1 %v19032_v58  ;;  %v19056_v58 = vld [vmem:[%s26855_s3 + $0x400] ss:$8 sps:$4 sm:$0xff]  }
 0x39d   : > { %4010 = vmatprep.subr.bf16.mxu1 %v19037_v7  ;;  %v19061_v7 = vld [vmem:[%s26855_s3 + $0x414] ss:$8 sps:$4 sm:$0xff]  }
 0x3a0   : > { %4011 = vmatpush1.bf16.msra.mxu1 %v19035_v26  ;;  %v19059_v26 = vld [vmem:[%s26855_s3 + $0x410] ss:$8 sps:$4 sm:$0xff]  }
 0x3a1   : > { %4012 = vmatprep.subr.bf16.mxu1 %v19040_v21  ;;  %v19062_v21 = vld [vmem:[%s26855_s3 + $0x420] ss:$8 sps:$4 sm:$0xff]  }
 0x3a3   : > { %3544 = vmatmul.mubr.bf16.gmra.mrb[84].mxu1 %v21218_v28 }
 0x3a4   : > { %3553 = vmatprep.mubr.bf16.mxu1 %v21240_v55  ;;  %4013 = vmatpush1.bf16.msra.mxu1 %v19038_v34  ;;  %v19070_v34 = vld [vmem:[%s26855_s3 + $0x444] ss:$8 sps:$4 sm:$0xff]  }
 0x3a5   : > { %4014 = vmatprep.subr.bf16.mxu1 %v19043_v22  ;;  %v19068_v22 = vld [vmem:[%s26855_s3 + $0x440] ss:$8 sps:$4 sm:$0xff]  }
 0x3a8   : > { %4015 = vmatpush1.bf16.msra.mxu1 %v19041_v10  ;;  %v19076_v10 = vld [vmem:[%s26855_s3 + $0x464] ss:$8 sps:$4 sm:$0xff]  }
 0x3a9   : > { %4016 = vmatprep.subr.bf16.mxu1 %v19046_v25  ;;  %v19074_v25 = vld [vmem:[%s26855_s3 + $0x460] ss:$8 sps:$4 sm:$0xff]  }
 0x3ab   : > { %3554 = vmatmul.mubr.bf16.gmra.mrb[88].mxu1 %v21237_v37 }
 0x3ac   : > { %3563 = vmatprep.mubr.bf16.mxu1 %v21240_v55  ;;  %4017 = vmatpush1.bf16.msra.mxu1 %v19044_v57  ;;  %v19110_v57 = vld [vmem:[%s26857_s5 + $0x3a0] ss:$8 sps:$4 sm:$0xff]  }
 0x3ad   : > { %4018 = vmatprep.subr.bf16.mxu1 %v19049_v35  ;;  %v19115_v35 = vld [vmem:[%s26857_s5 + $0x3b4] ss:$8 sps:$4 sm:$0xff]  }
 0x3b0   : > { %4019 = vmatpush1.bf16.msra.mxu1 %v19047_v56  ;;  %v19118_v56 = vld [vmem:[%s26857_s5 + $0x3c4] ss:$8 sps:$4 sm:$0xff]  }
 0x3b1   : > { %4020 = vmatprep.subr.bf16.mxu1 %v19052_v44  ;;  %v19116_v44 = vld [vmem:[%s26857_s5 + $0x3c0] ss:$8 sps:$4 sm:$0xff]  }
 0x3b3   : > { %3564 = vmatmul.mubr.bf16.gmra.mrb[92].mxu1 %v21258_v33 }
 0x3b4   : > { %3573 = vmatprep.mubr.bf16.mxu1 %v21240_v55  ;;  %4021 = vmatpush1.bf16.msra.mxu1 %v19050_v24  ;;  %v19121_v24 = vld [vmem:[%s26857_s5 + $0x3d4] ss:$8 sps:$4 sm:$0xff]  }
 0x3b5   : > { %4022 = vmatprep.subr.bf16.mxu1 %v19055_v17  ;;  %v19140_v17 = vld [vmem:[%s26857_s5 + $0x840] ss:$8 sps:$4 sm:$0xff]  }
 0x3b8   : > { %4023 = vmatpush1.bf16.msra.mxu1 %v19053_v39  ;;  %v19139_v39 = vld [vmem:[%s26857_s5 + $0x3f4] ss:$8 sps:$4 sm:$0xff]  }
 0x3b9   : > { %4185 = vmatprep.subr.bf16.mxu1 %v19058_v38  ;;  %v19145_v38 = vld [vmem:[%s26857_s5 + $0x854] ss:$8 sps:$4 sm:$0xff]  }
 0x3bb   : > { %3574 = vmatmul.mubr.bf16.gmra.mrb[96].mxu1 %v21277_v45 }
 0x3bc   : > { %3583 = vmatprep.mubr.bf16.mxu1 %v21240_v55 }
 0x3c3   : > { %3584 = vmatmul.mubr.bf16.gmra.mrb[100].mxu1 %v21290_v30 }
 0x3c4   : > { %3593 = vmatprep.mubr.bf16.mxu1 %v21240_v55 }
 0x3cb   : > { %3594 = vmatmul.mubr.bf16.gmra.mrb[104].mxu1 %v21297_v14 }
 0x3cc   : > { %3603 = vmatprep.mubr.bf16.mxu1 %v21240_v55 }
 0x3d3   : > { %3604 = vmatmul.mubr.bf16.gmra.mrb[108].mxu1 %v21304_v23 }
 0x3d4   : > { %3613 = vmatprep.mubr.bf16.mxu1 %v21240_v55 }
 0x3db   : > { %3614 = vmatmul.mubr.bf16.gmra.mrb[112].mxu1 %v21311_v47 }
 0x3dc   : > { %3623 = vmatprep.mubr.bf16.mxu1 %v21240_v55 }
 0x3e3   : > { %3624 = vmatmul.mubr.bf16.gmra.mrb[116].mxu1 %v21318_v12 }
 0x3e4   : > { %3633 = vmatprep.mubr.bf16.mxu1 %v21240_v55 }
 0x3eb   : > { %3634 = vmatmul.mubr.bf16.gmra.mrb[120].mxu1 %v21325_v49 }
 0x3ec   : > { %3643 = vmatprep.mubr.bf16.mxu1 %v21240_v55 }
 0x3f3   : > { %3644 = vmatmul.mubr.bf16.gmra.mrb[124].mxu1 %v21332_v61 }
 0x3f4   : > { %4024 = vmatprep.mubr.bf16.mxu1 %v20849_v50  ;;  %v19064_v50 = vld [vmem:[%s26855_s3 + $0x424] ss:$8 sps:$4 sm:$0xff]  }
 0x3fb   : > { %4025 = vmatmul.mubr.bf16.vlgmr.msra.gmra.mrb[64].mxu1 %v20882_v29  ;;  %v19067_v29 = vld [vmem:[%s26855_s3 + $0x434] ss:$8 sps:$4 sm:$0xff]  }
 0x3fc   : > { %4186 = vmatpush1.bf16.msra.mxu1 %v19056_v58  ;;  %4034 = vmatprep.mubr.bf16.mxu1 %v20877_v20  ;;  %v19065_v20 = vld [vmem:[%s26855_s3 + $0x430] ss:$8 sps:$4 sm:$0xff]  }
 0x3fd   : > { %4187 = vmatprep.subr.bf16.mxu1 %v19061_v7  ;;  %v19143_v58 = vld [vmem:[%s26857_s5 + $0x850] ss:$8 sps:$4 sm:$0xff]   ;;  %v19151_v7 = vld [vmem:[%s26857_s5 + $0x864] ss:$8 sps:$4 sm:$0xff]  }
 0x400   : > { %4188 = vmatpush1.bf16.msra.mxu1 %v19059_v26  ;;  %v19149_v26 = vld [vmem:[%s26857_s5 + $0x860] ss:$8 sps:$4 sm:$0xff]  }
 0x401   : > { %4189 = vmatprep.subr.bf16.mxu1 %v19064_v50  ;;  %v19154_v50 = vld [vmem:[%s26857_s5 + $0x874] ss:$8 sps:$4 sm:$0xff]  }
 0x403   : > { %4035 = vmatmul.mubr.bf16.gmra.mrb[68].mxu1 %v20910_v4  ;;  %v19071_v4 = vld [vmem:[%s26855_s3 + $0x450] ss:$8 sps:$4 sm:$0xff]  }
 0x404   : > { %4044 = vmatprep.mubr.bf16.mxu1 %v20905_v11  ;;  %4190 = vmatpush1.bf16.msra.mxu1 %v19062_v21  ;;  %v19073_v11 = vld [vmem:[%s26855_s3 + $0x454] ss:$8 sps:$4 sm:$0xff]   ;;  %v19152_v21 = vld [vmem:[%s26857_s5 + $0x870] ss:$8 sps:$4 sm:$0xff]  }
 0x405   : > { %4191 = vmatprep.subr.bf16.mxu1 %v19067_v29  ;;  %v19160_v29 = vld [vmem:[%s26857_s5 + $0x884] ss:$8 sps:$4 sm:$0xff]  }
 0x408   : > { %4192 = vmatpush1.bf16.msra.mxu1 %v19065_v20  ;;  %v19158_v20 = vld [vmem:[%s26857_s5 + $0x880] ss:$8 sps:$4 sm:$0xff]  }
 0x409   : > { %4193 = vmatprep.subr.bf16.mxu1 %v19070_v34  ;;  %v19161_v34 = vld [vmem:[%s26857_s5 + $0x890] ss:$8 sps:$4 sm:$0xff]  }
 0x40b   : > { %4045 = vmatmul.mubr.bf16.gmra.mrb[72].mxu1 %v20938_v60  ;;  %v19077_v60 = vld [vmem:[%s26855_s3 + $0x470] ss:$8 sps:$4 sm:$0xff]  }
 0x40c   : > { %4054 = vmatprep.mubr.bf16.mxu1 %v20933_v48  ;;  %4194 = vmatpush1.bf16.msra.mxu1 %v19068_v22  ;;  %v19079_v48 = vld [vmem:[%s26855_s3 + $0x474] ss:$8 sps:$4 sm:$0xff]   ;;  %v19169_v22 = vld [vmem:[%s26857_s5 + $0x8a4] ss:$8 sps:$4 sm:$0xff]  }
 0x40d   : > { %4195 = vmatprep.subr.bf16.mxu1 %v19073_v11  ;;  %v19167_v11 = vld [vmem:[%s26857_s5 + $0x8a0] ss:$8 sps:$4 sm:$0xff]  }
 0x410   : > { %4196 = vmatpush1.bf16.msra.mxu1 %v19071_v4  ;;  %v19170_v4 = vld [vmem:[%s26857_s5 + $0x8b0] ss:$8 sps:$4 sm:$0xff]  }
 0x411   : > { %4197 = vmatprep.subr.bf16.mxu1 %v19076_v10  ;;  %v19178_v10 = vld [vmem:[%s26857_s5 + $0x8c4] ss:$8 sps:$4 sm:$0xff]  }
 0x413   : > { %4055 = vmatmul.mubr.bf16.gmra.mrb[76].mxu1 %v20960_v9  ;;  %v19082_v9 = vld [vmem:[%s26857_s5 + $0x304] ss:$8 sps:$4 sm:$0xff]  }
 0x414   : > { %4064 = vmatprep.mubr.bf16.mxu1 %v20955_v59  ;;  %4198 = vmatpush1.bf16.msra.mxu1 %v19074_v25  ;;  %v19080_v59 = vld [vmem:[%s26857_s5 + $0x300] ss:$8 sps:$4 sm:$0xff]  }
 0x415   : > { %4199 = vmatprep.subr.bf16.mxu1 %v19079_v48  ;;  %5992 = vmatprep.subr.bf16.mxu0 %v19082_v9  ;;  %v19176_v25 = vld [vmem:[%s26857_s5 + $0x8c0] ss:$8 sps:$4 sm:$0xff]   ;;  %v19179_v48 = vld [vmem:[%s26857_s5 + $0x8d0] ss:$8 sps:$4 sm:$0xff]   ;;  %v19190_v9 = vld [vmem:[%s26857_s5 + $0x8f4] ss:$8 sps:$4 sm:$0xff]  }
 0x416   : > { %5993 = vmatpush1.bf16.msra.mxu0 %v19080_v59  ;;  %v19185_v59 = vld [vmem:[%s26857_s5 + $0x8e0] ss:$8 sps:$4 sm:$0xff]  }
 0x418   : > { %4200 = vmatpush1.bf16.msra.mxu1 %v19077_v60  ;;  %v19187_v60 = vld [vmem:[%s26857_s5 + $0x8e4] ss:$8 sps:$4 sm:$0xff]  }
 0x41b   : > { %4065 = vmatmul.mubr.bf16.gmra.mrb[80].mxu1 %v20976_v19  ;;  %v19085_v19 = vld [vmem:[%s26857_s5 + $0x314] ss:$8 sps:$4 sm:$0xff]  }
 0x41c   : > { %4074 = vmatprep.mubr.bf16.mxu1 %v20971_v52  ;;  %v19083_v52 = vld [vmem:[%s26857_s5 + $0x310] ss:$8 sps:$4 sm:$0xff]   ;;  %5994 = vmatprep.subr.bf16.mxu0 %v19085_v19  ;;  %v4444_v19 = vlaneseq }
 0x41d   : > { %5995 = vmatpush1.bf16.msra.mxu0 %v19083_v52  ;;  %v19188_v52 = vld [vmem:[%s26857_s5 + $0x8f0] ss:$8 sps:$4 sm:$0xff]  }
 0x423   : > { %4075 = vmatmul.mubr.bf16.gmra.mrb[84].mxu1 %v20992_v32  ;;  %v19088_v32 = vld [vmem:[%s26857_s5 + $0x324] ss:$8 sps:$4 sm:$0xff]  }
 0x424   : > { %4084 = vmatprep.mubr.bf16.mxu1 %v20987_v53  ;;  %v19086_v53 = vld [vmem:[%s26857_s5 + $0x320] ss:$8 sps:$4 sm:$0xff]   ;;  %5996 = vmatprep.subr.bf16.mxu0 %v19088_v32 }
 0x425   : > { %5997 = vmatpush1.bf16.msra.mxu0 %v19086_v53  ;;  %v21854_v53 = vshrl.u32 %v4444_v19, 7  ;;  %v19155_v19 = vld [vmem:[%s26857_s5 + $0x410] ss:$8 sps:$4 sm:$0xff]  }
 0x427   : > { %27124 = vst [vmem:[#allocation10_spill] sm:$0xff] %v21854_v53  ;;  %v26865_v32 = vsub.s32 0, %v21854_v53 }
 0x42b   : > { %4085 = vmatmul.mubr.bf16.gmra.mrb[88].mxu1 %v21008_v51  ;;  %v19091_v51 = vld [vmem:[%s26857_s5 + $0x334] ss:$8 sps:$4 sm:$0xff]  }
 0x42c   : > { %4094 = vmatprep.mubr.bf16.mxu1 %v21003_v16  ;;  %v19089_v16 = vld [vmem:[%s26857_s5 + $0x330] ss:$8 sps:$4 sm:$0xff]   ;;  %5998 = vmatprep.subr.bf16.mxu0 %v19091_v51  ;;  %v26864_v51 = vsub.s32 1, %v21854_v53 }
 0x42d   : > { %5999 = vmatpush1.bf16.msra.mxu0 %v19089_v16  ;;  %v4442_v16 = vld [vmem:[%s26856_s4] sm:$0x3] }
 0x433   : > { %4095 = vmatmul.mubr.bf16.gmra.mrb[92].mxu1 %v21024_v27  ;;  %v19092_v27 = vld [vmem:[%s26857_s5 + $0x340] ss:$8 sps:$4 sm:$0xff]  }
 0x434   : > { %4104 = vmatprep.mubr.bf16.mxu1 %v21019_v41  ;;  %v19094_v41 = vld [vmem:[%s26857_s5 + $0x344] ss:$8 sps:$4 sm:$0xff]  }
 0x435   : > { %6000 = vmatprep.subr.bf16.mxu0 %v19094_v41  ;;  %v21863_v41 = vrot.slane %v4442_v16, %v26865_v32 }
 0x436   : > { %6001 = vmatpush1.bf16.msra.mxu0 %v19092_v27  ;;  %v21867_v27 = vrot.slane %v4442_v16, %v26864_v51 }
 0x43b   : > { %4105 = vmatmul.mubr.bf16.gmra.mrb[96].mxu1 %v21040_v54  ;;  %v19095_v54 = vld [vmem:[%s26857_s5 + $0x350] ss:$8 sps:$4 sm:$0xff]  }
 0x43c   : > { %4114 = vmatprep.mubr.bf16.mxu1 %v21035_v3  ;;  %v19097_v3 = vld [vmem:[%s26857_s5 + $0x354] ss:$8 sps:$4 sm:$0xff]  }
 0x43d   : > { %6002 = vmatprep.subr.bf16.mxu0 %v19097_v3 }
 0x43e   : > { %6003 = vmatpush1.bf16.msra.mxu0 %v19095_v54 }
 0x443   : > { %4115 = vmatmul.mubr.bf16.gmra.mrb[100].mxu1 %v21056_v1  ;;  %v19124_v1 = vld [vmem:[%s26857_s5 + $0x804] ss:$8 sps:$4 sm:$0xff]  }
 0x444   : > { %4124 = vmatprep.mubr.bf16.mxu1 %v21051_v18  ;;  %v19122_v18 = vld [vmem:[%s26857_s5 + $0x800] ss:$8 sps:$4 sm:$0xff]   ;;  %17761 = vmatprep.subr.bf16.mxu1 %v19124_v1 }
 0x44b   : > { %4125 = vmatmul.mubr.bf16.gmra.mrb[104].mxu1 %v21072_v46  ;;  %v19127_v46 = vld [vmem:[%s26857_s5 + $0x814] ss:$8 sps:$4 sm:$0xff]  }
 0x44c   : > { %4134 = vmatprep.mubr.bf16.mxu1 %v21067_v5  ;;  %v19100_v5 = vld [vmem:[%s26857_s5 + $0x364] ss:$8 sps:$4 sm:$0xff]  }
 0x44d   : > { %6004 = vmatprep.subr.bf16.mxu0 %v19100_v5 }
 0x453   : > { %4135 = vmatmul.mubr.bf16.gmra.mrb[108].mxu1 %v21088_v2  ;;  %v19098_v2 = vld [vmem:[%s26857_s5 + $0x360] ss:$8 sps:$4 sm:$0xff]  }
 0x454   : > { %4144 = vmatprep.mubr.bf16.mxu1 %v21083_v0  ;;  %v19125_v0 = vld [vmem:[%s26857_s5 + $0x810] ss:$8 sps:$4 sm:$0xff]   ;;  %6005 = vmatpush1.bf16.msra.mxu0 %v19098_v2 }
 0x45b   : > { %4145 = vmatmul.mubr.bf16.gmra.mrb[112].mxu1 %v21104_v62  ;;  %v19101_v62 = vld [vmem:[%s26857_s5 + $0x370] ss:$8 sps:$4 sm:$0xff]  }
 0x45c   : > { %4154 = vmatprep.mubr.bf16.mxu1 %v21099_v43  ;;  %v19103_v43 = vld [vmem:[%s26857_s5 + $0x374] ss:$8 sps:$4 sm:$0xff]  }
 0x45d   : > { %6006 = vmatprep.subr.bf16.mxu0 %v19103_v43 }
 0x45e   : > { %6007 = vmatpush1.bf16.msra.mxu0 %v19101_v62 }
 0x463   : > { %4155 = vmatmul.mubr.bf16.gmra.mrb[116].mxu1 %v21117_v8  ;;  %v19106_v8 = vld [vmem:[%s26857_s5 + $0x384] ss:$8 sps:$4 sm:$0xff]  }
 0x464   : > { %4164 = vmatprep.mubr.bf16.mxu1 %v21119_v13  ;;  %v19104_v13 = vld [vmem:[%s26857_s5 + $0x380] ss:$8 sps:$4 sm:$0xff]   ;;  %6008 = vmatprep.subr.bf16.mxu0 %v19106_v8 }
 0x465   : > { %6009 = vmatpush1.bf16.msra.mxu0 %v19104_v13 }
 0x46b   : > { %4165 = vmatmul.mubr.bf16.gmra.mrb[120].mxu1 %v21129_v63  ;;  %v19109_v63 = vld [vmem:[%s26857_s5 + $0x394] ss:$8 sps:$4 sm:$0xff]  }
 0x46c   : > { %4174 = vmatprep.mubr.bf16.mxu1 %v21240_v55  ;;  %6010 = vmatprep.subr.bf16.mxu0 %v19109_v63 }
 0x473   : > { %4175 = vmatmul.mubr.bf16.gmra.mrb[124].mxu1 %v21240_v55 }
 0x474   : > { %4217 = vmatprep.mubr.bf16.mxu1 %v21240_v55 }
 0x47b   : > { %4218 = vmatmul.mubr.bf16.vlgmr.msra.gmra.mrb[64].mxu1 %v21161_v40  ;;  %v19107_v40 = vld [vmem:[%s26857_s5 + $0x390] ss:$8 sps:$4 sm:$0xff]  }
 0x47c   : > { %4227 = vmatprep.mubr.bf16.mxu1 %v21240_v55  ;;  %17777 = vmatpush1.bf16.msra.mxu1 %v19122_v18 }
 0x47d   : > { %17762 = vmatprep.subr.bf16.mxu1 %v19127_v46  ;;  %6011 = vmatpush1.bf16.msra.mxu0 %v19107_v40 }
 0x480   : > { %17778 = vmatpush1.bf16.msra.mxu1 %v19125_v0 }
 0x483   : > { %4228 = vmatmul.mubr.bf16.gmra.mrb[68].mxu1 %v21180_v15  ;;  %v19112_v15 = vld [vmem:[%s26857_s5 + $0x3a4] ss:$8 sps:$4 sm:$0xff]  }
 0x484   : > { %4237 = vmatprep.mubr.bf16.mxu1 %v21240_v55  ;;  %6012 = vmatprep.subr.bf16.mxu0 %v19112_v15 }
 0x485   : > { %6013 = vmatpush1.bf16.msra.mxu0 %v19110_v57 }
 0x486   : > { %6014 = vmatprep.subr.bf16.mxu0 %v19115_v35 }
 0x48b   : > { %4238 = vmatmul.mubr.bf16.gmra.mrb[72].mxu1 %v21199_v42  ;;  %v19113_v42 = vld [vmem:[%s26857_s5 + $0x3b0] ss:$8 sps:$4 sm:$0xff]  }
 0x48c   : > { %4247 = vmatprep.mubr.bf16.mxu1 %v21240_v55  ;;  %6015 = vmatpush1.bf16.msra.mxu0 %v19113_v42 }
 0x48d   : > { %6016 = vmatprep.subr.bf16.mxu0 %v19118_v56 }
 0x490   : > { %6017 = vmatpush1.bf16.msra.mxu0 %v19116_v44 }
 0x491   : > { %6018 = vmatprep.subr.bf16.mxu0 %v19121_v24 }
 0x493   : > { %4248 = vmatmul.mubr.bf16.gmra.mrb[76].mxu1 %v21218_v28  ;;  %v19119_v28 = vld [vmem:[%s26857_s5 + $0x3d0] ss:$8 sps:$4 sm:$0xff]  }
 0x494   : > { %4257 = vmatprep.mubr.bf16.mxu1 %v21240_v55  ;;  %6019 = vmatpush1.bf16.msra.mxu0 %v19119_v28 }
 0x49b   : > { %4258 = vmatmul.mubr.bf16.gmra.mrb[80].mxu1 %v21237_v37  ;;  %v19133_v37 = vld [vmem:[%s26857_s5 + $0x824] ss:$8 sps:$4 sm:$0xff]  }
 0x49c   : > { %4267 = vmatprep.mubr.bf16.mxu1 %v21240_v55  ;;  %17763 = vmatprep.subr.bf16.mxu1 %v19133_v37 }
 0x4a3   : > { %4268 = vmatmul.mubr.bf16.gmra.mrb[84].mxu1 %v21258_v33  ;;  %v19131_v33 = vld [vmem:[%s26857_s5 + $0x820] ss:$8 sps:$4 sm:$0xff]  }
 0x4a4   : > { %4277 = vmatprep.mubr.bf16.mxu1 %v21240_v55  ;;  %17779 = vmatpush1.bf16.msra.mxu1 %v19131_v33 }
 0x4ab   : > { %4278 = vmatmul.mubr.bf16.gmra.mrb[88].mxu1 %v21277_v45  ;;  %v19128_v45 = vld [vmem:[%s26857_s5 + $0x3e0] ss:$8 sps:$4 sm:$0xff]  }
 0x4ac   : > { %4287 = vmatprep.mubr.bf16.mxu1 %v21240_v55 }
 0x4b3   : > { %4288 = vmatmul.mubr.bf16.gmra.mrb[92].mxu1 %v21290_v30  ;;  %v19130_v30 = vld [vmem:[%s26857_s5 + $0x3e4] ss:$8 sps:$4 sm:$0xff]  }
 0x4b4   : > { %4297 = vmatprep.mubr.bf16.mxu1 %v21240_v55  ;;  %6020 = vmatprep.subr.bf16.mxu0 %v19130_v30 }
 0x4b5   : > { %6021 = vmatpush1.bf16.msra.mxu0 %v19128_v45 }
 0x4b6   : > { %6022 = vmatprep.subr.bf16.mxu0 %v19139_v39 }
 0x4bb   : > { %4298 = vmatmul.mubr.bf16.gmra.mrb[96].mxu1 %v21297_v14  ;;  %v19136_v14 = vld [vmem:[%s26857_s5 + $0x834] ss:$8 sps:$4 sm:$0xff]  }
 0x4bc   : > { %4307 = vmatprep.mubr.bf16.mxu1 %v21240_v55  ;;  %17764 = vmatprep.subr.bf16.mxu1 %v19136_v14 }
 0x4c3   : > { %4308 = vmatmul.mubr.bf16.gmra.mrb[100].mxu1 %v21304_v23  ;;  %v19134_v23 = vld [vmem:[%s26857_s5 + $0x830] ss:$8 sps:$4 sm:$0xff]  }
 0x4c4   : > { %4317 = vmatprep.mubr.bf16.mxu1 %v21240_v55  ;;  %17780 = vmatpush1.bf16.msra.mxu1 %v19134_v23 }
 0x4cb   : > { %4318 = vmatmul.mubr.bf16.gmra.mrb[104].mxu1 %v21311_v47  ;;  %v19142_v47 = vld [vmem:[%s26857_s5 + $0x844] ss:$8 sps:$4 sm:$0xff]  }
 0x4cc   : > { %4327 = vmatprep.mubr.bf16.mxu1 %v21240_v55  ;;  %17765 = vmatprep.subr.bf16.mxu1 %v19142_v47 }
 0x4cd   : > { %17781 = vmatpush1.bf16.msra.mxu1 %v19140_v17 }
 0x4ce   : > { %17766 = vmatprep.subr.bf16.mxu1 %v19145_v38 }
 0x4d1   : > { %17782 = vmatpush1.bf16.msra.mxu1 %v19143_v58 }
 0x4d2   : > { %17767 = vmatprep.subr.bf16.mxu1 %v19151_v7 }
 0x4d3   : > { %4328 = vmatmul.mubr.bf16.gmra.mrb[108].mxu1 %v21318_v12  ;;  %v19137_v12 = vld [vmem:[%s26857_s5 + $0x3f0] ss:$8 sps:$4 sm:$0xff]  }
 0x4d4   : > { %4337 = vmatprep.mubr.bf16.mxu1 %v21240_v55  ;;  %6023 = vmatpush1.bf16.msra.mxu0 %v19137_v12 }
 0x4d5   : > { %17783 = vmatpush1.bf16.msra.mxu1 %v19149_v26 }
 0x4d6   : > { %17768 = vmatprep.subr.bf16.mxu1 %v19154_v50 }
 0x4d9   : > { %17784 = vmatpush1.bf16.msra.mxu1 %v19152_v21 }
 0x4da   : > { %17769 = vmatprep.subr.bf16.mxu1 %v19160_v29  ;;  %v19146_v29 = vld [vmem:[%s26857_s5 + $0x400] ss:$8 sps:$4 sm:$0xff]  }
 0x4db   : > { %4338 = vmatmul.mubr.bf16.gmra.mrb[112].mxu1 %v21325_v49  ;;  %v19148_v49 = vld [vmem:[%s26857_s5 + $0x404] ss:$8 sps:$4 sm:$0xff]  }
 0x4dc   : > { %4347 = vmatprep.mubr.bf16.mxu1 %v21240_v55  ;;  %6185 = vmatprep.subr.bf16.mxu0 %v19148_v49 }
 0x4dd   : > { %17785 = vmatpush1.bf16.msra.mxu1 %v19158_v20 }
 0x4e3   : > { %4348 = vmatmul.mubr.bf16.gmra.mrb[116].mxu1 %v21332_v61  ;;  %v19163_v61 = vld [vmem:[%s26857_s5 + $0x894] ss:$8 sps:$4 sm:$0xff]  }
 0x4e4   : > { %4357 = vmatprep.mubr.bf16.mxu1 %v21240_v55  ;;  %17770 = vmatprep.subr.bf16.mxu1 %v19163_v61 }
 0x4e5   : > { %17786 = vmatpush1.bf16.msra.mxu1 %v19161_v34 }
 0x4e6   : > { %17771 = vmatprep.subr.bf16.mxu1 %v19169_v22  ;;  %v19157_v22 = vld [vmem:[%s26857_s5 + $0x414] ss:$8 sps:$4 sm:$0xff]  }
 0x4e9   : > { %17787 = vmatpush1.bf16.msra.mxu1 %v19167_v11 }
 0x4eb   : > { %4358 = vmatmul.mubr.bf16.gmra.mrb[120].mxu1 %v21339_v36  ;;  %v19172_v36 = vld [vmem:[%s26857_s5 + $0x8b4] ss:$8 sps:$4 sm:$0xff]  }
 0x4ec   : > { %4367 = vmatprep.mubr.bf16.mxu1 %v21240_v55  ;;  %17772 = vmatprep.subr.bf16.mxu1 %v19172_v36 }
 0x4ed   : > { %17788 = vmatpush1.bf16.msra.mxu1 %v19170_v4 }
 0x4ee   : > { %17773 = vmatprep.subr.bf16.mxu1 %v19178_v10 }
 0x4f1   : > { %17789 = vmatpush1.bf16.msra.mxu1 %v19176_v25 }
 0x4f3   : > { %4368 = vmatmul.mubr.bf16.gmra.mrb[124].mxu1 %v21240_v55  ;;  %v19181_v55 = vld [vmem:[%s26857_s5 + $0x8d4] ss:$8 sps:$4 sm:$0xff]  }
 0x4f4   : > { %17774 = vmatprep.subr.bf16.mxu1 %v19181_v55 }
 0x4f5   : > { %17790 = vmatpush1.bf16.msra.mxu1 %v19179_v48 }
 0x4f6   : > { %17775 = vmatprep.subr.bf16.mxu1 %v19187_v60 }
 0x4f9   : > { %17791 = vmatpush1.bf16.msra.mxu1 %v19185_v59 }
 0x4fa   : > { %17776 = vmatprep.subr.bf16.mxu1 %v19190_v9 }
 0x4fd   : > { %17792 = vmatpush1.bf16.msra.mxu1 %v19188_v52 }
 0x54e   : > { %v4219_v3 = vpop.f32.mrb[64].mxu1 }
 0x54f   : > { %v4454_v54 = vadd.f32 %v21863_v41, %v4219_v3  ;;  %v4221_v18 = vpop.f32.mrb[65].mxu1 }
 0x550   : > { %v4455_v1 = vadd.f32 %v21867_v27, %v4221_v18  ;;  %v4223_v5 = vpop.f32.mrb[66].mxu1 }
 0x551   : > { %v4456_v46 = vadd.f32 %v21863_v41, %v4223_v5  ;;  %v4225_v0 = vpop.f32.mrb[67].mxu1  ;;  %v4518_v43 = vmax.f32 %v4454_v54, 0.0 }
 0x552   : > { %v4457_v2 = vadd.f32 %v21867_v27, %v4225_v0  ;;  %v4519_v8 = vmax.f32 %v4455_v1, 0.0  ;;  %v19166_v1 = vld [vmem:[%s26857_s5 + $0x424] ss:$8 sps:$4 sm:$0xff]  }
 0x553   : > { %v4520_v62 = vmax.f32 %v4456_v46, 0.0 }
 0x554   : > { %v4521_v13 = vmax.f32 %v4457_v2, 0.0 }
 0x555   : > { %v21873_v63 = vpack.c.bf16 %v4520_v62, %v4518_v43 }
 0x556   : > { %v21875_v40 = vpack.c.bf16 %v4521_v13, %v4519_v8  ;;  %v4229_v15 = vpop.f32.mrb[68].mxu1 }
 0x557   : > { %v4458_v57 = vadd.f32 %v21863_v41, %v4229_v15  ;;  %v4231_v35 = vpop.f32.mrb[69].mxu1  ;;  %v4615_v42 = vshrl.u32 %v21873_v63, 16  ;;  %v4618_v56 = vshll.u32 %v21873_v63, 16 }
 0x558   : > { %v4459_v44 = vadd.f32 %v21867_v27, %v4231_v35  ;;  %v4233_v24 = vpop.f32.mrb[70].mxu1  ;;  %v4622_v28 = vshrl.u32 %v21875_v40, 16  ;;  %v4625_v37 = vshll.u32 %v21875_v40, 16  ;;  %v19164_v35 = vld [vmem:[%s26857_s5 + $0x420] ss:$8 sps:$4 sm:$0xff]  }
 0x559   : > { %v4460_v33 = vadd.f32 %v21863_v41, %v4233_v24  ;;  %v4235_v45 = vpop.f32.mrb[71].mxu1  ;;  %v4617_v30 = vrot.slane %v4615_v42, 7  ;;  %v4902_v14 = vrot.slane %v4618_v56, 1  ;;  %v4522_v12 = vmax.f32 %v4458_v57, 0.0  ;;  %v19175_v24 = vld [vmem:[%s26857_s5 + $0x434] ss:$8 sps:$4 sm:$0xff]  }
 0x55a   : > { %v4461_v23 = vadd.f32 %v21867_v27, %v4235_v45  ;;  %v4624_v47 = vrot.slane %v4622_v28, 7  ;;  %v4904_v17 = vrot.slane %v4625_v37, 1  ;;  %v4523_v7 = vmax.f32 %v4459_v44, 0.0 }
 0x55b   : > { %v4524_v39 = vmax.f32 %v4460_v33, 0.0  ;;  %v4620_v38 = vor.u32 %v4618_v56, %v4617_v30  ;;  %v21885_v58 = vor.u32 %v4902_v14, %v4615_v42 }
 0x55c   : > { %v4525_v26 = vmax.f32 %v4461_v23, 0.0  ;;  %v4627_v49 = vor.u32 %v4625_v37, %v4624_v47  ;;  %v21887_v50 = vor.u32 %v4904_v17, %v4622_v28 }
 0x55d   : > { %v21889_v21 = vpack.c.bf16 %v4524_v39, %v4522_v12  ;;  %v21907_v4 = vsel %vm20354_vm6, 0, %v4620_v38 }
 0x55e   : > { %v21894_v20 = vpack.c.bf16 %v4525_v26, %v4523_v7  ;;  %v4239_v61 = vpop.f32.mrb[72].mxu1  ;;  %v21898_v34 = vsel %vm20354_vm6, 0, %v4627_v49  ;;  %27126 = vst [vmem:[#allocation12_spill] sm:$0xff] %v21907_v4  ;;  %v19173_v7 = vld [vmem:[%s26857_s5 + $0x430] ss:$8 sps:$4 sm:$0xff]  }
 0x55f   : > { %27125 = vst [vmem:[#allocation11_spill] sm:$0xff] %v21898_v34  ;;  %v4462_v11 = vadd.f32 %v21863_v41, %v4239_v61  ;;  %v4241_v36 = vpop.f32.mrb[73].mxu1  ;;  %6024 = vmatprep.mubr.bf16.mxu0 %v21898_v34  ;;  %v4629_v10 = vshrl.u32 %v21889_v21, 16  ;;  %v4632_v25 = vshll.u32 %v21889_v21, 16  ;;  %v19184_v61 = vld [vmem:[%s26857_s5 + $0x444] ss:$8 sps:$4 sm:$0xff]  }
 0x560   : > { %v4463_v55 = vadd.f32 %v21867_v27, %v4241_v36  ;;  %v4243_v48 = vpop.f32.mrb[74].mxu1  ;;  %6025 = vmatmul.mubr.bf16.vlgmr.msra.gmra.mrb[128].mxu0 %v21907_v4  ;;  %v4636_v60 = vshrl.u32 %v21894_v20, 16  ;;  %v4639_v59 = vshll.u32 %v21894_v20, 16 }
 0x561   : > { %v4464_v9 = vadd.f32 %v21863_v41, %v4243_v48  ;;  %6186 = vmatpush1.bf16.msra.mxu0 %v19146_v29  ;;  %v4245_v52 = vpop.f32.mrb[75].mxu1  ;;  %v4631_v16 = vrot.slane %v4629_v10, 7  ;;  %v4906_v3 = vrot.slane %v4632_v25, 1  ;;  %v4526_v46 = vmax.f32 %v4462_v11, 0.0 }
 0x562   : > { %v4465_v54 = vadd.f32 %v21867_v27, %v4245_v52  ;;  %v4638_v18 = vrot.slane %v4636_v60, 7  ;;  %6187 = vmatprep.subr.bf16.mxu0 %v19157_v22  ;;  %v4908_v5 = vrot.slane %v4639_v59, 1  ;;  %v4527_v62 = vmax.f32 %v4463_v55, 0.0  ;;  %v19182_v52 = vld [vmem:[%s26857_s5 + $0x440] ss:$8 sps:$4 sm:$0xff]  }
 0x563   : > { %v4528_v0 = vmax.f32 %v4464_v9, 0.0  ;;  %v4634_v2 = vor.u32 %v4632_v25, %v4631_v16  ;;  %v21923_v43 = vor.u32 %v4906_v3, %v4629_v10 }
 0x564   : > { %v4529_v8 = vmax.f32 %v4465_v54, 0.0  ;;  %v4641_v13 = vor.u32 %v4639_v59, %v4638_v18  ;;  %v21925_v15 = vor.u32 %v4908_v5, %v4636_v60  ;;  %v19193_v54 = vld [vmem:[%s26857_s5 + $0x454] ss:$8 sps:$4 sm:$0xff]  }
 0x565   : > { %v21927_v57 = vpack.c.bf16 %v4528_v0, %v4526_v46  ;;  %6188 = vmatpush1.bf16.msra.mxu0 %v19155_v19  ;;  %v21945_v33 = vsel %vm20354_vm6, 0, %v4634_v2 }
 0x566   : > { %v21932_v42 = vpack.c.bf16 %v4529_v8, %v4527_v62  ;;  %v4249_v56 = vpop.f32.mrb[76].mxu1  ;;  %v21936_v44 = vsel %vm20354_vm6, 0, %v4641_v13  ;;  %6189 = vmatprep.subr.bf16.mxu0 %v19166_v1  ;;  %27128 = vst [vmem:[#allocation14_spill] sm:$0xff] %v21945_v33 }
 0x567   : > { %27127 = vst [vmem:[#allocation13_spill] sm:$0xff] %v21936_v44  ;;  %v4466_v28 = vadd.f32 %v21863_v41, %v4249_v56  ;;  %v4251_v37 = vpop.f32.mrb[77].mxu1  ;;  %6034 = vmatprep.mubr.bf16.mxu0 %v21936_v44  ;;  %v4643_v45 = vshrl.u32 %v21927_v57, 16  ;;  %v4646_v30 = vshll.u32 %v21927_v57, 16 }
 0x568   : > { %v4467_v14 = vadd.f32 %v21867_v27, %v4251_v37  ;;  %v4253_v23 = vpop.f32.mrb[78].mxu1  ;;  %6035 = vmatmul.mubr.bf16.gmra.mrb[132].mxu0 %v21945_v33  ;;  %v4650_v47 = vshrl.u32 %v21932_v42, 16  ;;  %v4653_v17 = vshll.u32 %v21932_v42, 16 }
 0x569   : > { %v4468_v12 = vadd.f32 %v21863_v41, %v4253_v23  ;;  %v4255_v39 = vpop.f32.mrb[79].mxu1  ;;  %v4645_v38 = vrot.slane %v4643_v45, 7  ;;  %6190 = vmatpush1.bf16.msra.mxu0 %v19164_v35  ;;  %v4910_v26 = vrot.slane %v4646_v30, 1  ;;  %v4530_v11 = vmax.f32 %v4466_v28, 0.0  ;;  %v19191_v28 = vld [vmem:[%s26857_s5 + $0x450] ss:$8 sps:$4 sm:$0xff]  }
 0x56a   : > { %v4469_v49 = vadd.f32 %v21867_v27, %v4255_v39  ;;  %v4652_v29 = vrot.slane %v4650_v47, 7  ;;  %6191 = vmatprep.subr.bf16.mxu0 %v19175_v24  ;;  %v4912_v22 = vrot.slane %v4653_v17, 1  ;;  %v4531_v55 = vmax.f32 %v4467_v14, 0.0  ;;  %v19196_v14 = vld [vmem:[%s26857_s5 + $0x464] ss:$8 sps:$4 sm:$0xff]  }
 0x56b   : > { %v4532_v36 = vmax.f32 %v4468_v12, 0.0  ;;  %v4648_v10 = vor.u32 %v4646_v30, %v4645_v38  ;;  %v21961_v25 = vor.u32 %v4910_v26, %v4643_v45 }
 0x56c   : > { %v4533_v48 = vmax.f32 %v4469_v49, 0.0  ;;  %v4655_v60 = vor.u32 %v4653_v17, %v4652_v29  ;;  %v21963_v59 = vor.u32 %v4912_v22, %v4650_v47 }
 0x56d   : > { %v21965_v9 = vpack.c.bf16 %v4532_v36, %v4530_v11  ;;  %6192 = vmatpush1.bf16.msra.mxu0 %v19173_v7  ;;  %v21983_v5 = vsel %vm20354_vm6, 0, %v4648_v10  ;;  %v19199_v10 = vld [vmem:[%s26857_s5 + $0x474] ss:$8 sps:$4 sm:$0xff]  }
 0x56e   : > { %v21970_v19 = vpack.c.bf16 %v4533_v48, %v4531_v55  ;;  %v4259_v16 = vpop.f32.mrb[80].mxu1  ;;  %v21974_v3 = vsel %vm20354_vm6, 0, %v4655_v60  ;;  %6193 = vmatprep.subr.bf16.mxu0 %v19184_v61  ;;  %27130 = vst [vmem:[#allocation16_spill] sm:$0xff] %v21983_v5  ;;  %v19194_v61 = vld [vmem:[%s26857_s5 + $0x460] ss:$8 sps:$4 sm:$0xff]  }
 0x56f   : > { %27129 = vst [vmem:[#allocation15_spill] sm:$0xff] %v21974_v3  ;;  %v4470_v18 = vadd.f32 %v21863_v41, %v4259_v16  ;;  %v4261_v1 = vpop.f32.mrb[81].mxu1  ;;  %6044 = vmatprep.mubr.bf16.mxu0 %v21974_v3  ;;  %v4657_v46 = vshrl.u32 %v21965_v9, 16  ;;  %v4660_v0 = vshll.u32 %v21965_v9, 16 }
 0x570   : > { %v4471_v2 = vadd.f32 %v21867_v27, %v4261_v1  ;;  %v4263_v62 = vpop.f32.mrb[82].mxu1  ;;  %6045 = vmatmul.mubr.bf16.gmra.mrb[136].mxu0 %v21983_v5  ;;  %v4664_v8 = vshrl.u32 %v21970_v19, 16  ;;  %v4667_v13 = vshll.u32 %v21970_v19, 16 }
 0x571   : > { %v4472_v35 = vadd.f32 %v21863_v41, %v4263_v62  ;;  %v4265_v56 = vpop.f32.mrb[83].mxu1  ;;  %v4659_v24 = vrot.slane %v4657_v46, 7  ;;  %6194 = vmatpush1.bf16.msra.mxu0 %v19182_v52  ;;  %v4914_v37 = vrot.slane %v4660_v0, 1  ;;  %v4534_v47 = vmax.f32 %v4470_v18, 0.0 }
 0x572   : > { %v4473_v45 = vadd.f32 %v21867_v27, %v4265_v56  ;;  %v4666_v30 = vrot.slane %v4664_v8, 7  ;;  %6195 = vmatprep.subr.bf16.mxu0 %v19193_v54  ;;  %v4916_v23 = vrot.slane %v4667_v13, 1  ;;  %v4535_v38 = vmax.f32 %v4471_v2, 0.0 }
 0x573   : > { %v4536_v17 = vmax.f32 %v4472_v35, 0.0  ;;  %v4662_v12 = vor.u32 %v4660_v0, %v4659_v24  ;;  %v21999_v39 = vor.u32 %v4914_v37, %v4657_v46  ;;  %v19202_v24 = vld [vmem:[%s26857_s5 + $0x484] ss:$8 sps:$4 sm:$0xff]  }
 0x574   : > { %v4537_v7 = vmax.f32 %v4473_v45, 0.0  ;;  %v4669_v26 = vor.u32 %v4667_v13, %v4666_v30  ;;  %v22001_v49 = vor.u32 %v4916_v23, %v4664_v8  ;;  %v19197_v8 = vld [vmem:[%s26857_s5 + $0x470] ss:$8 sps:$4 sm:$0xff]  }
 0x575   : > { %27131 = vst [vmem:[#allocation17_spill] sm:$0xff] %v21999_v39  ;;  %v22003_v29 = vpack.c.bf16 %v4536_v17, %v4534_v47  ;;  %6196 = vmatpush1.bf16.msra.mxu0 %v19191_v28  ;;  %v22021_v60 = vsel %vm20354_vm6, 0, %v4662_v12 }
 0x576   : > { %27132 = vst [vmem:[#allocation18_spill] sm:$0xff] %v22001_v49  ;;  %v22008_v22 = vpack.c.bf16 %v4537_v7, %v4535_v38  ;;  %v4269_v11 = vpop.f32.mrb[84].mxu1  ;;  %v22012_v36 = vsel %vm20354_vm6, 0, %v4669_v26  ;;  %6197 = vmatprep.subr.bf16.mxu0 %v19196_v14  ;;  %27134 = vst [vmem:[#allocation20_spill] sm:$0xff] %v22021_v60  ;;  %v19200_v7 = vld [vmem:[%s26857_s5 + $0x480] ss:$8 sps:$4 sm:$0xff]  }
 0x577   : > { %27133 = vst [vmem:[#allocation19_spill] sm:$0xff] %v22012_v36  ;;  %v4474_v55 = vadd.f32 %v21863_v41, %v4269_v11  ;;  %v4271_v48 = vpop.f32.mrb[85].mxu1  ;;  %6054 = vmatprep.mubr.bf16.mxu0 %v22012_v36  ;;  %v4671_v52 = vshrl.u32 %v22003_v29, 16  ;;  %v4674_v16 = vshll.u32 %v22003_v29, 16 }
 0x578   : > { %v4475_v54 = vadd.f32 %v21867_v27, %v4271_v48  ;;  %v4273_v18 = vpop.f32.mrb[86].mxu1  ;;  %6055 = vmatmul.mubr.bf16.gmra.mrb[140].mxu0 %v22021_v60  ;;  %v4678_v1 = vshrl.u32 %v22008_v22, 16  ;;  %v4681_v46 = vshll.u32 %v22008_v22, 16 }
 0x579   : > { %v4476_v0 = vadd.f32 %v21863_v41, %v4273_v18  ;;  %v4275_v2 = vpop.f32.mrb[87].mxu1  ;;  %v4673_v62 = vrot.slane %v4671_v52, 7  ;;  %6198 = vmatpush1.bf16.msra.mxu0 %v19194_v61  ;;  %v4918_v13 = vrot.slane %v4674_v16, 1  ;;  %v4538_v37 = vmax.f32 %v4474_v55, 0.0 }
 0x57a   : > { %v4477_v35 = vadd.f32 %v21867_v27, %v4275_v2  ;;  %v4680_v56 = vrot.slane %v4678_v1, 7  ;;  %6199 = vmatprep.subr.bf16.mxu0 %v19199_v10  ;;  %v4920_v28 = vrot.slane %v4681_v46, 1  ;;  %v4539_v23 = vmax.f32 %v4475_v54, 0.0  ;;  %v19205_v10 = vld [vmem:[%s26857_s5 + $0x494] ss:$8 sps:$4 sm:$0xff]  }
 0x57b   : > { %v4540_v45 = vmax.f32 %v4476_v0, 0.0  ;;  %v4676_v30 = vor.u32 %v4674_v16, %v4673_v62  ;;  %v22037_v14 = vor.u32 %v4918_v13, %v4671_v52 }
 0x57c   : > { %v4541_v47 = vmax.f32 %v4477_v35, 0.0  ;;  %v4683_v17 = vor.u32 %v4681_v46, %v4680_v56  ;;  %v22039_v12 = vor.u32 %v4920_v28, %v4678_v1  ;;  %v19203_v35 = vld [vmem:[%s26857_s5 + $0x490] ss:$8 sps:$4 sm:$0xff]  }
 0x57d   : > { %27135 = vst [vmem:[#allocation21_spill] sm:$0xff] %v22037_v14  ;;  %v22041_v38 = vpack.c.bf16 %v4540_v45, %v4538_v37  ;;  %6200 = vmatpush1.bf16.msra.mxu0 %v19197_v8  ;;  %v22059_v52 = vsel %vm20354_vm6, 0, %v4676_v30  ;;  %v19208_v37 = vld [vmem:[%s26857_s5 + $0x4a4] ss:$8 sps:$4 sm:$0xff]  }
 0x57e   : > { %27136 = vst [vmem:[#allocation22_spill] sm:$0xff] %v22039_v12  ;;  %v22046_v26 = vpack.c.bf16 %v4541_v47, %v4539_v23  ;;  %v4279_v61 = vpop.f32.mrb[88].mxu1  ;;  %v22050_v11 = vsel %vm20354_vm6, 0, %v4683_v17  ;;  %6201 = vmatprep.subr.bf16.mxu0 %v19202_v24  ;;  %27138 = vst [vmem:[#allocation24_spill] sm:$0xff] %v22059_v52 }
 0x57f   : > { %27137 = vst [vmem:[#allocation23_spill] sm:$0xff] %v22050_v11  ;;  %v4478_v55 = vadd.f32 %v21863_v41, %v4279_v61  ;;  %v4281_v48 = vpop.f32.mrb[89].mxu1  ;;  %6064 = vmatprep.mubr.bf16.mxu0 %v22050_v11  ;;  %v4685_v16 = vshrl.u32 %v22041_v38, 16  ;;  %v4688_v54 = vshll.u32 %v22041_v38, 16 }
 0x580   : > { %v4479_v18 = vadd.f32 %v21867_v27, %v4281_v48  ;;  %v4283_v1 = vpop.f32.mrb[90].mxu1  ;;  %6065 = vmatmul.mubr.bf16.gmra.mrb[144].mxu0 %v22059_v52  ;;  %v4692_v46 = vshrl.u32 %v22046_v26, 16  ;;  %v4695_v0 = vshll.u32 %v22046_v26, 16 }
 0x581   : > { %v4480_v2 = vadd.f32 %v21863_v41, %v4283_v1  ;;  %v4285_v62 = vpop.f32.mrb[91].mxu1  ;;  %v4687_v8 = vrot.slane %v4685_v16, 7  ;;  %v4922_v13 = vrot.slane %v4688_v54, 1  ;;  %6202 = vmatpush1.bf16.msra.mxu0 %v19200_v7  ;;  %v4542_v45 = vmax.f32 %v4478_v55, 0.0 }
 0x582   : > { %v4481_v56 = vadd.f32 %v21867_v27, %v4285_v62  ;;  %v4694_v24 = vrot.slane %v4692_v46, 7  ;;  %v4924_v28 = vrot.slane %v4695_v0, 1  ;;  %6203 = vmatprep.subr.bf16.mxu0 %v19205_v10  ;;  %v4543_v17 = vmax.f32 %v4479_v18, 0.0  ;;  %v19206_v62 = vld [vmem:[%s26857_s5 + $0x4a0] ss:$8 sps:$4 sm:$0xff]  }
 0x583   : > { %v4544_v30 = vmax.f32 %v4480_v2, 0.0  ;;  %v4690_v23 = vor.u32 %v4688_v54, %v4687_v8  ;;  %v4923_v47 = vor.u32 %v4922_v13, %v4685_v16  ;;  %v19211_v18 = vld [vmem:[%s26857_s5 + $0x4b4] ss:$8 sps:$4 sm:$0xff]  }
 0x584   : > { %v4545_v61 = vmax.f32 %v4481_v56, 0.0  ;;  %v4697_v7 = vor.u32 %v4695_v0, %v4694_v24  ;;  %v4925_v48 = vor.u32 %v4924_v28, %v4692_v46 }
 0x585   : > { %v22075_v1 = vpack.c.bf16 %v4544_v30, %v4542_v45  ;;  %6204 = vmatpush1.bf16.msra.mxu0 %v19203_v35  ;;  %v22092_v54 = vsel %vm20354_vm6, 0, %v4690_v23  ;;  %v22102_v2 = vsel %vm20207_vm3, %v4923_v47, 0  ;;  %v19209_v23 = vld [vmem:[%s26857_s5 + $0x4b0] ss:$8 sps:$4 sm:$0xff]  }
 0x586   : > { %v22080_v10 = vpack.c.bf16 %v4545_v61, %v4543_v17  ;;  %v4289_v51 = vpop.f32.mrb[92].mxu1  ;;  %v22084_v55 = vsel %vm20354_vm6, 0, %v4697_v7  ;;  %v22088_v16 = vsel %vm20207_vm3, %v4925_v48, 0  ;;  %27141 = vst [vmem:[#allocation27_spill] sm:$0xff] %v22092_v54  ;;  %6205 = vmatprep.subr.bf16.mxu0 %v19208_v37  ;;  %27142 = vst [vmem:[#allocation28_spill] sm:$0xff] %v22102_v2 }
 0x587   : > { %27139 = vst [vmem:[#allocation25_spill] sm:$0xff] %v22084_v55  ;;  %27140 = vst [vmem:[#allocation26_spill] sm:$0xff] %v22088_v16  ;;  %v4482_v46 = vadd.f32 %v21863_v41, %v4289_v51  ;;  %v4291_v0 = vpop.f32.mrb[93].mxu1  ;;  %6074 = vmatprep.mubr.bf16.mxu0 %v22084_v55  ;;  %8762 = vmatprep.mubr.bf16.mxu1 %v22088_v16  ;;  %v4699_v8 = vshrl.u32 %v22075_v1, 16  ;;  %v4702_v13 = vshll.u32 %v22075_v1, 16 }
 0x588   : > { %v4483_v35 = vadd.f32 %v21867_v27, %v4291_v0  ;;  %v4293_v56 = vpop.f32.mrb[94].mxu1  ;;  %6075 = vmatmul.mubr.bf16.gmra.mrb[148].mxu0 %v22092_v54  ;;  %8763 = vmatmul.mubr.bf16.vlgmr.msra.gmra.mrb[128].mxu1 %v22102_v2  ;;  %v4706_v51 = vshrl.u32 %v22080_v10, 16  ;;  %v4709_v24 = vshll.u32 %v22080_v10, 16  ;;  %v19214_v7 = vld [vmem:[%s26857_s5 + $0x4c4] ss:$8 sps:$4 sm:$0xff]  }
 0x589   : > { %v4484_v28 = vadd.f32 %v21863_v41, %v4293_v56  ;;  %v4295_v37 = vpop.f32.mrb[95].mxu1  ;;  %v4701_v45 = vrot.slane %v4699_v8, 7  ;;  %v4926_v30 = vrot.slane %v4702_v13, 1  ;;  %6206 = vmatpush1.bf16.msra.mxu0 %v19206_v62  ;;  %v4546_v48 = vmax.f32 %v4482_v46, 0.0 }
 0x58a   : > { %v4485_v47 = vadd.f32 %v21867_v27, %v4295_v37  ;;  %v4708_v17 = vrot.slane %v4706_v51, 7  ;;  %v4928_v61 = vrot.slane %v4709_v24, 1  ;;  %6207 = vmatprep.subr.bf16.mxu0 %v19211_v18  ;;  %v4547_v53 = vmax.f32 %v4483_v35, 0.0  ;;  %v19212_v37 = vld [vmem:[%s26857_s5 + $0x4c0] ss:$8 sps:$4 sm:$0xff]  }
 0x58b   : > { %v4548_v0 = vmax.f32 %v4484_v28, 0.0  ;;  %v4704_v56 = vor.u32 %v4702_v13, %v4701_v45  ;;  %v4927_v32 = vor.u32 %v4926_v30, %v4699_v8  ;;  %v19217_v35 = vld [vmem:[%s26857_s5 + $0x4d4] ss:$8 sps:$4 sm:$0xff]  }
 0x58c   : > { %v4549_v54 = vmax.f32 %v4485_v47, 0.0  ;;  %v4711_v62 = vor.u32 %v4709_v24, %v4708_v17  ;;  %v4929_v55 = vor.u32 %v4928_v61, %v4706_v51  ;;  %v19215_v61 = vld [vmem:[%s26857_s5 + $0x4d0] ss:$8 sps:$4 sm:$0xff]  }
 0x58d   : > { %v22119_v52 = vpack.c.bf16 %v4548_v0, %v4546_v48  ;;  %6208 = vmatpush1.bf16.msra.mxu0 %v19209_v23  ;;  %v22136_v13 = vsel %vm20354_vm6, 0, %v4704_v56  ;;  %v19220_v56 = vld [vmem:[%s26857_s5 + $0x4e4] ss:$8 sps:$4 sm:$0xff]  }
 0x58e   : > { %v22124_v18 = vpack.c.bf16 %v4549_v54, %v4547_v53  ;;  %v4299_v11 = vpop.f32.mrb[96].mxu1  ;;  %v22128_v46 = vsel %vm20354_vm6, 0, %v4711_v62  ;;  %v22132_v8 = vsel %vm20207_vm3, %v4929_v55, 0  ;;  %27145 = vst [vmem:[#allocation31_spill] sm:$0xff] %v22136_v13  ;;  %6209 = vmatprep.subr.bf16.mxu0 %v19214_v7  ;;  %v22146_v55 = vsel %vm20207_vm3, %v4927_v32, 0 }
 0x58f   : > { %27143 = vst [vmem:[#allocation29_spill] sm:$0xff] %v22128_v46  ;;  %27144 = vst [vmem:[#allocation30_spill] sm:$0xff] %v22132_v8  ;;  %v4486_v53 = vadd.f32 %v21863_v41, %v4299_v11  ;;  %v4301_v54 = vpop.f32.mrb[97].mxu1  ;;  %6084 = vmatprep.mubr.bf16.mxu0 %v22128_v46  ;;  %8772 = vmatprep.mubr.bf16.mxu1 %v22132_v8  ;;  %v4713_v51 = vshrl.u32 %v22119_v52, 16  ;;  %v4716_v24 = vshll.u32 %v22119_v52, 16 }
 0x590   : > { %27146 = vst [vmem:[#allocation32_spill] sm:$0xff] %v22146_v55  ;;  %v4487_v28 = vadd.f32 %v21867_v27, %v4301_v54  ;;  %v4303_v45 = vpop.f32.mrb[98].mxu1  ;;  %6085 = vmatmul.mubr.bf16.gmra.mrb[152].mxu0 %v22136_v13  ;;  %8773 = vmatmul.mubr.bf16.gmra.mrb[132].mxu1 %v22146_v55  ;;  %v4720_v11 = vshrl.u32 %v22124_v18, 16  ;;  %v4723_v30 = vshll.u32 %v22124_v18, 16 }
 0x591   : > { %v4488_v23 = vadd.f32 %v21863_v41, %v4303_v45  ;;  %v4305_v47 = vpop.f32.mrb[99].mxu1  ;;  %v4715_v32 = vrot.slane %v4713_v51, 7  ;;  %v4930_v17 = vrot.slane %v4716_v24, 1  ;;  %6210 = vmatpush1.bf16.msra.mxu0 %v19212_v37  ;;  %v4550_v62 = vmax.f32 %v4486_v53, 0.0 }
 0x592   : > { %v4489_v7 = vadd.f32 %v21867_v27, %v4305_v47  ;;  %v4722_v48 = vrot.slane %v4720_v11, 7  ;;  %v4932_v0 = vrot.slane %v4723_v30, 1  ;;  %6211 = vmatprep.subr.bf16.mxu0 %v19217_v35  ;;  %v4551_v46 = vmax.f32 %v4487_v28, 0.0  ;;  %v19218_v47 = vld [vmem:[%s26857_s5 + $0x4e0] ss:$8 sps:$4 sm:$0xff]  }
 0x593   : > { %v4552_v54 = vmax.f32 %v4488_v23, 0.0  ;;  %v4718_v45 = vor.u32 %v4716_v24, %v4715_v32  ;;  %v4931_v13 = vor.u32 %v4930_v17, %v4713_v51  ;;  %v19223_v28 = vld [vmem:[%s26857_s5 + $0x4f4] ss:$8 sps:$4 sm:$0xff]  }
 0x594   : > { %v4553_v60 = vmax.f32 %v4489_v7, 0.0  ;;  %v4725_v37 = vor.u32 %v4723_v30, %v4722_v48  ;;  %v4933_v36 = vor.u32 %v4932_v0, %v4720_v11  ;;  %v19221_v0 = vld [vmem:[%s26857_s5 + $0x4f0] ss:$8 sps:$4 sm:$0xff]  }
 0x595   : > { %v22163_v5 = vpack.c.bf16 %v4552_v54, %v4550_v62  ;;  %6212 = vmatpush1.bf16.msra.mxu0 %v19215_v61  ;;  %v22180_v24 = vsel %vm20354_vm6, 0, %v4718_v45  ;;  %v19226_v45 = vld [vmem:[%s26857_s5 + $0x504] ss:$8 sps:$4 sm:$0xff]  }
 0x596   : > { %v22168_v35 = vpack.c.bf16 %v4553_v60, %v4551_v46  ;;  %v4309_v3 = vpop.f32.mrb[100].mxu1  ;;  %v22172_v53 = vsel %vm20354_vm6, 0, %v4725_v37  ;;  %v22176_v51 = vsel %vm20207_vm3, %v4933_v36, 0  ;;  %27149 = vst [vmem:[#allocation35_spill] sm:$0xff] %v22180_v24  ;;  %6213 = vmatprep.subr.bf16.mxu0 %v19220_v56  ;;  %v22190_v36 = vsel %vm20207_vm3, %v4931_v13, 0 }
 0x597   : > { %27147 = vst [vmem:[#allocation33_spill] sm:$0xff] %v22172_v53  ;;  %27148 = vst [vmem:[#allocation34_spill] sm:$0xff] %v22176_v51  ;;  %v4490_v60 = vadd.f32 %v21863_v41, %v4309_v3  ;;  %v4311_v46 = vpop.f32.mrb[101].mxu1  ;;  %6094 = vmatprep.mubr.bf16.mxu0 %v22172_v53  ;;  %8782 = vmatprep.mubr.bf16.mxu1 %v22176_v51  ;;  %v4727_v11 = vshrl.u32 %v22163_v5, 16  ;;  %v4730_v30 = vshll.u32 %v22163_v5, 16 }
 0x598   : > { %27150 = vst [vmem:[#allocation36_spill] sm:$0xff] %v22190_v36  ;;  %v4491_v23 = vadd.f32 %v21867_v27, %v4311_v46  ;;  %v4313_v32 = vpop.f32.mrb[102].mxu1  ;;  %6095 = vmatmul.mubr.bf16.gmra.mrb[156].mxu0 %v22180_v24  ;;  %8783 = vmatmul.mubr.bf16.gmra.mrb[136].mxu1 %v22190_v36  ;;  %v4734_v3 = vshrl.u32 %v22168_v35, 16  ;;  %v4737_v17 = vshll.u32 %v22168_v35, 16 }
 0x599   : > { %v4492_v61 = vadd.f32 %v21863_v41, %v4313_v32  ;;  %v4315_v7 = vpop.f32.mrb[103].mxu1  ;;  %v4729_v13 = vrot.slane %v4727_v11, 7  ;;  %v4934_v48 = vrot.slane %v4730_v30, 1  ;;  %6214 = vmatpush1.bf16.msra.mxu0 %v19218_v47  ;;  %v4554_v37 = vmax.f32 %v4490_v60, 0.0 }
 0x59a   : > { %v4493_v56 = vadd.f32 %v21867_v27, %v4315_v7  ;;  %v4736_v62 = vrot.slane %v4734_v3, 7  ;;  %v4936_v54 = vrot.slane %v4737_v17, 1  ;;  %6215 = vmatprep.subr.bf16.mxu0 %v19223_v28  ;;  %v4555_v53 = vmax.f32 %v4491_v23, 0.0 }
 0x59b   : > { %v4556_v46 = vmax.f32 %v4492_v61, 0.0  ;;  %v4732_v32 = vor.u32 %v4730_v30, %v4729_v13  ;;  %v4935_v24 = vor.u32 %v4934_v48, %v4727_v11 }
 0x59c   : > { %v4557_v33 = vmax.f32 %v4493_v56, 0.0  ;;  %v4739_v47 = vor.u32 %v4737_v17, %v4736_v62  ;;  %v4937_v44 = vor.u32 %v4936_v54, %v4734_v3 }
 0x59d   : > { %v22207_v4 = vpack.c.bf16 %v4556_v46, %v4554_v37  ;;  %6216 = vmatpush1.bf16.msra.mxu0 %v19221_v0  ;;  %v22221_v11 = vsel %vm20354_vm6, 0, %v4732_v32 }
 0x59e   : > { %v22209_v34 = vpack.c.bf16 %v4557_v33, %v4555_v53  ;;  %v4319_v7 = vpop.f32.mrb[104].mxu1  ;;  %v22213_v28 = vsel %vm20354_vm6, 0, %v4739_v47  ;;  %v22217_v60 = vsel %vm20207_vm3, %v4937_v44, 0  ;;  %27153 = vst [vmem:[#allocation39_spill] sm:$0xff] %v22221_v11  ;;  %6378 = vmatprep.subr.bf16.mxu0 %v19226_v45  ;;  %v22228_v33 = vsel %vm20207_vm3, %v4935_v24, 0 }
 0x59f   : > { %27151 = vst [vmem:[#allocation37_spill] sm:$0xff] %v22213_v28  ;;  %27152 = vst [vmem:[#allocation38_spill] sm:$0xff] %v22217_v60  ;;  %v4494_v30 = vadd.f32 %v21863_v41, %v4319_v7  ;;  %v4321_v23 = vpop.f32.mrb[105].mxu1  ;;  %6104 = vmatprep.mubr.bf16.mxu0 %v22213_v28  ;;  %8792 = vmatprep.mubr.bf16.mxu1 %v22217_v60  ;;  %v4741_v53 = vshrl.u32 %v22207_v4, 16  ;;  %v4744_v44 = vshll.u32 %v22207_v4, 16 }
 0x5a0   : > { %27154 = vst [vmem:[#allocation40_spill] sm:$0xff] %v22228_v33  ;;  %v4495_v3 = vadd.f32 %v21867_v27, %v4321_v23  ;;  %v4323_v17 = vpop.f32.mrb[106].mxu1  ;;  %6105 = vmatmul.mubr.bf16.gmra.mrb[160].mxu0 %v22221_v11  ;;  %8793 = vmatmul.mubr.bf16.gmra.mrb[140].mxu1 %v22228_v33  ;;  %v4748_v61 = vshrl.u32 %v22209_v34, 16  ;;  %v4751_v13 = vshll.u32 %v22209_v34, 16 }
 0x5a1   : > { %v4496_v48 = vadd.f32 %v21863_v41, %v4323_v17  ;;  %v4325_v0 = vpop.f32.mrb[107].mxu1  ;;  %v4743_v24 = vrot.slane %v4741_v53, 7  ;;  %v4938_v56 = vrot.slane %v4744_v44, 1  ;;  %v4558_v37 = vmax.f32 %v4494_v30, 0.0 }
 0x5a2   : > { %v4497_v62 = vadd.f32 %v21867_v27, %v4325_v0  ;;  %v4750_v54 = vrot.slane %v4748_v61, 7  ;;  %v4940_v45 = vrot.slane %v4751_v13, 1  ;;  %v4559_v7 = vmax.f32 %v4495_v3, 0.0 }
 0x5a3   : > { %v4560_v46 = vmax.f32 %v4496_v48, 0.0  ;;  %v4746_v32 = vor.u32 %v4744_v44, %v4743_v24  ;;  %v4939_v47 = vor.u32 %v4938_v56, %v4741_v53 }
 0x5a4   : > { %v4561_v23 = vmax.f32 %v4497_v62, 0.0  ;;  %v4753_v11 = vor.u32 %v4751_v13, %v4750_v54  ;;  %v4941_v28 = vor.u32 %v4940_v45, %v4748_v61 }
 0x5a5   : > { %v22239_v33 = vpack.c.bf16 %v4560_v46, %v4558_v37  ;;  %v22253_v30 = vsel %vm20354_vm6, 0, %v4746_v32  ;;  %v22260_v3 = vsel %vm20207_vm3, %v4939_v47, 0 }
 0x5a6   : > { %v22241_v60 = vpack.c.bf16 %v4561_v23, %v4559_v7  ;;  %v4329_v17 = vpop.f32.mrb[108].mxu1  ;;  %v22245_v36 = vsel %vm20354_vm6, 0, %v4753_v11  ;;  %v22249_v0 = vsel %vm20207_vm3, %v4941_v28, 0  ;;  %27157 = vst [vmem:[#allocation43_spill] sm:$0xff] %v22253_v30  ;;  %27158 = vst [vmem:[#allocation44_spill] sm:$0xff] %v22260_v3 }
 0x5a7   : > { %27155 = vst [vmem:[#allocation41_spill] sm:$0xff] %v22245_v36  ;;  %27156 = vst [vmem:[#allocation42_spill] sm:$0xff] %v22249_v0  ;;  %v4498_v53 = vadd.f32 %v21863_v41, %v4329_v17  ;;  %v4331_v44 = vpop.f32.mrb[109].mxu1  ;;  %6114 = vmatprep.mubr.bf16.mxu0 %v22245_v36  ;;  %8802 = vmatprep.mubr.bf16.mxu1 %v22249_v0  ;;  %v4755_v11 = vshrl.u32 %v22239_v33, 16  ;;  %v4758_v28 = vshll.u32 %v22239_v33, 16 }
 0x5a8   : > { %v4499_v61 = vadd.f32 %v21867_v27, %v4331_v44  ;;  %v4333_v13 = vpop.f32.mrb[110].mxu1  ;;  %6115 = vmatmul.mubr.bf16.gmra.mrb[164].mxu0 %v22253_v30  ;;  %8803 = vmatmul.mubr.bf16.gmra.mrb[144].mxu1 %v22260_v3  ;;  %v4762_v48 = vshrl.u32 %v22241_v60, 16  ;;  %v4765_v24 = vshll.u32 %v22241_v60, 16 }
 0x5a9   : > { %v4500_v56 = vadd.f32 %v21863_v41, %v4333_v13  ;;  %v4335_v62 = vpop.f32.mrb[111].mxu1  ;;  %v4757_v54 = vrot.slane %v4755_v11, 7  ;;  %v4942_v45 = vrot.slane %v4758_v28, 1  ;;  %v4562_v47 = vmax.f32 %v4498_v53, 0.0 }
 0x5aa   : > { %v4501_v37 = vadd.f32 %v21867_v27, %v4335_v62  ;;  %v4764_v46 = vrot.slane %v4762_v48, 7  ;;  %v4944_v32 = vrot.slane %v4765_v24, 1  ;;  %v4563_v44 = vmax.f32 %v4499_v61, 0.0 }
 0x5ab   : > { %v4564_v7 = vmax.f32 %v4500_v56, 0.0  ;;  %v4760_v23 = vor.u32 %v4758_v28, %v4757_v54  ;;  %v4943_v17 = vor.u32 %v4942_v45, %v4755_v11 }
 0x5ac   : > { %v4565_v30 = vmax.f32 %v4501_v37, 0.0  ;;  %v4767_v36 = vor.u32 %v4765_v24, %v4764_v46  ;;  %v4945_v3 = vor.u32 %v4944_v32, %v4762_v48 }
 0x5ad   : > { %v22271_v0 = vpack.c.bf16 %v4564_v7, %v4562_v47  ;;  %v22285_v53 = vsel %vm20354_vm6, 0, %v4760_v23 }
 0x5ae   : > { %v22273_v51 = vpack.c.bf16 %v4565_v30, %v4563_v44  ;;  %v4339_v13 = vpop.f32.mrb[112].mxu1  ;;  %v22277_v55 = vsel %vm20354_vm6, 0, %v4767_v36  ;;  %v22281_v62 = vsel %vm20207_vm3, %v4945_v3, 0  ;;  %27161 = vst [vmem:[#allocation47_spill] sm:$0xff] %v22285_v53  ;;  %v22292_v30 = vsel %vm20207_vm3, %v4943_v17, 0 }
 0x5af   : > { %27159 = vst [vmem:[#allocation45_spill] sm:$0xff] %v22277_v55  ;;  %27160 = vst [vmem:[#allocation46_spill] sm:$0xff] %v22281_v62  ;;  %v4502_v11 = vadd.f32 %v21863_v41, %v4339_v13  ;;  %v4341_v28 = vpop.f32.mrb[113].mxu1  ;;  %6124 = vmatprep.mubr.bf16.mxu0 %v22277_v55  ;;  %8812 = vmatprep.mubr.bf16.mxu1 %v22281_v62  ;;  %v4769_v36 = vshrl.u32 %v22271_v0, 16  ;;  %v4772_v3 = vshll.u32 %v22271_v0, 16 }
 0x5b0   : > { %27162 = vst [vmem:[#allocation48_spill] sm:$0xff] %v22292_v30  ;;  %v4503_v61 = vadd.f32 %v21867_v27, %v4341_v28  ;;  %v4343_v48 = vpop.f32.mrb[114].mxu1  ;;  %6125 = vmatmul.mubr.bf16.gmra.mrb[168].mxu0 %v22285_v53  ;;  %8813 = vmatmul.mubr.bf16.gmra.mrb[148].mxu1 %v22292_v30  ;;  %v4776_v24 = vshrl.u32 %v22273_v51, 16  ;;  %v4779_v56 = vshll.u32 %v22273_v51, 16 }
 0x5b1   : > { %v4504_v54 = vadd.f32 %v21863_v41, %v4343_v48  ;;  %v4345_v45 = vpop.f32.mrb[115].mxu1  ;;  %v4771_v37 = vrot.slane %v4769_v36, 7  ;;  %v4946_v46 = vrot.slane %v4772_v3, 1  ;;  %v4566_v23 = vmax.f32 %v4502_v11, 0.0 }
 0x5b2   : > { %v4505_v32 = vadd.f32 %v21867_v27, %v4345_v45  ;;  %v4778_v47 = vrot.slane %v4776_v24, 7  ;;  %v4948_v7 = vrot.slane %v4779_v56, 1  ;;  %v4567_v28 = vmax.f32 %v4503_v61, 0.0 }
 0x5b3   : > { %v4568_v17 = vmax.f32 %v4504_v54, 0.0  ;;  %v4774_v44 = vor.u32 %v4772_v3, %v4771_v37  ;;  %v4947_v13 = vor.u32 %v4946_v46, %v4769_v36 }
 0x5b4   : > { %v4569_v53 = vmax.f32 %v4505_v32, 0.0  ;;  %v4781_v55 = vor.u32 %v4779_v56, %v4778_v47  ;;  %v4949_v30 = vor.u32 %v4948_v7, %v4776_v24 }
 0x5b5   : > { %v22303_v62 = vpack.c.bf16 %v4568_v17, %v4566_v23  ;;  %v22317_v11 = vsel %vm20354_vm6, 0, %v4774_v44 }
 0x5b6   : > { %v22305_v8 = vpack.c.bf16 %v4569_v53, %v4567_v28  ;;  %v4349_v48 = vpop.f32.mrb[116].mxu1  ;;  %v22309_v2 = vsel %vm20354_vm6, 0, %v4781_v55  ;;  %v22313_v45 = vsel %vm20207_vm3, %v4949_v30, 0  ;;  %27165 = vst [vmem:[#allocation51_spill] sm:$0xff] %v22317_v11  ;;  %v22324_v53 = vsel %vm20207_vm3, %v4947_v13, 0 }
 0x5b7   : > { %27163 = vst [vmem:[#allocation49_spill] sm:$0xff] %v22309_v2  ;;  %27164 = vst [vmem:[#allocation50_spill] sm:$0xff] %v22313_v45  ;;  %v4506_v36 = vadd.f32 %v21863_v41, %v4349_v48  ;;  %v4351_v3 = vpop.f32.mrb[117].mxu1  ;;  %6134 = vmatprep.mubr.bf16.mxu0 %v22309_v2  ;;  %8822 = vmatprep.mubr.bf16.mxu1 %v22313_v45  ;;  %v4783_v55 = vshrl.u32 %v22303_v62, 16  ;;  %v4786_v30 = vshll.u32 %v22303_v62, 16 }
 0x5b8   : > { %27166 = vst [vmem:[#allocation52_spill] sm:$0xff] %v22324_v53  ;;  %v4507_v61 = vadd.f32 %v21867_v27, %v4351_v3  ;;  %v4353_v24 = vpop.f32.mrb[118].mxu1  ;;  %6135 = vmatmul.mubr.bf16.gmra.mrb[172].mxu0 %v22317_v11  ;;  %8823 = vmatmul.mubr.bf16.gmra.mrb[152].mxu1 %v22324_v53  ;;  %v4790_v56 = vshrl.u32 %v22305_v8, 16  ;;  %v4793_v54 = vshll.u32 %v22305_v8, 16 }
 0x5b9   : > { %v4508_v37 = vadd.f32 %v21863_v41, %v4353_v24  ;;  %v4355_v46 = vpop.f32.mrb[119].mxu1  ;;  %v4785_v32 = vrot.slane %v4783_v55, 7  ;;  %v4950_v47 = vrot.slane %v4786_v30, 1  ;;  %v4570_v44 = vmax.f32 %v4506_v36, 0.0 }
 0x5ba   : > { %v4509_v7 = vadd.f32 %v21867_v27, %v4355_v46  ;;  %v4792_v23 = vrot.slane %v4790_v56, 7  ;;  %v4952_v17 = vrot.slane %v4793_v54, 1  ;;  %v4571_v3 = vmax.f32 %v4507_v61, 0.0 }
 0x5bb   : > { %v4572_v13 = vmax.f32 %v4508_v37, 0.0  ;;  %v4788_v28 = vor.u32 %v4786_v30, %v4785_v32  ;;  %v4951_v48 = vor.u32 %v4950_v47, %v4783_v55 }
 0x5bc   : > { %v4573_v11 = vmax.f32 %v4509_v7, 0.0  ;;  %v4795_v2 = vor.u32 %v4793_v54, %v4792_v23  ;;  %v4953_v53 = vor.u32 %v4952_v17, %v4790_v56 }
 0x5bd   : > { %v22335_v45 = vpack.c.bf16 %v4572_v13, %v4570_v44  ;;  %v22349_v36 = vsel %vm20354_vm6, 0, %v4788_v28 }
 0x5be   : > { %v22337_v16 = vpack.c.bf16 %v4573_v11, %v4571_v3  ;;  %v4359_v24 = vpop.f32.mrb[120].mxu1  ;;  %v22341_v14 = vsel %vm20354_vm6, 0, %v4795_v2  ;;  %v22345_v46 = vsel %vm20207_vm3, %v4953_v53, 0  ;;  %27169 = vst [vmem:[#allocation55_spill] sm:$0xff] %v22349_v36  ;;  %v22356_v11 = vsel %vm20207_vm3, %v4951_v48, 0 }
 0x5bf   : > { %27167 = vst [vmem:[#allocation53_spill] sm:$0xff] %v22341_v14  ;;  %27168 = vst [vmem:[#allocation54_spill] sm:$0xff] %v22345_v46  ;;  %v4510_v55 = vadd.f32 %v21863_v41, %v4359_v24  ;;  %v4361_v30 = vpop.f32.mrb[121].mxu1  ;;  %6144 = vmatprep.mubr.bf16.mxu0 %v22341_v14  ;;  %8832 = vmatprep.mubr.bf16.mxu1 %v22345_v46  ;;  %v4797_v2 = vshrl.u32 %v22335_v45, 16  ;;  %v4800_v53 = vshll.u32 %v22335_v45, 16 }
 0x5c0   : > { %27170 = vst [vmem:[#allocation56_spill] sm:$0xff] %v22356_v11  ;;  %v4511_v61 = vadd.f32 %v21867_v27, %v4361_v30  ;;  %v4363_v56 = vpop.f32.mrb[122].mxu1  ;;  %6145 = vmatmul.mubr.bf16.gmra.mrb[176].mxu0 %v22349_v36  ;;  %8833 = vmatmul.mubr.bf16.gmra.mrb[156].mxu1 %v22356_v11  ;;  %v4804_v54 = vshrl.u32 %v22337_v16, 16  ;;  %v4807_v37 = vshll.u32 %v22337_v16, 16 }
 0x5c1   : > { %v4512_v32 = vadd.f32 %v21863_v41, %v4363_v56  ;;  %v4365_v47 = vpop.f32.mrb[123].mxu1  ;;  %v4799_v7 = vrot.slane %v4797_v2, 7  ;;  %v4954_v23 = vrot.slane %v4800_v53, 1  ;;  %v4574_v28 = vmax.f32 %v4510_v55, 0.0 }
 0x5c2   : > { %v4513_v17 = vadd.f32 %v21867_v27, %v4365_v47  ;;  %v4806_v44 = vrot.slane %v4804_v54, 7  ;;  %v4956_v13 = vrot.slane %v4807_v37, 1  ;;  %v4575_v30 = vmax.f32 %v4511_v61, 0.0 }
 0x5c3   : > { %v4576_v48 = vmax.f32 %v4512_v32, 0.0  ;;  %v4802_v3 = vor.u32 %v4800_v53, %v4799_v7  ;;  %v4955_v24 = vor.u32 %v4954_v23, %v4797_v2 }
 0x5c4   : > { %v4577_v36 = vmax.f32 %v4513_v17, 0.0  ;;  %v4809_v14 = vor.u32 %v4807_v37, %v4806_v44  ;;  %v4957_v11 = vor.u32 %v4956_v13, %v4804_v54 }
 0x5c5   : > { %v22367_v46 = vpack.c.bf16 %v4576_v48, %v4574_v28  ;;  %v22381_v55 = vsel %vm20354_vm6, 0, %v4802_v3 }
 0x5c6   : > { %v22369_v12 = vpack.c.bf16 %v4577_v36, %v4575_v30  ;;  %v4369_v56 = vpop.f32.mrb[124].mxu1  ;;  %v22373_v39 = vsel %vm20354_vm6, 0, %v4809_v14  ;;  %v22377_v47 = vsel %vm20207_vm3, %v4957_v11, 0  ;;  %27173 = vst [vmem:[#allocation59_spill] sm:$0xff] %v22381_v55  ;;  %v22388_v36 = vsel %vm20207_vm3, %v4955_v24, 0 }
 0x5c7   : > { %27171 = vst [vmem:[#allocation57_spill] sm:$0xff] %v22373_v39  ;;  %27172 = vst [vmem:[#allocation58_spill] sm:$0xff] %v22377_v47  ;;  %v4514_v2 = vadd.f32 %v21863_v41, %v4369_v56  ;;  %v4371_v53 = vpop.f32.mrb[125].mxu1  ;;  %6154 = vmatprep.mubr.bf16.mxu0 %v22373_v39  ;;  %8842 = vmatprep.mubr.bf16.mxu1 %v22377_v47  ;;  %v4811_v14 = vshrl.u32 %v22367_v46, 16  ;;  %v4814_v11 = vshll.u32 %v22367_v46, 16 }
 0x5c8   : > { %27174 = vst [vmem:[#allocation60_spill] sm:$0xff] %v22388_v36  ;;  %v4515_v61 = vadd.f32 %v21867_v27, %v4371_v53  ;;  %v4373_v54 = vpop.f32.mrb[126].mxu1  ;;  %6155 = vmatmul.mubr.bf16.gmra.mrb[180].mxu0 %v22381_v55  ;;  %8843 = vmatmul.mubr.bf16.gmra.mrb[160].mxu1 %v22388_v36  ;;  %v4818_v37 = vshrl.u32 %v22369_v12, 16  ;;  %v4821_v32 = vshll.u32 %v22369_v12, 16 }
 0x5c9   : > { %v4516_v7 = vadd.f32 %v21863_v41, %v4373_v54  ;;  %v4375_v23 = vpop.f32.mrb[127].mxu1  ;;  %v4813_v17 = vrot.slane %v4811_v14, 7  ;;  %v4958_v44 = vrot.slane %v4814_v11, 1  ;;  %v4578_v3 = vmax.f32 %v4514_v2, 0.0 }
 0x5ca   : > { %v4517_v13 = vadd.f32 %v21867_v27, %v4375_v23  ;;  %v4820_v28 = vrot.slane %v4818_v37, 7  ;;  %v4960_v48 = vrot.slane %v4821_v32, 1  ;;  %v4579_v53 = vmax.f32 %v4515_v61, 0.0 }
 0x5cb   : > { %v4580_v24 = vmax.f32 %v4516_v7, 0.0  ;;  %v4816_v30 = vor.u32 %v4814_v11, %v4813_v17  ;;  %v4959_v56 = vor.u32 %v4958_v44, %v4811_v14 }
 0x5cc   : > { %v4581_v55 = vmax.f32 %v4517_v13, 0.0  ;;  %v4823_v39 = vor.u32 %v4821_v32, %v4820_v28  ;;  %v4961_v36 = vor.u32 %v4960_v48, %v4818_v37 }
 0x5cd   : > { %v22399_v47 = vpack.c.bf16 %v4580_v24, %v4578_v3  ;;  %v22415_v2 = vsel %vm20354_vm6, 0, %v4816_v30  ;;  %v22448_v24 = vld [vmem:[#allocation2] sm:$0xff] }
 0x5ce   : > { %v22401_v49 = vpack.c.bf16 %v4581_v55, %v4579_v53  ;;  %v22405_v41 = vsel %vm20354_vm6, 0, %v4823_v39  ;;  %v22409_v27 = vsel %vm20207_vm3, %v4961_v36, 0  ;;  %27179 = vst [vmem:[#allocation65_spill] sm:$0xff] %v22415_v2  ;;  %v22419_v55 = vsel %vm20207_vm3, %v4959_v56, 0  ;;  %v19224_v30 = vld [vmem:[%s26857_s5 + $0x500] ss:$8 sps:$4 sm:$0xff]  }
 0x5cf   : > { %27175 = vst [vmem:[#allocation61_spill] sm:$0xff] %v22399_v47  ;;  %27177 = vst [vmem:[#allocation63_spill] sm:$0xff] %v22405_v41  ;;  %6164 = vmatprep.mubr.bf16.mxu0 %v22405_v41  ;;  %8852 = vmatprep.mubr.bf16.mxu1 %v22409_v27  ;;  %v4825_v14 = vshrl.u32 %v22399_v47, 16  ;;  %v4828_v39 = vshll.u32 %v22399_v47, 16  ;;  %v19229_v56 = vld [vmem:[%s26857_s5 + $0x514] ss:$8 sps:$4 sm:$0xff]  }
 0x5d0   : > { %27176 = vst [vmem:[#allocation62_spill] sm:$0xff] %v22401_v49  ;;  %27178 = vst [vmem:[#allocation64_spill] sm:$0xff] %v22409_v27  ;;  %6165 = vmatmul.mubr.bf16.gmra.mrb[184].mxu0 %v22415_v2  ;;  %8853 = vmatmul.mubr.bf16.gmra.mrb[164].mxu1 %v22419_v55  ;;  %v4832_v36 = vshrl.u32 %v22401_v49, 16  ;;  %v4835_v11 = vshll.u32 %v22401_v49, 16  ;;  %v19227_v53 = vld [vmem:[%s26857_s5 + $0x510] ss:$8 sps:$4 sm:$0xff]  }
 0x5d1   : > { %27180 = vst [vmem:[#allocation66_spill] sm:$0xff] %v22419_v55  ;;  %v4827_v61 = vrot.slane %v4825_v14, 7  ;;  %v4962_v54 = vrot.slane %v4828_v39, 1 }
 0x5d2   : > { %v4834_v37 = vrot.slane %v4832_v36, 7  ;;  %v4964_v32 = vrot.slane %v4835_v11, 1 }
 0x5d3   : > { %v4830_v7 = vor.u32 %v4828_v39, %v4827_v61  ;;  %v4963_v23 = vor.u32 %v4962_v54, %v4825_v14  ;;  %v19232_v14 = vld [vmem:[%s26857_s5 + $0x524] ss:$8 sps:$4 sm:$0xff]   ;;  %v19230_v39 = vld [vmem:[%s26857_s5 + $0x520] ss:$8 sps:$4 sm:$0xff]  }
 0x5d4   : > { %v4837_v17 = vor.u32 %v4835_v11, %v4834_v37  ;;  %v4965_v44 = vor.u32 %v4964_v32, %v4832_v36  ;;  %v19235_v36 = vld [vmem:[%s26857_s5 + $0x534] ss:$8 sps:$4 sm:$0xff]   ;;  %v19233_v11 = vld [vmem:[%s26857_s5 + $0x530] ss:$8 sps:$4 sm:$0xff]   ;;  %v19238_v61 = vld [vmem:[%s26857_s5 + $0x544] ss:$8 sps:$4 sm:$0xff]  }
 0x5d5   : > { %v22439_v48 = vsel %vm20354_vm6, 0, %v4830_v7  ;;  %v22443_v3 = vsel %vm20207_vm3, %v4963_v23, 0  ;;  %v19236_v54 = vld [vmem:[%s26857_s5 + $0x540] ss:$8 sps:$4 sm:$0xff]   ;;  %v19241_v37 = vld [vmem:[%s26857_s5 + $0x554] ss:$8 sps:$4 sm:$0xff]  }
 0x5d6   : > { %v22429_v13 = vsel %vm20354_vm6, 0, %v4837_v17  ;;  %v22433_v28 = vsel %vm20207_vm3, %v4965_v44, 0  ;;  %27182 = vst [vmem:[#allocation68_spill] sm:$0xff] %v22439_v48  ;;  %v19239_v32 = vld [vmem:[%s26857_s5 + $0x550] ss:$8 sps:$4 sm:$0xff]  }
 0x5d7   : > { %27181 = vst [vmem:[#allocation67_spill] sm:$0xff] %v22429_v13  ;;  %6174 = vmatprep.mubr.bf16.mxu0 %v22429_v13  ;;  %8862 = vmatprep.mubr.bf16.mxu1 %v22433_v28  ;;  %v19244_v7 = vld [vmem:[%s26857_s5 + $0x564] ss:$8 sps:$4 sm:$0xff]   ;;  %v19242_v23 = vld [vmem:[%s26857_s5 + $0x560] ss:$8 sps:$4 sm:$0xff]  }
 0x5d8   : > { %6175 = vmatmul.mubr.bf16.gmra.mrb[188].mxu0 %v22439_v48  ;;  %8863 = vmatmul.mubr.bf16.gmra.mrb[168].mxu1 %v22443_v3  ;;  %v19247_v17 = vld [vmem:[%s26857_s5 + $0x574] ss:$8 sps:$4 sm:$0xff]   ;;  %v19245_v44 = vld [vmem:[%s26857_s5 + $0x570] ss:$8 sps:$4 sm:$0xff]  }
 0x5d9   : > { %6217 = vmatprep.mubr.bf16.mxu0 %v21875_v40  ;;  %8872 = vmatprep.mubr.bf16.mxu1 %v22448_v24  ;;  %v27231_v48 = vld [vmem:[#allocation42_spill] sm:$0xff] }
 0x5e0   : > { %6218 = vmatmul.mubr.bf16.vlgmr.msra.gmra.mrb[128].mxu0 %v21873_v63  ;;  %8873 = vmatmul.mubr.bf16.gmra.mrb[172].mxu1 %v22448_v24 }
 0x5e1   : > { %6379 = vmatpush1.bf16.msra.mxu0 %v19224_v30  ;;  %6227 = vmatprep.mubr.bf16.mxu0 %v21894_v20  ;;  %v19250_v30 = vld [vmem:[%s26857_s5 + $0x584] ss:$8 sps:$4 sm:$0xff]  }
 0x5e2   : > { %6380 = vmatprep.subr.bf16.mxu0 %v19229_v56  ;;  %v19248_v56 = vld [vmem:[%s26857_s5 + $0x580] ss:$8 sps:$4 sm:$0xff]  }
 0x5e5   : > { %6381 = vmatpush1.bf16.msra.mxu0 %v19227_v53  ;;  %v19253_v53 = vld [vmem:[%s26857_s5 + $0x594] ss:$8 sps:$4 sm:$0xff]  }
 0x5e6   : > { %6382 = vmatprep.subr.bf16.mxu0 %v19232_v14  ;;  %v19251_v14 = vld [vmem:[%s26857_s5 + $0x590] ss:$8 sps:$4 sm:$0xff]  }
 0x5e8   : > { %6228 = vmatmul.mubr.bf16.gmra.mrb[132].mxu0 %v21889_v21 }
 0x5e9   : > { %6237 = vmatprep.mubr.bf16.mxu0 %v21932_v42  ;;  %6383 = vmatpush1.bf16.msra.mxu0 %v19230_v39  ;;  %v19256_v39 = vld [vmem:[%s26857_s5 + $0x5a4] ss:$8 sps:$4 sm:$0xff]  }
 0x5ea   : > { %6384 = vmatprep.subr.bf16.mxu0 %v19235_v36  ;;  %v19254_v36 = vld [vmem:[%s26857_s5 + $0x5a0] ss:$8 sps:$4 sm:$0xff]  }
 0x5ed   : > { %6385 = vmatpush1.bf16.msra.mxu0 %v19233_v11  ;;  %v19259_v11 = vld [vmem:[%s26857_s5 + $0x5b4] ss:$8 sps:$4 sm:$0xff]  }
 0x5ee   : > { %6386 = vmatprep.subr.bf16.mxu0 %v19238_v61  ;;  %v19257_v61 = vld [vmem:[%s26857_s5 + $0x5b0] ss:$8 sps:$4 sm:$0xff]  }
 0x5f0   : > { %6238 = vmatmul.mubr.bf16.gmra.mrb[136].mxu0 %v21927_v57 }
 0x5f1   : > { %6247 = vmatprep.mubr.bf16.mxu0 %v21970_v19  ;;  %6387 = vmatpush1.bf16.msra.mxu0 %v19236_v54  ;;  %v19262_v54 = vld [vmem:[%s26857_s5 + $0x5c4] ss:$8 sps:$4 sm:$0xff]  }
 0x5f2   : > { %6388 = vmatprep.subr.bf16.mxu0 %v19241_v37  ;;  %v19260_v37 = vld [vmem:[%s26857_s5 + $0x5c0] ss:$8 sps:$4 sm:$0xff]  }
 0x5f5   : > { %6389 = vmatpush1.bf16.msra.mxu0 %v19239_v32  ;;  %v19265_v32 = vld [vmem:[%s26857_s5 + $0x5d4] ss:$8 sps:$4 sm:$0xff]  }
 0x5f6   : > { %6390 = vmatprep.subr.bf16.mxu0 %v19244_v7  ;;  %v19263_v7 = vld [vmem:[%s26857_s5 + $0x5d0] ss:$8 sps:$4 sm:$0xff]  }
 0x5f8   : > { %6248 = vmatmul.mubr.bf16.gmra.mrb[140].mxu0 %v21965_v9 }
 0x5f9   : > { %6257 = vmatprep.mubr.bf16.mxu0 %v22008_v22  ;;  %6391 = vmatpush1.bf16.msra.mxu0 %v19242_v23  ;;  %v19268_v23 = vld [vmem:[%s26857_s5 + $0x5e4] ss:$8 sps:$4 sm:$0xff]  }
 0x5fa   : > { %6392 = vmatprep.subr.bf16.mxu0 %v19247_v17  ;;  %v19266_v17 = vld [vmem:[%s26857_s5 + $0x5e0] ss:$8 sps:$4 sm:$0xff]  }
 0x5fd   : > { %6393 = vmatpush1.bf16.msra.mxu0 %v19245_v44  ;;  %v19271_v44 = vld [vmem:[%s26857_s5 + $0x5f4] ss:$8 sps:$4 sm:$0xff]  }
 0x5fe   : > { %6394 = vmatprep.subr.bf16.mxu0 %v19250_v30  ;;  %v19269_v30 = vld [vmem:[%s26857_s5 + $0x5f0] ss:$8 sps:$4 sm:$0xff]  }
 0x600   : > { %6258 = vmatmul.mubr.bf16.gmra.mrb[144].mxu0 %v22003_v29 }
 0x601   : > { %6267 = vmatprep.mubr.bf16.mxu0 %v22046_v26  ;;  %6395 = vmatpush1.bf16.msra.mxu0 %v19248_v56  ;;  %v19274_v56 = vld [vmem:[%s26857_s5 + $0x4] ss:$8 sps:$4 sm:$0xff]  }
 0x602   : > { %6396 = vmatprep.subr.bf16.mxu0 %v19253_v53  ;;  %v22582_v53 = vsel %vm20207_vm3, %v21887_v50, 0  ;;  %v22602_v50 = vsel %vm20207_vm3, %v21885_v58, 0  ;;  %v19280_v58 = vld [vmem:[%s26857_s5 + $0x24] ss:$8 sps:$4 sm:$0xff]  }
 0x605   : > { %6397 = vmatpush1.bf16.msra.mxu0 %v19251_v14 }
 0x606   : > { %6398 = vmatprep.subr.bf16.mxu0 %v19256_v39 }
 0x608   : > { %6268 = vmatmul.mubr.bf16.gmra.mrb[148].mxu0 %v22041_v38 }
 0x609   : > { %6277 = vmatprep.mubr.bf16.mxu0 %v22080_v10  ;;  %6399 = vmatpush1.bf16.msra.mxu0 %v19254_v36 }
 0x60a   : > { %6400 = vmatprep.subr.bf16.mxu0 %v19259_v11  ;;  %v19272_v11 = vld [vmem:[%s26857_s5] ss:$8 sps:$4 sm:$0xff]  }
 0x60d   : > { %6401 = vmatpush1.bf16.msra.mxu0 %v19257_v61 }
 0x60e   : > { %6402 = vmatprep.subr.bf16.mxu0 %v19262_v54  ;;  %v19277_v54 = vld [vmem:[%s26857_s5 + $0x14] ss:$8 sps:$4 sm:$0xff]  }
 0x610   : > { %6278 = vmatmul.mubr.bf16.gmra.mrb[152].mxu0 %v22075_v1 }
 0x611   : > { %6287 = vmatprep.mubr.bf16.mxu0 %v22124_v18  ;;  %6403 = vmatpush1.bf16.msra.mxu0 %v19260_v37  ;;  %v22608_v37 = vsel %vm20207_vm3, %v21925_v15, 0  ;;  %v19278_v15 = vld [vmem:[%s26857_s5 + $0x20] ss:$8 sps:$4 sm:$0xff]  }
 0x612   : > { %6404 = vmatprep.subr.bf16.mxu0 %v19265_v32  ;;  %v19275_v32 = vld [vmem:[%s26857_s5 + $0x10] ss:$8 sps:$4 sm:$0xff]  }
 0x615   : > { %6405 = vmatpush1.bf16.msra.mxu0 %v19263_v7 }
 0x616   : > { %6406 = vmatprep.subr.bf16.mxu0 %v19268_v23 }
 0x618   : > { %6288 = vmatmul.mubr.bf16.gmra.mrb[156].mxu0 %v22119_v52 }
 0x619   : > { %6297 = vmatprep.mubr.bf16.mxu0 %v22168_v35  ;;  %6407 = vmatpush1.bf16.msra.mxu0 %v19266_v17 }
 0x61a   : > { %6408 = vmatprep.subr.bf16.mxu0 %v19271_v44 }
 0x61d   : > { %6409 = vmatpush1.bf16.msra.mxu0 %v19269_v30  ;;  %v19283_v30 = vld [vmem:[%s26857_s5 + $0x34] ss:$8 sps:$4 sm:$0xff]  }
 0x61e   : > { %7051 = vmatprep.subr.bf16.mxu0 %v19274_v56  ;;  %v22634_v56 = vsel %vm20207_vm3, %v21923_v43, 0  ;;  %v19286_v43 = vld [vmem:[%s26857_s5 + $0x44] ss:$8 sps:$4 sm:$0xff]  }
 0x620   : > { %6298 = vmatmul.mubr.bf16.gmra.mrb[160].mxu0 %v22163_v5 }
 0x621   : > { %6307 = vmatprep.mubr.bf16.mxu0 %v22209_v34 }
 0x628   : > { %6308 = vmatmul.mubr.bf16.gmra.mrb[164].mxu0 %v22207_v4 }
 0x629   : > { %6317 = vmatprep.mubr.bf16.mxu0 %v22241_v60 }
 0x630   : > { %6318 = vmatmul.mubr.bf16.gmra.mrb[168].mxu0 %v22239_v33 }
 0x631   : > { %6327 = vmatprep.mubr.bf16.mxu0 %v22273_v51 }
 0x638   : > { %6328 = vmatmul.mubr.bf16.gmra.mrb[172].mxu0 %v22271_v0 }
 0x639   : > { %6337 = vmatprep.mubr.bf16.mxu0 %v22305_v8 }
 0x640   : > { %6338 = vmatmul.mubr.bf16.gmra.mrb[176].mxu0 %v22303_v62 }
 0x641   : > { %6347 = vmatprep.mubr.bf16.mxu0 %v22337_v16 }
 0x648   : > { %6348 = vmatmul.mubr.bf16.gmra.mrb[180].mxu0 %v22335_v45 }
 0x649   : > { %6357 = vmatprep.mubr.bf16.mxu0 %v22369_v12 }
 0x650   : > { %6358 = vmatmul.mubr.bf16.gmra.mrb[184].mxu0 %v22367_v46 }
 0x651   : > { %6367 = vmatprep.mubr.bf16.mxu0 %v22401_v49  ;;  %v27225_v49 = vld [vmem:[#allocation38_spill] sm:$0xff] }
 0x658   : > { %6368 = vmatmul.mubr.bf16.gmra.mrb[188].mxu0 %v22399_v47  ;;  %v27224_v47 = vld [vmem:[#allocation36_spill] sm:$0xff] }
 0x659   : > { %6410 = vmatprep.mubr.bf16.mxu0 %v22582_v53 }
 0x65b   : > { %v22585_v14 = vpop.f32.mrb[128].mxu1 }
 0x65c   : > { %27183 = vst [vmem:[#allocation69_spill] sm:$0xff] %v22585_v14  ;;  %v22587_v39 = vpop.f32.mrb[129].mxu1  ;;  %v27219_v14 = vld [vmem:[#allocation34_spill] sm:$0xff] }
 0x65d   : > { %27184 = vst [vmem:[#allocation70_spill] sm:$0xff] %v22587_v39  ;;  %v22589_v36 = vpop.f32.mrb[130].mxu1  ;;  %v27218_v39 = vld [vmem:[#allocation32_spill] sm:$0xff] }
 0x65e   : > { %27185 = vst [vmem:[#allocation71_spill] sm:$0xff] %v22589_v36  ;;  %v22594_v61 = vpop.f32.mrb[131].mxu1  ;;  %v27213_v36 = vld [vmem:[#allocation30_spill] sm:$0xff] }
 0x65f   : > { %27186 = vst [vmem:[#allocation72_spill] sm:$0xff] %v22594_v61  ;;  %v27212_v61 = vld [vmem:[#allocation28_spill] sm:$0xff] }
 0x660   : > { %6411 = vmatmul.mubr.bf16.vlgmr.msra.gmra.mrb[128].mxu0 %v22602_v50 }
 0x661   : > { %7052 = vmatpush1.bf16.msra.mxu0 %v19272_v11  ;;  %6420 = vmatprep.mubr.bf16.mxu0 %v22608_v37  ;;  %v22640_v11 = vsel %vm20207_vm3, %v21963_v59, 0  ;;  %v19284_v59 = vld [vmem:[%s26857_s5 + $0x40] ss:$8 sps:$4 sm:$0xff]  }
 0x662   : > { %7053 = vmatprep.subr.bf16.mxu0 %v19277_v54  ;;  %v19281_v54 = vld [vmem:[%s26857_s5 + $0x30] ss:$8 sps:$4 sm:$0xff]  }
 0x663   : > { %v22617_v7 = vpop.f32.mrb[132].mxu1 }
 0x664   : > { %27187 = vst [vmem:[#allocation73_spill] sm:$0xff] %v22617_v7  ;;  %v22619_v23 = vpop.f32.mrb[133].mxu1  ;;  %v27206_v7 = vld [vmem:[#allocation21_spill] sm:$0xff] }
 0x665   : > { %27188 = vst [vmem:[#allocation74_spill] sm:$0xff] %v22619_v23  ;;  %v22621_v17 = vpop.f32.mrb[134].mxu1  ;;  %7054 = vmatpush1.bf16.msra.mxu0 %v19275_v32 }
 0x666   : > { %27189 = vst [vmem:[#allocation75_spill] sm:$0xff] %v22621_v17  ;;  %v22626_v44 = vpop.f32.mrb[135].mxu1  ;;  %7055 = vmatprep.subr.bf16.mxu0 %v19280_v58  ;;  %v27200_v17 = vld [vmem:[#allocation17_spill] sm:$0xff] }
 0x667   : > { %27190 = vst [vmem:[#allocation76_spill] sm:$0xff] %v22626_v44 }
 0x668   : > { %6421 = vmatmul.mubr.bf16.gmra.mrb[132].mxu0 %v22634_v56 }
 0x669   : > { %6430 = vmatprep.mubr.bf16.mxu0 %v22640_v11  ;;  %7056 = vmatpush1.bf16.msra.mxu0 %v19278_v15 }
 0x66a   : > { %7057 = vmatprep.subr.bf16.mxu0 %v19283_v30  ;;  %v19289_v30 = vld [vmem:[%s26857_s5 + $0x54] ss:$8 sps:$4 sm:$0xff]  }
 0x66b   : > { %v22649_v32 = vpop.f32.mrb[136].mxu1 }
 0x66c   : > { %27191 = vst [vmem:[#allocation77_spill] sm:$0xff] %v22649_v32  ;;  %v22651_v58 = vpop.f32.mrb[137].mxu1  ;;  %v22666_v32 = vsel %vm20207_vm3, %v21961_v25, 0  ;;  %v19292_v25 = vld [vmem:[%s26857_s5 + $0x64] ss:$8 sps:$4 sm:$0xff]  }
 0x66d   : > { %27192 = vst [vmem:[#allocation78_spill] sm:$0xff] %v22651_v58  ;;  %v22653_v6 = vpop.f32.mrb[138].mxu1  ;;  %7058 = vmatpush1.bf16.msra.mxu0 %v19281_v54 }
 0x66e   : > { %27193 = vst [vmem:[#allocation79_spill] sm:$0xff] %v22653_v6  ;;  %v22658_v15 = vpop.f32.mrb[139].mxu1  ;;  %7059 = vmatprep.subr.bf16.mxu0 %v19286_v43  ;;  %v27195_v6 = vld [vmem:[#allocation18_spill] sm:$0xff] }
 0x66f   : > { %27194 = vst [vmem:[#allocation80_spill] sm:$0xff] %v22658_v15  ;;  %v22672_v54 = vsel %vm20207_vm3, %v27195_v6, 0  ;;  %v19287_v43 = vld [vmem:[%s26857_s5 + $0x50] ss:$8 sps:$4 sm:$0xff]   ;;  %v19290_v6 = vld [vmem:[%s26857_s5 + $0x60] ss:$8 sps:$4 sm:$0xff]  }
 0x670   : > { %6431 = vmatmul.mubr.bf16.gmra.mrb[136].mxu0 %v22666_v32 }
 0x671   : > { %6440 = vmatprep.mubr.bf16.mxu0 %v22672_v54  ;;  %7060 = vmatpush1.bf16.msra.mxu0 %v19284_v59 }
 0x672   : > { %7061 = vmatprep.subr.bf16.mxu0 %v19289_v30  ;;  %v19295_v30 = vld [vmem:[%s26857_s5 + $0x74] ss:$8 sps:$4 sm:$0xff]  }
 0x673   : > { %v22681_v15 = vpop.f32.mrb[140].mxu1 }
 0x674   : > { %27196 = vst [vmem:[#allocation18_spill] sm:$0xff] %v22681_v15  ;;  %v22683_v58 = vpop.f32.mrb[141].mxu1  ;;  %v22698_v15 = vsel %vm20207_vm3, %v27200_v17, 0  ;;  %v19298_v17 = vld [vmem:[%s26857_s5 + $0x84] ss:$8 sps:$4 sm:$0xff]  }
 0x675   : > { %27197 = vst [vmem:[#allocation81_spill] sm:$0xff] %v22683_v58  ;;  %v22685_v44 = vpop.f32.mrb[142].mxu1  ;;  %7062 = vmatpush1.bf16.msra.mxu0 %v19287_v43 }
 0x676   : > { %27198 = vst [vmem:[#allocation82_spill] sm:$0xff] %v22685_v44  ;;  %v22690_v59 = vpop.f32.mrb[143].mxu1  ;;  %7063 = vmatprep.subr.bf16.mxu0 %v19292_v25  ;;  %v27201_v44 = vld [vmem:[#allocation22_spill] sm:$0xff] }
 0x677   : > { %27199 = vst [vmem:[#allocation83_spill] sm:$0xff] %v22690_v59  ;;  %v22704_v43 = vsel %vm20207_vm3, %v27201_v44, 0  ;;  %v19293_v25 = vld [vmem:[%s26857_s5 + $0x70] ss:$8 sps:$4 sm:$0xff]   ;;  %v19296_v44 = vld [vmem:[%s26857_s5 + $0x80] ss:$8 sps:$4 sm:$0xff]  }
 0x678   : > { %6441 = vmatmul.mubr.bf16.gmra.mrb[140].mxu0 %v22698_v15 }
 0x679   : > { %6450 = vmatprep.mubr.bf16.mxu0 %v22704_v43  ;;  %7064 = vmatpush1.bf16.msra.mxu0 %v19290_v6 }
 0x67a   : > { %7065 = vmatprep.subr.bf16.mxu0 %v19295_v30  ;;  %v19301_v30 = vld [vmem:[%s26857_s5 + $0x94] ss:$8 sps:$4 sm:$0xff]  }
 0x67b   : > { %v22713_v59 = vpop.f32.mrb[144].mxu1 }
 0x67c   : > { %27202 = vst [vmem:[#allocation17_spill] sm:$0xff] %v22713_v59  ;;  %v22715_v58 = vpop.f32.mrb[145].mxu1  ;;  %v22730_v59 = vsel %vm20207_vm3, %v27206_v7, 0 }
 0x67d   : > { %27203 = vst [vmem:[#allocation22_spill] sm:$0xff] %v22715_v58  ;;  %v22717_v23 = vpop.f32.mrb[146].mxu1  ;;  %7066 = vmatpush1.bf16.msra.mxu0 %v19293_v25  ;;  %v19299_v25 = vld [vmem:[%s26857_s5 + $0x90] ss:$8 sps:$4 sm:$0xff]  }
 0x67e   : > { %27204 = vst [vmem:[#allocation84_spill] sm:$0xff] %v22717_v23  ;;  %v22722_v6 = vpop.f32.mrb[147].mxu1  ;;  %7067 = vmatprep.subr.bf16.mxu0 %v19298_v17  ;;  %v27207_v23 = vld [vmem:[#allocation26_spill] sm:$0xff]  ;;  %v19304_v17 = vld [vmem:[%s26857_s5 + $0xa4] ss:$8 sps:$4 sm:$0xff]  }
 0x67f   : > { %27205 = vst [vmem:[#allocation85_spill] sm:$0xff] %v22722_v6 }
 0x680   : > { %6451 = vmatmul.mubr.bf16.gmra.mrb[144].mxu0 %v22730_v59 }
 0x681   : > { %6460 = vmatprep.mubr.bf16.mxu0 %v27207_v23  ;;  %7068 = vmatpush1.bf16.msra.mxu0 %v19296_v44  ;;  %v19302_v44 = vld [vmem:[%s26857_s5 + $0xa0] ss:$8 sps:$4 sm:$0xff]  }
 0x682   : > { %7069 = vmatprep.subr.bf16.mxu0 %v19301_v30  ;;  %v19307_v30 = vld [vmem:[%s26857_s5 + $0xb4] ss:$8 sps:$4 sm:$0xff]  }
 0x683   : > { %v22740_v6 = vpop.f32.mrb[148].mxu1 }
 0x684   : > { %27208 = vst [vmem:[#allocation21_spill] sm:$0xff] %v22740_v6  ;;  %v22742_v58 = vpop.f32.mrb[149].mxu1 }
 0x685   : > { %27209 = vst [vmem:[#allocation26_spill] sm:$0xff] %v22742_v58  ;;  %v22744_v7 = vpop.f32.mrb[150].mxu1  ;;  %7070 = vmatpush1.bf16.msra.mxu0 %v19299_v25  ;;  %v19305_v25 = vld [vmem:[%s26857_s5 + $0xb0] ss:$8 sps:$4 sm:$0xff]  }
 0x686   : > { %27210 = vst [vmem:[#allocation86_spill] sm:$0xff] %v22744_v7  ;;  %v22749_v31 = vpop.f32.mrb[151].mxu1  ;;  %7071 = vmatprep.subr.bf16.mxu0 %v19304_v17  ;;  %v19310_v7 = vld [vmem:[%s26857_s5 + $0xc4] ss:$8 sps:$4 sm:$0xff]  }
 0x687   : > { %27211 = vst [vmem:[#allocation87_spill] sm:$0xff] %v22749_v31 }
 0x688   : > { %6461 = vmatmul.mubr.bf16.gmra.mrb[148].mxu0 %v27212_v61 }
 0x689   : > { %6470 = vmatprep.mubr.bf16.mxu0 %v27213_v36  ;;  %7072 = vmatpush1.bf16.msra.mxu0 %v19302_v44  ;;  %v19308_v44 = vld [vmem:[%s26857_s5 + $0xc0] ss:$8 sps:$4 sm:$0xff]  }
 0x68a   : > { %7073 = vmatprep.subr.bf16.mxu0 %v19307_v30  ;;  %v19313_v30 = vld [vmem:[%s26857_s5 + $0xd4] ss:$8 sps:$4 sm:$0xff]  }
 0x68b   : > { %v22762_v31 = vpop.f32.mrb[152].mxu1 }
 0x68c   : > { %27214 = vst [vmem:[#allocation28_spill] sm:$0xff] %v22762_v31  ;;  %v22764_v17 = vpop.f32.mrb[153].mxu1 }
 0x68d   : > { %27215 = vst [vmem:[#allocation30_spill] sm:$0xff] %v22764_v17  ;;  %v22766_v58 = vpop.f32.mrb[154].mxu1  ;;  %7074 = vmatpush1.bf16.msra.mxu0 %v19305_v25  ;;  %v19311_v25 = vld [vmem:[%s26857_s5 + $0xd0] ss:$8 sps:$4 sm:$0xff]  }
 0x68e   : > { %27216 = vst [vmem:[#allocation88_spill] sm:$0xff] %v22766_v58  ;;  %v22771_v6 = vpop.f32.mrb[155].mxu1  ;;  %7075 = vmatprep.subr.bf16.mxu0 %v19310_v7  ;;  %v19316_v58 = vld [vmem:[%s26857_s5 + $0xe4] ss:$8 sps:$4 sm:$0xff]  }
 0x68f   : > { %27217 = vst [vmem:[#allocation89_spill] sm:$0xff] %v22771_v6 }
 0x690   : > { %6471 = vmatmul.mubr.bf16.gmra.mrb[152].mxu0 %v27218_v39 }
 0x691   : > { %6480 = vmatprep.mubr.bf16.mxu0 %v27219_v14  ;;  %7076 = vmatpush1.bf16.msra.mxu0 %v19308_v44  ;;  %v19314_v44 = vld [vmem:[%s26857_s5 + $0xe0] ss:$8 sps:$4 sm:$0xff]  }
 0x692   : > { %7077 = vmatprep.subr.bf16.mxu0 %v19313_v30  ;;  %v19319_v30 = vld [vmem:[%s26857_s5 + $0xf4] ss:$8 sps:$4 sm:$0xff]  }
 0x693   : > { %v22784_v6 = vpop.f32.mrb[156].mxu1 }
 0x694   : > { %27220 = vst [vmem:[#allocation32_spill] sm:$0xff] %v22784_v6  ;;  %v22786_v7 = vpop.f32.mrb[157].mxu1 }
 0x695   : > { %27221 = vst [vmem:[#allocation34_spill] sm:$0xff] %v22786_v7  ;;  %v22788_v17 = vpop.f32.mrb[158].mxu1  ;;  %7078 = vmatpush1.bf16.msra.mxu0 %v19311_v25  ;;  %v19317_v25 = vld [vmem:[%s26857_s5 + $0xf0] ss:$8 sps:$4 sm:$0xff]  }
 0x696   : > { %27222 = vst [vmem:[#allocation90_spill] sm:$0xff] %v22788_v17  ;;  %v22793_v31 = vpop.f32.mrb[159].mxu1  ;;  %7079 = vmatprep.subr.bf16.mxu0 %v19316_v58  ;;  %v19322_v17 = vld [vmem:[%s26857_s5 + $0x104] ss:$8 sps:$4 sm:$0xff]  }
 0x697   : > { %27223 = vst [vmem:[#allocation91_spill] sm:$0xff] %v22793_v31 }
 0x698   : > { %6481 = vmatmul.mubr.bf16.gmra.mrb[156].mxu0 %v27224_v47 }
 0x699   : > { %6490 = vmatprep.mubr.bf16.mxu0 %v27225_v49  ;;  %7080 = vmatpush1.bf16.msra.mxu0 %v19314_v44  ;;  %v27230_v44 = vld [vmem:[#allocation40_spill] sm:$0xff] }
 0x69a   : > { %7081 = vmatprep.subr.bf16.mxu0 %v19319_v30 }
 0x69b   : > { %v22806_v31 = vpop.f32.mrb[160].mxu1 }
 0x69c   : > { %27226 = vst [vmem:[#allocation92_spill] sm:$0xff] %v22806_v31  ;;  %v22808_v58 = vpop.f32.mrb[161].mxu1  ;;  %v27236_v31 = vld [vmem:[#allocation44_spill] sm:$0xff] }
 0x69d   : > { %27227 = vst [vmem:[#allocation93_spill] sm:$0xff] %v22808_v58  ;;  %v22810_v7 = vpop.f32.mrb[162].mxu1  ;;  %7082 = vmatpush1.bf16.msra.mxu0 %v19317_v25  ;;  %v27237_v58 = vld [vmem:[#allocation46_spill] sm:$0xff] }
 0x69e   : > { %27228 = vst [vmem:[#allocation94_spill] sm:$0xff] %v22810_v7  ;;  %v22812_v6 = vpop.f32.mrb[163].mxu1  ;;  %7244 = vmatprep.subr.bf16.mxu0 %v19322_v17 }
 0x69f   : > { %27229 = vst [vmem:[#allocation95_spill] sm:$0xff] %v22812_v6 }
 0x6a0   : > { %6491 = vmatmul.mubr.bf16.gmra.mrb[160].mxu0 %v27230_v44 }
 0x6a1   : > { %6500 = vmatprep.mubr.bf16.mxu0 %v27231_v48  ;;  %v27242_v48 = vld [vmem:[#allocation48_spill] sm:$0xff] }
 0x6a3   : > { %v22816_v13 = vpop.f32.mrb[164].mxu1 }
 0x6a4   : > { %27232 = vst [vmem:[#allocation40_spill] sm:$0xff] %v22816_v13  ;;  %v22818_v30 = vpop.f32.mrb[165].mxu1  ;;  %v27243_v13 = vld [vmem:[#allocation50_spill] sm:$0xff] }
 0x6a5   : > { %27233 = vst [vmem:[#allocation96_spill] sm:$0xff] %v22818_v30  ;;  %v22820_v49 = vpop.f32.mrb[166].mxu1  ;;  %v27244_v30 = vld [vmem:[#allocation52_spill] sm:$0xff] }
 0x6a6   : > { %27234 = vst [vmem:[#allocation97_spill] sm:$0xff] %v22820_v49  ;;  %v22822_v47 = vpop.f32.mrb[167].mxu1  ;;  %v27245_v49 = vld [vmem:[#allocation54_spill] sm:$0xff] }
 0x6a7   : > { %27235 = vst [vmem:[#allocation98_spill] sm:$0xff] %v22822_v47  ;;  %v27246_v47 = vld [vmem:[#allocation56_spill] sm:$0xff] }
 0x6a8   : > { %6501 = vmatmul.mubr.bf16.gmra.mrb[164].mxu0 %v27236_v31  ;;  %v27247_v31 = vld [vmem:[#allocation58_spill] sm:$0xff] }
 0x6a9   : > { %6510 = vmatprep.mubr.bf16.mxu0 %v27237_v58  ;;  %v27248_v58 = vld [vmem:[#allocation60_spill] sm:$0xff] }
 0x6ab   : > { %v22826_v25 = vpop.f32.mrb[168].mxu1 }
 0x6ac   : > { %27238 = vst [vmem:[#allocation99_spill] sm:$0xff] %v22826_v25  ;;  %v22828_v6 = vpop.f32.mrb[169].mxu1  ;;  %v19326_v25 = vld [vmem:[%s26857_s5 + $0x120] ss:$8 sps:$4 sm:$0xff]  }
 0x6ad   : > { %27239 = vst [vmem:[#allocation100_spill] sm:$0xff] %v22828_v6  ;;  %v22830_v17 = vpop.f32.mrb[170].mxu1  ;;  %v27249_v6 = vld [vmem:[#allocation11_spill] sm:$0xff] }
 0x6ae   : > { %27240 = vst [vmem:[#allocation101_spill] sm:$0xff] %v22830_v17  ;;  %v22832_v7 = vpop.f32.mrb[171].mxu1  ;;  %v19325_v17 = vld [vmem:[%s26857_s5 + $0x114] ss:$8 sps:$4 sm:$0xff]  }
 0x6af   : > { %27241 = vst [vmem:[#allocation102_spill] sm:$0xff] %v22832_v7  ;;  %v19320_v7 = vld [vmem:[%s26857_s5 + $0x100] ss:$8 sps:$4 sm:$0xff]  }
 0x6b0   : > { %6511 = vmatmul.mubr.bf16.gmra.mrb[168].mxu0 %v27242_v48 }
 0x6b1   : > { %6520 = vmatprep.mubr.bf16.mxu0 %v27243_v13 }
 0x6b8   : > { %6521 = vmatmul.mubr.bf16.gmra.mrb[172].mxu0 %v27244_v30 }
 0x6b9   : > { %6530 = vmatprep.mubr.bf16.mxu0 %v27245_v49 }
 0x6c0   : > { %6531 = vmatmul.mubr.bf16.gmra.mrb[176].mxu0 %v27246_v47  ;;  %v27272_v47 = vld [vmem:[#allocation51_spill] sm:$0xff] }
 0x6c1   : > { %6540 = vmatprep.mubr.bf16.mxu0 %v27247_v31  ;;  %v27270_v31 = vld [vmem:[#allocation47_spill] sm:$0xff] }
 0x6c8   : > { %6541 = vmatmul.mubr.bf16.gmra.mrb[180].mxu0 %v27248_v58  ;;  %v27266_v58 = vld [vmem:[#allocation39_spill] sm:$0xff] }
 0x6c9   : > { %6550 = vmatprep.mubr.bf16.mxu0 %v22409_v27  ;;  %v27265_v27 = vld [vmem:[#allocation37_spill] sm:$0xff] }
 0x6d0   : > { %6551 = vmatmul.mubr.bf16.gmra.mrb[184].mxu0 %v22419_v55  ;;  %v27251_v55 = vld [vmem:[#allocation13_spill] sm:$0xff] }
 0x6d1   : > { %6560 = vmatprep.mubr.bf16.mxu0 %v22433_v28  ;;  %v19323_v28 = vld [vmem:[%s26857_s5 + $0x110] ss:$8 sps:$4 sm:$0xff]  }
 0x6d8   : > { %6561 = vmatmul.mubr.bf16.gmra.mrb[188].mxu0 %v22443_v3  ;;  %v19328_v3 = vld [vmem:[%s26857_s5 + $0x124] ss:$8 sps:$4 sm:$0xff]  }
 0x6d9   : > { %7083 = vmatprep.mubr.bf16.mxu0 %v22448_v24 }
 0x6e0   : > { %7084 = vmatmul.mubr.bf16.vlgmr.msra.gmra.mrb[128].mxu0 %v22448_v24 }
 0x6e1   : > { %7245 = vmatpush1.bf16.msra.mxu0 %v19320_v7  ;;  %7093 = vmatprep.mubr.bf16.mxu0 %v27249_v6  ;;  %v19331_v7 = vld [vmem:[%s26857_s5 + $0x134] ss:$8 sps:$4 sm:$0xff]   ;;  %v27250_v6 = vld [vmem:[#allocation12_spill] sm:$0xff] }
 0x6e2   : > { %7246 = vmatprep.subr.bf16.mxu0 %v19325_v17  ;;  %v19329_v17 = vld [vmem:[%s26857_s5 + $0x130] ss:$8 sps:$4 sm:$0xff]  }
 0x6e5   : > { %7247 = vmatpush1.bf16.msra.mxu0 %v19323_v28  ;;  %v19334_v28 = vld [vmem:[%s26857_s5 + $0x144] ss:$8 sps:$4 sm:$0xff]  }
 0x6e6   : > { %7248 = vmatprep.subr.bf16.mxu0 %v19328_v3  ;;  %v19332_v3 = vld [vmem:[%s26857_s5 + $0x140] ss:$8 sps:$4 sm:$0xff]  }
 0x6e8   : > { %7094 = vmatmul.mubr.bf16.gmra.mrb[132].mxu0 %v27250_v6  ;;  %v19337_v6 = vld [vmem:[%s26857_s5 + $0x154] ss:$8 sps:$4 sm:$0xff]  }
 0x6e9   : > { %7103 = vmatprep.mubr.bf16.mxu0 %v27251_v55  ;;  %7249 = vmatpush1.bf16.msra.mxu0 %v19326_v25  ;;  %v27252_v25 = vld [vmem:[#allocation14_spill] sm:$0xff]  ;;  %v27253_v55 = vld [vmem:[#allocation15_spill] sm:$0xff] }
 0x6ea   : > { %7250 = vmatprep.subr.bf16.mxu0 %v19331_v7  ;;  %v19335_v7 = vld [vmem:[%s26857_s5 + $0x150] ss:$8 sps:$4 sm:$0xff]  }
 0x6ed   : > { %7251 = vmatpush1.bf16.msra.mxu0 %v19329_v17  ;;  %v19340_v17 = vld [vmem:[%s26857_s5 + $0x164] ss:$8 sps:$4 sm:$0xff]  }
 0x6ee   : > { %7252 = vmatprep.subr.bf16.mxu0 %v19334_v28  ;;  %v19338_v28 = vld [vmem:[%s26857_s5 + $0x160] ss:$8 sps:$4 sm:$0xff]  }
 0x6f0   : > { %7104 = vmatmul.mubr.bf16.gmra.mrb[136].mxu0 %v27252_v25  ;;  %v27255_v25 = vld [vmem:[#allocation19_spill] sm:$0xff] }
 0x6f1   : > { %7113 = vmatprep.mubr.bf16.mxu0 %v27253_v55  ;;  %7253 = vmatpush1.bf16.msra.mxu0 %v19332_v3  ;;  %v19343_v55 = vld [vmem:[%s26857_s5 + $0x174] ss:$8 sps:$4 sm:$0xff]   ;;  %v27254_v3 = vld [vmem:[#allocation16_spill] sm:$0xff] }
 0x6f2   : > { %7254 = vmatprep.subr.bf16.mxu0 %v19337_v6  ;;  %v19341_v6 = vld [vmem:[%s26857_s5 + $0x170] ss:$8 sps:$4 sm:$0xff]  }
 0x6f5   : > { %7255 = vmatpush1.bf16.msra.mxu0 %v19335_v7  ;;  %v19346_v7 = vld [vmem:[%s26857_s5 + $0x184] ss:$8 sps:$4 sm:$0xff]  }
 0x6f6   : > { %7256 = vmatprep.subr.bf16.mxu0 %v19340_v17  ;;  %v19344_v17 = vld [vmem:[%s26857_s5 + $0x180] ss:$8 sps:$4 sm:$0xff]  }
 0x6f8   : > { %7114 = vmatmul.mubr.bf16.gmra.mrb[140].mxu0 %v27254_v3  ;;  %v27257_v3 = vld [vmem:[#allocation23_spill] sm:$0xff] }
 0x6f9   : > { %7123 = vmatprep.mubr.bf16.mxu0 %v27255_v25  ;;  %7257 = vmatpush1.bf16.msra.mxu0 %v19338_v28  ;;  %v19349_v25 = vld [vmem:[%s26857_s5 + $0x194] ss:$8 sps:$4 sm:$0xff]   ;;  %v27256_v28 = vld [vmem:[#allocation20_spill] sm:$0xff] }
 0x6fa   : > { %7258 = vmatprep.subr.bf16.mxu0 %v19343_v55  ;;  %v19347_v55 = vld [vmem:[%s26857_s5 + $0x190] ss:$8 sps:$4 sm:$0xff]  }
 0x6fd   : > { %7259 = vmatpush1.bf16.msra.mxu0 %v19341_v6  ;;  %v19352_v6 = vld [vmem:[%s26857_s5 + $0x1a4] ss:$8 sps:$4 sm:$0xff]  }
 0x6fe   : > { %7260 = vmatprep.subr.bf16.mxu0 %v19346_v7  ;;  %v19350_v7 = vld [vmem:[%s26857_s5 + $0x1a0] ss:$8 sps:$4 sm:$0xff]  }
 0x700   : > { %7124 = vmatmul.mubr.bf16.gmra.mrb[144].mxu0 %v27256_v28  ;;  %v27259_v28 = vld [vmem:[#allocation25_spill] sm:$0xff] }
 0x701   : > { %7133 = vmatprep.mubr.bf16.mxu0 %v27257_v3  ;;  %7261 = vmatpush1.bf16.msra.mxu0 %v19344_v17  ;;  %v19355_v3 = vld [vmem:[%s26857_s5 + $0x1b4] ss:$8 sps:$4 sm:$0xff]   ;;  %v27258_v17 = vld [vmem:[#allocation24_spill] sm:$0xff] }
 0x702   : > { %7262 = vmatprep.subr.bf16.mxu0 %v19349_v25  ;;  %v19353_v25 = vld [vmem:[%s26857_s5 + $0x1b0] ss:$8 sps:$4 sm:$0xff]  }
 0x705   : > { %7263 = vmatpush1.bf16.msra.mxu0 %v19347_v55  ;;  %v19358_v55 = vld [vmem:[%s26857_s5 + $0x1c4] ss:$8 sps:$4 sm:$0xff]  }
 0x706   : > { %7264 = vmatprep.subr.bf16.mxu0 %v19352_v6  ;;  %v19356_v6 = vld [vmem:[%s26857_s5 + $0x1c0] ss:$8 sps:$4 sm:$0xff]  }
 0x708   : > { %7134 = vmatmul.mubr.bf16.gmra.mrb[148].mxu0 %v27258_v17  ;;  %v27261_v17 = vld [vmem:[#allocation29_spill] sm:$0xff] }
 0x709   : > { %7143 = vmatprep.mubr.bf16.mxu0 %v27259_v28  ;;  %7265 = vmatpush1.bf16.msra.mxu0 %v19350_v7  ;;  %v19361_v28 = vld [vmem:[%s26857_s5 + $0x1d4] ss:$8 sps:$4 sm:$0xff]  }
 0x70a   : > { %7266 = vmatprep.subr.bf16.mxu0 %v19355_v3  ;;  %v27260_v7 = vld [vmem:[#allocation27_spill] sm:$0xff] }
 0x70b   : > { %v19359_v3 = vld [vmem:[%s26857_s5 + $0x1d0] ss:$8 sps:$4 sm:$0xff]  }
 0x70d   : > { %7267 = vmatpush1.bf16.msra.mxu0 %v19353_v25  ;;  %v19364_v25 = vld [vmem:[%s26857_s5 + $0x1e4] ss:$8 sps:$4 sm:$0xff]  }
 0x70e   : > { %7268 = vmatprep.subr.bf16.mxu0 %v19358_v55  ;;  %v19362_v55 = vld [vmem:[%s26857_s5 + $0x1e0] ss:$8 sps:$4 sm:$0xff]  }
 0x710   : > { %7144 = vmatmul.mubr.bf16.gmra.mrb[152].mxu0 %v27260_v7  ;;  %v27263_v7 = vld [vmem:[#allocation33_spill] sm:$0xff] }
 0x711   : > { %7153 = vmatprep.mubr.bf16.mxu0 %v27261_v17  ;;  %7269 = vmatpush1.bf16.msra.mxu0 %v19356_v6  ;;  %v19367_v17 = vld [vmem:[%s26857_s5 + $0x1f4] ss:$8 sps:$4 sm:$0xff]  }
 0x712   : > { %7270 = vmatprep.subr.bf16.mxu0 %v19361_v28  ;;  %v27262_v6 = vld [vmem:[#allocation31_spill] sm:$0xff] }
 0x713   : > { %v19365_v28 = vld [vmem:[%s26857_s5 + $0x1f0] ss:$8 sps:$4 sm:$0xff]  }
 0x715   : > { %7271 = vmatpush1.bf16.msra.mxu0 %v19359_v3  ;;  %v19370_v3 = vld [vmem:[%s26857_s5 + $0x204] ss:$8 sps:$4 sm:$0xff]  }
 0x716   : > { %7272 = vmatprep.subr.bf16.mxu0 %v19364_v25  ;;  %v27264_v25 = vld [vmem:[#allocation35_spill] sm:$0xff] }
 0x718   : > { %7154 = vmatmul.mubr.bf16.gmra.mrb[156].mxu0 %v27262_v6  ;;  %v27267_v6 = vld [vmem:[#allocation41_spill] sm:$0xff] }
 0x719   : > { %7163 = vmatprep.mubr.bf16.mxu0 %v27263_v7  ;;  %7273 = vmatpush1.bf16.msra.mxu0 %v19362_v55  ;;  %v27268_v55 = vld [vmem:[#allocation43_spill] sm:$0xff]  ;;  %v27269_v7 = vld [vmem:[#allocation45_spill] sm:$0xff] }
 0x71a   : > { %7274 = vmatprep.subr.bf16.mxu0 %v19367_v17  ;;  %v27271_v17 = vld [vmem:[#allocation49_spill] sm:$0xff] }
 0x71d   : > { %7275 = vmatpush1.bf16.msra.mxu0 %v19365_v28  ;;  %v27273_v28 = vld [vmem:[#allocation53_spill] sm:$0xff] }
 0x71e   : > { %7437 = vmatprep.subr.bf16.mxu0 %v19370_v3  ;;  %v27274_v3 = vld [vmem:[#allocation55_spill] sm:$0xff] }
 0x720   : > { %7164 = vmatmul.mubr.bf16.gmra.mrb[160].mxu0 %v27264_v25  ;;  %v27275_v25 = vld [vmem:[#allocation57_spill] sm:$0xff] }
 0x721   : > { %7173 = vmatprep.mubr.bf16.mxu0 %v27265_v27  ;;  %v27276_v27 = vld [vmem:[#allocation59_spill] sm:$0xff] }
 0x728   : > { %7174 = vmatmul.mubr.bf16.gmra.mrb[164].mxu0 %v27266_v58 }
 0x729   : > { %7183 = vmatprep.mubr.bf16.mxu0 %v27267_v6 }
 0x730   : > { %7184 = vmatmul.mubr.bf16.gmra.mrb[168].mxu0 %v27268_v55 }
 0x731   : > { %7193 = vmatprep.mubr.bf16.mxu0 %v27269_v7 }
 0x738   : > { %7194 = vmatmul.mubr.bf16.gmra.mrb[172].mxu0 %v27270_v31 }
 0x739   : > { %7203 = vmatprep.mubr.bf16.mxu0 %v27271_v17  ;;  %v19368_v17 = vld [vmem:[%s26857_s5 + $0x200] ss:$8 sps:$4 sm:$0xff]  }
 0x740   : > { %7204 = vmatmul.mubr.bf16.gmra.mrb[176].mxu0 %v27272_v47 }
 0x741   : > { %7213 = vmatprep.mubr.bf16.mxu0 %v27273_v28  ;;  %v19373_v28 = vld [vmem:[%s26857_s5 + $0x214] ss:$8 sps:$4 sm:$0xff]  }
 0x748   : > { %7214 = vmatmul.mubr.bf16.gmra.mrb[180].mxu0 %v27274_v3 }
 0x749   : > { %7223 = vmatprep.mubr.bf16.mxu0 %v27275_v25 }
 0x750   : > { %7224 = vmatmul.mubr.bf16.gmra.mrb[184].mxu0 %v27276_v27  ;;  %v19374_v27 = vld [vmem:[%s26857_s5 + $0x220] ss:$8 sps:$4 sm:$0xff]  }
 0x751   : > { %7233 = vmatprep.mubr.bf16.mxu0 %v22405_v41  ;;  %v19371_v41 = vld [vmem:[%s26857_s5 + $0x210] ss:$8 sps:$4 sm:$0xff]  }
 0x758   : > { %7234 = vmatmul.mubr.bf16.gmra.mrb[188].mxu0 %v22415_v2  ;;  %v19376_v2 = vld [vmem:[%s26857_s5 + $0x224] ss:$8 sps:$4 sm:$0xff]  }
 0x759   : > { %7276 = vmatprep.mubr.bf16.mxu0 %v22448_v24 }
 0x760   : > { %7277 = vmatmul.mubr.bf16.vlgmr.msra.gmra.mrb[128].mxu0 %v22448_v24 }
 0x761   : > { %7438 = vmatpush1.bf16.msra.mxu0 %v19368_v17  ;;  %7286 = vmatprep.mubr.bf16.mxu0 %v21875_v40  ;;  %v19379_v17 = vld [vmem:[%s26857_s5 + $0x234] ss:$8 sps:$4 sm:$0xff]   ;;  %v19377_v40 = vld [vmem:[%s26857_s5 + $0x230] ss:$8 sps:$4 sm:$0xff]  }
 0x762   : > { %7439 = vmatprep.subr.bf16.mxu0 %v19373_v28  ;;  %v19388_v28 = vld [vmem:[%s26857_s5 + $0x264] ss:$8 sps:$4 sm:$0xff]  }
 0x765   : > { %7440 = vmatpush1.bf16.msra.mxu0 %v19371_v41  ;;  %v19382_v41 = vld [vmem:[%s26857_s5 + $0x244] ss:$8 sps:$4 sm:$0xff]  }
 0x766   : > { %7441 = vmatprep.subr.bf16.mxu0 %v19376_v2  ;;  %v19380_v2 = vld [vmem:[%s26857_s5 + $0x240] ss:$8 sps:$4 sm:$0xff]  }
 0x768   : > { %7287 = vmatmul.mubr.bf16.gmra.mrb[132].mxu0 %v21873_v63  ;;  %v19385_v63 = vld [vmem:[%s26857_s5 + $0x254] ss:$8 sps:$4 sm:$0xff]  }
 0x769   : > { %7296 = vmatprep.mubr.bf16.mxu0 %v21894_v20  ;;  %7442 = vmatpush1.bf16.msra.mxu0 %v19374_v27  ;;  %v19383_v27 = vld [vmem:[%s26857_s5 + $0x250] ss:$8 sps:$4 sm:$0xff]  }
 0x76a   : > { %7443 = vmatprep.subr.bf16.mxu0 %v19379_v17  ;;  %v19386_v17 = vld [vmem:[%s26857_s5 + $0x260] ss:$8 sps:$4 sm:$0xff]  }
 0x76d   : > { %7444 = vmatpush1.bf16.msra.mxu0 %v19377_v40  ;;  %v19391_v40 = vld [vmem:[%s26857_s5 + $0x274] ss:$8 sps:$4 sm:$0xff]  }
 0x76e   : > { %7445 = vmatprep.subr.bf16.mxu0 %v19382_v41  ;;  %v19389_v41 = vld [vmem:[%s26857_s5 + $0x270] ss:$8 sps:$4 sm:$0xff]  }
 0x770   : > { %7297 = vmatmul.mubr.bf16.gmra.mrb[136].mxu0 %v21889_v21 }
 0x771   : > { %7306 = vmatprep.mubr.bf16.mxu0 %v21932_v42  ;;  %7446 = vmatpush1.bf16.msra.mxu0 %v19380_v2  ;;  %v19394_v2 = vld [vmem:[%s26857_s5 + $0x284] ss:$8 sps:$4 sm:$0xff]  }
 0x772   : > { %7447 = vmatprep.subr.bf16.mxu0 %v19385_v63  ;;  %v19392_v63 = vld [vmem:[%s26857_s5 + $0x280] ss:$8 sps:$4 sm:$0xff]  }
 0x775   : > { %7448 = vmatpush1.bf16.msra.mxu0 %v19383_v27  ;;  %v19397_v27 = vld [vmem:[%s26857_s5 + $0x294] ss:$8 sps:$4 sm:$0xff]  }
 0x776   : > { %7449 = vmatprep.subr.bf16.mxu0 %v19388_v28  ;;  %v19395_v28 = vld [vmem:[%s26857_s5 + $0x290] ss:$8 sps:$4 sm:$0xff]  }
 0x778   : > { %7307 = vmatmul.mubr.bf16.gmra.mrb[140].mxu0 %v21927_v57 }
 0x779   : > { %7316 = vmatprep.mubr.bf16.mxu0 %v21970_v19  ;;  %7450 = vmatpush1.bf16.msra.mxu0 %v19386_v17  ;;  %v19400_v17 = vld [vmem:[%s26857_s5 + $0x2a4] ss:$8 sps:$4 sm:$0xff]  }
 0x77a   : > { %7451 = vmatprep.subr.bf16.mxu0 %v19391_v40  ;;  %v19398_v40 = vld [vmem:[%s26857_s5 + $0x2a0] ss:$8 sps:$4 sm:$0xff]  }
 0x77d   : > { %7452 = vmatpush1.bf16.msra.mxu0 %v19389_v41  ;;  %v19403_v41 = vld [vmem:[%s26857_s5 + $0x2b4] ss:$8 sps:$4 sm:$0xff]  }
 0x77e   : > { %7453 = vmatprep.subr.bf16.mxu0 %v19394_v2  ;;  %v19401_v2 = vld [vmem:[%s26857_s5 + $0x2b0] ss:$8 sps:$4 sm:$0xff]  }
 0x780   : > { %7317 = vmatmul.mubr.bf16.gmra.mrb[144].mxu0 %v21965_v9 }
 0x781   : > { %7326 = vmatprep.mubr.bf16.mxu0 %v22008_v22  ;;  %7454 = vmatpush1.bf16.msra.mxu0 %v19392_v63  ;;  %v19406_v63 = vld [vmem:[%s26857_s5 + $0x2c4] ss:$8 sps:$4 sm:$0xff]  }
 0x782   : > { %7455 = vmatprep.subr.bf16.mxu0 %v19397_v27  ;;  %v19404_v27 = vld [vmem:[%s26857_s5 + $0x2c0] ss:$8 sps:$4 sm:$0xff]  }
 0x785   : > { %7456 = vmatpush1.bf16.msra.mxu0 %v19395_v28  ;;  %v19409_v28 = vld [vmem:[%s26857_s5 + $0x2d4] ss:$8 sps:$4 sm:$0xff]  }
 0x786   : > { %7457 = vmatprep.subr.bf16.mxu0 %v19400_v17  ;;  %v19407_v17 = vld [vmem:[%s26857_s5 + $0x2d0] ss:$8 sps:$4 sm:$0xff]  }
 0x788   : > { %7327 = vmatmul.mubr.bf16.gmra.mrb[148].mxu0 %v22003_v29 }
 0x789   : > { %7336 = vmatprep.mubr.bf16.mxu0 %v22046_v26  ;;  %7458 = vmatpush1.bf16.msra.mxu0 %v19398_v40  ;;  %v19412_v40 = vld [vmem:[%s26857_s5 + $0x2e4] ss:$8 sps:$4 sm:$0xff]  }
 0x78a   : > { %7459 = vmatprep.subr.bf16.mxu0 %v19403_v41  ;;  %v19410_v41 = vld [vmem:[%s26857_s5 + $0x2e0] ss:$8 sps:$4 sm:$0xff]  }
 0x78d   : > { %7460 = vmatpush1.bf16.msra.mxu0 %v19401_v2  ;;  %v19415_v2 = vld [vmem:[%s26857_s5 + $0x2f4] ss:$8 sps:$4 sm:$0xff]  }
 0x78e   : > { %7461 = vmatprep.subr.bf16.mxu0 %v19406_v63  ;;  %v19413_v63 = vld [vmem:[%s26857_s5 + $0x2f0] ss:$8 sps:$4 sm:$0xff]  }
 0x790   : > { %7337 = vmatmul.mubr.bf16.gmra.mrb[152].mxu0 %v22041_v38 }
 0x791   : > { %7346 = vmatprep.mubr.bf16.mxu0 %v22080_v10  ;;  %7462 = vmatpush1.bf16.msra.mxu0 %v19404_v27  ;;  %v19418_v27 = vld [vmem:[%s26857_s5 + $0x604] ss:$8 sps:$4 sm:$0xff]  }
 0x792   : > { %7463 = vmatprep.subr.bf16.mxu0 %v19409_v28  ;;  %v19416_v28 = vld [vmem:[%s26857_s5 + $0x600] ss:$8 sps:$4 sm:$0xff]  }
 0x795   : > { %7464 = vmatpush1.bf16.msra.mxu0 %v19407_v17  ;;  %v19421_v17 = vld [vmem:[%s26857_s5 + $0x614] ss:$8 sps:$4 sm:$0xff]  }
 0x796   : > { %7465 = vmatprep.subr.bf16.mxu0 %v19412_v40  ;;  %v19419_v40 = vld [vmem:[%s26857_s5 + $0x610] ss:$8 sps:$4 sm:$0xff]  }
 0x798   : > { %7347 = vmatmul.mubr.bf16.gmra.mrb[156].mxu0 %v22075_v1 }
 0x799   : > { %7356 = vmatprep.mubr.bf16.mxu0 %v22124_v18  ;;  %7466 = vmatpush1.bf16.msra.mxu0 %v19410_v41  ;;  %v19424_v41 = vld [vmem:[%s26857_s5 + $0x624] ss:$8 sps:$4 sm:$0xff]  }
 0x79a   : > { %7467 = vmatprep.subr.bf16.mxu0 %v19415_v2  ;;  %v19422_v2 = vld [vmem:[%s26857_s5 + $0x620] ss:$8 sps:$4 sm:$0xff]  }
 0x79d   : > { %7468 = vmatpush1.bf16.msra.mxu0 %v19413_v63  ;;  %v19430_v63 = vld [vmem:[%s26857_s5 + $0x644] ss:$8 sps:$4 sm:$0xff]  }
 0x79e   : > { %8304 = vmatprep.subr.bf16.mxu0 %v19418_v27  ;;  %v19428_v27 = vld [vmem:[%s26857_s5 + $0x640] ss:$8 sps:$4 sm:$0xff]  }
 0x7a0   : > { %7357 = vmatmul.mubr.bf16.gmra.mrb[160].mxu0 %v22119_v52 }
 0x7a1   : > { %7366 = vmatprep.mubr.bf16.mxu0 %v22168_v35 }
 0x7a8   : > { %7367 = vmatmul.mubr.bf16.gmra.mrb[164].mxu0 %v22163_v5 }
 0x7a9   : > { %7376 = vmatprep.mubr.bf16.mxu0 %v22209_v34 }
 0x7b0   : > { %7377 = vmatmul.mubr.bf16.gmra.mrb[168].mxu0 %v22207_v4 }
 0x7b1   : > { %7386 = vmatprep.mubr.bf16.mxu0 %v22241_v60 }
 0x7b8   : > { %7387 = vmatmul.mubr.bf16.gmra.mrb[172].mxu0 %v22239_v33 }
 0x7b9   : > { %7396 = vmatprep.mubr.bf16.mxu0 %v22273_v51 }
 0x7c0   : > { %7397 = vmatmul.mubr.bf16.gmra.mrb[176].mxu0 %v22271_v0 }
 0x7c1   : > { %7406 = vmatprep.mubr.bf16.mxu0 %v22305_v8 }
 0x7c8   : > { %7407 = vmatmul.mubr.bf16.gmra.mrb[180].mxu0 %v22303_v62 }
 0x7c9   : > { %7416 = vmatprep.mubr.bf16.mxu0 %v22337_v16 }
 0x7d0   : > { %7417 = vmatmul.mubr.bf16.gmra.mrb[184].mxu0 %v22335_v45 }
 0x7d1   : > { %7426 = vmatprep.mubr.bf16.mxu0 %v22369_v12 }
 0x7d8   : > { %7427 = vmatmul.mubr.bf16.gmra.mrb[188].mxu0 %v22367_v46 }
 0x7d9   : > { %7469 = vmatprep.mubr.bf16.mxu0 %v22448_v24 }
 0x7e0   : > { %7470 = vmatmul.mubr.bf16.vlgmr.msra.gmra.mrb[128].mxu0 %v22448_v24  ;;  %v19427_v24 = vld [vmem:[%s26857_s5 + $0x634] ss:$8 sps:$4 sm:$0xff]  }
 0x7e1   : > { %8305 = vmatpush1.bf16.msra.mxu0 %v19416_v28  ;;  %7479 = vmatprep.mubr.bf16.mxu0 %v22582_v53  ;;  %v19425_v53 = vld [vmem:[%s26857_s5 + $0x630] ss:$8 sps:$4 sm:$0xff]  }
 0x7e2   : > { %8306 = vmatprep.subr.bf16.mxu0 %v19421_v17  ;;  %v19431_v28 = vld [vmem:[%s26857_s5 + $0x650] ss:$8 sps:$4 sm:$0xff]   ;;  %v19436_v17 = vld [vmem:[%s26857_s5 + $0x664] ss:$8 sps:$4 sm:$0xff]  }
 0x7e5   : > { %8307 = vmatpush1.bf16.msra.mxu0 %v19419_v40  ;;  %v19434_v40 = vld [vmem:[%s26857_s5 + $0x660] ss:$8 sps:$4 sm:$0xff]  }
 0x7e6   : > { %8308 = vmatprep.subr.bf16.mxu0 %v19424_v41  ;;  %v19439_v41 = vld [vmem:[%s26857_s5 + $0x674] ss:$8 sps:$4 sm:$0xff]  }
 0x7e8   : > { %7480 = vmatmul.mubr.bf16.gmra.mrb[132].mxu0 %v22602_v50  ;;  %v19433_v50 = vld [vmem:[%s26857_s5 + $0x654] ss:$8 sps:$4 sm:$0xff]  }
 0x7e9   : > { %7489 = vmatprep.mubr.bf16.mxu0 %v22608_v37  ;;  %8309 = vmatpush1.bf16.msra.mxu0 %v19422_v2  ;;  %v19437_v2 = vld [vmem:[%s26857_s5 + $0x670] ss:$8 sps:$4 sm:$0xff]  }
 0x7ea   : > { %8310 = vmatprep.subr.bf16.mxu0 %v19427_v24  ;;  %v19442_v24 = vld [vmem:[%s26857_s5 + $0x684] ss:$8 sps:$4 sm:$0xff]  }
 0x7ed   : > { %8311 = vmatpush1.bf16.msra.mxu0 %v19425_v53  ;;  %v19440_v53 = vld [vmem:[%s26857_s5 + $0x680] ss:$8 sps:$4 sm:$0xff]  }
 0x7ee   : > { %8312 = vmatprep.subr.bf16.mxu0 %v19430_v63  ;;  %v19445_v63 = vld [vmem:[%s26857_s5 + $0x694] ss:$8 sps:$4 sm:$0xff]  }
 0x7f0   : > { %7490 = vmatmul.mubr.bf16.gmra.mrb[136].mxu0 %v22634_v56 }
 0x7f1   : > { %7499 = vmatprep.mubr.bf16.mxu0 %v22640_v11  ;;  %8313 = vmatpush1.bf16.msra.mxu0 %v19428_v27  ;;  %v19443_v27 = vld [vmem:[%s26857_s5 + $0x690] ss:$8 sps:$4 sm:$0xff]  }
 0x7f2   : > { %8314 = vmatprep.subr.bf16.mxu0 %v19433_v50  ;;  %v19448_v50 = vld [vmem:[%s26857_s5 + $0x6a4] ss:$8 sps:$4 sm:$0xff]  }
 0x7f5   : > { %8315 = vmatpush1.bf16.msra.mxu0 %v19431_v28  ;;  %v19446_v28 = vld [vmem:[%s26857_s5 + $0x6a0] ss:$8 sps:$4 sm:$0xff]  }
 0x7f6   : > { %8316 = vmatprep.subr.bf16.mxu0 %v19436_v17  ;;  %v19451_v17 = vld [vmem:[%s26857_s5 + $0x6b4] ss:$8 sps:$4 sm:$0xff]  }
 0x7f8   : > { %7500 = vmatmul.mubr.bf16.gmra.mrb[140].mxu0 %v22666_v32 }
 0x7f9   : > { %7509 = vmatprep.mubr.bf16.mxu0 %v22672_v54  ;;  %8317 = vmatpush1.bf16.msra.mxu0 %v19434_v40  ;;  %v19449_v40 = vld [vmem:[%s26857_s5 + $0x6b0] ss:$8 sps:$4 sm:$0xff]  }
 0x7fa   : > { %8318 = vmatprep.subr.bf16.mxu0 %v19439_v41  ;;  %v19454_v41 = vld [vmem:[%s26857_s5 + $0x6c4] ss:$8 sps:$4 sm:$0xff]  }
 0x7fd   : > { %8319 = vmatpush1.bf16.msra.mxu0 %v19437_v2  ;;  %v19452_v2 = vld [vmem:[%s26857_s5 + $0x6c0] ss:$8 sps:$4 sm:$0xff]  }
 0x7fe   : > { %8320 = vmatprep.subr.bf16.mxu0 %v19442_v24  ;;  %v19455_v24 = vld [vmem:[%s26857_s5 + $0x6d0] ss:$8 sps:$4 sm:$0xff]  }
 0x800   : > { %7510 = vmatmul.mubr.bf16.gmra.mrb[144].mxu0 %v22698_v15 }
 0x801   : > { %7519 = vmatprep.mubr.bf16.mxu0 %v22704_v43  ;;  %8321 = vmatpush1.bf16.msra.mxu0 %v19440_v53  ;;  %v19460_v53 = vld [vmem:[%s26857_s5 + $0x6e4] ss:$8 sps:$4 sm:$0xff]  }
 0x802   : > { %8322 = vmatprep.subr.bf16.mxu0 %v19445_v63  ;;  %v19458_v63 = vld [vmem:[%s26857_s5 + $0x6e0] ss:$8 sps:$4 sm:$0xff]  }
 0x805   : > { %8323 = vmatpush1.bf16.msra.mxu0 %v19443_v27  ;;  %v19466_v27 = vld [vmem:[%s26857_s5 + $0x704] ss:$8 sps:$4 sm:$0xff]  }
 0x806   : > { %8324 = vmatprep.subr.bf16.mxu0 %v19448_v50  ;;  %v27277_v50 = vld [vmem:[#allocation36_spill] sm:$0xff] }
 0x808   : > { %7520 = vmatmul.mubr.bf16.gmra.mrb[148].mxu0 %v22730_v59 }
 0x809   : > { %7529 = vmatprep.mubr.bf16.mxu0 %v27207_v23  ;;  %8325 = vmatpush1.bf16.msra.mxu0 %v19446_v28  ;;  %v19457_v23 = vld [vmem:[%s26857_s5 + $0x6d4] ss:$8 sps:$4 sm:$0xff]  }
 0x80a   : > { %8326 = vmatprep.subr.bf16.mxu0 %v19451_v17  ;;  %v27278_v28 = vld [vmem:[#allocation38_spill] sm:$0xff] }
 0x80b   : > { %v27281_v17 = vld [vmem:[#allocation46_spill] sm:$0xff] }
 0x80d   : > { %8327 = vmatpush1.bf16.msra.mxu0 %v19449_v40  ;;  %v27282_v40 = vld [vmem:[#allocation56_spill] sm:$0xff] }
 0x80e   : > { %8328 = vmatprep.subr.bf16.mxu0 %v19454_v41  ;;  %v27283_v41 = vld [vmem:[#allocation58_spill] sm:$0xff] }
 0x810   : > { %7530 = vmatmul.mubr.bf16.gmra.mrb[152].mxu0 %v27212_v61  ;;  %v19461_v61 = vld [vmem:[%s26857_s5 + $0x6f0] ss:$8 sps:$4 sm:$0xff]  }
 0x811   : > { %7539 = vmatprep.mubr.bf16.mxu0 %v27213_v36  ;;  %8329 = vmatpush1.bf16.msra.mxu0 %v19452_v2  ;;  %v19463_v36 = vld [vmem:[%s26857_s5 + $0x6f4] ss:$8 sps:$4 sm:$0xff]   ;;  %v27284_v2 = vld [vmem:[#allocation60_spill] sm:$0xff] }
 0x812   : > { %8330 = vmatprep.subr.bf16.mxu0 %v19457_v23  ;;  %v27286_v23 = vld [vmem:[#allocation66_spill] sm:$0xff] }
 0x815   : > { %8331 = vmatpush1.bf16.msra.mxu0 %v19455_v24  ;;  %v27287_v24 = vld [vmem:[#allocation13_spill] sm:$0xff] }
 0x816   : > { %8332 = vmatprep.subr.bf16.mxu0 %v19460_v53  ;;  %v19467_v53 = vld [vmem:[%s26857_s5 + $0x710] ss:$8 sps:$4 sm:$0xff]  }
 0x818   : > { %7540 = vmatmul.mubr.bf16.gmra.mrb[156].mxu0 %v27218_v39  ;;  %v27279_v39 = vld [vmem:[#allocation42_spill] sm:$0xff] }
 0x819   : > { %7549 = vmatprep.mubr.bf16.mxu0 %v27219_v14  ;;  %8333 = vmatpush1.bf16.msra.mxu0 %v19458_v63  ;;  %v27280_v14 = vld [vmem:[#allocation44_spill] sm:$0xff] }
 0x81a   : > { %8334 = vmatprep.subr.bf16.mxu0 %v19463_v36  ;;  %v19472_v63 = vld [vmem:[%s26857_s5 + $0x724] ss:$8 sps:$4 sm:$0xff]   ;;  %v19470_v36 = vld [vmem:[%s26857_s5 + $0x720] ss:$8 sps:$4 sm:$0xff]  }
 0x81d   : > { %8335 = vmatpush1.bf16.msra.mxu0 %v19461_v61  ;;  %v19475_v61 = vld [vmem:[%s26857_s5 + $0x734] ss:$8 sps:$4 sm:$0xff]  }
 0x81e   : > { %8497 = vmatprep.subr.bf16.mxu0 %v19466_v27  ;;  %v27290_v27 = vld [vmem:[#allocation16_spill] sm:$0xff] }
 0x820   : > { %7550 = vmatmul.mubr.bf16.gmra.mrb[160].mxu0 %v27277_v50  ;;  %v27291_v50 = vld [vmem:[#allocation19_spill] sm:$0xff] }
 0x821   : > { %7559 = vmatprep.mubr.bf16.mxu0 %v27278_v28  ;;  %v19473_v28 = vld [vmem:[%s26857_s5 + $0x730] ss:$8 sps:$4 sm:$0xff]  }
 0x828   : > { %7560 = vmatmul.mubr.bf16.gmra.mrb[164].mxu0 %v27230_v44  ;;  %v27285_v44 = vld [vmem:[#allocation64_spill] sm:$0xff] }
 0x829   : > { %7569 = vmatprep.mubr.bf16.mxu0 %v27279_v39  ;;  %v19478_v39 = vld [vmem:[%s26857_s5 + $0x744] ss:$8 sps:$4 sm:$0xff]  }
 0x830   : > { %7570 = vmatmul.mubr.bf16.gmra.mrb[168].mxu0 %v27280_v14  ;;  %v19476_v14 = vld [vmem:[%s26857_s5 + $0x740] ss:$8 sps:$4 sm:$0xff]  }
 0x831   : > { %7579 = vmatprep.mubr.bf16.mxu0 %v27281_v17  ;;  %v19481_v17 = vld [vmem:[%s26857_s5 + $0x754] ss:$8 sps:$4 sm:$0xff]  }
 0x838   : > { %7580 = vmatmul.mubr.bf16.gmra.mrb[172].mxu0 %v27242_v48  ;;  %v27288_v48 = vld [vmem:[#allocation14_spill] sm:$0xff] }
 0x839   : > { %7589 = vmatprep.mubr.bf16.mxu0 %v27243_v13  ;;  %v19464_v13 = vld [vmem:[%s26857_s5 + $0x700] ss:$8 sps:$4 sm:$0xff]  }
 0x840   : > { %7590 = vmatmul.mubr.bf16.gmra.mrb[176].mxu0 %v27244_v30  ;;  %v27289_v30 = vld [vmem:[#allocation15_spill] sm:$0xff] }
 0x841   : > { %7599 = vmatprep.mubr.bf16.mxu0 %v27245_v49  ;;  %v19469_v49 = vld [vmem:[%s26857_s5 + $0x714] ss:$8 sps:$4 sm:$0xff]  }
 0x848   : > { %7600 = vmatmul.mubr.bf16.gmra.mrb[180].mxu0 %v27282_v40  ;;  %v27292_v40 = vld [vmem:[#allocation20_spill] sm:$0xff] }
 0x849   : > { %7609 = vmatprep.mubr.bf16.mxu0 %v27283_v41  ;;  %v27293_v41 = vld [vmem:[#allocation23_spill] sm:$0xff] }
 0x850   : > { %7610 = vmatmul.mubr.bf16.gmra.mrb[184].mxu0 %v27284_v2  ;;  %v19479_v2 = vld [vmem:[%s26857_s5 + $0x750] ss:$8 sps:$4 sm:$0xff]  }
 0x851   : > { %7619 = vmatprep.mubr.bf16.mxu0 %v27285_v44  ;;  %v19484_v44 = vld [vmem:[%s26857_s5 + $0x764] ss:$8 sps:$4 sm:$0xff]  }
 0x858   : > { %7620 = vmatmul.mubr.bf16.gmra.mrb[188].mxu0 %v27286_v23  ;;  %v19482_v23 = vld [vmem:[%s26857_s5 + $0x760] ss:$8 sps:$4 sm:$0xff]  }
 0x859   : > { %8336 = vmatprep.mubr.bf16.mxu0 %v27287_v24  ;;  %v19487_v24 = vld [vmem:[%s26857_s5 + $0x774] ss:$8 sps:$4 sm:$0xff]  }
 0x860   : > { %8337 = vmatmul.mubr.bf16.vlgmr.msra.gmra.mrb[128].mxu0 %v27288_v48  ;;  %v19485_v48 = vld [vmem:[%s26857_s5 + $0x770] ss:$8 sps:$4 sm:$0xff]  }
 0x861   : > { %8498 = vmatpush1.bf16.msra.mxu0 %v19464_v13  ;;  %8346 = vmatprep.mubr.bf16.mxu0 %v27289_v30  ;;  %v27294_v13 = vld [vmem:[#allocation24_spill] sm:$0xff] }
 0x862   : > { %8499 = vmatprep.subr.bf16.mxu0 %v19469_v49  ;;  %v27295_v49 = vld [vmem:[#allocation25_spill] sm:$0xff] }
 0x863   : > { %v19490_v30 = vld [vmem:[%s26857_s5 + $0x784] ss:$8 sps:$4 sm:$0xff]  }
 0x865   : > { %8500 = vmatpush1.bf16.msra.mxu0 %v19467_v53  ;;  %v19488_v53 = vld [vmem:[%s26857_s5 + $0x780] ss:$8 sps:$4 sm:$0xff]  }
 0x866   : > { %8501 = vmatprep.subr.bf16.mxu0 %v19472_v63  ;;  %v19493_v63 = vld [vmem:[%s26857_s5 + $0x794] ss:$8 sps:$4 sm:$0xff]  }
 0x868   : > { %8347 = vmatmul.mubr.bf16.gmra.mrb[132].mxu0 %v27290_v27  ;;  %v19491_v27 = vld [vmem:[%s26857_s5 + $0x790] ss:$8 sps:$4 sm:$0xff]  }
 0x869   : > { %8356 = vmatprep.mubr.bf16.mxu0 %v27291_v50  ;;  %8502 = vmatpush1.bf16.msra.mxu0 %v19470_v36  ;;  %v27296_v36 = vld [vmem:[#allocation27_spill] sm:$0xff]  ;;  %v19496_v50 = vld [vmem:[%s26857_s5 + $0x7a4] ss:$8 sps:$4 sm:$0xff]  }
 0x86a   : > { %8503 = vmatprep.subr.bf16.mxu0 %v19475_v61  ;;  %v27297_v61 = vld [vmem:[#allocation29_spill] sm:$0xff] }
 0x86d   : > { %8504 = vmatpush1.bf16.msra.mxu0 %v19473_v28  ;;  %v19494_v28 = vld [vmem:[%s26857_s5 + $0x7a0] ss:$8 sps:$4 sm:$0xff]  }
 0x86e   : > { %8505 = vmatprep.subr.bf16.mxu0 %v19478_v39  ;;  %v19499_v39 = vld [vmem:[%s26857_s5 + $0x7b4] ss:$8 sps:$4 sm:$0xff]  }
 0x870   : > { %8357 = vmatmul.mubr.bf16.gmra.mrb[136].mxu0 %v27292_v40  ;;  %v19497_v40 = vld [vmem:[%s26857_s5 + $0x7b0] ss:$8 sps:$4 sm:$0xff]  }
 0x871   : > { %8366 = vmatprep.mubr.bf16.mxu0 %v27293_v41  ;;  %8506 = vmatpush1.bf16.msra.mxu0 %v19476_v14  ;;  %v27298_v14 = vld [vmem:[#allocation31_spill] sm:$0xff]  ;;  %v19502_v41 = vld [vmem:[%s26857_s5 + $0x7c4] ss:$8 sps:$4 sm:$0xff]  }
 0x872   : > { %8507 = vmatprep.subr.bf16.mxu0 %v19481_v17  ;;  %v27299_v17 = vld [vmem:[#allocation33_spill] sm:$0xff] }
 0x875   : > { %8508 = vmatpush1.bf16.msra.mxu0 %v19479_v2  ;;  %v19500_v2 = vld [vmem:[%s26857_s5 + $0x7c0] ss:$8 sps:$4 sm:$0xff]  }
 0x876   : > { %8509 = vmatprep.subr.bf16.mxu0 %v19484_v44  ;;  %v19505_v44 = vld [vmem:[%s26857_s5 + $0x7d4] ss:$8 sps:$4 sm:$0xff]  }
 0x878   : > { %8367 = vmatmul.mubr.bf16.gmra.mrb[140].mxu0 %v27294_v13  ;;  %v19503_v13 = vld [vmem:[%s26857_s5 + $0x7d0] ss:$8 sps:$4 sm:$0xff]  }
 0x879   : > { %8376 = vmatprep.mubr.bf16.mxu0 %v27295_v49  ;;  %8510 = vmatpush1.bf16.msra.mxu0 %v19482_v23  ;;  %v27300_v23 = vld [vmem:[#allocation35_spill] sm:$0xff]  ;;  %v19508_v49 = vld [vmem:[%s26857_s5 + $0x7e4] ss:$8 sps:$4 sm:$0xff]  }
 0x87a   : > { %8511 = vmatprep.subr.bf16.mxu0 %v19487_v24  ;;  %v27301_v24 = vld [vmem:[#allocation37_spill] sm:$0xff] }
 0x87d   : > { %8512 = vmatpush1.bf16.msra.mxu0 %v19485_v48  ;;  %v19506_v48 = vld [vmem:[%s26857_s5 + $0x7e0] ss:$8 sps:$4 sm:$0xff]  }
 0x87e   : > { %8513 = vmatprep.subr.bf16.mxu0 %v19490_v30  ;;  %v19511_v30 = vld [vmem:[%s26857_s5 + $0x7f4] ss:$8 sps:$4 sm:$0xff]  }
 0x880   : > { %8377 = vmatmul.mubr.bf16.gmra.mrb[144].mxu0 %v27296_v36  ;;  %v27304_v36 = vld [vmem:[#allocation59_spill] sm:$0xff] }
 0x881   : > { %8386 = vmatprep.mubr.bf16.mxu0 %v27297_v61  ;;  %8514 = vmatpush1.bf16.msra.mxu0 %v19488_v53  ;;  %v19509_v53 = vld [vmem:[%s26857_s5 + $0x7f0] ss:$8 sps:$4 sm:$0xff]  }
 0x882   : > { %8515 = vmatprep.subr.bf16.mxu0 %v19493_v63  ;;  %v19750_v63 = vld [vmem:[%s26857_s5 + $0x804] ss:$8 sps:$4 sm:$0xff]   ;;  %v27305_v61 = vld [vmem:[#allocation63_spill] sm:$0xff] }
 0x885   : > { %8516 = vmatpush1.bf16.msra.mxu0 %v19491_v27  ;;  %v27306_v27 = vld [vmem:[#allocation65_spill] sm:$0xff] }
 0x886   : > { %8517 = vmatprep.subr.bf16.mxu0 %v19496_v50  ;;  %v19758_v50 = vld [vmem:[%s26857_s5 + $0x830] ss:$8 sps:$4 sm:$0xff]  }
 0x888   : > { %8387 = vmatmul.mubr.bf16.gmra.mrb[148].mxu0 %v27298_v14  ;;  %v19765_v14 = vld [vmem:[%s26857_s5 + $0x874] ss:$8 sps:$4 sm:$0xff]  }
 0x889   : > { %8396 = vmatprep.mubr.bf16.mxu0 %v27299_v17  ;;  %8518 = vmatpush1.bf16.msra.mxu0 %v19494_v28  ;;  %v19761_v28 = vld [vmem:[%s26857_s5 + $0x854] ss:$8 sps:$4 sm:$0xff]   ;;  %v19766_v17 = vld [vmem:[%s26857_s5 + $0x870] ss:$8 sps:$4 sm:$0xff]  }
 0x88a   : > { %8519 = vmatprep.subr.bf16.mxu0 %v19499_v39  ;;  %v19762_v39 = vld [vmem:[%s26857_s5 + $0x850] ss:$8 sps:$4 sm:$0xff]  }
 0x88d   : > { %8520 = vmatpush1.bf16.msra.mxu0 %v19497_v40  ;;  %v19769_v40 = vld [vmem:[%s26857_s5 + $0x894] ss:$8 sps:$4 sm:$0xff]  }
 0x88e   : > { %8521 = vmatprep.subr.bf16.mxu0 %v19502_v41  ;;  %v19770_v41 = vld [vmem:[%s26857_s5 + $0x890] ss:$8 sps:$4 sm:$0xff]  }
 0x890   : > { %8397 = vmatmul.mubr.bf16.gmra.mrb[152].mxu0 %v27300_v23  ;;  %v19777_v23 = vld [vmem:[%s26857_s5 + $0x8d4] ss:$8 sps:$4 sm:$0xff]  }
 0x891   : > { %8406 = vmatprep.mubr.bf16.mxu0 %v27301_v24  ;;  %8522 = vmatpush1.bf16.msra.mxu0 %v19500_v2  ;;  %v19773_v2 = vld [vmem:[%s26857_s5 + $0x8b4] ss:$8 sps:$4 sm:$0xff]   ;;  %v19778_v24 = vld [vmem:[%s26857_s5 + $0x8d0] ss:$8 sps:$4 sm:$0xff]  }
 0x892   : > { %8523 = vmatprep.subr.bf16.mxu0 %v19505_v44  ;;  %v19774_v44 = vld [vmem:[%s26857_s5 + $0x8b0] ss:$8 sps:$4 sm:$0xff]  }
 0x895   : > { %8524 = vmatpush1.bf16.msra.mxu0 %v19503_v13  ;;  %v19781_v13 = vld [vmem:[%s26857_s5 + $0x8f4] ss:$8 sps:$4 sm:$0xff]  }
 0x896   : > { %8525 = vmatprep.subr.bf16.mxu0 %v19508_v49  ;;  %v19782_v49 = vld [vmem:[%s26857_s5 + $0x8f0] ss:$8 sps:$4 sm:$0xff]  }
 0x898   : > { %8407 = vmatmul.mubr.bf16.gmra.mrb[156].mxu0 %v27266_v58  ;;  %v27302_v58 = vld [vmem:[#allocation49_spill] sm:$0xff] }
 0x899   : > { %8416 = vmatprep.mubr.bf16.mxu0 %v27267_v6  ;;  %8526 = vmatpush1.bf16.msra.mxu0 %v19506_v48  ;;  %v27303_v6 = vld [vmem:[#allocation53_spill] sm:$0xff] }
 0x89a   : > { %8527 = vmatprep.subr.bf16.mxu0 %v19511_v30  ;;  %v19528_v48 = vld [vmem:[%s26859_s7 + $0x1e8] sm:$0xff]  }
 0x89b   : > { %v19529_v30 = vld [vmem:[%s26859_s7 + $0x1a8] sm:$0xff]  }
 0x89d   : > { %8528 = vmatpush1.bf16.msra.mxu0 %v19509_v53  ;;  %v19533_v53 = vld [vmem:[%s26859_s7 + $0xa0] sm:$0xff]  }
 0x89e   : > { %8690 = vmatprep.subr.bf16.mxu0 %v19750_v63  ;;  %v19534_v63 = vld [vmem:[%s26859_s7 + $0xe8] sm:$0xff]  }
 0x8a0   : > { %8417 = vmatmul.mubr.bf16.gmra.mrb[160].mxu0 %v27268_v55  ;;  %v27307_v55 = vld [vmem:[#allocation67_spill] sm:$0xff] }
 0x8a1   : > { %8426 = vmatprep.mubr.bf16.mxu0 %v27269_v7  ;;  %v27308_v7 = vld [vmem:[#allocation68_spill] sm:$0xff] }
 0x8a8   : > { %8427 = vmatmul.mubr.bf16.gmra.mrb[164].mxu0 %v27270_v31  ;;  %v23355_v31 = vld [vmem:[#allocation2] sm:$0xff] }
 0x8a9   : > { %8436 = vmatprep.mubr.bf16.mxu0 %v27302_v58  ;;  %v19535_v58 = vld [vmem:[%s26859_s7 + $0xa8] sm:$0xff]  }
 0x8b0   : > { %8437 = vmatmul.mubr.bf16.gmra.mrb[168].mxu0 %v27272_v47  ;;  %v19752_v47 = vld [vmem:[%s26857_s5 + $0x800] ss:$8 sps:$4 sm:$0xff]  }
 0x8b1   : > { %8446 = vmatprep.mubr.bf16.mxu0 %v27303_v6  ;;  %v23565_v6 = vpop.f32.mrb[172].mxu1 }
 0x8b8   : > { %8447 = vmatmul.mubr.bf16.gmra.mrb[172].mxu0 %v27274_v3  ;;  %v19754_v3 = vld [vmem:[%s26857_s5 + $0x810] ss:$8 sps:$4 sm:$0xff]  }
 0x8b9   : > { %8456 = vmatprep.mubr.bf16.mxu0 %v27275_v25  ;;  %v19753_v25 = vld [vmem:[%s26857_s5 + $0x814] ss:$8 sps:$4 sm:$0xff]  }
 0x8c0   : > { %8457 = vmatmul.mubr.bf16.gmra.mrb[176].mxu0 %v27304_v36  ;;  %v23567_v36 = vpop.f32.mrb[173].mxu1 }
 0x8c1   : > { %8466 = vmatprep.mubr.bf16.mxu0 %v27305_v61  ;;  %v19538_v61 = vld [vmem:[%s26859_s7 + $0xf0] sm:$0xff]  }
 0x8c8   : > { %8467 = vmatmul.mubr.bf16.gmra.mrb[180].mxu0 %v27306_v27  ;;  %v23572_v27 = vpop.f32.mrb[174].mxu1 }
 0x8c9   : > { %8476 = vmatprep.mubr.bf16.mxu0 %v27307_v55  ;;  %v19539_v55 = vld [vmem:[%s26859_s7 + $0xb0] sm:$0xff]  }
 0x8d0   : > { %8477 = vmatmul.mubr.bf16.gmra.mrb[184].mxu0 %v27308_v7  ;;  %v23577_v7 = vpop.f32.mrb[175].mxu1 }
 0x8d1   : > { %8486 = vmatprep.mubr.bf16.mxu0 %v23355_v31 }
 0x8d8   : > { %8487 = vmatmul.mubr.bf16.gmra.mrb[188].mxu0 %v23355_v31 }
 0x8d9   : > { %8529 = vmatprep.mubr.bf16.mxu0 %v21894_v20  ;;  %v19756_v20 = vld [vmem:[%s26857_s5 + $0x820] ss:$8 sps:$4 sm:$0xff]  }
 0x8e0   : > { %8530 = vmatmul.mubr.bf16.vlgmr.msra.gmra.mrb[128].mxu0 %v21889_v21  ;;  %v19755_v21 = vld [vmem:[%s26857_s5 + $0x824] ss:$8 sps:$4 sm:$0xff]  }
 0x8e1   : > { %8691 = vmatpush1.bf16.msra.mxu0 %v19752_v47  ;;  %8539 = vmatprep.mubr.bf16.mxu0 %v21932_v42  ;;  %v19757_v42 = vld [vmem:[%s26857_s5 + $0x834] ss:$8 sps:$4 sm:$0xff]  }
 0x8e2   : > { %8692 = vmatprep.subr.bf16.mxu0 %v19753_v25  ;;  %v19540_v47 = vld [vmem:[%s26859_s7 + $0xf8] sm:$0xff]   ;;  %v19536_v25 = vld [vmem:[%s26859_s7 + $0x1f0] sm:$0xff]  }
 0x8e5   : > { %8693 = vmatpush1.bf16.msra.mxu0 %v19754_v3  ;;  %v19541_v3 = vld [vmem:[%s26859_s7 + $0xb8] sm:$0xff]  }
 0x8e6   : > { %8694 = vmatprep.subr.bf16.mxu0 %v19755_v21  ;;  %v19537_v21 = vld [vmem:[%s26859_s7 + $0x1b0] sm:$0xff]  }
 0x8e8   : > { %8540 = vmatmul.mubr.bf16.gmra.mrb[132].mxu0 %v21927_v57  ;;  %v19759_v57 = vld [vmem:[%s26857_s5 + $0x844] ss:$8 sps:$4 sm:$0xff]  }
 0x8e9   : > { %8549 = vmatprep.mubr.bf16.mxu0 %v21970_v19  ;;  %8695 = vmatpush1.bf16.msra.mxu0 %v19756_v20  ;;  %v19760_v19 = vld [vmem:[%s26857_s5 + $0x840] ss:$8 sps:$4 sm:$0xff]   ;;  %v19542_v20 = vld [vmem:[%s26859_s7 + $0x1f8] sm:$0xff]  }
 0x8ea   : > { %8696 = vmatprep.subr.bf16.mxu0 %v19757_v42  ;;  %v19543_v42 = vld [vmem:[%s26859_s7 + $0x1b8] sm:$0xff]  }
 0x8ed   : > { %8697 = vmatpush1.bf16.msra.mxu0 %v19758_v50  ;;  %v19544_v50 = vld [vmem:[%s26859_s7 + $0x240] sm:$0xff]  }
 0x8ee   : > { %8698 = vmatprep.subr.bf16.mxu0 %v19759_v57  ;;  %v8947_v57 = vld [vmem:[%s26858_s6] sm:$0x3] }
 0x8f0   : > { %8550 = vmatmul.mubr.bf16.gmra.mrb[136].mxu0 %v21965_v9  ;;  %v19763_v9 = vld [vmem:[%s26857_s5 + $0x864] ss:$8 sps:$4 sm:$0xff]  }
 0x8f1   : > { %8559 = vmatprep.mubr.bf16.mxu0 %v22008_v22  ;;  %8699 = vmatpush1.bf16.msra.mxu0 %v19760_v19  ;;  %v19764_v22 = vld [vmem:[%s26857_s5 + $0x860] ss:$8 sps:$4 sm:$0xff]  }
 0x8f2   : > { %8700 = vmatprep.subr.bf16.mxu0 %v19761_v28 }
 0x8f5   : > { %8701 = vmatpush1.bf16.msra.mxu0 %v19762_v39 }
 0x8f6   : > { %8702 = vmatprep.subr.bf16.mxu0 %v19763_v9 }
 0x8f8   : > { %8560 = vmatmul.mubr.bf16.gmra.mrb[140].mxu0 %v22003_v29  ;;  %v19767_v29 = vld [vmem:[%s26857_s5 + $0x884] ss:$8 sps:$4 sm:$0xff]  }
 0x8f9   : > { %8569 = vmatprep.mubr.bf16.mxu0 %v22046_v26  ;;  %8703 = vmatpush1.bf16.msra.mxu0 %v19764_v22  ;;  %v19768_v26 = vld [vmem:[%s26857_s5 + $0x880] ss:$8 sps:$4 sm:$0xff]  }
 0x8fa   : > { %8704 = vmatprep.subr.bf16.mxu0 %v19765_v14  ;;  %v27314_v14 = vld [vmem:[#allocation69_spill] sm:$0xff] }
 0x8fd   : > { %8705 = vmatpush1.bf16.msra.mxu0 %v19766_v17 }
 0x8fe   : > { %8706 = vmatprep.subr.bf16.mxu0 %v19767_v29 }
 0x900   : > { %8570 = vmatmul.mubr.bf16.gmra.mrb[144].mxu0 %v22041_v38  ;;  %v19771_v38 = vld [vmem:[%s26857_s5 + $0x8a4] ss:$8 sps:$4 sm:$0xff]  }
 0x901   : > { %8579 = vmatprep.mubr.bf16.mxu0 %v22080_v10  ;;  %8707 = vmatpush1.bf16.msra.mxu0 %v19768_v26  ;;  %v19772_v10 = vld [vmem:[%s26857_s5 + $0x8a0] ss:$8 sps:$4 sm:$0xff]   ;;  %v27315_v26 = vld [vmem:[#allocation70_spill] sm:$0xff] }
 0x902   : > { %8708 = vmatprep.subr.bf16.mxu0 %v19769_v40 }
 0x905   : > { %8709 = vmatpush1.bf16.msra.mxu0 %v19770_v41 }
 0x906   : > { %8710 = vmatprep.subr.bf16.mxu0 %v19771_v38 }
 0x908   : > { %8580 = vmatmul.mubr.bf16.gmra.mrb[148].mxu0 %v22075_v1  ;;  %v19775_v1 = vld [vmem:[%s26857_s5 + $0x8c4] ss:$8 sps:$4 sm:$0xff]  }
 0x909   : > { %8589 = vmatprep.mubr.bf16.mxu0 %v22124_v18  ;;  %8711 = vmatpush1.bf16.msra.mxu0 %v19772_v10  ;;  %v19776_v18 = vld [vmem:[%s26857_s5 + $0x8c0] ss:$8 sps:$4 sm:$0xff]   ;;  %v27316_v10 = vld [vmem:[#allocation71_spill] sm:$0xff] }
 0x90a   : > { %8712 = vmatprep.subr.bf16.mxu0 %v19773_v2 }
 0x90d   : > { %8713 = vmatpush1.bf16.msra.mxu0 %v19774_v44 }
 0x90e   : > { %8714 = vmatprep.subr.bf16.mxu0 %v19775_v1 }
 0x910   : > { %8590 = vmatmul.mubr.bf16.gmra.mrb[152].mxu0 %v22119_v52  ;;  %v19779_v52 = vld [vmem:[%s26857_s5 + $0x8e4] ss:$8 sps:$4 sm:$0xff]  }
 0x911   : > { %8599 = vmatprep.mubr.bf16.mxu0 %v22168_v35  ;;  %8715 = vmatpush1.bf16.msra.mxu0 %v19776_v18  ;;  %v19780_v35 = vld [vmem:[%s26857_s5 + $0x8e0] ss:$8 sps:$4 sm:$0xff]  }
 0x912   : > { %8716 = vmatprep.subr.bf16.mxu0 %v19777_v23  ;;  %v27317_v18 = vld [vmem:[#allocation72_spill] sm:$0xff] }
 0x915   : > { %8717 = vmatpush1.bf16.msra.mxu0 %v19778_v24 }
 0x916   : > { %8718 = vmatprep.subr.bf16.mxu0 %v19779_v52 }
 0x918   : > { %8600 = vmatmul.mubr.bf16.gmra.mrb[156].mxu0 %v22163_v5  ;;  %v19512_v5 = vld [vmem:[%s26859_s7 + $0x1c0] sm:$0xff]  }
 0x919   : > { %8609 = vmatprep.mubr.bf16.mxu0 %v22209_v34  ;;  %8719 = vmatpush1.bf16.msra.mxu0 %v19780_v35  ;;  %v27309_v34 = vld [vmem:[#allocation62_spill] sm:$0xff] }
 0x91a   : > { %8720 = vmatprep.subr.bf16.mxu0 %v19781_v13  ;;  %16201 = vmatprep.subr.bf16.mxu1 %v19512_v5  ;;  %v27318_v5 = vld [vmem:[#allocation73_spill] sm:$0xff] }
 0x91d   : > { %8721 = vmatpush1.bf16.msra.mxu0 %v19782_v49 }
 0x920   : > { %8610 = vmatmul.mubr.bf16.gmra.mrb[160].mxu0 %v22207_v4  ;;  %v27310_v4 = vld [vmem:[#allocation61_spill] sm:$0xff] }
 0x921   : > { %8619 = vmatprep.mubr.bf16.mxu0 %v22241_v60  ;;  %v19517_v60 = vld [vmem:[%s26859_s7 + $0x190] sm:$0xff]  }
 0x928   : > { %8620 = vmatmul.mubr.bf16.gmra.mrb[164].mxu0 %v22239_v33  ;;  %v19518_v33 = vld [vmem:[%s26859_s7 + $0x1d8] sm:$0xff]  }
 0x929   : > { %8629 = vmatprep.mubr.bf16.mxu0 %v22273_v51  ;;  %v19516_v51 = vld [vmem:[%s26859_s7 + $0x1d0] sm:$0xff]  }
 0x930   : > { %8630 = vmatmul.mubr.bf16.gmra.mrb[168].mxu0 %v22271_v0  ;;  %v19519_v0 = vld [vmem:[%s26859_s7 + $0x198] sm:$0xff]  }
 0x931   : > { %8639 = vmatprep.mubr.bf16.mxu0 %v22305_v8  ;;  %v19515_v8 = vld [vmem:[%s26859_s7 + $0x188] sm:$0xff]  }
 0x938   : > { %8640 = vmatmul.mubr.bf16.gmra.mrb[172].mxu0 %v22303_v62  ;;  %v19522_v62 = vld [vmem:[%s26859_s7 + $0xc0] sm:$0xff]  }
 0x939   : > { %8649 = vmatprep.mubr.bf16.mxu0 %v22337_v16  ;;  %v19514_v16 = vld [vmem:[%s26859_s7 + $0x1c8] sm:$0xff]   ;;  %16649 = vmatprep.subr.bf16.mxu0 %v19522_v62 }
 0x940   : > { %8650 = vmatmul.mubr.bf16.gmra.mrb[176].mxu0 %v22335_v45  ;;  %v19523_v45 = vld [vmem:[%s26859_s7 + $0x80] sm:$0xff]  }
 0x941   : > { %8659 = vmatprep.mubr.bf16.mxu0 %v22369_v12  ;;  %v19513_v12 = vld [vmem:[%s26859_s7 + $0x180] sm:$0xff]  }
 0x942   : > { %16202 = vmatpush3.bf16.msra.mxu1 %v19513_v12 }
 0x943   : > { %16203 = vmatprep.subr.bf16.mxu1 %v19514_v16 }
 0x946   : > { %16204 = vmatpush3.bf16.msra.mxu1 %v19515_v8 }
 0x947   : > { %16205 = vmatprep.subr.bf16.mxu1 %v19516_v51  ;;  %v27320_v51 = vld [vmem:[#allocation74_spill] sm:$0xff] }
 0x948   : > { %8660 = vmatmul.mubr.bf16.gmra.mrb[180].mxu0 %v22367_v46  ;;  %v19524_v46 = vld [vmem:[%s26859_s7 + $0xc8] sm:$0xff]  }
 0x949   : > { %8669 = vmatprep.mubr.bf16.mxu0 %v27309_v34 }
 0x94a   : > { %16206 = vmatpush3.bf16.msra.mxu1 %v19517_v60 }
 0x94b   : > { %16207 = vmatprep.subr.bf16.mxu1 %v19518_v33 }
 0x94e   : > { %16208 = vmatpush3.bf16.msra.mxu1 %v19519_v0 }
 0x950   : > { %8670 = vmatmul.mubr.bf16.gmra.mrb[184].mxu0 %v27310_v4 }
 0x951   : > { %8679 = vmatprep.mubr.bf16.mxu0 %v23355_v31 }
 0x958   : > { %8680 = vmatmul.mubr.bf16.gmra.mrb[188].mxu0 %v23355_v31 }
 0x959   : > { %8722 = vmatprep.mubr.bf16.mxu0 %v22608_v37  ;;  %v19520_v37 = vld [vmem:[%s26859_s7 + $0x1e0] sm:$0xff]  }
 0x95a   : > { %16209 = vmatprep.subr.bf16.mxu1 %v19520_v37 }
 0x960   : > { %8723 = vmatmul.mubr.bf16.vlgmr.msra.gmra.mrb[128].mxu0 %v22634_v56  ;;  %v19525_v56 = vld [vmem:[%s26859_s7 + $0x88] sm:$0xff]  }
 0x961   : > { %8732 = vmatprep.mubr.bf16.mxu0 %v22640_v11  ;;  %16650 = vmatpush3.bf16.msra.mxu0 %v19523_v45  ;;  %v19521_v11 = vld [vmem:[%s26859_s7 + $0x1a0] sm:$0xff]   ;;  %v27322_v45 = vld [vmem:[#allocation75_spill] sm:$0xff] }
 0x962   : > { %16651 = vmatprep.subr.bf16.mxu0 %v19524_v46  ;;  %16210 = vmatpush3.bf16.msra.mxu1 %v19521_v11 }
 0x963   : > { %16211 = vmatprep.subr.bf16.mxu1 %v19528_v48 }
 0x965   : > { %16652 = vmatpush3.bf16.msra.mxu0 %v19525_v56 }
 0x966   : > { %16212 = vmatpush3.bf16.msra.mxu1 %v19529_v30 }
 0x967   : > { %16213 = vmatprep.subr.bf16.mxu1 %v19536_v25 }
 0x968   : > { %8733 = vmatmul.mubr.bf16.gmra.mrb[132].mxu0 %v22666_v32  ;;  %v19526_v32 = vld [vmem:[%s26859_s7 + $0xd0] sm:$0xff]  }
 0x969   : > { %8742 = vmatprep.mubr.bf16.mxu0 %v22672_v54  ;;  %16653 = vmatprep.subr.bf16.mxu0 %v19526_v32  ;;  %v19530_v54 = vld [vmem:[%s26859_s7 + $0xd8] sm:$0xff]   ;;  %v27323_v32 = vld [vmem:[#allocation76_spill] sm:$0xff] }
 0x96a   : > { %16214 = vmatpush3.bf16.msra.mxu1 %v19537_v21 }
 0x96b   : > { %16215 = vmatprep.subr.bf16.mxu1 %v19542_v20  ;;  %v27326_v20 = vld [vmem:[#allocation77_spill] sm:$0xff] }
 0x96e   : > { %16216 = vmatpush3.bf16.msra.mxu1 %v19543_v42 }
 0x96f   : > { %16313 = vmatprep.subr.bf16.mxu1 %v19544_v50 }
 0x970   : > { %8743 = vmatmul.mubr.bf16.gmra.mrb[136].mxu0 %v22698_v15  ;;  %v19527_v15 = vld [vmem:[%s26859_s7 + $0x90] sm:$0xff]  }
 0x971   : > { %8752 = vmatprep.mubr.bf16.mxu0 %v22704_v43  ;;  %16654 = vmatpush3.bf16.msra.mxu0 %v19527_v15  ;;  %v19532_v43 = vld [vmem:[%s26859_s7 + $0xe0] sm:$0xff]  }
 0x972   : > { %16655 = vmatprep.subr.bf16.mxu0 %v19530_v54 }
 0x978   : > { %8753 = vmatmul.mubr.bf16.gmra.mrb[140].mxu0 %v22730_v59  ;;  %v19531_v59 = vld [vmem:[%s26859_s7 + $0x98] sm:$0xff]  }
 0x979   : > { %11268 = vmatprep.mubr.bf16.mxu0 %v23355_v31  ;;  %16656 = vmatpush3.bf16.msra.mxu0 %v19531_v59 }
 0x97a   : > { %16657 = vmatprep.subr.bf16.mxu0 %v19532_v43 }
 0x97d   : > { %16658 = vmatpush3.bf16.msra.mxu0 %v19533_v53 }
 0x97e   : > { %16659 = vmatprep.subr.bf16.mxu0 %v19534_v63 }
 0x981   : > { %16660 = vmatpush3.bf16.msra.mxu0 %v19535_v58 }
 0x982   : > { %16661 = vmatprep.subr.bf16.mxu0 %v19538_v61 }
 0x985   : > { %16662 = vmatpush3.bf16.msra.mxu0 %v19539_v55 }
 0x986   : > { %16663 = vmatprep.subr.bf16.mxu0 %v19540_v47 }
 0x989   : > { %16664 = vmatpush3.bf16.msra.mxu0 %v19541_v3 }
 0x98c   : > { %11269 = vmatmul.mubr.bf16.vlgmr.msra.gmra.mrb[192].mxu0 %v23355_v31  ;;  %v27311_v31 = vld [vmem:[#allocation10_spill] sm:$0xff] }
 0x98d   : > { %v27312_v19 = vsub.s32 0, %v27311_v31  ;;  %v27313_v9 = vsub.s32 1, %v27311_v31  ;;  %v27328_v31 = vld [vmem:[#allocation78_spill] sm:$0xff] }
 0x98f   : > { %v23606_v28 = vrot.slane %v8947_v57, %v27312_v19  ;;  %v23610_v22 = vrot.slane %v8947_v57, %v27313_v9 }
 0x9d3   : > { %v8571_v39 = vpop.f32.mrb[144].mxu0 }
 0x9d4   : > { %v17793_v17 = vadd.f32 %v27314_v14, %v8571_v39  ;;  %v8573_v29 = vpop.f32.mrb[145].mxu0 }
 0x9d5   : > { %v17794_v40 = vadd.f32 %v27315_v26, %v8573_v29  ;;  %v8575_v41 = vpop.f32.mrb[146].mxu0 }
 0x9d6   : > { %v8975_v38 = vadd.f32 %v17793_v17, %v23606_v28  ;;  %v17795_v2 = vadd.f32 %v27316_v10, %v8575_v41  ;;  %v8577_v44 = vpop.f32.mrb[147].mxu0  ;;  %v27330_v17 = vld [vmem:[#allocation79_spill] sm:$0xff] }
 0x9d7   : > { %v8976_v1 = vadd.f32 %v17794_v40, %v23610_v22  ;;  %v17796_v23 = vadd.f32 %v27317_v18, %v8577_v44 }
 0x9d8   : > { %v8977_v24 = vadd.f32 %v17795_v2, %v23606_v28  ;;  %v9039_v35 = vmax.f32 %v8975_v38, 0.0  ;;  %v27331_v38 = vld [vmem:[#allocation80_spill] sm:$0xff] }
 0x9d9   : > { %v8978_v52 = vadd.f32 %v17796_v23, %v23610_v22  ;;  %v9040_v49 = vmax.f32 %v8976_v1, 0.0 }
 0x9da   : > { %v9041_v13 = vmax.f32 %v8977_v24, 0.0 }
 0x9db   : > { %v9042_v34 = vmax.f32 %v8978_v52, 0.0  ;;  %v8581_v4 = vpop.f32.mrb[148].mxu0 }
 0x9dc   : > { %v17797_v12 = vadd.f32 %v27318_v5, %v8581_v4  ;;  %v8583_v16 = vpop.f32.mrb[149].mxu0  ;;  %v23621_v8 = vpack.c.bf16 %v9041_v13, %v9039_v35 }
 0x9dd   : > { %v17798_v60 = vadd.f32 %v27320_v51, %v8583_v16  ;;  %v8585_v33 = vpop.f32.mrb[150].mxu0  ;;  %v23624_v0 = vpack.c.bf16 %v9042_v34, %v9040_v49  ;;  %v27334_v16 = vld [vmem:[#allocation18_spill] sm:$0xff] }
 0x9de   : > { %27319 = vst [vmem:[#allocation48_spill] sm:$0xff] %v23621_v8  ;;  %v8979_v62 = vadd.f32 %v17797_v12, %v23606_v28  ;;  %v17799_v46 = vadd.f32 %v27322_v45, %v8585_v33  ;;  %v8587_v37 = vpop.f32.mrb[151].mxu0  ;;  %v26998_v56 = vshll.u32 %v23621_v8, 16  ;;  %v27003_v43 = vshrl.u32 %v23621_v8, 16 }
 0x9df   : > { %27321 = vst [vmem:[#allocation50_spill] sm:$0xff] %v23624_v0  ;;  %v8980_v11 = vadd.f32 %v17798_v60, %v23610_v22  ;;  %v17800_v15 = vadd.f32 %v27323_v32, %v8587_v37  ;;  %v27004_v54 = vshll.u32 %v23624_v0, 16  ;;  %v27006_v53 = vshrl.u32 %v23624_v0, 16  ;;  %v27338_v32 = vld [vmem:[#allocation82_spill] sm:$0xff] }
 0x9e0   : > { %v8981_v59 = vadd.f32 %v17799_v46, %v23606_v28  ;;  %v9423_v48 = vrot.slane %v26998_v56, 1  ;;  %v9043_v58 = vmax.f32 %v8979_v62, 0.0  ;;  %v27336_v62 = vld [vmem:[#allocation81_spill] sm:$0xff] }
 0x9e1   : > { %v8982_v30 = vadd.f32 %v17800_v15, %v23610_v22  ;;  %v9425_v63 = vrot.slane %v27004_v54, 1  ;;  %v9044_v47 = vmax.f32 %v8980_v11, 0.0 }
 0x9e2   : > { %v9045_v61 = vmax.f32 %v8981_v59, 0.0  ;;  %v23642_v55 = vor.u32 %v9423_v48, %v27003_v43 }
 0x9e3   : > { %v9046_v25 = vmax.f32 %v8982_v30, 0.0  ;;  %v8591_v3 = vpop.f32.mrb[152].mxu0  ;;  %v23646_v21 = vor.u32 %v9425_v63, %v27006_v53  ;;  %v27339_v63 = vld [vmem:[#allocation83_spill] sm:$0xff] }
 0x9e4   : > { %27324 = vst [vmem:[#allocation52_spill] sm:$0xff] %v23642_v55  ;;  %v17801_v42 = vadd.f32 %v27326_v20, %v8591_v3  ;;  %v8593_v50 = vpop.f32.mrb[153].mxu0  ;;  %v23649_v57 = vpack.c.bf16 %v9045_v61, %v9043_v58 }
 0x9e5   : > { %27325 = vst [vmem:[#allocation54_spill] sm:$0xff] %v23646_v21  ;;  %v17802_v19 = vadd.f32 %v27328_v31, %v8593_v50  ;;  %v8595_v39 = vpop.f32.mrb[154].mxu0  ;;  %v23652_v9 = vpack.c.bf16 %v9046_v25, %v9044_v47 }
 0x9e6   : > { %27327 = vst [vmem:[#allocation11_spill] sm:$0xff] %v23649_v57  ;;  %v8983_v14 = vadd.f32 %v17801_v42, %v23606_v28  ;;  %v17803_v29 = vadd.f32 %v27330_v17, %v8595_v39  ;;  %v8597_v26 = vpop.f32.mrb[155].mxu0  ;;  %v26990_v40 = vshll.u32 %v23649_v57, 16  ;;  %v26995_v1 = vshrl.u32 %v23649_v57, 16 }
 0x9e7   : > { %27329 = vst [vmem:[#allocation12_spill] sm:$0xff] %v23652_v9  ;;  %v8984_v41 = vadd.f32 %v17802_v19, %v23610_v22  ;;  %v17804_v10 = vadd.f32 %v27331_v38, %v8597_v26  ;;  %v26996_v2 = vshll.u32 %v23652_v9, 16  ;;  %v26999_v24 = vshrl.u32 %v23652_v9, 16 }
 0x9e8   : > { %v8985_v44 = vadd.f32 %v17803_v29, %v23606_v28  ;;  %v9427_v18 = vrot.slane %v26990_v40, 1  ;;  %v9047_v35 = vmax.f32 %v8983_v14, 0.0 }
 0x9e9   : > { %v8986_v23 = vadd.f32 %v17804_v10, %v23610_v22  ;;  %v9429_v52 = vrot.slane %v26996_v2, 1  ;;  %v9048_v34 = vmax.f32 %v8984_v41, 0.0  ;;  %v27342_v41 = vld [vmem:[#allocation17_spill] sm:$0xff] }
 0x9ea   : > { %v9049_v13 = vmax.f32 %v8985_v44, 0.0  ;;  %v23670_v49 = vor.u32 %v9427_v18, %v26995_v1  ;;  %v27344_v18 = vld [vmem:[#allocation22_spill] sm:$0xff] }
 0x9eb   : > { %v9050_v4 = vmax.f32 %v8986_v23, 0.0  ;;  %v8601_v5 = vpop.f32.mrb[156].mxu0  ;;  %v23674_v12 = vor.u32 %v9429_v52, %v26999_v24 }
 0x9ec   : > { %27332 = vst [vmem:[#allocation39_spill] sm:$0xff] %v23670_v49  ;;  %v17805_v51 = vadd.f32 %v27334_v16, %v8601_v5  ;;  %v8603_v60 = vpop.f32.mrb[157].mxu0  ;;  %v23677_v33 = vpack.c.bf16 %v9049_v13, %v9047_v35 }
 0x9ed   : > { %27333 = vst [vmem:[#allocation41_spill] sm:$0xff] %v23674_v12  ;;  %v17806_v45 = vadd.f32 %v27336_v62, %v8603_v60  ;;  %v8605_v46 = vpop.f32.mrb[158].mxu0  ;;  %v23680_v37 = vpack.c.bf16 %v9050_v4, %v9048_v34  ;;  %v27346_v34 = vld [vmem:[#allocation84_spill] sm:$0xff]  ;;  %v27347_v60 = vld [vmem:[#allocation85_spill] sm:$0xff] }
 0x9ee   : > { %27335 = vst [vmem:[#allocation43_spill] sm:$0xff] %v23677_v33  ;;  %v8987_v11 = vadd.f32 %v17805_v51, %v23606_v28  ;;  %v17807_v15 = vadd.f32 %v27338_v32, %v8605_v46  ;;  %v8607_v59 = vpop.f32.mrb[159].mxu0  ;;  %v26982_v48 = vshll.u32 %v23677_v33, 16  ;;  %v26987_v25 = vshrl.u32 %v23677_v33, 16 }
 0x9ef   : > { %27337 = vst [vmem:[#allocation45_spill] sm:$0xff] %v23680_v37  ;;  %v8988_v30 = vadd.f32 %v17806_v45, %v23610_v22  ;;  %v17808_v58 = vadd.f32 %v27339_v63, %v8607_v59  ;;  %v26988_v61 = vshll.u32 %v23680_v37, 16  ;;  %v26991_v42 = vshrl.u32 %v23680_v37, 16 }
 0x9f0   : > { %v8989_v47 = vadd.f32 %v17807_v15, %v23606_v28  ;;  %v9431_v3 = vrot.slane %v26982_v48, 1  ;;  %v9051_v31 = vmax.f32 %v8987_v11, 0.0 }
 0x9f1   : > { %v8990_v20 = vadd.f32 %v17808_v58, %v23610_v22  ;;  %v9433_v50 = vrot.slane %v26988_v61, 1  ;;  %v9052_v14 = vmax.f32 %v8988_v30, 0.0 }
 0x9f2   : > { %v9053_v19 = vmax.f32 %v8989_v47, 0.0  ;;  %v23698_v39 = vor.u32 %v9431_v3, %v26987_v25 }
 0x9f3   : > { %v9054_v17 = vmax.f32 %v8990_v20, 0.0  ;;  %v8611_v29 = vpop.f32.mrb[160].mxu0  ;;  %v23702_v26 = vor.u32 %v9433_v50, %v26991_v42 }
 0x9f4   : > { %27340 = vst [vmem:[#allocation47_spill] sm:$0xff] %v23698_v39  ;;  %v17809_v38 = vadd.f32 %v27342_v41, %v8611_v29  ;;  %v8613_v10 = vpop.f32.mrb[161].mxu0  ;;  %v23705_v44 = vpack.c.bf16 %v9053_v19, %v9051_v31 }
 0x9f5   : > { %27341 = vst [vmem:[#allocation51_spill] sm:$0xff] %v23702_v26  ;;  %v17810_v23 = vadd.f32 %v27344_v18, %v8613_v10  ;;  %v8615_v52 = vpop.f32.mrb[162].mxu0  ;;  %v23708_v35 = vpack.c.bf16 %v9054_v17, %v9052_v14  ;;  %v27351_v14 = vld [vmem:[#allocation21_spill] sm:$0xff] }
 0x9f6   : > { %27343 = vst [vmem:[#allocation55_spill] sm:$0xff] %v23705_v44  ;;  %v8991_v13 = vadd.f32 %v17809_v38, %v23606_v28  ;;  %v17811_v4 = vadd.f32 %v27346_v34, %v8615_v52  ;;  %v8617_v5 = vpop.f32.mrb[163].mxu0  ;;  %v26974_v16 = vshll.u32 %v23705_v44, 16  ;;  %v26978_v11 = vshrl.u32 %v23705_v44, 16  ;;  %v27353_v38 = vld [vmem:[#allocation26_spill] sm:$0xff] }
 0x9f7   : > { %27345 = vst [vmem:[#allocation57_spill] sm:$0xff] %v23708_v35  ;;  %v8992_v51 = vadd.f32 %v17810_v23, %v23610_v22  ;;  %v17812_v62 = vadd.f32 %v27347_v60, %v8617_v5  ;;  %v26981_v45 = vshll.u32 %v23708_v35, 16  ;;  %v26986_v59 = vshrl.u32 %v23708_v35, 16  ;;  %v27354_v52 = vld [vmem:[#allocation86_spill] sm:$0xff] }
 0x9f8   : > { %v8993_v46 = vadd.f32 %v17811_v4, %v23606_v28  ;;  %v9435_v32 = vrot.slane %v26974_v16, 1  ;;  %v9055_v63 = vmax.f32 %v8991_v13, 0.0 }
 0x9f9   : > { %v8994_v15 = vadd.f32 %v17812_v62, %v23610_v22  ;;  %v9437_v30 = vrot.slane %v26981_v45, 1  ;;  %v9056_v3 = vmax.f32 %v8992_v51, 0.0  ;;  %v27355_v51 = vld [vmem:[#allocation87_spill] sm:$0xff] }
 0x9fa   : > { %v9057_v58 = vmax.f32 %v8993_v46, 0.0  ;;  %v23726_v47 = vor.u32 %v9435_v32, %v26978_v11 }
 0x9fb   : > { %v9058_v20 = vmax.f32 %v8994_v15, 0.0  ;;  %v8621_v50 = vpop.f32.mrb[164].mxu0  ;;  %v23730_v31 = vor.u32 %v9437_v30, %v26986_v59 }
 0x9fc   : > { %27348 = vst [vmem:[#allocation36_spill] sm:$0xff] %v23726_v47  ;;  %v23732_v19 = vpack.c.bf16 %v9057_v58, %v9055_v63  ;;  %v17813_v17 = vadd.f32 %v27351_v14, %v8621_v50  ;;  %v8623_v29 = vpop.f32.mrb[165].mxu0 }
 0x9fd   : > { %27349 = vst [vmem:[#allocation38_spill] sm:$0xff] %v23730_v31  ;;  %v23735_v41 = vpack.c.bf16 %v9058_v20, %v9056_v3  ;;  %v17814_v10 = vadd.f32 %v27353_v38, %v8623_v29  ;;  %v8625_v18 = vpop.f32.mrb[166].mxu0 }
 0x9fe   : > { %27350 = vst [vmem:[#allocation42_spill] sm:$0xff] %v23732_v19  ;;  %v8995_v23 = vadd.f32 %v17813_v17, %v23606_v28  ;;  %v17815_v13 = vadd.f32 %v27354_v52, %v8625_v18  ;;  %v8627_v34 = vpop.f32.mrb[167].mxu0  ;;  %v26970_v4 = vshll.u32 %v23732_v19, 16  ;;  %v26971_v32 = vshrl.u32 %v23732_v19, 16  ;;  %v27359_v18 = vld [vmem:[#allocation28_spill] sm:$0xff] }
 0x9ff   : > { %27352 = vst [vmem:[#allocation44_spill] sm:$0xff] %v23735_v41  ;;  %v8996_v5 = vadd.f32 %v17814_v10, %v23610_v22  ;;  %v17816_v60 = vadd.f32 %v27355_v51, %v8627_v34  ;;  %v26973_v62 = vshll.u32 %v23735_v41, 16  ;;  %v26975_v63 = vshrl.u32 %v23735_v41, 16 }
 0xa00   : > { %v8997_v46 = vadd.f32 %v17815_v13, %v23606_v28  ;;  %v9439_v15 = vrot.slane %v26970_v4, 1  ;;  %v9059_v3 = vmax.f32 %v8995_v23, 0.0  ;;  %v27361_v23 = vld [vmem:[#allocation30_spill] sm:$0xff] }
 0xa01   : > { %v8998_v30 = vadd.f32 %v17816_v60, %v23610_v22  ;;  %v9441_v58 = vrot.slane %v26973_v62, 1  ;;  %v9060_v14 = vmax.f32 %v8996_v5, 0.0 }
 0xa02   : > { %v9061_v20 = vmax.f32 %v8997_v46, 0.0  ;;  %v23754_v50 = vor.u32 %v9439_v15, %v26971_v32  ;;  %v27362_v15 = vld [vmem:[#allocation88_spill] sm:$0xff]  ;;  %v27363_v32 = vld [vmem:[#allocation89_spill] sm:$0xff] }
 0xa03   : > { %v9062_v17 = vmax.f32 %v8998_v30, 0.0  ;;  %v8631_v29 = vpop.f32.mrb[168].mxu0  ;;  %v23758_v38 = vor.u32 %v9441_v58, %v26975_v63 }
 0xa04   : > { %27356 = vst [vmem:[#allocation46_spill] sm:$0xff] %v23754_v50  ;;  %v23760_v10 = vpack.c.bf16 %v9061_v20, %v9059_v3  ;;  %v17817_v52 = vadd.f32 %v27359_v18, %v8631_v29  ;;  %v8633_v13 = vpop.f32.mrb[169].mxu0 }
 0xa05   : > { %27357 = vst [vmem:[#allocation56_spill] sm:$0xff] %v23758_v38  ;;  %v23763_v34 = vpack.c.bf16 %v9062_v17, %v9060_v14  ;;  %v17818_v51 = vadd.f32 %v27361_v23, %v8633_v13  ;;  %v8635_v60 = vpop.f32.mrb[170].mxu0 }
 0xa06   : > { %27358 = vst [vmem:[#allocation58_spill] sm:$0xff] %v23760_v10  ;;  %v8999_v46 = vadd.f32 %v17817_v52, %v23606_v28  ;;  %v17819_v5 = vadd.f32 %v27362_v15, %v8635_v60  ;;  %v8637_v30 = vpop.f32.mrb[171].mxu0  ;;  %v26972_v4 = vshll.u32 %v23760_v10, 16  ;;  %v26977_v14 = vshrl.u32 %v23760_v10, 16 }
 0xa07   : > { %27360 = vst [vmem:[#allocation60_spill] sm:$0xff] %v23763_v34  ;;  %v9000_v58 = vadd.f32 %v17818_v51, %v23610_v22  ;;  %v17820_v3 = vadd.f32 %v27363_v32, %v8637_v30  ;;  %v26976_v20 = vshll.u32 %v23763_v34, 16  ;;  %v26979_v52 = vshrl.u32 %v23763_v34, 16 }
 0xa08   : > { %v9001_v29 = vadd.f32 %v17819_v5, %v23606_v28  ;;  %v9443_v17 = vrot.slane %v26972_v4, 1  ;;  %v9063_v23 = vmax.f32 %v8999_v46, 0.0  ;;  %v27369_v46 = vld [vmem:[#allocation34_spill] sm:$0xff] }
 0xa09   : > { %v9002_v18 = vadd.f32 %v17820_v3, %v23610_v22  ;;  %v9445_v13 = vrot.slane %v26976_v20, 1  ;;  %v9064_v60 = vmax.f32 %v9000_v58, 0.0  ;;  %v27367_v3 = vld [vmem:[#allocation32_spill] sm:$0xff] }
 0xa0a   : > { %v9065_v51 = vmax.f32 %v9001_v29, 0.0  ;;  %v23782_v32 = vor.u32 %v9443_v17, %v26977_v14  ;;  %v27370_v14 = vld [vmem:[#allocation90_spill] sm:$0xff] }
 0xa0b   : > { %v9066_v15 = vmax.f32 %v9002_v18, 0.0  ;;  %v8641_v5 = vpop.f32.mrb[172].mxu0  ;;  %v23786_v30 = vor.u32 %v9445_v13, %v26979_v52  ;;  %v27371_v52 = vld [vmem:[#allocation91_spill] sm:$0xff] }
 0xa0c   : > { %27364 = vst [vmem:[#allocation64_spill] sm:$0xff] %v23782_v32  ;;  %v23788_v4 = vpack.c.bf16 %v9065_v51, %v9063_v23  ;;  %v17821_v62 = vadd.f32 %v27367_v3, %v8641_v5  ;;  %v8643_v16 = vpop.f32.mrb[173].mxu0 }
 0xa0d   : > { %27365 = vst [vmem:[#allocation66_spill] sm:$0xff] %v23786_v30  ;;  %v23791_v63 = vpack.c.bf16 %v9066_v15, %v9064_v60  ;;  %v17822_v29 = vadd.f32 %v27369_v46, %v8643_v16  ;;  %v8645_v20 = vpop.f32.mrb[174].mxu0 }
 0xa0e   : > { %27366 = vst [vmem:[#allocation13_spill] sm:$0xff] %v23788_v4  ;;  %v9003_v17 = vadd.f32 %v17821_v62, %v23606_v28  ;;  %v17823_v58 = vadd.f32 %v27370_v14, %v8645_v20  ;;  %v8647_v18 = vpop.f32.mrb[175].mxu0  ;;  %v26980_v11 = vshll.u32 %v23788_v4, 16  ;;  %v26983_v60 = vshrl.u32 %v23788_v4, 16 }
 0xa0f   : > { %27368 = vst [vmem:[#allocation14_spill] sm:$0xff] %v23791_v63  ;;  %v9004_v13 = vadd.f32 %v17822_v29, %v23610_v22  ;;  %v17824_v23 = vadd.f32 %v27371_v52, %v8647_v18  ;;  %v26984_v51 = vshll.u32 %v23791_v63, 16  ;;  %v26985_v20 = vshrl.u32 %v23791_v63, 16 }
 0xa10   : > { %v9005_v5 = vadd.f32 %v17823_v58, %v23606_v28  ;;  %v9447_v16 = vrot.slane %v26980_v11, 1  ;;  %v9067_v15 = vmax.f32 %v9003_v17, 0.0  ;;  %v19556_v17 = vld [vmem:[%s26859_s7 + $0x340] sm:$0xff]  }
 0xa11   : > { %v9006_v62 = vadd.f32 %v17824_v23, %v23610_v22  ;;  %v9449_v14 = vrot.slane %v26984_v51, 1  ;;  %v9068_v46 = vmax.f32 %v9004_v13, 0.0  ;;  %v27375_v23 = vld [vmem:[#allocation92_spill] sm:$0xff]  ;;  %16873 = vmatprep.subr.bf16.mxu0 %v19556_v17 }
 0xa12   : > { %v9069_v3 = vmax.f32 %v9005_v5, 0.0  ;;  %v23810_v52 = vor.u32 %v9447_v16, %v26983_v60  ;;  %v27377_v16 = vld [vmem:[#allocation93_spill] sm:$0xff] }
 0xa13   : > { %v9070_v29 = vmax.f32 %v9006_v62, 0.0  ;;  %v8651_v58 = vpop.f32.mrb[176].mxu0  ;;  %v23814_v18 = vor.u32 %v9449_v14, %v26985_v20  ;;  %v19557_v62 = vld [vmem:[%s26859_s7 + $0x300] sm:$0xff]   ;;  %v27379_v20 = vld [vmem:[#allocation95_spill] sm:$0xff] }
 0xa14   : > { %27372 = vst [vmem:[#allocation15_spill] sm:$0xff] %v23810_v52  ;;  %v23816_v11 = vpack.c.bf16 %v9069_v3, %v9067_v15  ;;  %v17825_v45 = vadd.f32 %v27375_v23, %v8651_v58  ;;  %v8653_v48 = vpop.f32.mrb[177].mxu0  ;;  %v27378_v15 = vld [vmem:[#allocation94_spill] sm:$0xff]  ;;  %16874 = vmatpush3.bf16.msra.mxu0 %v19557_v62  ;;  %v19545_v52 = vld [vmem:[%s26859_s7 + $0x200] sm:$0xff]  }
 0xa15   : > { %27373 = vst [vmem:[#allocation16_spill] sm:$0xff] %v23814_v18  ;;  %v23822_v5 = vpack.c.bf16 %v9070_v29, %v9068_v46  ;;  %v17826_v60 = vadd.f32 %v27377_v16, %v8653_v48  ;;  %v8655_v13 = vpop.f32.mrb[178].mxu0  ;;  %v19558_v48 = vld [vmem:[%s26859_s7 + $0x348] sm:$0xff]  }
 0xa16   : > { %27374 = vst [vmem:[#allocation19_spill] sm:$0xff] %v23816_v11  ;;  %v9007_v14 = vadd.f32 %v17825_v45, %v23606_v28  ;;  %v17827_v3 = vadd.f32 %v27378_v15, %v8655_v13  ;;  %v8657_v51 = vpop.f32.mrb[179].mxu0  ;;  %v26989_v58 = vshll.u32 %v23816_v11, 16  ;;  %v19559_v45 = vld [vmem:[%s26859_s7 + $0x308] sm:$0xff]   ;;  %v26992_v17 = vshrl.u32 %v23816_v11, 16  ;;  %16875 = vmatprep.subr.bf16.mxu0 %v19558_v48  ;;  %v27383_v48 = vld [vmem:[#allocation40_spill] sm:$0xff] }
 0xa17   : > { %27376 = vst [vmem:[#allocation20_spill] sm:$0xff] %v23822_v5  ;;  %v9008_v23 = vadd.f32 %v17826_v60, %v23610_v22  ;;  %v17828_v46 = vadd.f32 %v27379_v20, %v8657_v51  ;;  %v26993_v29 = vshll.u32 %v23822_v5, 16  ;;  %v26994_v20 = vshrl.u32 %v23822_v5, 16 }
 0xa18   : > { %v9009_v16 = vadd.f32 %v17827_v3, %v23606_v28  ;;  %v9451_v60 = vrot.slane %v26989_v58, 1  ;;  %v9071_v62 = vmax.f32 %v9007_v14, 0.0  ;;  %16876 = vmatpush3.bf16.msra.mxu0 %v19559_v45  ;;  %v19560_v14 = vld [vmem:[%s26859_s7 + $0x350] sm:$0xff]  }
 0xa19   : > { %v9010_v51 = vadd.f32 %v17828_v46, %v23610_v22  ;;  %v9453_v13 = vrot.slane %v26993_v29, 1  ;;  %v9072_v3 = vmax.f32 %v9008_v23, 0.0  ;;  %v19561_v45 = vld [vmem:[%s26859_s7 + $0x310] sm:$0xff]   ;;  %16877 = vmatprep.subr.bf16.mxu0 %v19560_v14 }
 0xa1a   : > { %v9073_v15 = vmax.f32 %v9009_v16, 0.0  ;;  %v23850_v59 = vor.u32 %v9451_v60, %v26992_v17  ;;  %v27385_v60 = vld [vmem:[#allocation96_spill] sm:$0xff]  ;;  %v27387_v29 = vld [vmem:[#allocation98_spill] sm:$0xff] }
 0xa1b   : > { %v9074_v25 = vmax.f32 %v9010_v51, 0.0  ;;  %v8661_v61 = vpop.f32.mrb[180].mxu0  ;;  %v23854_v58 = vor.u32 %v9453_v13, %v26994_v20 }
 0xa1c   : > { %27380 = vst [vmem:[#allocation23_spill] sm:$0xff] %v23850_v59  ;;  %v23856_v46 = vpack.c.bf16 %v9073_v15, %v9071_v62  ;;  %v17829_v40 = vadd.f32 %v27383_v48, %v8661_v61  ;;  %v8663_v42 = vpop.f32.mrb[181].mxu0  ;;  %v27386_v62 = vld [vmem:[#allocation97_spill] sm:$0xff]  ;;  %16878 = vmatpush3.bf16.msra.mxu0 %v19561_v45 }
 0xa1d   : > { %27381 = vst [vmem:[#allocation24_spill] sm:$0xff] %v23854_v58  ;;  %v23862_v16 = vpack.c.bf16 %v9074_v25, %v9072_v3  ;;  %v17830_v23 = vadd.f32 %v27385_v60, %v8663_v42  ;;  %v8665_v51 = vpop.f32.mrb[182].mxu0  ;;  %v19562_v42 = vld [vmem:[%s26859_s7 + $0x358] sm:$0xff]  }
 0xa1e   : > { %27382 = vst [vmem:[#allocation25_spill] sm:$0xff] %v23856_v46  ;;  %v9011_v13 = vadd.f32 %v17829_v40, %v23606_v28  ;;  %v17831_v15 = vadd.f32 %v27386_v62, %v8665_v51  ;;  %v8667_v17 = vpop.f32.mrb[183].mxu0  ;;  %v26997_v61 = vshll.u32 %v23856_v46, 16  ;;  %v19563_v40 = vld [vmem:[%s26859_s7 + $0x318] sm:$0xff]   ;;  %v27000_v14 = vshrl.u32 %v23856_v46, 16  ;;  %16879 = vmatprep.subr.bf16.mxu0 %v19562_v42 }
 0xa1f   : > { %27384 = vst [vmem:[#allocation27_spill] sm:$0xff] %v23862_v16  ;;  %v9012_v48 = vadd.f32 %v17830_v23, %v23610_v22  ;;  %v17832_v25 = vadd.f32 %v27387_v29, %v8667_v17  ;;  %v27001_v3 = vshll.u32 %v23862_v16, 16  ;;  %v27002_v17 = vshrl.u32 %v23862_v16, 16  ;;  %v27391_v42 = vld [vmem:[#allocation99_spill] sm:$0xff] }
 0xa20   : > { %v9013_v60 = vadd.f32 %v17831_v15, %v23606_v28  ;;  %v9455_v23 = vrot.slane %v26997_v61, 1  ;;  %v9075_v45 = vmax.f32 %v9011_v13, 0.0  ;;  %16880 = vmatpush3.bf16.msra.mxu0 %v19563_v40  ;;  %v19566_v13 = vld [vmem:[%s26859_s7 + $0x360] sm:$0xff]  }
 0xa21   : > { %v9014_v29 = vadd.f32 %v17832_v25, %v23610_v22  ;;  %v9457_v51 = vrot.slane %v27001_v3, 1  ;;  %v9076_v15 = vmax.f32 %v9012_v48, 0.0  ;;  %v19567_v40 = vld [vmem:[%s26859_s7 + $0x320] sm:$0xff]   ;;  %16881 = vmatprep.subr.bf16.mxu0 %v19566_v13  ;;  %v27395_v3 = vld [vmem:[#allocation102_spill] sm:$0xff] }
 0xa22   : > { %v9077_v62 = vmax.f32 %v9013_v60, 0.0  ;;  %v23890_v20 = vor.u32 %v9455_v23, %v27000_v14  ;;  %v27393_v23 = vld [vmem:[#allocation100_spill] sm:$0xff] }
 0xa23   : > { %v9078_v1 = vmax.f32 %v9014_v29, 0.0  ;;  %v8671_v2 = vpop.f32.mrb[184].mxu0  ;;  %v23894_v61 = vor.u32 %v9457_v51, %v27002_v17 }
 0xa24   : > { %27388 = vst [vmem:[#allocation29_spill] sm:$0xff] %v23890_v20  ;;  %v23896_v25 = vpack.c.bf16 %v9077_v62, %v9075_v45  ;;  %v17833_v56 = vadd.f32 %v27391_v42, %v8671_v2  ;;  %v8673_v24 = vpop.f32.mrb[185].mxu0  ;;  %v27394_v45 = vld [vmem:[#allocation101_spill] sm:$0xff]  ;;  %16882 = vmatpush3.bf16.msra.mxu0 %v19567_v40 }
 0xa25   : > { %27389 = vst [vmem:[#allocation31_spill] sm:$0xff] %v23894_v61  ;;  %v23902_v60 = vpack.c.bf16 %v9078_v1, %v9076_v15  ;;  %v17834_v48 = vadd.f32 %v27393_v23, %v8673_v24  ;;  %v8675_v29 = vpop.f32.mrb[186].mxu0  ;;  %v19568_v24 = vld [vmem:[%s26859_s7 + $0x368] sm:$0xff]  }
 0xa26   : > { %27390 = vst [vmem:[#allocation33_spill] sm:$0xff] %v23896_v25  ;;  %v9015_v51 = vadd.f32 %v17833_v56, %v23606_v28  ;;  %v17835_v62 = vadd.f32 %v27394_v45, %v8675_v29  ;;  %v8677_v14 = vpop.f32.mrb[187].mxu0  ;;  %v27005_v2 = vshll.u32 %v23896_v25, 16  ;;  %v19569_v56 = vld [vmem:[%s26859_s7 + $0x328] sm:$0xff]   ;;  %v27007_v13 = vshrl.u32 %v23896_v25, 16  ;;  %16883 = vmatprep.subr.bf16.mxu0 %v19568_v24 }
 0xa27   : > { %27392 = vst [vmem:[#allocation35_spill] sm:$0xff] %v23902_v60  ;;  %v9016_v42 = vadd.f32 %v17834_v48, %v23610_v22  ;;  %v17836_v1 = vadd.f32 %v27395_v3, %v8677_v14  ;;  %v27008_v15 = vshll.u32 %v23902_v60, 16  ;;  %v27010_v14 = vshrl.u32 %v23902_v60, 16 }
 0xa28   : > { %v9017_v23 = vadd.f32 %v17835_v62, %v23606_v28  ;;  %v9459_v48 = vrot.slane %v27005_v2, 1  ;;  %v9079_v40 = vmax.f32 %v9015_v51, 0.0  ;;  %16884 = vmatpush3.bf16.msra.mxu0 %v19569_v56  ;;  %v19570_v51 = vld [vmem:[%s26859_s7 + $0x370] sm:$0xff]  }
 0xa29   : > { %v9018_v3 = vadd.f32 %v17836_v1, %v23610_v22  ;;  %v9461_v29 = vrot.slane %v27008_v15, 1  ;;  %v9080_v62 = vmax.f32 %v9016_v42, 0.0  ;;  %v19571_v56 = vld [vmem:[%s26859_s7 + $0x330] sm:$0xff]   ;;  %16885 = vmatprep.subr.bf16.mxu0 %v19570_v51 }
 0xa2a   : > { %v9081_v45 = vmax.f32 %v9017_v23, 0.0  ;;  %v23930_v17 = vor.u32 %v9459_v48, %v27007_v13 }
 0xa2b   : > { %v9082_v43 = vmax.f32 %v9018_v3, 0.0  ;;  %v8681_v54 = vpop.f32.mrb[188].mxu0  ;;  %v23934_v2 = vor.u32 %v9461_v29, %v27010_v14 }
 0xa2c   : > { %27396 = vst [vmem:[#allocation37_spill] sm:$0xff] %v23930_v17  ;;  %v23936_v1 = vpack.c.bf16 %v9081_v45, %v9079_v40  ;;  %v17837_v24 = vadd.f32 %v23565_v6, %v8681_v54  ;;  %v8683_v53 = vpop.f32.mrb[189].mxu0  ;;  %16886 = vmatpush3.bf16.msra.mxu0 %v19571_v56 }
 0xa2d   : > { %27397 = vst [vmem:[#allocation49_spill] sm:$0xff] %v23934_v2  ;;  %v23942_v23 = vpack.c.bf16 %v9082_v43, %v9080_v62  ;;  %v17838_v42 = vadd.f32 %v23567_v36, %v8683_v53  ;;  %v8685_v48 = vpop.f32.mrb[190].mxu0  ;;  %v19572_v36 = vld [vmem:[%s26859_s7 + $0x378] sm:$0xff]  }
 0xa2e   : > { %27398 = vst [vmem:[#allocation53_spill] sm:$0xff] %v23936_v1  ;;  %v9019_v3 = vadd.f32 %v17837_v24, %v23606_v28  ;;  %v17839_v29 = vadd.f32 %v23572_v27, %v8685_v48  ;;  %v8687_v40 = vpop.f32.mrb[191].mxu0  ;;  %v27009_v6 = vshll.u32 %v23936_v1, 16  ;;  %v19573_v53 = vld [vmem:[%s26859_s7 + $0x338] sm:$0xff]   ;;  %v27012_v62 = vshrl.u32 %v23936_v1, 16  ;;  %16887 = vmatprep.subr.bf16.mxu0 %v19572_v36 }
 0xa2f   : > { %27399 = vst [vmem:[#allocation59_spill] sm:$0xff] %v23942_v23  ;;  %v9020_v54 = vadd.f32 %v17838_v42, %v23610_v22  ;;  %v17840_v43 = vadd.f32 %v23577_v7, %v8687_v40  ;;  %v27011_v45 = vshll.u32 %v23942_v23, 16  ;;  %v27013_v51 = vshrl.u32 %v23942_v23, 16 }
 0xa30   : > { %v9021_v27 = vadd.f32 %v17839_v29, %v23606_v28  ;;  %v9463_v24 = vrot.slane %v27009_v6, 1  ;;  %v9083_v48 = vmax.f32 %v9019_v3, 0.0  ;;  %16888 = vmatpush3.bf16.msra.mxu0 %v19573_v53 }
 0xa31   : > { %v9022_v7 = vadd.f32 %v17840_v43, %v23610_v22  ;;  %v9465_v42 = vrot.slane %v27011_v45, 1  ;;  %v9084_v29 = vmax.f32 %v9020_v54, 0.0 }
 0xa32   : > { %v9085_v56 = vmax.f32 %v9021_v27, 0.0  ;;  %v23970_v40 = vor.u32 %v9463_v24, %v27012_v62 }
 0xa33   : > { %v9086_v13 = vmax.f32 %v9022_v7, 0.0  ;;  %v8724_v15 = vpop.f32.mrb[128].mxu0  ;;  %v23974_v6 = vor.u32 %v9465_v42, %v27013_v51 }
 0xa34   : > { %27400 = vst [vmem:[#allocation63_spill] sm:$0xff] %v23970_v40  ;;  %v23976_v43 = vpack.c.bf16 %v9085_v56, %v9083_v48  ;;  %v8959_v36 = vadd.f32 %v23606_v28, %v8724_v15  ;;  %v8726_v14 = vpop.f32.mrb[129].mxu0 }
 0xa35   : > { %27401 = vst [vmem:[#allocation65_spill] sm:$0xff] %v23974_v6  ;;  %v23979_v45 = vpack.c.bf16 %v9086_v13, %v9084_v29  ;;  %v8960_v3 = vadd.f32 %v23610_v22, %v8726_v14  ;;  %v8728_v27 = vpop.f32.mrb[130].mxu0 }
 0xa36   : > { %27402 = vst [vmem:[#allocation67_spill] sm:$0xff] %v23976_v43  ;;  %v8961_v24 = vadd.f32 %v23606_v28, %v8728_v27  ;;  %v8730_v54 = vpop.f32.mrb[131].mxu0  ;;  %v27014_v7 = vshll.u32 %v23976_v43, 16  ;;  %v9023_v62 = vmax.f32 %v8959_v36, 0.0  ;;  %v27016_v56 = vshrl.u32 %v23976_v43, 16 }
 0xa37   : > { %27403 = vst [vmem:[#allocation68_spill] sm:$0xff] %v23979_v45  ;;  %v8962_v53 = vadd.f32 %v23610_v22, %v8730_v54  ;;  %v27015_v42 = vshll.u32 %v23979_v45, 16  ;;  %v9024_v13 = vmax.f32 %v8960_v3, 0.0  ;;  %v27017_v14 = vshrl.u32 %v23979_v45, 16 }
 0xa38   : > { %v9025_v48 = vmax.f32 %v8961_v24, 0.0  ;;  %v9467_v15 = vrot.slane %v27014_v7, 1 }
 0xa39   : > { %v9026_v29 = vmax.f32 %v8962_v53, 0.0  ;;  %v9469_v27 = vrot.slane %v27015_v42, 1 }
 0xa3a   : > { %v23992_v51 = vpack.c.bf16 %v9025_v48, %v9023_v62  ;;  %v23996_v54 = vor.u32 %v9467_v15, %v27016_v56 }
 0xa3b   : > { %v8734_v36 = vpop.f32.mrb[132].mxu0  ;;  %v23998_v24 = vpack.c.bf16 %v9026_v29, %v9024_v13  ;;  %v24002_v40 = vor.u32 %v9469_v27, %v27017_v14 }
 0xa3c   : > { %27404 = vst [vmem:[#allocation62_spill] sm:$0xff] %v23996_v54  ;;  %v8963_v3 = vadd.f32 %v23606_v28, %v8734_v36  ;;  %v8736_v53 = vpop.f32.mrb[133].mxu0  ;;  %v9120_v7 = vshrl.u32 %v23992_v51, 16  ;;  %v9123_v42 = vshll.u32 %v23992_v51, 16 }
 0xa3d   : > { %27405 = vst [vmem:[#allocation61_spill] sm:$0xff] %v24002_v40  ;;  %v8964_v62 = vadd.f32 %v23610_v22, %v8736_v53  ;;  %v8738_v48 = vpop.f32.mrb[134].mxu0  ;;  %11276 = vmatprep.mubr.bf16.mxu0 %v23998_v24  ;;  %v9127_v15 = vshrl.u32 %v23998_v24, 16  ;;  %v9130_v13 = vshll.u32 %v23998_v24, 16 }
 0xa3e   : > { %v8965_v29 = vadd.f32 %v23606_v28, %v8738_v48  ;;  %v8740_v27 = vpop.f32.mrb[135].mxu0  ;;  %11277 = vmatmul.mubr.bf16.gmra.mrb[196].mxu0 %v23992_v51  ;;  %v9122_v36 = vrot.slane %v9120_v7, 7  ;;  %v9407_v56 = vrot.slane %v9123_v42, 1  ;;  %v9027_v6 = vmax.f32 %v8963_v3, 0.0 }
 0xa3f   : > { %v8966_v14 = vadd.f32 %v23610_v22, %v8740_v27  ;;  %v9129_v54 = vrot.slane %v9127_v15, 7  ;;  %v9409_v40 = vrot.slane %v9130_v13, 1  ;;  %v9028_v20 = vmax.f32 %v8964_v62, 0.0 }
 0xa40   : > { %v9029_v53 = vmax.f32 %v8965_v29, 0.0  ;;  %v9125_v17 = vor.u32 %v9123_v42, %v9122_v36  ;;  %v24014_v2 = vor.u32 %v9407_v56, %v9120_v7  ;;  %v19546_v7 = vld [vmem:[%s26859_s7 + $0x248] sm:$0xff]  }
 0xa41   : > { %v9030_v61 = vmax.f32 %v8966_v14, 0.0  ;;  %v9132_v59 = vor.u32 %v9130_v13, %v9129_v54  ;;  %v24016_v58 = vor.u32 %v9409_v40, %v9127_v15  ;;  %v19547_v29 = vld [vmem:[%s26859_s7 + $0x208] sm:$0xff]  }
 0xa42   : > { %27406 = vst [vmem:[#allocation10_spill] sm:$0xff] %v24014_v2  ;;  %v24018_v48 = vpack.c.bf16 %v9029_v53, %v9027_v6  ;;  %v24036_v6 = vsel %vm20354_vm6, 0, %v9125_v17 }
 0xa43   : > { %27407 = vst [vmem:[#allocation69_spill] sm:$0xff] %v24016_v58  ;;  %v24023_v18 = vpack.c.bf16 %v9030_v61, %v9028_v20  ;;  %v8744_v27 = vpop.f32.mrb[136].mxu0  ;;  %v24027_v3 = vsel %vm20354_vm6, 0, %v9132_v59  ;;  %27412 = vst [vmem:[#allocation73_spill] sm:$0xff] %v24036_v6  ;;  %v27455_v58 = vshrl.u32 %v23822_v5, 16 }
 0xa44   : > { %27408 = vst [vmem:[#allocation70_spill] sm:$0xff] %v24018_v48  ;;  %27411 = vst [vmem:[#allocation72_spill] sm:$0xff] %v24027_v3  ;;  %v8967_v40 = vadd.f32 %v23606_v28, %v8744_v27  ;;  %v8746_v42 = vpop.f32.mrb[137].mxu0  ;;  %10336 = vmatprep.mubr.bf16.mxu1 %v24027_v3  ;;  %v9134_v20 = vshrl.u32 %v24018_v48, 16  ;;  %v9137_v61 = vshll.u32 %v24018_v48, 16  ;;  %v19548_v27 = vld [vmem:[%s26859_s7 + $0x250] sm:$0xff]  }
 0xa45   : > { %27409 = vst [vmem:[#allocation71_spill] sm:$0xff] %v24023_v18  ;;  %v8968_v59 = vadd.f32 %v23610_v22, %v8746_v42  ;;  %v8748_v56 = vpop.f32.mrb[138].mxu0  ;;  %10337 = vmatmul.mubr.bf16.vlgmr.msra.gmra.mrb[176].mxu1 %v24036_v6  ;;  %11284 = vmatprep.mubr.bf16.mxu0 %v24023_v18  ;;  %v9141_v14 = vshrl.u32 %v24023_v18, 16  ;;  %v9144_v54 = vshll.u32 %v24023_v18, 16 }
 0xa46   : > { %v8969_v62 = vadd.f32 %v23606_v28, %v8748_v56  ;;  %16314 = vmatpush3.bf16.msra.mxu1 %v19545_v52  ;;  %v8750_v17 = vpop.f32.mrb[139].mxu0  ;;  %11285 = vmatmul.mubr.bf16.gmra.mrb[200].mxu0 %v24018_v48  ;;  %v9136_v15 = vrot.slane %v9134_v20, 7  ;;  %v9411_v13 = vrot.slane %v9137_v61, 1  ;;  %v9031_v56 = vmax.f32 %v8967_v40, 0.0 }
 0xa47   : > { %v8970_v36 = vadd.f32 %v23610_v22, %v8750_v17  ;;  %v9143_v53 = vrot.slane %v9141_v14, 7  ;;  %16315 = vmatprep.subr.bf16.mxu1 %v19546_v7  ;;  %v9413_v42 = vrot.slane %v9144_v54, 1  ;;  %v9032_v30 = vmax.f32 %v8968_v59, 0.0  ;;  %v19549_v7 = vld [vmem:[%s26859_s7 + $0x210] sm:$0xff]  }
 0xa48   : > { %v9033_v52 = vmax.f32 %v8969_v62, 0.0  ;;  %v9139_v6 = vor.u32 %v9137_v61, %v9136_v15  ;;  %v24054_v3 = vor.u32 %v9411_v13, %v9134_v20  ;;  %v19550_v20 = vld [vmem:[%s26859_s7 + $0x258] sm:$0xff]  }
 0xa49   : > { %v9034_v50 = vmax.f32 %v8970_v36, 0.0  ;;  %v9146_v38 = vor.u32 %v9144_v54, %v9143_v53  ;;  %v24056_v47 = vor.u32 %v9413_v42, %v9141_v14  ;;  %v19551_v36 = vld [vmem:[%s26859_s7 + $0x218] sm:$0xff]   ;;  %v19552_v42 = vld [vmem:[%s26859_s7 + $0x260] sm:$0xff]  }
 0xa4a   : > { %27413 = vst [vmem:[#allocation74_spill] sm:$0xff] %v24054_v3  ;;  %v24058_v31 = vpack.c.bf16 %v9033_v52, %v9031_v56  ;;  %16316 = vmatpush3.bf16.msra.mxu1 %v19547_v29  ;;  %v24076_v14 = vsel %vm20354_vm6, 0, %v9139_v6 }
 0xa4b   : > { %27414 = vst [vmem:[#allocation75_spill] sm:$0xff] %v24056_v47  ;;  %v24063_v17 = vpack.c.bf16 %v9034_v50, %v9032_v30  ;;  %v8754_v39 = vpop.f32.mrb[140].mxu0  ;;  %v24067_v40 = vsel %vm20354_vm6, 0, %v9146_v38  ;;  %16317 = vmatprep.subr.bf16.mxu1 %v19548_v27 }
 0xa4c   : > { %27415 = vst [vmem:[#allocation76_spill] sm:$0xff] %v24058_v31  ;;  %27417 = vst [vmem:[#allocation78_spill] sm:$0xff] %v24067_v40  ;;  %v8971_v61 = vadd.f32 %v23606_v28, %v8754_v39  ;;  %v8756_v59 = vpop.f32.mrb[141].mxu0  ;;  %10344 = vmatprep.mubr.bf16.mxu1 %v24067_v40  ;;  %v9148_v50 = vshrl.u32 %v24058_v31, 16  ;;  %v9151_v30 = vshll.u32 %v24058_v31, 16 }
 0xa4d   : > { %27416 = vst [vmem:[#allocation77_spill] sm:$0xff] %v24063_v17  ;;  %v8972_v38 = vadd.f32 %v23610_v22, %v8756_v59  ;;  %v8758_v54 = vpop.f32.mrb[142].mxu0  ;;  %10345 = vmatmul.mubr.bf16.gmra.mrb[180].mxu1 %v24076_v14  ;;  %11292 = vmatprep.mubr.bf16.mxu0 %v24063_v17  ;;  %v9155_v39 = vshrl.u32 %v24063_v17, 16  ;;  %v9158_v62 = vshll.u32 %v24063_v17, 16 }
 0xa4e   : > { %v8973_v15 = vadd.f32 %v23606_v28, %v8758_v54  ;;  %v8760_v13 = vpop.f32.mrb[143].mxu0  ;;  %11293 = vmatmul.mubr.bf16.gmra.mrb[204].mxu0 %v24058_v31  ;;  %v9150_v6 = vrot.slane %v9148_v50, 7  ;;  %v9415_v29 = vrot.slane %v9151_v30, 1  ;;  %16318 = vmatpush3.bf16.msra.mxu1 %v19549_v7  ;;  %v9035_v28 = vmax.f32 %v8971_v61, 0.0 }
 0xa4f   : > { %v8974_v53 = vadd.f32 %v23610_v22, %v8760_v13  ;;  %v9157_v27 = vrot.slane %v9155_v39, 7  ;;  %16319 = vmatprep.subr.bf16.mxu1 %v19550_v20  ;;  %v9417_v56 = vrot.slane %v9158_v62, 1  ;;  %v9036_v26 = vmax.f32 %v8972_v38, 0.0  ;;  %v19553_v22 = vld [vmem:[%s26859_s7 + $0x220] sm:$0xff]  }
 0xa50   : > { %v9037_v52 = vmax.f32 %v8973_v15, 0.0  ;;  %v9153_v59 = vor.u32 %v9151_v30, %v9150_v6  ;;  %v24094_v54 = vor.u32 %v9415_v29, %v9148_v50  ;;  %v19554_v50 = vld [vmem:[%s26859_s7 + $0x268] sm:$0xff]  }
 0xa51   : > { %v9038_v7 = vmax.f32 %v8974_v53, 0.0  ;;  %v9160_v49 = vor.u32 %v9158_v62, %v9157_v27  ;;  %v24096_v12 = vor.u32 %v9417_v56, %v9155_v39  ;;  %v27422_v62 = vshrl.u32 %v23624_v0, 16  ;;  %v19555_v29 = vld [vmem:[%s26859_s7 + $0x228] sm:$0xff]   ;;  %v19564_v53 = vld [vmem:[%s26859_s7 + $0x270] sm:$0xff]  }
 0xa52   : > { %27418 = vst [vmem:[#allocation79_spill] sm:$0xff] %v24094_v54  ;;  %v24098_v55 = vpack.c.bf16 %v9037_v52, %v9035_v28  ;;  %16320 = vmatpush3.bf16.msra.mxu1 %v19551_v36  ;;  %v24115_v30 = vsel %vm20354_vm6, 0, %v9153_v59  ;;  %v27424_v52 = vshll.u32 %v23624_v0, 16 }
 0xa53   : > { %27419 = vst [vmem:[#allocation80_spill] sm:$0xff] %v24096_v12  ;;  %v24103_v20 = vpack.c.bf16 %v9038_v7, %v9036_v26  ;;  %v24107_v61 = vsel %vm20354_vm6, 0, %v9160_v49  ;;  %16321 = vmatprep.subr.bf16.mxu1 %v19552_v42  ;;  %v9185_v15 = vrot.slane %v27422_v62, 7  ;;  %v9283_v12 = vrot.slane %v27455_v58, 7 }
 0xa54   : > { %27420 = vst [vmem:[#allocation18_spill] sm:$0xff] %v24098_v55  ;;  %10352 = vmatprep.mubr.bf16.mxu1 %v24107_v61  ;;  %v9162_v38 = vshrl.u32 %v24098_v55, 16  ;;  %v9165_v26 = vshll.u32 %v24098_v55, 16 }
 0xa55   : > { %27421 = vst [vmem:[#allocation81_spill] sm:$0xff] %v24103_v20  ;;  %10353 = vmatmul.mubr.bf16.gmra.mrb[184].mxu1 %v24115_v30  ;;  %11300 = vmatprep.mubr.bf16.mxu0 %v24103_v20  ;;  %v9169_v49 = vshrl.u32 %v24103_v20, 16  ;;  %v9172_v39 = vshll.u32 %v24103_v20, 16  ;;  %v9188_v59 = vor.u32 %v27424_v52, %v9185_v15  ;;  %v27427_v15 = vshrl.u32 %v23652_v9, 16 }
 0xa56   : > { %11301 = vmatmul.mubr.bf16.gmra.mrb[208].mxu0 %v24098_v55  ;;  %v9164_v13 = vrot.slane %v9162_v38, 7  ;;  %v9419_v6 = vrot.slane %v9165_v26, 1  ;;  %16322 = vmatpush3.bf16.msra.mxu1 %v19553_v22  ;;  %v27430_v52 = vshrl.u32 %v23649_v57, 16 }
 0xa57   : > { %11308 = vmatprep.mubr.bf16.mxu0 %v23624_v0  ;;  %v9171_v36 = vrot.slane %v9169_v49, 7  ;;  %16323 = vmatprep.subr.bf16.mxu1 %v19554_v50  ;;  %v9421_v27 = vrot.slane %v9172_v39, 1  ;;  %v19565_v50 = vld [vmem:[%s26859_s7 + $0x230] sm:$0xff]   ;;  %v24159_v62 = vsel %vm20354_vm6, 0, %v9188_v59 }
 0xa58   : > { %v9167_v42 = vor.u32 %v9165_v26, %v9164_v13  ;;  %v24133_v56 = vor.u32 %v9419_v6, %v9162_v38  ;;  %v27426_v26 = vshrl.u32 %v23621_v8, 16  ;;  %v9199_v13 = vrot.slane %v27427_v15, 7  ;;  %v19575_v6 = vld [vmem:[%s26859_s7 + $0x238] sm:$0xff]  }
 0xa59   : > { %v9174_v28 = vor.u32 %v9172_v39, %v9171_v36  ;;  %v24137_v7 = vor.u32 %v9421_v27, %v9169_v49  ;;  %v19574_v39 = vld [vmem:[%s26859_s7 + $0x278] sm:$0xff]   ;;  %v27429_v27 = vshll.u32 %v23652_v9, 16  ;;  %v9192_v59 = vrot.slane %v27430_v52, 7 }
 0xa5a   : > { %27423 = vst [vmem:[#allocation82_spill] sm:$0xff] %v24133_v56  ;;  %16324 = vmatpush3.bf16.msra.mxu1 %v19555_v29  ;;  %v24149_v38 = vsel %vm20354_vm6, 0, %v9167_v42  ;;  %v9178_v49 = vrot.slane %v27426_v26, 7  ;;  %v27428_v29 = vshll.u32 %v23621_v8, 16  ;;  %v27431_v26 = vshrl.u32 %v23680_v37, 16 }
 0xa5b   : > { %27425 = vst [vmem:[#allocation83_spill] sm:$0xff] %v24137_v7  ;;  %v24141_v22 = vsel %vm20354_vm6, 0, %v9174_v28  ;;  %16325 = vmatprep.subr.bf16.mxu1 %v19564_v53  ;;  %v19576_v53 = vld [vmem:[%s26859_s7 + $0x2c0] sm:$0xff]   ;;  %v9202_v42 = vor.u32 %v27429_v27, %v9199_v13  ;;  %v27433_v13 = vshll.u32 %v23680_v37, 16  ;;  %v27443_v56 = vshrl.u32 %v23763_v34, 16 }
 0xa5c   : > { %10360 = vmatprep.mubr.bf16.mxu1 %v24141_v22  ;;  %v9181_v36 = vor.u32 %v27428_v29, %v9178_v49  ;;  %v9213_v49 = vrot.slane %v27431_v26, 7  ;;  %v27449_v7 = vshrl.u32 %v23791_v63, 16 }
 0xa5d   : > { %10361 = vmatmul.mubr.bf16.gmra.mrb[188].mxu1 %v24149_v38  ;;  %v9255_v2 = vrot.slane %v27443_v56, 7 }
 0xa5e   : > { %10368 = vmatprep.mubr.bf16.mxu1 %v24159_v62  ;;  %11309 = vmatmul.mubr.bf16.gmra.mrb[212].mxu0 %v23621_v8  ;;  %v24178_v28 = vsel %vm20354_vm6, 0, %v9181_v36  ;;  %v27434_v36 = vshrl.u32 %v23677_v33, 16  ;;  %v9269_v54 = vrot.slane %v27449_v7, 7 }
 0xa5f   : > { %11316 = vmatprep.mubr.bf16.mxu0 %v23652_v9  ;;  %16326 = vmatpush3.bf16.msra.mxu1 %v19565_v50  ;;  %v24185_v50 = vsel %vm20354_vm6, 0, %v9202_v42  ;;  %v27435_v42 = vshrl.u32 %v23708_v35, 16 }
 0xa60   : > { %16327 = vmatprep.subr.bf16.mxu1 %v19574_v39  ;;  %v27432_v39 = vshll.u32 %v23649_v57, 16 }
 0xa61   : > { %v9227_v52 = vrot.slane %v27435_v42, 7  ;;  %v27439_v42 = vshrl.u32 %v23735_v41, 16 }
 0xa62   : > { %v9195_v15 = vor.u32 %v27432_v39, %v9192_v59  ;;  %v27436_v59 = vshll.u32 %v23677_v33, 16 }
 0xa63   : > { %16328 = vmatpush3.bf16.msra.mxu1 %v19575_v6  ;;  %v9216_v6 = vor.u32 %v27433_v13, %v9213_v49  ;;  %v27437_v49 = vshll.u32 %v23708_v35, 16  ;;  %v27438_v13 = vshrl.u32 %v23705_v44, 16  ;;  %v9241_v21 = vrot.slane %v27439_v42, 7 }
 0xa64   : > { %16425 = vmatprep.subr.bf16.mxu1 %v19576_v53  ;;  %v24198_v29 = vsel %vm20354_vm6, 0, %v9195_v15  ;;  %v9206_v53 = vrot.slane %v27434_v36, 7 }
 0xa65   : > { %10369 = vmatmul.mubr.bf16.gmra.mrb[192].mxu1 %v24178_v28  ;;  %v24205_v27 = vsel %vm20354_vm6, 0, %v9216_v6  ;;  %v9230_v39 = vor.u32 %v27437_v49, %v9227_v52  ;;  %v9220_v6 = vrot.slane %v27438_v13, 7 }
 0xa66   : > { %10376 = vmatprep.mubr.bf16.mxu1 %v24185_v50  ;;  %11317 = vmatmul.mubr.bf16.gmra.mrb[216].mxu0 %v23649_v57  ;;  %v9209_v26 = vor.u32 %v27436_v59, %v9206_v53  ;;  %v27440_v53 = vshll.u32 %v23705_v44, 16  ;;  %v27441_v59 = vshll.u32 %v23735_v41, 16 }
 0xa67   : > { %11324 = vmatprep.mubr.bf16.mxu0 %v23680_v37  ;;  %v24225_v36 = vsel %vm20354_vm6, 0, %v9230_v39  ;;  %v27442_v39 = vshrl.u32 %v23732_v19, 16 }
 0xa68   : > { %v24218_v15 = vsel %vm20354_vm6, 0, %v9209_v26  ;;  %v9223_v52 = vor.u32 %v27440_v53, %v9220_v6  ;;  %v9244_v26 = vor.u32 %v27441_v59, %v9241_v21  ;;  %v27444_v21 = vshll.u32 %v23732_v19, 16 }
 0xa69   : > { %v9234_v13 = vrot.slane %v27442_v39, 7  ;;  %v27445_v53 = vshll.u32 %v23763_v34, 16 }
 0xa6a   : > { %v24238_v49 = vsel %vm20354_vm6, 0, %v9223_v52  ;;  %v24245_v42 = vsel %vm20354_vm6, 0, %v9244_v26  ;;  %v27447_v26 = vshrl.u32 %v23760_v10, 16 }
 0xa6b   : > { %v9237_v6 = vor.u32 %v27444_v21, %v9234_v13  ;;  %v9258_v52 = vor.u32 %v27445_v53, %v9255_v2  ;;  %v27450_v2 = vshll.u32 %v23760_v10, 16  ;;  %v27451_v21 = vshll.u32 %v23791_v63, 16 }
 0xa6c   : > { %v9248_v39 = vrot.slane %v27447_v26, 7 }
 0xa6d   : > { %10377 = vmatmul.mubr.bf16.gmra.mrb[196].mxu1 %v24198_v29  ;;  %v24258_v59 = vsel %vm20354_vm6, 0, %v9237_v6  ;;  %v24265_v56 = vsel %vm20354_vm6, 0, %v9258_v52  ;;  %v9272_v6 = vor.u32 %v27451_v21, %v9269_v54  ;;  %v27453_v52 = vshrl.u32 %v23788_v4, 16 }
 0xa6e   : > { %10384 = vmatprep.mubr.bf16.mxu1 %v24205_v27  ;;  %11325 = vmatmul.mubr.bf16.gmra.mrb[220].mxu0 %v23677_v33  ;;  %27446 = vst [vmem:[#allocation17_spill] sm:$0xff] %v24258_v59  ;;  %27448 = vst [vmem:[#allocation22_spill] sm:$0xff] %v24265_v56  ;;  %v9251_v13 = vor.u32 %v27450_v2, %v9248_v39  ;;  %v16665_v39 = vpop.f32.mrb[192].mxu0  ;;  %v27457_v21 = vshll.u32 %v23788_v4, 16 }
 0xa6f   : > { %11332 = vmatprep.mubr.bf16.mxu0 %v23708_v35  ;;  %v9262_v26 = vrot.slane %v27453_v52, 7  ;;  %v24285_v7 = vsel %vm20354_vm6, 0, %v9272_v6  ;;  %v16666_v54 = vpop.f32.mrb[193].mxu0  ;;  %v27458_v6 = vshll.u32 %v23822_v5, 16 }
 0xa70   : > { %v24278_v53 = vsel %vm20354_vm6, 0, %v9251_v13  ;;  %27454 = vst [vmem:[#allocation85_spill] sm:$0xff] %v24285_v7  ;;  %v24292_v2 = vadd.f32 %v16666_v54, %v16665_v39  ;;  %v16668_v13 = vpop.f32.mrb[194].mxu0 }
 0xa71   : > { %27452 = vst [vmem:[#allocation84_spill] sm:$0xff] %v24278_v53  ;;  %v9265_v52 = vor.u32 %v27457_v21, %v9262_v26  ;;  %v16669_v3 = vpop.f32.mrb[195].mxu0  ;;  %v9286_v47 = vor.u32 %v27458_v6, %v9283_v12  ;;  %v27463_v26 = vshrl.u32 %v23862_v16, 16  ;;  %v19588_v12 = vld [vmem:[%s26859_s7 + $0x440] sm:$0xff]  }
 0xa72   : > { %27456 = vst [vmem:[#allocation21_spill] sm:$0xff] %v24292_v2  ;;  %17097 = vmatprep.subr.bf16.mxu0 %v19588_v12  ;;  %v27469_v12 = vshrl.u32 %v23902_v60, 16  ;;  %v27475_v2 = vshrl.u32 %v23942_v23, 16 }
 0xa73   : > { %v24302_v58 = vsel %vm20354_vm6, 0, %v9265_v52  ;;  %v24309_v39 = vsel %vm20354_vm6, 0, %v9286_v47  ;;  %v9297_v54 = vrot.slane %v27463_v26, 7  ;;  %v27465_v47 = vshll.u32 %v23862_v16, 16 }
 0xa74   : > { %27460 = vst [vmem:[#allocation86_spill] sm:$0xff] %v24302_v58  ;;  %27462 = vst [vmem:[#allocation87_spill] sm:$0xff] %v24309_v39  ;;  %v27467_v52 = vshrl.u32 %v23856_v46, 16 }
 0xa75   : > { %10385 = vmatmul.mubr.bf16.gmra.mrb[200].mxu1 %v24218_v15 }
 0xa76   : > { %10392 = vmatprep.mubr.bf16.mxu1 %v24225_v36  ;;  %11333 = vmatmul.mubr.bf16.gmra.mrb[224].mxu0 %v23705_v44  ;;  %v9290_v6 = vrot.slane %v27467_v52, 7 }
 0xa77   : > { %11340 = vmatprep.mubr.bf16.mxu0 %v23735_v41 }
 0xa7d   : > { %10393 = vmatmul.mubr.bf16.gmra.mrb[204].mxu1 %v24238_v49 }
 0xa7e   : > { %10400 = vmatprep.mubr.bf16.mxu1 %v24245_v42  ;;  %11341 = vmatmul.mubr.bf16.gmra.mrb[228].mxu0 %v23732_v19 }
 0xa7f   : > { %11348 = vmatprep.mubr.bf16.mxu0 %v23763_v34 }
 0xa85   : > { %10401 = vmatmul.mubr.bf16.gmra.mrb[208].mxu1 %v24258_v59 }
 0xa86   : > { %10408 = vmatprep.mubr.bf16.mxu1 %v24265_v56  ;;  %11349 = vmatmul.mubr.bf16.gmra.mrb[232].mxu0 %v23760_v10  ;;  %v27461_v10 = vshrl.u32 %v23816_v11, 16 }
 0xa87   : > { %11356 = vmatprep.mubr.bf16.mxu0 %v23791_v63  ;;  %v24298_v63 = vadd.f32 %v16669_v3, %v16668_v13  ;;  %v9300_v13 = vor.u32 %v27465_v47, %v9297_v54 }
 0xa88   : > { %v9276_v34 = vrot.slane %v27461_v10, 7  ;;  %v27464_v10 = vshll.u32 %v23816_v11, 16 }
 0xa89   : > { %27459 = vst [vmem:[#allocation26_spill] sm:$0xff] %v24298_v63  ;;  %v24332_v26 = vsel %vm20354_vm6, 0, %v9300_v13  ;;  %v9311_v63 = vrot.slane %v27469_v12, 7  ;;  %v27473_v13 = vshrl.u32 %v23896_v25, 16 }
 0xa8a   : > { %v9279_v3 = vor.u32 %v27464_v10, %v9276_v34  ;;  %27468 = vst [vmem:[#allocation30_spill] sm:$0xff] %v24332_v26  ;;  %v27470_v34 = vshll.u32 %v23856_v46, 16  ;;  %v27471_v10 = vshll.u32 %v23902_v60, 16 }
 0xa8b   : > { %v9304_v52 = vrot.slane %v27473_v13, 7 }
 0xa8c   : > { %v24325_v21 = vsel %vm20354_vm6, 0, %v9279_v3  ;;  %v9293_v54 = vor.u32 %v27470_v34, %v9290_v6  ;;  %v9314_v3 = vor.u32 %v27471_v10, %v9311_v63  ;;  %v27476_v63 = vshll.u32 %v23896_v25, 16 }
 0xa8d   : > { %10409 = vmatmul.mubr.bf16.gmra.mrb[212].mxu1 %v24278_v53  ;;  %27466 = vst [vmem:[#allocation28_spill] sm:$0xff] %v24325_v21  ;;  %v27477_v34 = vshll.u32 %v23942_v23, 16 }
 0xa8e   : > { %10416 = vmatprep.mubr.bf16.mxu1 %v24285_v7  ;;  %11357 = vmatmul.mubr.bf16.gmra.mrb[236].mxu0 %v23788_v4  ;;  %v24345_v47 = vsel %vm20354_vm6, 0, %v9293_v54  ;;  %v24352_v12 = vsel %vm20354_vm6, 0, %v9314_v3  ;;  %v9307_v6 = vor.u32 %v27476_v63, %v9304_v52  ;;  %v27479_v3 = vshrl.u32 %v23936_v1, 16 }
 0xa8f   : > { %11364 = vmatprep.mubr.bf16.mxu0 %v23822_v5  ;;  %27472 = vst [vmem:[#allocation88_spill] sm:$0xff] %v24345_v47  ;;  %27474 = vst [vmem:[#allocation89_spill] sm:$0xff] %v24352_v12  ;;  %v27483_v63 = vshll.u32 %v23979_v45, 16 }
 0xa90   : > { %v24365_v10 = vsel %vm20354_vm6, 0, %v9307_v6  ;;  %v9318_v13 = vrot.slane %v27479_v3, 7 }
 0xa91   : > { %27478 = vst [vmem:[#allocation32_spill] sm:$0xff] %v24365_v10 }
 0xa95   : > { %10417 = vmatmul.mubr.bf16.gmra.mrb[216].mxu1 %v24302_v58 }
 0xa96   : > { %10424 = vmatprep.mubr.bf16.mxu1 %v24309_v39  ;;  %11365 = vmatmul.mubr.bf16.gmra.mrb[240].mxu0 %v23816_v11 }
 0xa97   : > { %11372 = vmatprep.mubr.bf16.mxu0 %v23862_v16 }
 0xa9d   : > { %10425 = vmatmul.mubr.bf16.gmra.mrb[220].mxu1 %v24325_v21 }
 0xa9e   : > { %10432 = vmatprep.mubr.bf16.mxu1 %v24332_v26  ;;  %11373 = vmatmul.mubr.bf16.gmra.mrb[244].mxu0 %v23856_v46  ;;  %v9325_v46 = vrot.slane %v27475_v2, 7 }
 0xa9f   : > { %11380 = vmatprep.mubr.bf16.mxu0 %v23902_v60  ;;  %v27481_v60 = vshrl.u32 %v23979_v45, 16 }
 0xaa0   : > { %v9328_v54 = vor.u32 %v27477_v34, %v9325_v46  ;;  %v27482_v46 = vshll.u32 %v23936_v1, 16  ;;  %v19589_v34 = vld [vmem:[%s26859_s7 + $0x400] sm:$0xff]  }
 0xaa2   : > { %v24372_v2 = vsel %vm20354_vm6, 0, %v9328_v54  ;;  %v9321_v52 = vor.u32 %v27482_v46, %v9318_v13  ;;  %v19591_v13 = vld [vmem:[%s26859_s7 + $0x408] sm:$0xff]   ;;  %v27486_v46 = vshll.u32 %v23976_v43, 16 }
 0xaa3   : > { %27480 = vst [vmem:[#allocation34_spill] sm:$0xff] %v24372_v2 }
 0xaa4   : > { %v24388_v54 = vsel %vm20354_vm6, 0, %v9321_v52 }
 0xaa5   : > { %10433 = vmatmul.mubr.bf16.gmra.mrb[224].mxu1 %v24345_v47  ;;  %27484 = vst [vmem:[#allocation90_spill] sm:$0xff] %v24388_v54 }
 0xaa6   : > { %10440 = vmatprep.mubr.bf16.mxu1 %v24352_v12  ;;  %11381 = vmatmul.mubr.bf16.gmra.mrb[248].mxu0 %v23896_v25  ;;  %v9339_v25 = vrot.slane %v27481_v60, 7  ;;  %v27485_v60 = vshrl.u32 %v23976_v43, 16 }
 0xaa7   : > { %11388 = vmatprep.mubr.bf16.mxu0 %v23942_v23 }
 0xaa8   : > { %v9342_v6 = vor.u32 %v27483_v63, %v9339_v25  ;;  %v9332_v3 = vrot.slane %v27485_v60, 7  ;;  %v19592_v63 = vld [vmem:[%s26859_s7 + $0x450] sm:$0xff]   ;;  %v19594_v60 = vld [vmem:[%s26859_s7 + $0x458] sm:$0xff]  }
 0xaaa   : > { %v24398_v25 = vsel %vm20354_vm6, 0, %v9342_v6  ;;  %v9335_v52 = vor.u32 %v27486_v46, %v9332_v3  ;;  %v19593_v6 = vld [vmem:[%s26859_s7 + $0x410] sm:$0xff]   ;;  %v19598_v3 = vld [vmem:[%s26859_s7 + $0x460] sm:$0xff]  }
 0xaab   : > { %v19599_v46 = vld [vmem:[%s26859_s7 + $0x420] sm:$0xff]  }
 0xaad   : > { %10441 = vmatmul.mubr.bf16.gmra.mrb[228].mxu1 %v24365_v10 }
 0xaae   : > { %10448 = vmatprep.mubr.bf16.mxu1 %v24372_v2  ;;  %11389 = vmatmul.mubr.bf16.gmra.mrb[252].mxu0 %v23936_v1 }
 0xaaf   : > { %12071 = vmatprep.mubr.bf16.mxu0 %v24067_v40  ;;  %v19590_v40 = vld [vmem:[%s26859_s7 + $0x448] sm:$0xff]  }
 0xab5   : > { %10449 = vmatmul.mubr.bf16.gmra.mrb[232].mxu1 %v24388_v54 }
 0xab6   : > { %10456 = vmatprep.mubr.bf16.mxu1 %v24398_v25  ;;  %12072 = vmatmul.mubr.bf16.vlgmr.msra.gmra.mrb[0].mxu0 %v24076_v14 }
 0xab7   : > { %12079 = vmatprep.mubr.bf16.mxu0 %v24107_v61  ;;  %17098 = vmatpush3.bf16.msra.mxu0 %v19589_v34  ;;  %v24416_v34 = vsel %vm20354_vm6, 0, %v9335_v52  ;;  %v19600_v52 = vld [vmem:[%s26859_s7 + $0x468] sm:$0xff]  }
 0xab8   : > { %17099 = vmatprep.subr.bf16.mxu0 %v19590_v40  ;;  %v19595_v40 = vld [vmem:[%s26859_s7 + $0x418] sm:$0xff]  }
 0xabb   : > { %17100 = vmatpush3.bf16.msra.mxu0 %v19591_v13  ;;  %v19577_v13 = vld [vmem:[%s26859_s7 + $0x280] sm:$0xff]  }
 0xabc   : > { %17101 = vmatprep.subr.bf16.mxu0 %v19592_v63  ;;  %v19579_v63 = vld [vmem:[%s26859_s7 + $0x288] sm:$0xff]  }
 0xabd   : > { %10457 = vmatmul.mubr.bf16.gmra.mrb[236].mxu1 %v24416_v34 }
 0xabe   : > { %10497 = vmatprep.mubr.bf16.mxu1 %v23998_v24  ;;  %12080 = vmatmul.mubr.bf16.gmra.mrb[4].mxu0 %v24115_v30  ;;  %v19578_v24 = vld [vmem:[%s26859_s7 + $0x2c8] sm:$0xff]  }
 0xabf   : > { %12087 = vmatprep.mubr.bf16.mxu0 %v24141_v22  ;;  %17102 = vmatpush3.bf16.msra.mxu0 %v19593_v6  ;;  %v19580_v6 = vld [vmem:[%s26859_s7 + $0x2d0] sm:$0xff]  }
 0xac0   : > { %17103 = vmatprep.subr.bf16.mxu0 %v19594_v60  ;;  %v19602_v60 = vld [vmem:[%s26859_s7 + $0x470] sm:$0xff]  }
 0xac3   : > { %17104 = vmatpush3.bf16.msra.mxu0 %v19595_v40  ;;  %v19581_v40 = vld [vmem:[%s26859_s7 + $0x290] sm:$0xff]  }
 0xac4   : > { %17105 = vmatprep.subr.bf16.mxu0 %v19598_v3  ;;  %v19582_v3 = vld [vmem:[%s26859_s7 + $0x2d8] sm:$0xff]  }
 0xac5   : > { %10498 = vmatmul.mubr.bf16.vlgmr.msra.gmra.mrb[240].mxu1 %v23992_v51  ;;  %v19601_v51 = vld [vmem:[%s26859_s7 + $0x428] sm:$0xff]  }
 0xac6   : > { %16426 = vmatpush3.bf16.msra.mxu1 %v19577_v13  ;;  %10505 = vmatprep.mubr.bf16.mxu1 %v24023_v18  ;;  %v19603_v13 = vld [vmem:[%s26859_s7 + $0x430] sm:$0xff]  }
 0xac7   : > { %12088 = vmatmul.mubr.bf16.gmra.mrb[8].mxu0 %v24149_v38  ;;  %16427 = vmatprep.subr.bf16.mxu1 %v19578_v24  ;;  %v19604_v24 = vld [vmem:[%s26859_s7 + $0x478] sm:$0xff]  }
 0xac8   : > { %12095 = vmatprep.mubr.bf16.mxu0 %v24159_v62  ;;  %17106 = vmatpush3.bf16.msra.mxu0 %v19599_v46  ;;  %v19583_v46 = vld [vmem:[%s26859_s7 + $0x298] sm:$0xff]  }
 0xac9   : > { %17107 = vmatprep.subr.bf16.mxu0 %v19600_v52  ;;  %v19584_v52 = vld [vmem:[%s26859_s7 + $0x2e0] sm:$0xff]  }
 0xaca   : > { %16428 = vmatpush3.bf16.msra.mxu1 %v19579_v63  ;;  %v19605_v63 = vld [vmem:[%s26859_s7 + $0x438] sm:$0xff]  }
 0xacb   : > { %16429 = vmatprep.subr.bf16.mxu1 %v19580_v6  ;;  %v19585_v6 = vld [vmem:[%s26859_s7 + $0x2a0] sm:$0xff]  }
 0xacc   : > { %17108 = vmatpush3.bf16.msra.mxu0 %v19601_v51  ;;  %v19586_v51 = vld [vmem:[%s26859_s7 + $0x2e8] sm:$0xff]  }
 0xacd   : > { %10506 = vmatmul.mubr.bf16.gmra.mrb[244].mxu1 %v24018_v48  ;;  %17109 = vmatprep.subr.bf16.mxu0 %v19602_v60  ;;  %v19587_v60 = vld [vmem:[%s26859_s7 + $0x2a8] sm:$0xff]  }
 0xace   : > { %10513 = vmatprep.mubr.bf16.mxu1 %v24063_v17  ;;  %16430 = vmatpush3.bf16.msra.mxu1 %v19581_v40  ;;  %v19596_v40 = vld [vmem:[%s26859_s7 + $0x2f0] sm:$0xff]  }
 0xacf   : > { %12096 = vmatmul.mubr.bf16.gmra.mrb[12].mxu0 %v24178_v28  ;;  %16431 = vmatprep.subr.bf16.mxu1 %v19582_v3  ;;  %v19597_v3 = vld [vmem:[%s26859_s7 + $0x2b0] sm:$0xff]  }
 0xad0   : > { %12103 = vmatprep.mubr.bf16.mxu0 %v24185_v50  ;;  %17110 = vmatpush3.bf16.msra.mxu0 %v19603_v13  ;;  %v19606_v13 = vld [vmem:[%s26859_s7 + $0x2f8] sm:$0xff]  }
 0xad1   : > { %17111 = vmatprep.subr.bf16.mxu0 %v19604_v24  ;;  %v19607_v24 = vld [vmem:[%s26859_s7 + $0x2b8] sm:$0xff]  }
 0xad2   : > { %16432 = vmatpush3.bf16.msra.mxu1 %v19583_v46  ;;  %v19608_v46 = vld [vmem:[%s26859_s7 + $0x40] sm:$0xff]  }
 0xad3   : > { %16433 = vmatprep.subr.bf16.mxu1 %v19584_v52  ;;  %v27487_v52 = vld [vmem:[#allocation60_spill] sm:$0xff] }
 0xad4   : > { %17112 = vmatpush3.bf16.msra.mxu0 %v19605_v63  ;;  %v27488_v63 = vld [vmem:[#allocation58_spill] sm:$0xff] }
 0xad5   : > { %10514 = vmatmul.mubr.bf16.gmra.mrb[248].mxu1 %v24058_v31 }
 0xad6   : > { %10521 = vmatprep.mubr.bf16.mxu1 %v24103_v20  ;;  %16434 = vmatpush3.bf16.msra.mxu1 %v19585_v6  ;;  %v27489_v6 = vld [vmem:[#allocation14_spill] sm:$0xff] }
 0xad7   : > { %12104 = vmatmul.mubr.bf16.gmra.mrb[16].mxu0 %v24198_v29  ;;  %16435 = vmatprep.subr.bf16.mxu1 %v19586_v51 }
 0xad8   : > { %12111 = vmatprep.mubr.bf16.mxu0 %v24205_v27 }
 0xada   : > { %16436 = vmatpush3.bf16.msra.mxu1 %v19587_v60 }
 0xadb   : > { %16437 = vmatprep.subr.bf16.mxu1 %v19596_v40 }
 0xadd   : > { %10522 = vmatmul.mubr.bf16.gmra.mrb[252].mxu1 %v24098_v55 }
 0xade   : > { %10529 = vmatprep.mubr.bf16.mxu1 %v23624_v0  ;;  %16438 = vmatpush3.bf16.msra.mxu1 %v19597_v3 }
 0xadf   : > { %12112 = vmatmul.mubr.bf16.gmra.mrb[20].mxu0 %v24218_v15  ;;  %16439 = vmatprep.subr.bf16.mxu1 %v19606_v13 }
 0xae0   : > { %12119 = vmatprep.mubr.bf16.mxu0 %v24225_v36 }
 0xae2   : > { %16440 = vmatpush3.bf16.msra.mxu1 %v19607_v24 }
 0xae3   : > { %16537 = vmatprep.subr.bf16.mxu1 %v19608_v46 }
 0xae5   : > { %10530 = vmatmul.mubr.bf16.gmra.mrb[0].mxu1 %v23621_v8 }
 0xae6   : > { %10537 = vmatprep.mubr.bf16.mxu1 %v23652_v9  ;;  %v27501_v9 = vld [vmem:[#allocation75_spill] sm:$0xff] }
 0xae7   : > { %12120 = vmatmul.mubr.bf16.gmra.mrb[24].mxu0 %v24238_v49 }
 0xae8   : > { %12127 = vmatprep.mubr.bf16.mxu0 %v24245_v42 }
 0xaed   : > { %10538 = vmatmul.mubr.bf16.gmra.mrb[4].mxu1 %v23649_v57 }
 0xaee   : > { %10545 = vmatprep.mubr.bf16.mxu1 %v23680_v37 }
 0xaef   : > { %12128 = vmatmul.mubr.bf16.gmra.mrb[28].mxu0 %v24258_v59 }
 0xaf0   : > { %12135 = vmatprep.mubr.bf16.mxu0 %v24265_v56 }
 0xaf5   : > { %10546 = vmatmul.mubr.bf16.gmra.mrb[8].mxu1 %v23677_v33  ;;  %v27497_v33 = vld [vmem:[#allocation35_spill] sm:$0xff] }
 0xaf6   : > { %10553 = vmatprep.mubr.bf16.mxu1 %v23708_v35 }
 0xaf7   : > { %12136 = vmatmul.mubr.bf16.gmra.mrb[32].mxu0 %v24278_v53 }
 0xaf8   : > { %12143 = vmatprep.mubr.bf16.mxu0 %v24285_v7 }
 0xafd   : > { %10554 = vmatmul.mubr.bf16.gmra.mrb[12].mxu1 %v23705_v44 }
 0xafe   : > { %10561 = vmatprep.mubr.bf16.mxu1 %v23735_v41 }
 0xaff   : > { %12144 = vmatmul.mubr.bf16.gmra.mrb[36].mxu0 %v24302_v58 }
 0xb00   : > { %12151 = vmatprep.mubr.bf16.mxu0 %v24309_v39 }
 0xb05   : > { %10562 = vmatmul.mubr.bf16.gmra.mrb[16].mxu1 %v23732_v19 }
 0xb06   : > { %10569 = vmatprep.mubr.bf16.mxu1 %v27487_v52 }
 0xb07   : > { %12152 = vmatmul.mubr.bf16.gmra.mrb[40].mxu0 %v24325_v21 }
 0xb08   : > { %12159 = vmatprep.mubr.bf16.mxu0 %v24332_v26 }
 0xb0d   : > { %10570 = vmatmul.mubr.bf16.gmra.mrb[20].mxu1 %v27488_v63 }
 0xb0e   : > { %10577 = vmatprep.mubr.bf16.mxu1 %v27489_v6 }
 0xb0f   : > { %12160 = vmatmul.mubr.bf16.gmra.mrb[44].mxu0 %v24345_v47 }
 0xb10   : > { %12167 = vmatprep.mubr.bf16.mxu0 %v24352_v12  ;;  %v27546_v12 = vld [vmem:[#allocation36_spill] sm:$0xff] }
 0xb11   : > { %v16671_v51 = vpop.f32.mrb[196].mxu0 }
 0xb12   : > { %v16672_v60 = vpop.f32.mrb[197].mxu0 }
 0xb13   : > { %v24540_v40 = vadd.f32 %v16672_v60, %v16671_v51  ;;  %v16674_v3 = vpop.f32.mrb[198].mxu0 }
 0xb14   : > { %v16675_v13 = vpop.f32.mrb[199].mxu0 }
 0xb15   : > { %27490 = vst [vmem:[#allocation91_spill] sm:$0xff] %v24540_v40  ;;  %v24542_v24 = vadd.f32 %v16675_v13, %v16674_v3  ;;  %10578 = vmatmul.mubr.bf16.gmra.mrb[24].mxu1 %v23788_v4 }
 0xb16   : > { %10585 = vmatprep.mubr.bf16.mxu1 %v23822_v5 }
 0xb17   : > { %27491 = vst [vmem:[#allocation92_spill] sm:$0xff] %v24542_v24  ;;  %12168 = vmatmul.mubr.bf16.gmra.mrb[48].mxu0 %v24365_v10  ;;  %v19614_v24 = vld [vmem:[%s26859_s7 + $0x58] sm:$0xff]  }
 0xb18   : > { %12175 = vmatprep.mubr.bf16.mxu0 %v24372_v2  ;;  %v16217_v46 = vpop.f32.mrb[176].mxu1 }
 0xb19   : > { %v16218_v32 = vpop.f32.mrb[177].mxu1  ;;  %v16677_v6 = vpop.f32.mrb[200].mxu0 }
 0xb1a   : > { %v24548_v63 = vadd.f32 %v16218_v32, %v16217_v46  ;;  %v16220_v52 = vpop.f32.mrb[178].mxu1  ;;  %v16678_v51 = vpop.f32.mrb[201].mxu0 }
 0xb1b   : > { %v24550_v60 = vadd.f32 %v16678_v51, %v16677_v6  ;;  %v16221_v19 = vpop.f32.mrb[179].mxu1  ;;  %v16680_v3 = vpop.f32.mrb[202].mxu0 }
 0xb1c   : > { %v24552_v13 = vadd.f32 %v16221_v19, %v16220_v52  ;;  %v16681_v4 = vpop.f32.mrb[203].mxu0 }
 0xb1d   : > { %27492 = vst [vmem:[#allocation93_spill] sm:$0xff] %v24550_v60  ;;  %v24554_v41 = vadd.f32 %v16681_v4, %v16680_v3  ;;  %10586 = vmatmul.mubr.bf16.gmra.mrb[28].mxu1 %v23816_v11 }
 0xb1e   : > { %10593 = vmatprep.mubr.bf16.mxu1 %v23862_v16  ;;  %v27496_v16 = vld [vmem:[#allocation25_spill] sm:$0xff] }
 0xb1f   : > { %27493 = vst [vmem:[#allocation94_spill] sm:$0xff] %v24554_v41  ;;  %12176 = vmatmul.mubr.bf16.gmra.mrb[52].mxu0 %v24388_v54 }
 0xb20   : > { %12183 = vmatprep.mubr.bf16.mxu0 %v24398_v25  ;;  %v16223_v32 = vpop.f32.mrb[180].mxu1 }
 0xb21   : > { %v16224_v46 = vpop.f32.mrb[181].mxu1  ;;  %v16683_v5 = vpop.f32.mrb[204].mxu0 }
 0xb22   : > { %v24560_v6 = vadd.f32 %v16224_v46, %v16223_v32  ;;  %v16226_v51 = vpop.f32.mrb[182].mxu1  ;;  %v16684_v44 = vpop.f32.mrb[205].mxu0  ;;  %v24571_v32 = vld [vmem:[#allocation2] sm:$0xff] }
 0xb23   : > { %v24562_v19 = vadd.f32 %v16684_v44, %v16683_v5  ;;  %v16227_v52 = vpop.f32.mrb[183].mxu1  ;;  %v16686_v4 = vpop.f32.mrb[206].mxu0 }
 0xb24   : > { %v24564_v3 = vadd.f32 %v16227_v52, %v16226_v51  ;;  %v16687_v11 = vpop.f32.mrb[207].mxu0 }
 0xb25   : > { %27494 = vst [vmem:[#allocation95_spill] sm:$0xff] %v24562_v19  ;;  %v24566_v35 = vadd.f32 %v16687_v11, %v16686_v4  ;;  %10594 = vmatmul.mubr.bf16.gmra.mrb[32].mxu1 %v27496_v16 }
 0xb26   : > { %10601 = vmatprep.mubr.bf16.mxu1 %v27497_v33 }
 0xb27   : > { %27495 = vst [vmem:[#allocation40_spill] sm:$0xff] %v24566_v35  ;;  %12184 = vmatmul.mubr.bf16.gmra.mrb[56].mxu0 %v24416_v34  ;;  %v27500_v34 = vld [vmem:[#allocation33_spill] sm:$0xff] }
 0xb28   : > { %v16229_v25 = vpop.f32.mrb[184].mxu1  ;;  %12191 = vmatprep.mubr.bf16.mxu0 %v24571_v32 }
 0xb29   : > { %v16230_v44 = vpop.f32.mrb[185].mxu1  ;;  %v16689_v5 = vpop.f32.mrb[208].mxu0 }
 0xb2a   : > { %v24574_v46 = vadd.f32 %v16230_v44, %v16229_v25  ;;  %v16232_v51 = vpop.f32.mrb[186].mxu1  ;;  %v16690_v52 = vpop.f32.mrb[209].mxu0  ;;  %v24588_v44 = vsel %vm20207_vm3, %v27501_v9, 0  ;;  %v27506_v9 = vld [vmem:[#allocation74_spill] sm:$0xff] }
 0xb2b   : > { %v24576_v37 = vadd.f32 %v16690_v52, %v16689_v5  ;;  %v16233_v11 = vpop.f32.mrb[187].mxu1  ;;  %v16692_v4 = vpop.f32.mrb[210].mxu0  ;;  %27503 = vst [vmem:[#allocation98_spill] sm:$0xff] %v24588_v44  ;;  %v24603_v31 = vsel %vm20207_vm3, %v27506_v9, 0 }
 0xb2c   : > { %v24578_v16 = vadd.f32 %v16233_v11, %v16232_v51  ;;  %v16693_v33 = vpop.f32.mrb[211].mxu0  ;;  %27507 = vst [vmem:[#allocation101_spill] sm:$0xff] %v24603_v31 }
 0xb2d   : > { %27498 = vst [vmem:[#allocation96_spill] sm:$0xff] %v24576_v37  ;;  %v24580_v57 = vadd.f32 %v16693_v33, %v16692_v4  ;;  %10602 = vmatmul.mubr.bf16.gmra.mrb[36].mxu1 %v27500_v34  ;;  %v27519_v37 = vld [vmem:[#allocation10_spill] sm:$0xff] }
 0xb2e   : > { %10609 = vmatprep.mubr.bf16.mxu1 %v23942_v23  ;;  %v24653_v18 = vsel %vm20207_vm3, %v27519_v37, 0  ;;  %v19611_v37 = vld [vmem:[%s26859_s7 + $0x8] sm:$0xff]  }
 0xb2f   : > { %27499 = vst [vmem:[#allocation97_spill] sm:$0xff] %v24580_v57  ;;  %12192 = vmatmul.mubr.bf16.gmra.mrb[60].mxu0 %v24571_v32  ;;  %27520 = vst [vmem:[#allocation10_spill] sm:$0xff] %v24653_v18 }
 0xb30   : > { %12393 = vmatprep.mubr.bf16.mxu0 %v24588_v44  ;;  %v16235_v5 = vpop.f32.mrb[188].mxu1 }
 0xb31   : > { %v16236_v52 = vpop.f32.mrb[189].mxu1  ;;  %v16695_v51 = vpop.f32.mrb[212].mxu0 }
 0xb32   : > { %v24591_v11 = vadd.f32 %v16236_v52, %v16235_v5  ;;  %v16238_v33 = vpop.f32.mrb[190].mxu1  ;;  %v16696_v4 = vpop.f32.mrb[213].mxu0  ;;  %v27508_v5 = vld [vmem:[#allocation80_spill] sm:$0xff] }
 0xb33   : > { %v24593_v8 = vadd.f32 %v16696_v4, %v16695_v51  ;;  %v16239_v34 = vpop.f32.mrb[191].mxu1  ;;  %v16698_v23 = vpop.f32.mrb[214].mxu0  ;;  %v24610_v52 = vsel %vm20207_vm3, %v27508_v5, 0  ;;  %v27512_v5 = vld [vmem:[#allocation69_spill] sm:$0xff] }
 0xb34   : > { %v24595_v0 = vadd.f32 %v16239_v34, %v16238_v33  ;;  %v16699_v55 = vpop.f32.mrb[215].mxu0  ;;  %27509 = vst [vmem:[#allocation102_spill] sm:$0xff] %v24610_v52  ;;  %v24625_v48 = vsel %vm20207_vm3, %v27512_v5, 0 }
 0xb35   : > { %27504 = vst [vmem:[#allocation99_spill] sm:$0xff] %v24593_v8  ;;  %v24597_v20 = vadd.f32 %v16699_v55, %v16698_v23  ;;  %10610 = vmatmul.mubr.bf16.gmra.mrb[40].mxu1 %v23936_v1  ;;  %27513 = vst [vmem:[#allocation80_spill] sm:$0xff] %v24625_v48 }
 0xb36   : > { %10617 = vmatprep.mubr.bf16.mxu1 %v23979_v45 }
 0xb37   : > { %27505 = vst [vmem:[#allocation100_spill] sm:$0xff] %v24597_v20  ;;  %12394 = vmatmul.mubr.bf16.vlgmr.msra.gmra.mrb[64].mxu0 %v24603_v31 }
 0xb38   : > { %12401 = vmatprep.mubr.bf16.mxu0 %v24610_v52  ;;  %v16241_v55 = vpop.f32.mrb[192].mxu1 }
 0xb39   : > { %v16242_v23 = vpop.f32.mrb[193].mxu1  ;;  %v16701_v34 = vpop.f32.mrb[216].mxu0 }
 0xb3a   : > { %v24613_v51 = vadd.f32 %v16242_v23, %v16241_v55  ;;  %v16244_v33 = vpop.f32.mrb[194].mxu1  ;;  %v16702_v4 = vpop.f32.mrb[217].mxu0  ;;  %v27514_v55 = vld [vmem:[#allocation79_spill] sm:$0xff] }
 0xb3b   : > { %v24615_v9 = vadd.f32 %v16702_v4, %v16701_v34  ;;  %v16245_v1 = vpop.f32.mrb[195].mxu1  ;;  %v16704_v45 = vpop.f32.mrb[218].mxu0  ;;  %v24631_v23 = vsel %vm20207_vm3, %v27514_v55, 0  ;;  %v19609_v55 = vld [vmem:[%s26859_s7] sm:$0xff]  }
 0xb3c   : > { %v24617_v20 = vadd.f32 %v16245_v1, %v16244_v33  ;;  %v16705_v8 = vpop.f32.mrb[219].mxu0  ;;  %27515 = vst [vmem:[#allocation69_spill] sm:$0xff] %v24631_v23  ;;  %v27516_v1 = vld [vmem:[#allocation83_spill] sm:$0xff] }
 0xb3d   : > { %27510 = vst [vmem:[#allocation75_spill] sm:$0xff] %v24615_v9  ;;  %v24619_v17 = vadd.f32 %v16705_v8, %v16704_v45  ;;  %10618 = vmatmul.mubr.bf16.gmra.mrb[44].mxu1 %v23976_v43  ;;  %v24637_v8 = vsel %vm20207_vm3, %v27516_v1, 0  ;;  %v19610_v1 = vld [vmem:[%s26859_s7 + $0x48] sm:$0xff]  }
 0xb3e   : > { %10658 = vmatprep.mubr.bf16.mxu1 %v24625_v48  ;;  %27517 = vst [vmem:[#allocation79_spill] sm:$0xff] %v24637_v8  ;;  %v19622_v48 = vld [vmem:[%s26859_s7 + $0x78] sm:$0xff]  }
 0xb3f   : > { %27511 = vst [vmem:[#allocation74_spill] sm:$0xff] %v24619_v17  ;;  %12402 = vmatmul.mubr.bf16.gmra.mrb[68].mxu0 %v24631_v23 }
 0xb40   : > { %12409 = vmatprep.mubr.bf16.mxu0 %v24637_v8  ;;  %v16247_v45 = vpop.f32.mrb[196].mxu1 }
 0xb41   : > { %v16248_v34 = vpop.f32.mrb[197].mxu1  ;;  %v16707_v33 = vpop.f32.mrb[220].mxu0 }
 0xb42   : > { %v24640_v4 = vadd.f32 %v16248_v34, %v16247_v45  ;;  %v16250_v5 = vpop.f32.mrb[198].mxu1  ;;  %v16708_v43 = vpop.f32.mrb[221].mxu0 }
 0xb43   : > { %v24645_v17 = vadd.f32 %v16708_v43, %v16707_v33  ;;  %v16251_v9 = vpop.f32.mrb[199].mxu1  ;;  %v16710_v57 = vpop.f32.mrb[222].mxu0  ;;  %v27522_v43 = vld [vmem:[#allocation82_spill] sm:$0xff] }
 0xb44   : > { %v24655_v45 = vadd.f32 %v16251_v9, %v16250_v5  ;;  %v16711_v34 = vpop.f32.mrb[223].mxu0  ;;  %v24664_v33 = vsel %vm20207_vm3, %v27522_v43, 0  ;;  %v27524_v9 = vld [vmem:[#allocation54_spill] sm:$0xff] }
 0xb45   : > { %27518 = vst [vmem:[#allocation83_spill] sm:$0xff] %v24645_v17  ;;  %v24657_v35 = vadd.f32 %v16711_v34, %v16710_v57  ;;  %10659 = vmatmul.mubr.bf16.vlgmr.msra.gmra.mrb[48].mxu1 %v24653_v18  ;;  %27523 = vst [vmem:[#allocation82_spill] sm:$0xff] %v24664_v33  ;;  %v24673_v57 = vsel %vm20207_vm3, %v27524_v9, 0  ;;  %v19612_v5 = vld [vmem:[%s26859_s7 + $0x50] sm:$0xff]  }
 0xb46   : > { %16538 = vmatpush3.bf16.msra.mxu1 %v19609_v55  ;;  %10666 = vmatprep.mubr.bf16.mxu1 %v24588_v44  ;;  %27525 = vst [vmem:[#allocation54_spill] sm:$0xff] %v24673_v57  ;;  %v19613_v9 = vld [vmem:[%s26859_s7 + $0x10] sm:$0xff]   ;;  %v19618_v44 = vld [vmem:[%s26859_s7 + $0x68] sm:$0xff]  }
 0xb47   : > { %27521 = vst [vmem:[#allocation103_spill] sm:$0xff] %v24657_v35  ;;  %12410 = vmatmul.mubr.bf16.gmra.mrb[72].mxu0 %v24664_v33  ;;  %16539 = vmatprep.subr.bf16.mxu1 %v19610_v1 }
 0xb48   : > { %12417 = vmatprep.mubr.bf16.mxu0 %v24673_v57  ;;  %v16253_v55 = vpop.f32.mrb[200].mxu1 }
 0xb49   : > { %v16254_v34 = vpop.f32.mrb[201].mxu1  ;;  %v16713_v43 = vpop.f32.mrb[224].mxu0 }
 0xb4a   : > { %v24679_v35 = vadd.f32 %v16254_v34, %v16253_v55  ;;  %v16256_v17 = vpop.f32.mrb[202].mxu1  ;;  %v16714_v19 = vpop.f32.mrb[225].mxu0  ;;  %16540 = vmatpush3.bf16.msra.mxu1 %v19611_v37  ;;  %v27528_v37 = vld [vmem:[#allocation52_spill] sm:$0xff] }
 0xb4b   : > { %v24684_v41 = vadd.f32 %v16714_v19, %v16713_v43  ;;  %v16257_v1 = vpop.f32.mrb[203].mxu1  ;;  %v16716_v60 = vpop.f32.mrb[226].mxu0  ;;  %16541 = vmatprep.subr.bf16.mxu1 %v19612_v5  ;;  %v24698_v19 = vsel %vm20207_vm3, %v27528_v37, 0  ;;  %v19615_v5 = vld [vmem:[%s26859_s7 + $0x18] sm:$0xff]   ;;  %v19616_v43 = vld [vmem:[%s26859_s7 + $0x60] sm:$0xff]  }
 0xb4c   : > { %v24689_v40 = vadd.f32 %v16257_v1, %v16256_v17  ;;  %v16717_v55 = vpop.f32.mrb[227].mxu0  ;;  %27529 = vst [vmem:[#allocation52_spill] sm:$0xff] %v24698_v19  ;;  %v27530_v17 = vld [vmem:[#allocation41_spill] sm:$0xff] }
 0xb4d   : > { %27526 = vst [vmem:[#allocation104_spill] sm:$0xff] %v24684_v41  ;;  %v24691_v34 = vadd.f32 %v16717_v55, %v16716_v60  ;;  %10667 = vmatmul.mubr.bf16.gmra.mrb[52].mxu1 %v24603_v31  ;;  %v24707_v60 = vsel %vm20207_vm3, %v27530_v17, 0  ;;  %v19617_v17 = vld [vmem:[%s26859_s7 + $0x20] sm:$0xff]  }
 0xb4e   : > { %10674 = vmatprep.mubr.bf16.mxu1 %v24610_v52  ;;  %16542 = vmatpush3.bf16.msra.mxu1 %v19613_v9  ;;  %27531 = vst [vmem:[#allocation41_spill] sm:$0xff] %v24707_v60 }
 0xb4f   : > { %27527 = vst [vmem:[#allocation105_spill] sm:$0xff] %v24691_v34  ;;  %12418 = vmatmul.mubr.bf16.gmra.mrb[76].mxu0 %v24698_v19  ;;  %16543 = vmatprep.subr.bf16.mxu1 %v19614_v24 }
 0xb50   : > { %12425 = vmatprep.mubr.bf16.mxu0 %v24707_v60  ;;  %v16259_v1 = vpop.f32.mrb[204].mxu1 }
 0xb51   : > { %v16260_v9 = vpop.f32.mrb[205].mxu1  ;;  %v16719_v55 = vpop.f32.mrb[228].mxu0 }
 0xb52   : > { %v24713_v37 = vadd.f32 %v16260_v9, %v16259_v1  ;;  %v16262_v34 = vpop.f32.mrb[206].mxu1  ;;  %v16720_v41 = vpop.f32.mrb[229].mxu0  ;;  %16544 = vmatpush3.bf16.msra.mxu1 %v19615_v5  ;;  %v27534_v5 = vld [vmem:[#allocation39_spill] sm:$0xff] }
 0xb53   : > { %v24718_v52 = vadd.f32 %v16720_v41, %v16719_v55  ;;  %v16263_v24 = vpop.f32.mrb[207].mxu1  ;;  %v16722_v31 = vpop.f32.mrb[230].mxu0  ;;  %16545 = vmatprep.subr.bf16.mxu1 %v19616_v43  ;;  %v24732_v41 = vsel %vm20207_vm3, %v27534_v5, 0  ;;  %v19619_v43 = vld [vmem:[%s26859_s7 + $0x28] sm:$0xff]   ;;  %v19620_v55 = vld [vmem:[%s26859_s7 + $0x70] sm:$0xff]  }
 0xb54   : > { %v24723_v18 = vadd.f32 %v16263_v24, %v16262_v34  ;;  %v16723_v1 = vpop.f32.mrb[231].mxu0  ;;  %27535 = vst [vmem:[#allocation39_spill] sm:$0xff] %v24732_v41  ;;  %v27536_v34 = vld [vmem:[#allocation51_spill] sm:$0xff] }
 0xb55   : > { %27532 = vst [vmem:[#allocation106_spill] sm:$0xff] %v24718_v52  ;;  %v24725_v9 = vadd.f32 %v16723_v1, %v16722_v31  ;;  %10675 = vmatmul.mubr.bf16.gmra.mrb[56].mxu1 %v24631_v23  ;;  %v24741_v31 = vsel %vm20207_vm3, %v27536_v34, 0  ;;  %v19621_v34 = vld [vmem:[%s26859_s7 + $0x30] sm:$0xff]  }
 0xb56   : > { %10682 = vmatprep.mubr.bf16.mxu1 %v24637_v8  ;;  %16546 = vmatpush3.bf16.msra.mxu1 %v19617_v17  ;;  %27537 = vst [vmem:[#allocation51_spill] sm:$0xff] %v24741_v31 }
 0xb57   : > { %27533 = vst [vmem:[#allocation107_spill] sm:$0xff] %v24725_v9  ;;  %12426 = vmatmul.mubr.bf16.gmra.mrb[80].mxu0 %v24732_v41  ;;  %16547 = vmatprep.subr.bf16.mxu1 %v19618_v44 }
 0xb58   : > { %12433 = vmatprep.mubr.bf16.mxu0 %v24741_v31  ;;  %v16265_v24 = vpop.f32.mrb[208].mxu1 }
 0xb59   : > { %v16266_v17 = vpop.f32.mrb[209].mxu1  ;;  %v16725_v1 = vpop.f32.mrb[232].mxu0 }
 0xb5a   : > { %v24747_v5 = vadd.f32 %v16266_v17, %v16265_v24  ;;  %v16268_v9 = vpop.f32.mrb[210].mxu1  ;;  %v16726_v52 = vpop.f32.mrb[233].mxu0  ;;  %16548 = vmatpush3.bf16.msra.mxu1 %v19619_v43  ;;  %v27540_v43 = vld [vmem:[#allocation47_spill] sm:$0xff] }
 0xb5b   : > { %v24752_v8 = vadd.f32 %v16726_v52, %v16725_v1  ;;  %v16269_v44 = vpop.f32.mrb[211].mxu1  ;;  %v16728_v23 = vpop.f32.mrb[234].mxu0  ;;  %16549 = vmatprep.subr.bf16.mxu1 %v19620_v55  ;;  %v24766_v52 = vsel %vm20207_vm3, %v27540_v43, 0  ;;  %v19623_v55 = vld [vmem:[%s26859_s7 + $0x38] sm:$0xff]   ;;  %v19624_v1 = vld [vmem:[%s26859_s7 + $0x140] sm:$0xff]  }
 0xb5c   : > { %v24757_v54 = vadd.f32 %v16269_v44, %v16268_v9  ;;  %v16729_v24 = vpop.f32.mrb[235].mxu0  ;;  %27541 = vst [vmem:[#allocation47_spill] sm:$0xff] %v24766_v52  ;;  %v27542_v9 = vld [vmem:[#allocation38_spill] sm:$0xff] }
 0xb5d   : > { %27538 = vst [vmem:[#allocation108_spill] sm:$0xff] %v24752_v8  ;;  %v24759_v17 = vadd.f32 %v16729_v24, %v16728_v23  ;;  %10683 = vmatmul.mubr.bf16.gmra.mrb[60].mxu1 %v24664_v33  ;;  %v24775_v23 = vsel %vm20207_vm3, %v27542_v9, 0 }
 0xb5e   : > { %10690 = vmatprep.mubr.bf16.mxu1 %v24673_v57  ;;  %16550 = vmatpush3.bf16.msra.mxu1 %v19621_v34  ;;  %27543 = vst [vmem:[#allocation38_spill] sm:$0xff] %v24775_v23 }
 0xb5f   : > { %27539 = vst [vmem:[#allocation109_spill] sm:$0xff] %v24759_v17  ;;  %12434 = vmatmul.mubr.bf16.gmra.mrb[84].mxu0 %v24766_v52  ;;  %16551 = vmatprep.subr.bf16.mxu1 %v19622_v48 }
 0xb60   : > { %12441 = vmatprep.mubr.bf16.mxu0 %v24775_v23  ;;  %v16271_v44 = vpop.f32.mrb[212].mxu1 }
 0xb61   : > { %v16272_v34 = vpop.f32.mrb[213].mxu1  ;;  %v16731_v24 = vpop.f32.mrb[236].mxu0 }
 0xb62   : > { %v24781_v43 = vadd.f32 %v16272_v34, %v16271_v44  ;;  %v16274_v17 = vpop.f32.mrb[214].mxu1  ;;  %v16732_v8 = vpop.f32.mrb[237].mxu0  ;;  %16552 = vmatpush3.bf16.msra.mxu1 %v19623_v55  ;;  %v24794_v44 = vsel %vm20207_vm3, %v27546_v12, 0 }
 0xb63   : > { %v24783_v57 = vadd.f32 %v16732_v8, %v16731_v24  ;;  %v16275_v33 = vpop.f32.mrb[215].mxu1  ;;  %v16734_v9 = vpop.f32.mrb[238].mxu0  ;;  %16761 = vmatprep.subr.bf16.mxu1 %v19624_v1  ;;  %27547 = vst [vmem:[#allocation36_spill] sm:$0xff] %v24794_v44  ;;  %v27548_v8 = vld [vmem:[#allocation56_spill] sm:$0xff] }
 0xb64   : > { %v24785_v48 = vadd.f32 %v16275_v33, %v16274_v17  ;;  %v16735_v2 = vpop.f32.mrb[239].mxu0  ;;  %v24800_v55 = vsel %vm20207_vm3, %v27548_v8, 0  ;;  %v27552_v8 = vld [vmem:[#allocation46_spill] sm:$0xff] }
 0xb65   : > { %27544 = vst [vmem:[#allocation110_spill] sm:$0xff] %v24783_v57  ;;  %v24787_v10 = vadd.f32 %v16735_v2, %v16734_v9  ;;  %10691 = vmatmul.mubr.bf16.gmra.mrb[64].mxu1 %v24698_v19  ;;  %27549 = vst [vmem:[#allocation56_spill] sm:$0xff] %v24800_v55 }
 0xb66   : > { %10698 = vmatprep.mubr.bf16.mxu1 %v24707_v60 }
 0xb67   : > { %27545 = vst [vmem:[#allocation111_spill] sm:$0xff] %v24787_v10  ;;  %12442 = vmatmul.mubr.bf16.gmra.mrb[88].mxu0 %v24794_v44 }
 0xb68   : > { %12449 = vmatprep.mubr.bf16.mxu0 %v24800_v55  ;;  %v16277_v2 = vpop.f32.mrb[216].mxu1 }
 0xb69   : > { %v16278_v33 = vpop.f32.mrb[217].mxu1  ;;  %v16737_v17 = vpop.f32.mrb[240].mxu0 }
 0xb6a   : > { %v24803_v1 = vadd.f32 %v16278_v33, %v16277_v2  ;;  %v16280_v34 = vpop.f32.mrb[218].mxu1  ;;  %v16738_v24 = vpop.f32.mrb[241].mxu0  ;;  %v24816_v2 = vsel %vm20207_vm3, %v27552_v8, 0  ;;  %v27554_v33 = vld [vmem:[#allocation66_spill] sm:$0xff] }
 0xb6b   : > { %v24805_v9 = vadd.f32 %v16738_v24, %v16737_v17  ;;  %v16281_v12 = vpop.f32.mrb[219].mxu1  ;;  %v16740_v10 = vpop.f32.mrb[242].mxu0  ;;  %27553 = vst [vmem:[#allocation46_spill] sm:$0xff] %v24816_v2  ;;  %v24822_v17 = vsel %vm20207_vm3, %v27554_v33, 0  ;;  %v27558_v33 = vld [vmem:[#allocation64_spill] sm:$0xff] }
 0xb6c   : > { %v24807_v57 = vadd.f32 %v16281_v12, %v16280_v34  ;;  %v16741_v60 = vpop.f32.mrb[243].mxu0  ;;  %27555 = vst [vmem:[#allocation66_spill] sm:$0xff] %v24822_v17 }
 0xb6d   : > { %27550 = vst [vmem:[#allocation112_spill] sm:$0xff] %v24805_v9  ;;  %v24809_v19 = vadd.f32 %v16741_v60, %v16740_v10  ;;  %10699 = vmatmul.mubr.bf16.gmra.mrb[68].mxu1 %v24732_v41 }
 0xb6e   : > { %10706 = vmatprep.mubr.bf16.mxu1 %v24741_v31 }
 0xb6f   : > { %27551 = vst [vmem:[#allocation113_spill] sm:$0xff] %v24809_v19  ;;  %12450 = vmatmul.mubr.bf16.gmra.mrb[92].mxu0 %v24816_v2 }
 0xb70   : > { %12457 = vmatprep.mubr.bf16.mxu0 %v24822_v17  ;;  %v16283_v10 = vpop.f32.mrb[220].mxu1 }
 0xb71   : > { %v16284_v60 = vpop.f32.mrb[221].mxu1  ;;  %v16743_v34 = vpop.f32.mrb[244].mxu0 }
 0xb72   : > { %v24825_v24 = vadd.f32 %v16284_v60, %v16283_v10  ;;  %v16286_v12 = vpop.f32.mrb[222].mxu1  ;;  %v16744_v19 = vpop.f32.mrb[245].mxu0  ;;  %v24838_v10 = vsel %vm20207_vm3, %v27558_v33, 0 }
 0xb73   : > { %v24827_v9 = vadd.f32 %v16744_v19, %v16743_v34  ;;  %v16287_v8 = vpop.f32.mrb[223].mxu1  ;;  %v16746_v31 = vpop.f32.mrb[246].mxu0  ;;  %27559 = vst [vmem:[#allocation64_spill] sm:$0xff] %v24838_v10  ;;  %v27560_v19 = vld [vmem:[#allocation16_spill] sm:$0xff] }
 0xb74   : > { %v24829_v41 = vadd.f32 %v16287_v8, %v16286_v12  ;;  %v16747_v47 = vpop.f32.mrb[247].mxu0  ;;  %v24844_v60 = vsel %vm20207_vm3, %v27560_v19, 0  ;;  %v27564_v19 = vld [vmem:[#allocation15_spill] sm:$0xff] }
 0xb75   : > { %27556 = vst [vmem:[#allocation114_spill] sm:$0xff] %v24827_v9  ;;  %v24831_v26 = vadd.f32 %v16747_v47, %v16746_v31  ;;  %10707 = vmatmul.mubr.bf16.gmra.mrb[72].mxu1 %v24766_v52  ;;  %27561 = vst [vmem:[#allocation16_spill] sm:$0xff] %v24844_v60 }
 0xb76   : > { %10714 = vmatprep.mubr.bf16.mxu1 %v24775_v23 }
 0xb77   : > { %27557 = vst [vmem:[#allocation115_spill] sm:$0xff] %v24831_v26  ;;  %12458 = vmatmul.mubr.bf16.gmra.mrb[96].mxu0 %v24838_v10 }
 0xb78   : > { %12465 = vmatprep.mubr.bf16.mxu0 %v24844_v60  ;;  %v16289_v47 = vpop.f32.mrb[224].mxu1 }
 0xb79   : > { %v16290_v31 = vpop.f32.mrb[225].mxu1  ;;  %v16749_v34 = vpop.f32.mrb[248].mxu0 }
 0xb7a   : > { %v24847_v12 = vadd.f32 %v16290_v31, %v16289_v47  ;;  %v16292_v8 = vpop.f32.mrb[226].mxu1  ;;  %v16750_v26 = vpop.f32.mrb[249].mxu0  ;;  %v24860_v47 = vsel %vm20207_vm3, %v27564_v19, 0 }
 0xb7b   : > { %v24849_v9 = vadd.f32 %v16750_v26, %v16749_v34  ;;  %v16293_v33 = vpop.f32.mrb[227].mxu1  ;;  %v16752_v23 = vpop.f32.mrb[250].mxu0  ;;  %27565 = vst [vmem:[#allocation15_spill] sm:$0xff] %v24860_v47  ;;  %v27566_v26 = vld [vmem:[#allocation24_spill] sm:$0xff] }
 0xb7c   : > { %v24851_v52 = vadd.f32 %v16293_v33, %v16292_v8  ;;  %v16753_v21 = vpop.f32.mrb[251].mxu0  ;;  %v24866_v31 = vsel %vm20207_vm3, %v27566_v26, 0  ;;  %v27570_v26 = vld [vmem:[#allocation23_spill] sm:$0xff] }
 0xb7d   : > { %27562 = vst [vmem:[#allocation116_spill] sm:$0xff] %v24849_v9  ;;  %v24853_v39 = vadd.f32 %v16753_v21, %v16752_v23  ;;  %10715 = vmatmul.mubr.bf16.gmra.mrb[76].mxu1 %v24794_v44  ;;  %27567 = vst [vmem:[#allocation24_spill] sm:$0xff] %v24866_v31 }
 0xb7e   : > { %10722 = vmatprep.mubr.bf16.mxu1 %v24800_v55 }
 0xb7f   : > { %27563 = vst [vmem:[#allocation117_spill] sm:$0xff] %v24853_v39  ;;  %12466 = vmatmul.mubr.bf16.gmra.mrb[100].mxu0 %v24860_v47 }
 0xb80   : > { %12473 = vmatprep.mubr.bf16.mxu0 %v24866_v31  ;;  %v16295_v21 = vpop.f32.mrb[228].mxu1 }
 0xb81   : > { %v16296_v23 = vpop.f32.mrb[229].mxu1  ;;  %v16755_v34 = vpop.f32.mrb[252].mxu0 }
 0xb82   : > { %v24869_v8 = vadd.f32 %v16296_v23, %v16295_v21  ;;  %v16298_v33 = vpop.f32.mrb[230].mxu1  ;;  %v16756_v39 = vpop.f32.mrb[253].mxu0  ;;  %v24882_v21 = vsel %vm20207_vm3, %v27570_v26, 0 }
 0xb83   : > { %v24871_v9 = vadd.f32 %v16756_v39, %v16755_v34  ;;  %v16299_v19 = vpop.f32.mrb[231].mxu1  ;;  %v16758_v55 = vpop.f32.mrb[254].mxu0  ;;  %27571 = vst [vmem:[#allocation23_spill] sm:$0xff] %v24882_v21  ;;  %v27572_v39 = vld [vmem:[#allocation31_spill] sm:$0xff] }
 0xb84   : > { %v24873_v44 = vadd.f32 %v16299_v19, %v16298_v33  ;;  %v16759_v58 = vpop.f32.mrb[255].mxu0  ;;  %v24888_v23 = vsel %vm20207_vm3, %v27572_v39, 0  ;;  %v27578_v39 = vld [vmem:[#allocation29_spill] sm:$0xff] }
 0xb85   : > { %27568 = vst [vmem:[#allocation118_spill] sm:$0xff] %v24871_v9  ;;  %v24875_v7 = vadd.f32 %v16759_v58, %v16758_v55  ;;  %10723 = vmatmul.mubr.bf16.gmra.mrb[80].mxu1 %v24816_v2  ;;  %27573 = vst [vmem:[#allocation31_spill] sm:$0xff] %v24888_v23 }
 0xb86   : > { %10730 = vmatprep.mubr.bf16.mxu1 %v24822_v17 }
 0xb87   : > { %27569 = vst [vmem:[#allocation119_spill] sm:$0xff] %v24875_v7  ;;  %12474 = vmatmul.mubr.bf16.gmra.mrb[104].mxu0 %v24882_v21 }
 0xb88   : > { %12481 = vmatprep.mubr.bf16.mxu0 %v24888_v23  ;;  %v16301_v58 = vpop.f32.mrb[232].mxu1 }
 0xb89   : > { %v16302_v55 = vpop.f32.mrb[233].mxu1  ;;  %v16889_v34 = vpop.f32.mrb[0].mxu0 }
 0xb8a   : > { %v24891_v33 = vadd.f32 %v16302_v55, %v16301_v58  ;;  %v16304_v19 = vpop.f32.mrb[234].mxu1  ;;  %v16890_v7 = vpop.f32.mrb[1].mxu0  ;;  %v24904_v58 = vsel %vm20207_vm3, %v27578_v39, 0 }
 0xb8b   : > { %v24893_v9 = vadd.f32 %v16890_v7, %v16889_v34  ;;  %v16305_v26 = vpop.f32.mrb[235].mxu1  ;;  %v16892_v17 = vpop.f32.mrb[2].mxu0  ;;  %v27579_v7 = vld [vmem:[#allocation49_spill] sm:$0xff] }
 0xb8c   : > { %27574 = vst [vmem:[#allocation120_spill] sm:$0xff] %v24891_v33  ;;  %v24895_v2 = vadd.f32 %v16305_v26, %v16304_v19  ;;  %v16893_v53 = vpop.f32.mrb[3].mxu0  ;;  %v24910_v55 = vsel %vm20207_vm3, %v27579_v7, 0  ;;  %v27585_v7 = vld [vmem:[#allocation37_spill] sm:$0xff] }
 0xb8d   : > { %27575 = vst [vmem:[#allocation121_spill] sm:$0xff] %v24893_v9  ;;  %v24897_v56 = vadd.f32 %v16893_v53, %v16892_v17  ;;  %10731 = vmatmul.mubr.bf16.gmra.mrb[84].mxu1 %v24838_v10  ;;  %27580 = vst [vmem:[#allocation29_spill] sm:$0xff] %v24910_v55 }
 0xb8e   : > { %27576 = vst [vmem:[#allocation122_spill] sm:$0xff] %v24895_v2  ;;  %10738 = vmatprep.mubr.bf16.mxu1 %v24844_v60 }
 0xb8f   : > { %27577 = vst [vmem:[#allocation123_spill] sm:$0xff] %v24897_v56  ;;  %12482 = vmatmul.mubr.bf16.gmra.mrb[108].mxu0 %v24904_v58 }
 0xb90   : > { %12489 = vmatprep.mubr.bf16.mxu0 %v24910_v55  ;;  %v16307_v53 = vpop.f32.mrb[236].mxu1 }
 0xb91   : > { %v16308_v17 = vpop.f32.mrb[237].mxu1  ;;  %v16895_v34 = vpop.f32.mrb[4].mxu0 }
 0xb92   : > { %v24913_v19 = vadd.f32 %v16308_v17, %v16307_v53  ;;  %v16310_v26 = vpop.f32.mrb[238].mxu1  ;;  %v16896_v56 = vpop.f32.mrb[5].mxu0  ;;  %v24926_v53 = vsel %vm20207_vm3, %v27585_v7, 0 }
 0xb93   : > { %v24915_v9 = vadd.f32 %v16896_v56, %v16895_v34  ;;  %v16311_v39 = vpop.f32.mrb[239].mxu1  ;;  %v16898_v60 = vpop.f32.mrb[6].mxu0  ;;  %27586 = vst [vmem:[#allocation37_spill] sm:$0xff] %v24926_v53  ;;  %v27587_v56 = vld [vmem:[#allocation65_spill] sm:$0xff] }
 0xb94   : > { %27581 = vst [vmem:[#allocation49_spill] sm:$0xff] %v24913_v19  ;;  %v24917_v10 = vadd.f32 %v16311_v39, %v16310_v26  ;;  %v16899_v2 = vpop.f32.mrb[7].mxu0  ;;  %v24932_v17 = vsel %vm20207_vm3, %v27587_v56, 0 }
 0xb95   : > { %27582 = vst [vmem:[#allocation124_spill] sm:$0xff] %v24915_v9  ;;  %v24919_v59 = vadd.f32 %v16899_v2, %v16898_v60  ;;  %10739 = vmatmul.mubr.bf16.gmra.mrb[88].mxu1 %v24860_v47  ;;  %27588 = vst [vmem:[#allocation65_spill] sm:$0xff] %v24932_v17 }
 0xb96   : > { %27583 = vst [vmem:[#allocation125_spill] sm:$0xff] %v24917_v10  ;;  %10746 = vmatprep.mubr.bf16.mxu1 %v24866_v31 }
 0xb97   : > { %27584 = vst [vmem:[#allocation126_spill] sm:$0xff] %v24919_v59  ;;  %12490 = vmatmul.mubr.bf16.gmra.mrb[112].mxu0 %v24926_v53 }
 0xb98   : > { %12497 = vmatprep.mubr.bf16.mxu0 %v24932_v17  ;;  %v16329_v2 = vpop.f32.mrb[240].mxu1 }
 0xb99   : > { %v16330_v60 = vpop.f32.mrb[241].mxu1 }
 0xb9a   : > { %v16331_v34 = vadd.f32 %v16330_v60, %v16329_v2  ;;  %v16901_v26 = vpop.f32.mrb[8].mxu0  ;;  %v16332_v39 = vpop.f32.mrb[242].mxu1  ;;  %v27591_v2 = vld [vmem:[#allocation63_spill] sm:$0xff] }
 0xb9b   : > { %v16902_v59 = vpop.f32.mrb[9].mxu0  ;;  %v16333_v9 = vpop.f32.mrb[243].mxu1  ;;  %v24950_v60 = vsel %vm20207_vm3, %v27591_v2, 0 }
 0xb9c   : > { %v24936_v31 = vadd.f32 %v16331_v34, %v24548_v63  ;;  %v24938_v7 = vadd.f32 %v16902_v59, %v16901_v26  ;;  %v16334_v47 = vadd.f32 %v16333_v9, %v16332_v39  ;;  %v16904_v10 = vpop.f32.mrb[10].mxu0  ;;  %v27592_v59 = vld [vmem:[#allocation61_spill] sm:$0xff] }
 0xb9d   : > { %v16905_v19 = vpop.f32.mrb[11].mxu0  ;;  %10747 = vmatmul.mubr.bf16.gmra.mrb[92].mxu1 %v24882_v21  ;;  %v9534_v63 = vsel %vm20207_vm3, %v27592_v59, 0 }
 0xb9e   : > { %27589 = vst [vmem:[#allocation127_spill] sm:$0xff] %v24938_v7  ;;  %v24942_v56 = vadd.f32 %v16334_v47, %v24552_v13  ;;  %v24944_v33 = vadd.f32 %v16905_v19, %v16904_v10  ;;  %10754 = vmatprep.mubr.bf16.mxu1 %v24888_v23 }
 0xb9f   : > { %12498 = vmatmul.mubr.bf16.gmra.mrb[116].mxu0 %v24950_v60 }
 0xba0   : > { %27590 = vst [vmem:[#allocation128_spill] sm:$0xff] %v24944_v33  ;;  %12505 = vmatprep.mubr.bf16.mxu0 %v9534_v63  ;;  %v16335_v9 = vpop.f32.mrb[244].mxu1 }
 0xba1   : > { %v16336_v34 = vpop.f32.mrb[245].mxu1 }
 0xba2   : > { %v16337_v13 = vadd.f32 %v16336_v34, %v16335_v9  ;;  %v16907_v47 = vpop.f32.mrb[12].mxu0  ;;  %v16338_v10 = vpop.f32.mrb[246].mxu1  ;;  %v27595_v9 = vld [vmem:[#allocation62_spill] sm:$0xff] }
 0xba3   : > { %v16908_v19 = vpop.f32.mrb[13].mxu0  ;;  %v16339_v26 = vpop.f32.mrb[247].mxu1  ;;  %v9533_v34 = vsel %vm20207_vm3, %v27595_v9, 0 }
 0xba4   : > { %v24957_v39 = vadd.f32 %v16337_v13, %v24560_v6  ;;  %v24959_v33 = vadd.f32 %v16908_v19, %v16907_v47  ;;  %v16340_v2 = vadd.f32 %v16339_v26, %v16338_v10  ;;  %v16910_v7 = vpop.f32.mrb[14].mxu0 }
 0xba5   : > { %v16911_v23 = vpop.f32.mrb[15].mxu0  ;;  %10755 = vmatmul.mubr.bf16.gmra.mrb[96].mxu1 %v24904_v58 }
 0xba6   : > { %27593 = vst [vmem:[#allocation63_spill] sm:$0xff] %v24959_v33  ;;  %v24963_v59 = vadd.f32 %v16340_v2, %v24564_v3  ;;  %v24965_v21 = vadd.f32 %v16911_v23, %v16910_v7  ;;  %10762 = vmatprep.mubr.bf16.mxu1 %v24910_v55 }
 0xba7   : > { %12506 = vmatmul.mubr.bf16.gmra.mrb[120].mxu0 %v9533_v34 }
 0xba8   : > { %27594 = vst [vmem:[#allocation61_spill] sm:$0xff] %v24965_v21  ;;  %v16341_v6 = vpop.f32.mrb[248].mxu1  ;;  %12513 = vmatprep.mubr.bf16.mxu0 %v24571_v32 }
 0xba9   : > { %v16342_v13 = vpop.f32.mrb[249].mxu1 }
 0xbaa   : > { %v16343_v47 = vadd.f32 %v16342_v13, %v16341_v6  ;;  %v16913_v10 = vpop.f32.mrb[16].mxu0  ;;  %v16344_v19 = vpop.f32.mrb[250].mxu1 }
 0xbab   : > { %v16914_v26 = vpop.f32.mrb[17].mxu0  ;;  %v16345_v33 = vpop.f32.mrb[251].mxu1 }
 0xbac   : > { %v24973_v3 = vadd.f32 %v16343_v47, %v24574_v46  ;;  %v24975_v23 = vadd.f32 %v16914_v26, %v16913_v10  ;;  %v16346_v7 = vadd.f32 %v16345_v33, %v16344_v19  ;;  %v16916_v2 = vpop.f32.mrb[18].mxu0 }
 0xbad   : > { %v16917_v21 = vpop.f32.mrb[19].mxu0  ;;  %10763 = vmatmul.mubr.bf16.gmra.mrb[100].mxu1 %v24926_v53 }
 0xbae   : > { %27596 = vst [vmem:[#allocation62_spill] sm:$0xff] %v24975_v23  ;;  %v24979_v9 = vadd.f32 %v16346_v7, %v24578_v16  ;;  %v24981_v25 = vadd.f32 %v16917_v21, %v16916_v2  ;;  %10770 = vmatprep.mubr.bf16.mxu1 %v24932_v17 }
 0xbaf   : > { %12514 = vmatmul.mubr.bf16.gmra.mrb[124].mxu0 %v24571_v32 }
 0xbb0   : > { %27597 = vst [vmem:[#allocation129_spill] sm:$0xff] %v24981_v25  ;;  %v16347_v6 = vpop.f32.mrb[252].mxu1 }
 0xbb1   : > { %v16348_v13 = vpop.f32.mrb[253].mxu1 }
 0xbb2   : > { %v16349_v46 = vadd.f32 %v16348_v13, %v16347_v6  ;;  %v16919_v47 = vpop.f32.mrb[20].mxu0  ;;  %v16350_v10 = vpop.f32.mrb[254].mxu1 }
 0xbb3   : > { %v16920_v26 = vpop.f32.mrb[21].mxu0  ;;  %v16351_v33 = vpop.f32.mrb[255].mxu1 }
 0xbb4   : > { %v24986_v19 = vadd.f32 %v16349_v46, %v24591_v11  ;;  %v24988_v23 = vadd.f32 %v16920_v26, %v16919_v47  ;;  %v16352_v16 = vadd.f32 %v16351_v33, %v16350_v10  ;;  %v16922_v7 = vpop.f32.mrb[22].mxu0 }
 0xbb5   : > { %v16923_v21 = vpop.f32.mrb[23].mxu0  ;;  %10771 = vmatmul.mubr.bf16.gmra.mrb[104].mxu1 %v24950_v60 }
 0xbb6   : > { %27598 = vst [vmem:[#allocation130_spill] sm:$0xff] %v24988_v23  ;;  %v24992_v2 = vadd.f32 %v16352_v16, %v24595_v0  ;;  %v24994_v25 = vadd.f32 %v16923_v21, %v16922_v7  ;;  %10778 = vmatprep.mubr.bf16.mxu1 %v9534_v63 }
 0xbb8   : > { %27599 = vst [vmem:[#allocation131_spill] sm:$0xff] %v24994_v25  ;;  %v16353_v6 = vpop.f32.mrb[0].mxu1 }
 0xbb9   : > { %v16354_v13 = vpop.f32.mrb[1].mxu1 }
 0xbba   : > { %v16355_v17 = vadd.f32 %v16354_v13, %v16353_v6  ;;  %v16925_v53 = vpop.f32.mrb[24].mxu0  ;;  %v16356_v55 = vpop.f32.mrb[2].mxu1 }
 0xbbb   : > { %v16926_v11 = vpop.f32.mrb[25].mxu0  ;;  %v16357_v46 = vpop.f32.mrb[3].mxu1 }
 0xbbc   : > { %v24997_v47 = vadd.f32 %v16355_v17, %v24613_v51  ;;  %v24999_v10 = vadd.f32 %v16926_v11, %v16925_v53  ;;  %v16358_v26 = vadd.f32 %v16357_v46, %v16356_v55  ;;  %v16928_v33 = vpop.f32.mrb[26].mxu0  ;;  %v19625_v51 = vld [vmem:[%s26859_s7 + $0x100] sm:$0xff]  }
 0xbbd   : > { %v16929_v23 = vpop.f32.mrb[27].mxu0  ;;  %10779 = vmatmul.mubr.bf16.gmra.mrb[108].mxu1 %v9533_v34 }
 0xbbe   : > { %27600 = vst [vmem:[#allocation132_spill] sm:$0xff] %v24999_v10  ;;  %v25002_v0 = vadd.f32 %v16358_v26, %v24617_v20  ;;  %v25004_v63 = vadd.f32 %v16929_v23, %v16928_v33  ;;  %11107 = vmatprep.mubr.bf16.mxu1 %v24571_v32  ;;  %v19626_v20 = vld [vmem:[%s26859_s7 + $0x148] sm:$0xff]  }
 0xbc0   : > { %27601 = vst [vmem:[#allocation133_spill] sm:$0xff] %v25004_v63  ;;  %v16359_v16 = vpop.f32.mrb[4].mxu1 }
 0xbc1   : > { %v16360_v7 = vpop.f32.mrb[5].mxu1 }
 0xbc2   : > { %v16361_v21 = vadd.f32 %v16360_v7, %v16359_v16  ;;  %v16931_v6 = vpop.f32.mrb[28].mxu0  ;;  %v16362_v13 = vpop.f32.mrb[6].mxu1  ;;  %v27604_v16 = vld [vmem:[#allocation72_spill] sm:$0xff]  ;;  %v19628_v7 = vld [vmem:[%s26859_s7 + $0x150] sm:$0xff]  }
 0xbc3   : > { %v16932_v55 = vpop.f32.mrb[29].mxu0  ;;  %v16363_v53 = vpop.f32.mrb[7].mxu1 }
 0xbc4   : > { %v25014_v17 = vadd.f32 %v16361_v21, %v24640_v4  ;;  %v25016_v34 = vadd.f32 %v16932_v55, %v16931_v6  ;;  %v16364_v23 = vadd.f32 %v16363_v53, %v16362_v13  ;;  %v16934_v11 = vpop.f32.mrb[30].mxu0  ;;  %v19627_v4 = vld [vmem:[%s26859_s7 + $0x108] sm:$0xff]  }
 0xbc5   : > { %v16935_v46 = vpop.f32.mrb[31].mxu0  ;;  %11108 = vmatmul.mubr.bf16.vlgmr.msra.gmra.mrb[112].mxu1 %v24571_v32 }
 0xbc6   : > { %27602 = vst [vmem:[#allocation134_spill] sm:$0xff] %v25016_v34  ;;  %v25020_v26 = vadd.f32 %v16364_v23, %v24655_v45  ;;  %v25022_v33 = vadd.f32 %v16935_v46, %v16934_v11  ;;  %16762 = vmatpush3.bf16.msra.mxu1 %v19625_v51  ;;  %11115 = vmatprep.mubr.bf16.mxu1 %v27604_v16  ;;  %v19629_v51 = vld [vmem:[%s26859_s7 + $0x110] sm:$0xff]  }
 0xbc7   : > { %16763 = vmatprep.subr.bf16.mxu1 %v19626_v20  ;;  %v19630_v20 = vld [vmem:[%s26859_s7 + $0x158] sm:$0xff]  }
 0xbc8   : > { %27603 = vst [vmem:[#allocation135_spill] sm:$0xff] %v25022_v33  ;;  %v16365_v21 = vpop.f32.mrb[8].mxu1 }
 0xbc9   : > { %v16366_v6 = vpop.f32.mrb[9].mxu1 }
 0xbca   : > { %v16367_v32 = vadd.f32 %v16366_v6, %v16365_v21  ;;  %v16937_v13 = vpop.f32.mrb[32].mxu0  ;;  %v16368_v45 = vpop.f32.mrb[10].mxu1  ;;  %16764 = vmatpush3.bf16.msra.mxu1 %v19627_v4  ;;  %v27606_v4 = vld [vmem:[#allocation73_spill] sm:$0xff] }
 0xbcb   : > { %v16938_v55 = vpop.f32.mrb[33].mxu0  ;;  %v16369_v53 = vpop.f32.mrb[11].mxu1  ;;  %16765 = vmatprep.subr.bf16.mxu1 %v19628_v7  ;;  %v27608_v7 = vld [vmem:[#allocation78_spill] sm:$0xff] }
 0xbcc   : > { %v25038_v23 = vadd.f32 %v16367_v32, %v24679_v35  ;;  %v25040_v11 = vadd.f32 %v16938_v55, %v16937_v13  ;;  %v16370_v46 = vadd.f32 %v16369_v53, %v16368_v45  ;;  %v16940_v16 = vpop.f32.mrb[34].mxu0  ;;  %v19631_v35 = vld [vmem:[%s26859_s7 + $0x118] sm:$0xff]   ;;  %v19632_v32 = vld [vmem:[%s26859_s7 + $0x160] sm:$0xff]  }
 0xbcd   : > { %v16941_v21 = vpop.f32.mrb[35].mxu0  ;;  %11116 = vmatmul.mubr.bf16.gmra.mrb[116].mxu1 %v27606_v4 }
 0xbce   : > { %27605 = vst [vmem:[#allocation72_spill] sm:$0xff] %v25040_v11  ;;  %v25044_v6 = vadd.f32 %v16370_v46, %v24689_v40  ;;  %v25046_v33 = vadd.f32 %v16941_v21, %v16940_v16  ;;  %11123 = vmatprep.mubr.bf16.mxu1 %v27608_v7  ;;  %16766 = vmatpush3.bf16.msra.mxu1 %v19629_v51  ;;  %v19633_v46 = vld [vmem:[%s26859_s7 + $0x120] sm:$0xff]  }
 0xbcf   : > { %16767 = vmatprep.subr.bf16.mxu1 %v19630_v20  ;;  %v19634_v20 = vld [vmem:[%s26859_s7 + $0x168] sm:$0xff]  }
 0xbd0   : > { %27607 = vst [vmem:[#allocation73_spill] sm:$0xff] %v25046_v33  ;;  %v16371_v13 = vpop.f32.mrb[12].mxu1 }
 0xbd1   : > { %v16372_v45 = vpop.f32.mrb[13].mxu1 }
 0xbd2   : > { %v16373_v55 = vadd.f32 %v16372_v45, %v16371_v13  ;;  %v16943_v53 = vpop.f32.mrb[36].mxu0  ;;  %v16374_v40 = vpop.f32.mrb[14].mxu1  ;;  %16768 = vmatpush3.bf16.msra.mxu1 %v19631_v35 }
 0xbd3   : > { %v16944_v51 = vpop.f32.mrb[37].mxu0  ;;  %v16375_v16 = vpop.f32.mrb[15].mxu1  ;;  %16769 = vmatprep.subr.bf16.mxu1 %v19632_v32  ;;  %v19636_v32 = vld [vmem:[%s26859_s7 + $0x170] sm:$0xff]  }
 0xbd4   : > { %v25062_v21 = vadd.f32 %v16373_v55, %v24713_v37  ;;  %v25064_v4 = vadd.f32 %v16944_v51, %v16943_v53  ;;  %v16376_v7 = vadd.f32 %v16375_v16, %v16374_v40  ;;  %v16946_v13 = vpop.f32.mrb[38].mxu0  ;;  %v19635_v37 = vld [vmem:[%s26859_s7 + $0x128] sm:$0xff]   ;;  %v19638_v16 = vld [vmem:[%s26859_s7 + $0x178] sm:$0xff]  }
 0xbd5   : > { %v16947_v45 = vpop.f32.mrb[39].mxu0  ;;  %11124 = vmatmul.mubr.bf16.gmra.mrb[120].mxu1 %v24076_v14 }
 0xbd6   : > { %27609 = vst [vmem:[#allocation78_spill] sm:$0xff] %v25064_v4  ;;  %v25068_v35 = vadd.f32 %v16376_v7, %v24723_v18  ;;  %v25070_v33 = vadd.f32 %v16947_v45, %v16946_v13  ;;  %11131 = vmatprep.mubr.bf16.mxu1 %v24107_v61  ;;  %16770 = vmatpush3.bf16.msra.mxu1 %v19633_v46  ;;  %v19637_v61 = vld [vmem:[%s26859_s7 + $0x130] sm:$0xff]  }
 0xbd7   : > { %16771 = vmatprep.subr.bf16.mxu1 %v19634_v20 }
 0xbd8   : > { %27610 = vst [vmem:[#allocation136_spill] sm:$0xff] %v25070_v33  ;;  %v16377_v55 = vpop.f32.mrb[16].mxu1 }
 0xbd9   : > { %v16378_v53 = vpop.f32.mrb[17].mxu1 }
 0xbda   : > { %v16379_v14 = vadd.f32 %v16378_v53, %v16377_v55  ;;  %v16949_v40 = vpop.f32.mrb[40].mxu0  ;;  %v16380_v18 = vpop.f32.mrb[18].mxu1  ;;  %16772 = vmatpush3.bf16.msra.mxu1 %v19635_v37 }
 0xbdb   : > { %v16950_v46 = vpop.f32.mrb[41].mxu0  ;;  %v16381_v51 = vpop.f32.mrb[19].mxu1  ;;  %16773 = vmatprep.subr.bf16.mxu1 %v19636_v32  ;;  %v19640_v32 = vld [vmem:[%s26859_s7 + $0x3c0] sm:$0xff]  }
 0xbdc   : > { %v25086_v20 = vadd.f32 %v16379_v14, %v24747_v5  ;;  %v25088_v7 = vadd.f32 %v16950_v46, %v16949_v40  ;;  %v16382_v13 = vadd.f32 %v16381_v51, %v16380_v18  ;;  %v16952_v45 = vpop.f32.mrb[42].mxu0  ;;  %v19639_v5 = vld [vmem:[%s26859_s7 + $0x138] sm:$0xff]  }
 0xbdd   : > { %v16953_v55 = vpop.f32.mrb[43].mxu0  ;;  %11132 = vmatmul.mubr.bf16.gmra.mrb[124].mxu1 %v24115_v30 }
 0xbde   : > { %27611 = vst [vmem:[#allocation137_spill] sm:$0xff] %v25088_v7  ;;  %v25092_v37 = vadd.f32 %v16382_v13, %v24757_v54  ;;  %v25094_v53 = vadd.f32 %v16953_v55, %v16952_v45  ;;  %11139 = vmatprep.mubr.bf16.mxu1 %v24141_v22  ;;  %16774 = vmatpush3.bf16.msra.mxu1 %v19637_v61 }
 0xbdf   : > { %16775 = vmatprep.subr.bf16.mxu1 %v19638_v16 }
 0xbe0   : > { %27612 = vst [vmem:[#allocation138_spill] sm:$0xff] %v25094_v53  ;;  %v16383_v14 = vpop.f32.mrb[20].mxu1 }
 0xbe1   : > { %v16384_v40 = vpop.f32.mrb[21].mxu1 }
 0xbe2   : > { %v16385_v30 = vadd.f32 %v16384_v40, %v16383_v14  ;;  %v16955_v18 = vpop.f32.mrb[44].mxu0  ;;  %v16386_v54 = vpop.f32.mrb[22].mxu1  ;;  %16776 = vmatpush3.bf16.msra.mxu1 %v19639_v5 }
 0xbe3   : > { %v16956_v46 = vpop.f32.mrb[45].mxu0  ;;  %v16387_v51 = vpop.f32.mrb[23].mxu1  ;;  %16985 = vmatprep.subr.bf16.mxu1 %v19640_v32 }
 0xbe4   : > { %v25104_v22 = vadd.f32 %v16385_v30, %v24781_v43  ;;  %v25106_v61 = vadd.f32 %v16956_v46, %v16955_v18  ;;  %v16388_v13 = vadd.f32 %v16387_v51, %v16386_v54  ;;  %v16958_v16 = vpop.f32.mrb[46].mxu0 }
 0xbe5   : > { %v16959_v45 = vpop.f32.mrb[47].mxu0  ;;  %11140 = vmatmul.mubr.bf16.gmra.mrb[128].mxu1 %v24149_v38 }
 0xbe6   : > { %27613 = vst [vmem:[#allocation139_spill] sm:$0xff] %v25106_v61  ;;  %v25110_v55 = vadd.f32 %v16388_v13, %v24785_v48  ;;  %v25112_v14 = vadd.f32 %v16959_v45, %v16958_v16  ;;  %11147 = vmatprep.mubr.bf16.mxu1 %v24159_v62 }
 0xbe8   : > { %27614 = vst [vmem:[#allocation140_spill] sm:$0xff] %v25112_v14  ;;  %v16389_v5 = vpop.f32.mrb[24].mxu1 }
 0xbe9   : > { %v16390_v40 = vpop.f32.mrb[25].mxu1 }
 0xbea   : > { %v16391_v32 = vadd.f32 %v16390_v40, %v16389_v5  ;;  %v16961_v53 = vpop.f32.mrb[48].mxu0  ;;  %v16392_v43 = vpop.f32.mrb[26].mxu1 }
 0xbeb   : > { %v16962_v30 = vpop.f32.mrb[49].mxu0  ;;  %v16393_v18 = vpop.f32.mrb[27].mxu1 }
 0xbec   : > { %v25116_v54 = vadd.f32 %v16391_v32, %v24803_v1  ;;  %v25118_v46 = vadd.f32 %v16962_v30, %v16961_v53  ;;  %v16394_v38 = vadd.f32 %v16393_v18, %v16392_v43  ;;  %v16964_v51 = vpop.f32.mrb[50].mxu0 }
 0xbed   : > { %v16965_v48 = vpop.f32.mrb[51].mxu0  ;;  %11148 = vmatmul.mubr.bf16.gmra.mrb[132].mxu1 %v24178_v28 }
 0xbee   : > { %27615 = vst [vmem:[#allocation141_spill] sm:$0xff] %v25118_v46  ;;  %v25122_v13 = vadd.f32 %v16394_v38, %v24807_v57  ;;  %v25124_v62 = vadd.f32 %v16965_v48, %v16964_v51  ;;  %11155 = vmatprep.mubr.bf16.mxu1 %v24185_v50 }
 0xbf0   : > { %27616 = vst [vmem:[#allocation142_spill] sm:$0xff] %v25124_v62  ;;  %v16395_v16 = vpop.f32.mrb[28].mxu1 }
 0xbf1   : > { %v16396_v45 = vpop.f32.mrb[29].mxu1 }
 0xbf2   : > { %v16397_v5 = vadd.f32 %v16396_v45, %v16395_v16  ;;  %v16967_v40 = vpop.f32.mrb[52].mxu0  ;;  %v16398_v1 = vpop.f32.mrb[30].mxu1 }
 0xbf3   : > { %v16968_v32 = vpop.f32.mrb[53].mxu0  ;;  %v16399_v53 = vpop.f32.mrb[31].mxu1 }
 0xbf4   : > { %v25128_v43 = vadd.f32 %v16397_v5, %v24825_v24  ;;  %v25130_v30 = vadd.f32 %v16968_v32, %v16967_v40  ;;  %v16400_v28 = vadd.f32 %v16399_v53, %v16398_v1  ;;  %v16970_v18 = vpop.f32.mrb[54].mxu0 }
 0xbf5   : > { %v16971_v57 = vpop.f32.mrb[55].mxu0  ;;  %11156 = vmatmul.mubr.bf16.gmra.mrb[136].mxu1 %v24198_v29 }
 0xbf6   : > { %27617 = vst [vmem:[#allocation143_spill] sm:$0xff] %v25130_v30  ;;  %v25134_v38 = vadd.f32 %v16400_v28, %v24829_v41  ;;  %v25136_v50 = vadd.f32 %v16971_v57, %v16970_v18  ;;  %11163 = vmatprep.mubr.bf16.mxu1 %v24205_v27 }
 0xbf8   : > { %27618 = vst [vmem:[#allocation144_spill] sm:$0xff] %v25136_v50  ;;  %v16401_v51 = vpop.f32.mrb[32].mxu1 }
 0xbf9   : > { %v16402_v48 = vpop.f32.mrb[33].mxu1 }
 0xbfa   : > { %v16403_v16 = vadd.f32 %v16402_v48, %v16401_v51  ;;  %v16973_v45 = vpop.f32.mrb[56].mxu0  ;;  %v16404_v24 = vpop.f32.mrb[34].mxu1 }
 0xbfb   : > { %v16974_v5 = vpop.f32.mrb[57].mxu0  ;;  %v16405_v40 = vpop.f32.mrb[35].mxu1 }
 0xbfc   : > { %v25140_v1 = vadd.f32 %v16403_v16, %v24847_v12  ;;  %v25142_v32 = vadd.f32 %v16974_v5, %v16973_v45  ;;  %v16406_v29 = vadd.f32 %v16405_v40, %v16404_v24  ;;  %v16976_v53 = vpop.f32.mrb[58].mxu0 }
 0xbfd   : > { %v16977_v41 = vpop.f32.mrb[59].mxu0  ;;  %11164 = vmatmul.mubr.bf16.gmra.mrb[140].mxu1 %v24218_v15 }
 0xbfe   : > { %27619 = vst [vmem:[#allocation145_spill] sm:$0xff] %v25142_v32  ;;  %v25146_v28 = vadd.f32 %v16406_v29, %v24851_v52  ;;  %v25148_v27 = vadd.f32 %v16977_v41, %v16976_v53  ;;  %11171 = vmatprep.mubr.bf16.mxu1 %v24225_v36 }
 0xc00   : > { %27620 = vst [vmem:[#allocation146_spill] sm:$0xff] %v25148_v27  ;;  %v16407_v18 = vpop.f32.mrb[36].mxu1 }
 0xc01   : > { %v16408_v57 = vpop.f32.mrb[37].mxu1 }
 0xc02   : > { %v16409_v51 = vadd.f32 %v16408_v57, %v16407_v18  ;;  %v16410_v48 = vpop.f32.mrb[38].mxu1  ;;  %v16979_v12 = vpop.f32.mrb[60].mxu0 }
 0xc03   : > { %v16411_v16 = vpop.f32.mrb[39].mxu1  ;;  %v16980_v45 = vpop.f32.mrb[61].mxu0 }
 0xc04   : > { %v25152_v24 = vadd.f32 %v16409_v51, %v24869_v8  ;;  %v16412_v5 = vadd.f32 %v16411_v16, %v16410_v48  ;;  %v25154_v40 = vadd.f32 %v16980_v45, %v16979_v12  ;;  %v16982_v15 = vpop.f32.mrb[62].mxu0  ;;  %v27623_v12 = vld [vmem:[#allocation120_spill] sm:$0xff] }
 0xc05   : > { %11172 = vmatmul.mubr.bf16.gmra.mrb[144].mxu1 %v24238_v49  ;;  %v16983_v52 = vpop.f32.mrb[63].mxu0 }
 0xc06   : > { %27621 = vst [vmem:[#allocation147_spill] sm:$0xff] %v25154_v40  ;;  %v25158_v29 = vadd.f32 %v16412_v5, %v24873_v44  ;;  %11179 = vmatprep.mubr.bf16.mxu1 %v24245_v42  ;;  %v25161_v36 = vadd.f32 %v16983_v52, %v16982_v15  ;;  %v27624_v5 = vld [vmem:[#allocation17_spill] sm:$0xff]  ;;  %v27625_v42 = vld [vmem:[#allocation122_spill] sm:$0xff] }
 0xc08   : > { %27622 = vst [vmem:[#allocation148_spill] sm:$0xff] %v25161_v36  ;;  %v16413_v53 = vpop.f32.mrb[40].mxu1 }
 0xc09   : > { %v16414_v41 = vpop.f32.mrb[41].mxu1 }
 0xc0a   : > { %v16415_v18 = vadd.f32 %v16414_v41, %v16413_v53  ;;  %v17113_v57 = vpop.f32.mrb[64].mxu0  ;;  %v16416_v8 = vpop.f32.mrb[42].mxu1  ;;  %v27626_v53 = vld [vmem:[#allocation22_spill] sm:$0xff] }
 0xc0b   : > { %v17114_v51 = vpop.f32.mrb[65].mxu0  ;;  %v16417_v48 = vpop.f32.mrb[43].mxu1 }
 0xc0c   : > { %v25164_v16 = vadd.f32 %v16415_v18, %v27623_v12  ;;  %v25166_v45 = vadd.f32 %v17114_v51, %v17113_v57  ;;  %v16418_v49 = vadd.f32 %v16417_v48, %v16416_v8  ;;  %v17116_v40 = vpop.f32.mrb[66].mxu0  ;;  %v27627_v51 = vld [vmem:[#allocation49_spill] sm:$0xff] }
 0xc0d   : > { %v17117_v44 = vpop.f32.mrb[67].mxu0  ;;  %11180 = vmatmul.mubr.bf16.gmra.mrb[148].mxu1 %v27624_v5 }
 0xc0e   : > { %v25170_v15 = vadd.f32 %v16418_v49, %v27625_v42  ;;  %v25172_v52 = vadd.f32 %v17117_v44, %v17116_v40  ;;  %11187 = vmatprep.mubr.bf16.mxu1 %v27626_v53  ;;  %v27628_v42 = vld [vmem:[#allocation84_spill] sm:$0xff]  ;;  %v27629_v40 = vld [vmem:[#allocation125_spill] sm:$0xff] }
 0xc10   : > { %v16419_v41 = vpop.f32.mrb[44].mxu1 }
 0xc11   : > { %v16420_v36 = vpop.f32.mrb[45].mxu1 }
 0xc12   : > { %v16421_v27 = vadd.f32 %v16420_v36, %v16419_v41  ;;  %v17119_v32 = vpop.f32.mrb[68].mxu0  ;;  %v16422_v18 = vpop.f32.mrb[46].mxu1  ;;  %v27630_v36 = vld [vmem:[#allocation85_spill] sm:$0xff] }
 0xc13   : > { %v17120_v12 = vpop.f32.mrb[69].mxu0  ;;  %v16423_v57 = vpop.f32.mrb[47].mxu1 }
 0xc14   : > { %v25176_v8 = vadd.f32 %v16421_v27, %v27627_v51  ;;  %v25178_v48 = vadd.f32 %v17120_v12, %v17119_v32  ;;  %v16424_v5 = vadd.f32 %v16423_v57, %v16422_v18  ;;  %v17122_v50 = vpop.f32.mrb[70].mxu0 }
 0xc15   : > { %v17123_v49 = vpop.f32.mrb[71].mxu0  ;;  %11188 = vmatmul.mubr.bf16.gmra.mrb[152].mxu1 %v27628_v42 }
 0xc16   : > { %v25182_v44 = vadd.f32 %v16424_v5, %v27629_v40  ;;  %v25184_v53 = vadd.f32 %v17123_v49, %v17122_v50  ;;  %11195 = vmatprep.mubr.bf16.mxu1 %v27630_v36  ;;  %v27631_v40 = vld [vmem:[#allocation86_spill] sm:$0xff] }
 0xc18   : > { %v16441_v41 = vpop.f32.mrb[48].mxu1 }
 0xc19   : > { %v16442_v30 = vpop.f32.mrb[49].mxu1 }
 0xc1a   : > { %v16443_v62 = vadd.f32 %v16442_v30, %v16441_v41  ;;  %v17125_v46 = vpop.f32.mrb[72].mxu0  ;;  %v16444_v27 = vpop.f32.mrb[50].mxu1  ;;  %v27632_v30 = vld [vmem:[#allocation87_spill] sm:$0xff] }
 0xc1b   : > { %v17126_v51 = vpop.f32.mrb[73].mxu0  ;;  %v16445_v32 = vpop.f32.mrb[51].mxu1 }
 0xc1c   : > { %v25188_v18 = vadd.f32 %v16443_v62, %v24936_v31  ;;  %v25190_v12 = vadd.f32 %v17126_v51, %v17125_v46  ;;  %v16446_v57 = vadd.f32 %v16445_v32, %v16444_v27  ;;  %v17128_v42 = vpop.f32.mrb[74].mxu0 }
 0xc1d   : > { %v17129_v5 = vpop.f32.mrb[75].mxu0  ;;  %11196 = vmatmul.mubr.bf16.gmra.mrb[156].mxu1 %v27631_v40 }
 0xc1e   : > { %v25194_v50 = vadd.f32 %v16446_v57, %v24942_v56  ;;  %v25196_v49 = vadd.f32 %v17129_v5, %v17128_v42  ;;  %11203 = vmatprep.mubr.bf16.mxu1 %v27632_v30  ;;  %v27633_v57 = vld [vmem:[#allocation28_spill] sm:$0xff]  ;;  %v27634_v30 = vld [vmem:[#allocation30_spill] sm:$0xff] }
 0xc20   : > { %v16447_v36 = vpop.f32.mrb[52].mxu1 }
 0xc21   : > { %v16448_v41 = vpop.f32.mrb[53].mxu1 }
 0xc22   : > { %v16449_v14 = vadd.f32 %v16448_v41, %v16447_v36  ;;  %v17131_v61 = vpop.f32.mrb[76].mxu0  ;;  %v16450_v31 = vpop.f32.mrb[54].mxu1 }
 0xc23   : > { %v17132_v62 = vpop.f32.mrb[77].mxu0  ;;  %v16451_v46 = vpop.f32.mrb[55].mxu1 }
 0xc24   : > { %v25200_v27 = vadd.f32 %v16449_v14, %v24957_v39  ;;  %v25202_v51 = vadd.f32 %v17132_v62, %v17131_v61  ;;  %v16452_v32 = vadd.f32 %v16451_v46, %v16450_v31  ;;  %v17134_v40 = vpop.f32.mrb[78].mxu0 }
 0xc25   : > { %v17135_v56 = vpop.f32.mrb[79].mxu0  ;;  %11204 = vmatmul.mubr.bf16.gmra.mrb[160].mxu1 %v27633_v57 }
 0xc26   : > { %v25206_v42 = vadd.f32 %v16452_v32, %v24963_v59  ;;  %v25208_v5 = vadd.f32 %v17135_v56, %v17134_v40  ;;  %11211 = vmatprep.mubr.bf16.mxu1 %v27634_v30  ;;  %v27635_v32 = vld [vmem:[#allocation88_spill] sm:$0xff]  ;;  %v27636_v30 = vld [vmem:[#allocation89_spill] sm:$0xff] }
 0xc28   : > { %v16453_v36 = vpop.f32.mrb[56].mxu1 }
 0xc29   : > { %v16454_v41 = vpop.f32.mrb[57].mxu1 }
 0xc2a   : > { %v16455_v7 = vadd.f32 %v16454_v41, %v16453_v36  ;;  %v17137_v33 = vpop.f32.mrb[80].mxu0  ;;  %v16456_v39 = vpop.f32.mrb[58].mxu1 }
 0xc2b   : > { %v17138_v14 = vpop.f32.mrb[81].mxu0  ;;  %v16457_v61 = vpop.f32.mrb[59].mxu1 }
 0xc2c   : > { %v25212_v31 = vadd.f32 %v16455_v7, %v24973_v3  ;;  %v25214_v62 = vadd.f32 %v17138_v14, %v17137_v33  ;;  %v16458_v46 = vadd.f32 %v16457_v61, %v16456_v39  ;;  %v17140_v57 = vpop.f32.mrb[82].mxu0 }
 0xc2d   : > { %v17141_v59 = vpop.f32.mrb[83].mxu0  ;;  %11212 = vmatmul.mubr.bf16.gmra.mrb[164].mxu1 %v27635_v32 }
 0xc2e   : > { %v25218_v40 = vadd.f32 %v16458_v46, %v24979_v9  ;;  %v25220_v56 = vadd.f32 %v17141_v59, %v17140_v57  ;;  %11219 = vmatprep.mubr.bf16.mxu1 %v27636_v30  ;;  %v27637_v46 = vld [vmem:[#allocation32_spill] sm:$0xff]  ;;  %v27639_v30 = vld [vmem:[#allocation34_spill] sm:$0xff] }
 0xc30   : > { %v16459_v36 = vpop.f32.mrb[60].mxu1 }
 0xc31   : > { %v16460_v41 = vpop.f32.mrb[61].mxu1 }
 0xc32   : > { %v16461_v4 = vadd.f32 %v16460_v41, %v16459_v36  ;;  %v17143_v11 = vpop.f32.mrb[84].mxu0  ;;  %v16462_v3 = vpop.f32.mrb[62].mxu1 }
 0xc33   : > { %v17144_v7 = vpop.f32.mrb[85].mxu0  ;;  %v16463_v33 = vpop.f32.mrb[63].mxu1 }
 0xc34   : > { %v25224_v39 = vadd.f32 %v16461_v4, %v24986_v19  ;;  %v25226_v14 = vadd.f32 %v17144_v7, %v17143_v11  ;;  %v16464_v61 = vadd.f32 %v16463_v33, %v16462_v3  ;;  %v17146_v32 = vpop.f32.mrb[86].mxu0 }
 0xc35   : > { %v17147_v9 = vpop.f32.mrb[87].mxu0  ;;  %11220 = vmatmul.mubr.bf16.gmra.mrb[168].mxu1 %v27637_v46 }
 0xc36   : > { %v25230_v57 = vadd.f32 %v16464_v61, %v24992_v2  ;;  %v25232_v59 = vadd.f32 %v17147_v9, %v17146_v32  ;;  %11227 = vmatprep.mubr.bf16.mxu1 %v27639_v30  ;;  %v27641_v61 = vld [vmem:[#allocation90_spill] sm:$0xff]  ;;  %v25246_v30 = vld [vmem:[#allocation2] sm:$0xff] }
 0xc38   : > { %27638 = vst [vmem:[#allocation120_spill] sm:$0xff] %v25232_v59  ;;  %v16465_v36 = vpop.f32.mrb[64].mxu1 }
 0xc39   : > { %v16466_v41 = vpop.f32.mrb[65].mxu1 }
 0xc3a   : > { %v16467_v34 = vadd.f32 %v16466_v41, %v16465_v36  ;;  %v17149_v63 = vpop.f32.mrb[88].mxu0  ;;  %v16468_v19 = vpop.f32.mrb[66].mxu1 }
 0xc3b   : > { %v17150_v4 = vpop.f32.mrb[89].mxu0  ;;  %v16469_v11 = vpop.f32.mrb[67].mxu1 }
 0xc3c   : > { %v25236_v3 = vadd.f32 %v16467_v34, %v24997_v47  ;;  %v25238_v7 = vadd.f32 %v17150_v4, %v17149_v63  ;;  %v16470_v33 = vadd.f32 %v16469_v11, %v16468_v19  ;;  %v17152_v46 = vpop.f32.mrb[90].mxu0  ;;  %v19641_v19 = vld [vmem:[%s26859_s7 + $0x380] sm:$0xff]  }
 0xc3d   : > { %v17153_v2 = vpop.f32.mrb[91].mxu0  ;;  %11228 = vmatmul.mubr.bf16.gmra.mrb[172].mxu1 %v27641_v61 }
 0xc3e   : > { %27640 = vst [vmem:[#allocation17_spill] sm:$0xff] %v25238_v7  ;;  %v25242_v32 = vadd.f32 %v16470_v33, %v25002_v0  ;;  %v25244_v9 = vadd.f32 %v17153_v2, %v17152_v46  ;;  %11429 = vmatprep.mubr.bf16.mxu1 %v25246_v30  ;;  %v19642_v0 = vld [vmem:[%s26859_s7 + $0x3c8] sm:$0xff]   ;;  %v27645_v7 = vld [vmem:[#allocation80_spill] sm:$0xff] }
 0xc40   : > { %27642 = vst [vmem:[#allocation122_spill] sm:$0xff] %v25244_v9  ;;  %v16471_v36 = vpop.f32.mrb[68].mxu1 }
 0xc41   : > { %v16472_v41 = vpop.f32.mrb[69].mxu1 }
 0xc42   : > { %v16473_v47 = vadd.f32 %v16472_v41, %v16471_v36  ;;  %v17155_v34 = vpop.f32.mrb[92].mxu0  ;;  %v16474_v63 = vpop.f32.mrb[70].mxu1 }
 0xc43   : > { %v17156_v4 = vpop.f32.mrb[93].mxu0  ;;  %v16475_v11 = vpop.f32.mrb[71].mxu1 }
 0xc44   : > { %v25256_v33 = vadd.f32 %v16473_v47, %v25014_v17  ;;  %v25258_v46 = vadd.f32 %v17156_v4, %v17155_v34  ;;  %v16476_v2 = vadd.f32 %v16475_v11, %v16474_v63  ;;  %v17158_v61 = vpop.f32.mrb[94].mxu0  ;;  %v19643_v17 = vld [vmem:[%s26859_s7 + $0x388] sm:$0xff]   ;;  %v19644_v47 = vld [vmem:[%s26859_s7 + $0x3d0] sm:$0xff]  }
 0xc45   : > { %v17159_v36 = vpop.f32.mrb[95].mxu0  ;;  %11430 = vmatmul.mubr.bf16.vlgmr.msra.gmra.mrb[176].mxu1 %v25246_v30 }
 0xc46   : > { %27643 = vst [vmem:[#allocation22_spill] sm:$0xff] %v25258_v46  ;;  %v25262_v41 = vadd.f32 %v16476_v2, %v25020_v26  ;;  %v25264_v9 = vadd.f32 %v17159_v36, %v17158_v61  ;;  %16986 = vmatpush3.bf16.msra.mxu1 %v19641_v19  ;;  %11437 = vmatprep.mubr.bf16.mxu1 %v27645_v7  ;;  %v19645_v19 = vld [vmem:[%s26859_s7 + $0x390] sm:$0xff]  }
 0xc47   : > { %16987 = vmatprep.subr.bf16.mxu1 %v19642_v0  ;;  %v19646_v0 = vld [vmem:[%s26859_s7 + $0x3d8] sm:$0xff]  }
 0xc48   : > { %27644 = vst [vmem:[#allocation49_spill] sm:$0xff] %v25264_v9  ;;  %v16477_v34 = vpop.f32.mrb[72].mxu1 }
 0xc49   : > { %v16478_v63 = vpop.f32.mrb[73].mxu1 }
 0xc4a   : > { %v16479_v4 = vadd.f32 %v16478_v63, %v16477_v34  ;;  %v17161_v11 = vpop.f32.mrb[96].mxu0  ;;  %v16480_v26 = vpop.f32.mrb[74].mxu1  ;;  %16988 = vmatpush3.bf16.msra.mxu1 %v19643_v17  ;;  %v27647_v17 = vld [vmem:[#allocation10_spill] sm:$0xff] }
 0xc4b   : > { %v17162_v7 = vpop.f32.mrb[97].mxu0  ;;  %v16481_v2 = vpop.f32.mrb[75].mxu1  ;;  %16989 = vmatprep.subr.bf16.mxu1 %v19644_v47  ;;  %v27649_v47 = vld [vmem:[#allocation98_spill] sm:$0xff] }
 0xc4c   : > { %v25280_v61 = vadd.f32 %v16479_v4, %v25038_v23  ;;  %v25282_v36 = vadd.f32 %v17162_v7, %v17161_v11  ;;  %v16482_v34 = vadd.f32 %v16481_v2, %v16480_v26  ;;  %v17164_v63 = vpop.f32.mrb[98].mxu0  ;;  %v19647_v23 = vld [vmem:[%s26859_s7 + $0x398] sm:$0xff]   ;;  %v19648_v4 = vld [vmem:[%s26859_s7 + $0x3e0] sm:$0xff]  }
 0xc4d   : > { %v17165_v9 = vpop.f32.mrb[99].mxu0  ;;  %11438 = vmatmul.mubr.bf16.gmra.mrb[180].mxu1 %v27647_v17 }
 0xc4e   : > { %27646 = vst [vmem:[#allocation84_spill] sm:$0xff] %v25282_v36  ;;  %v25286_v46 = vadd.f32 %v16482_v34, %v25044_v6  ;;  %v25288_v10 = vadd.f32 %v17165_v9, %v17164_v63  ;;  %11445 = vmatprep.mubr.bf16.mxu1 %v27649_v47  ;;  %16990 = vmatpush3.bf16.msra.mxu1 %v19645_v19  ;;  %v19649_v9 = vld [vmem:[%s26859_s7 + $0x3a0] sm:$0xff]  }
 0xc4f   : > { %16991 = vmatprep.subr.bf16.mxu1 %v19646_v0  ;;  %v19650_v0 = vld [vmem:[%s26859_s7 + $0x3e8] sm:$0xff]  }
 0xc50   : > { %27648 = vst [vmem:[#allocation125_spill] sm:$0xff] %v25288_v10  ;;  %v16483_v11 = vpop.f32.mrb[76].mxu1 }
 0xc51   : > { %v16484_v26 = vpop.f32.mrb[77].mxu1 }
 0xc52   : > { %v16485_v7 = vadd.f32 %v16484_v26, %v16483_v11  ;;  %v17167_v2 = vpop.f32.mrb[100].mxu0  ;;  %v16486_v6 = vpop.f32.mrb[78].mxu1  ;;  %16992 = vmatpush3.bf16.msra.mxu1 %v19647_v23  ;;  %v27651_v23 = vld [vmem:[#allocation101_spill] sm:$0xff] }
 0xc53   : > { %v17168_v19 = vpop.f32.mrb[101].mxu0  ;;  %v16487_v34 = vpop.f32.mrb[79].mxu1  ;;  %16993 = vmatprep.subr.bf16.mxu1 %v19648_v4  ;;  %v27653_v4 = vld [vmem:[#allocation102_spill] sm:$0xff] }
 0xc54   : > { %v25304_v63 = vadd.f32 %v16485_v7, %v25062_v21  ;;  %v25306_v17 = vadd.f32 %v17168_v19, %v17167_v2  ;;  %v16488_v47 = vadd.f32 %v16487_v34, %v16486_v6  ;;  %v17170_v11 = vpop.f32.mrb[102].mxu0  ;;  %v19651_v21 = vld [vmem:[%s26859_s7 + $0x3a8] sm:$0xff]   ;;  %v19652_v7 = vld [vmem:[%s26859_s7 + $0x3f0] sm:$0xff]  }
 0xc55   : > { %v17171_v26 = vpop.f32.mrb[103].mxu0  ;;  %11446 = vmatmul.mubr.bf16.gmra.mrb[184].mxu1 %v27651_v23 }
 0xc56   : > { %27650 = vst [vmem:[#allocation85_spill] sm:$0xff] %v25306_v17  ;;  %v25310_v10 = vadd.f32 %v16488_v47, %v25068_v35  ;;  %v25312_v36 = vadd.f32 %v17171_v26, %v17170_v11  ;;  %11453 = vmatprep.mubr.bf16.mxu1 %v27653_v4  ;;  %16994 = vmatpush3.bf16.msra.mxu1 %v19649_v9  ;;  %v19653_v47 = vld [vmem:[%s26859_s7 + $0x3b0] sm:$0xff]  }
 0xc57   : > { %16995 = vmatprep.subr.bf16.mxu1 %v19650_v0  ;;  %v19654_v0 = vld [vmem:[%s26859_s7 + $0x3f8] sm:$0xff]  }
 0xc58   : > { %27652 = vst [vmem:[#allocation86_spill] sm:$0xff] %v25312_v36  ;;  %v16489_v2 = vpop.f32.mrb[80].mxu1 }
 0xc59   : > { %v16490_v6 = vpop.f32.mrb[81].mxu1 }
 0xc5a   : > { %v16491_v19 = vadd.f32 %v16490_v6, %v16489_v2  ;;  %v17173_v34 = vpop.f32.mrb[104].mxu0  ;;  %v16492_v35 = vpop.f32.mrb[82].mxu1  ;;  %16996 = vmatpush3.bf16.msra.mxu1 %v19651_v21  ;;  %v27655_v21 = vld [vmem:[#allocation69_spill] sm:$0xff] }
 0xc5b   : > { %v17174_v9 = vpop.f32.mrb[105].mxu0  ;;  %v16493_v11 = vpop.f32.mrb[83].mxu1  ;;  %16997 = vmatprep.subr.bf16.mxu1 %v19652_v7  ;;  %v27657_v7 = vld [vmem:[#allocation79_spill] sm:$0xff] }
 0xc5c   : > { %v25328_v26 = vadd.f32 %v16491_v19, %v25086_v20  ;;  %v25330_v23 = vadd.f32 %v17174_v9, %v17173_v34  ;;  %v16494_v4 = vadd.f32 %v16493_v11, %v16492_v35  ;;  %v17176_v2 = vpop.f32.mrb[106].mxu0  ;;  %v19655_v20 = vld [vmem:[%s26859_s7 + $0x3b8] sm:$0xff]  }
 0xc5d   : > { %v17177_v6 = vpop.f32.mrb[107].mxu0  ;;  %11454 = vmatmul.mubr.bf16.gmra.mrb[188].mxu1 %v27655_v21 }
 0xc5e   : > { %27654 = vst [vmem:[#allocation87_spill] sm:$0xff] %v25330_v23  ;;  %v25334_v36 = vadd.f32 %v16494_v4, %v25092_v37  ;;  %v25336_v17 = vadd.f32 %v17177_v6, %v17176_v2  ;;  %11461 = vmatprep.mubr.bf16.mxu1 %v27657_v7  ;;  %16998 = vmatpush3.bf16.msra.mxu1 %v19653_v47  ;;  %v27659_v7 = vld [vmem:[#allocation82_spill] sm:$0xff] }
 0xc5f   : > { %16999 = vmatprep.subr.bf16.mxu1 %v19654_v0 }
 0xc60   : > { %27656 = vst [vmem:[#allocation28_spill] sm:$0xff] %v25336_v17  ;;  %v16495_v19 = vpop.f32.mrb[84].mxu1 }
 0xc61   : > { %v16496_v34 = vpop.f32.mrb[85].mxu1 }
 0xc62   : > { %v16497_v35 = vadd.f32 %v16496_v34, %v16495_v19  ;;  %v17179_v9 = vpop.f32.mrb[108].mxu0  ;;  %v16498_v11 = vpop.f32.mrb[86].mxu1  ;;  %17000 = vmatpush3.bf16.msra.mxu1 %v19655_v20  ;;  %v27661_v19 = vld [vmem:[#allocation54_spill] sm:$0xff] }
 0xc63   : > { %v17180_v21 = vpop.f32.mrb[109].mxu0  ;;  %v16499_v23 = vpop.f32.mrb[87].mxu1 }
 0xc64   : > { %v25343_v37 = vadd.f32 %v16497_v35, %v25104_v22  ;;  %v25345_v4 = vadd.f32 %v17180_v21, %v17179_v9  ;;  %v16500_v2 = vadd.f32 %v16499_v23, %v16498_v11  ;;  %v17182_v47 = vpop.f32.mrb[110].mxu0 }
 0xc65   : > { %v17183_v6 = vpop.f32.mrb[111].mxu0  ;;  %11462 = vmatmul.mubr.bf16.gmra.mrb[192].mxu1 %v27659_v7 }
 0xc66   : > { %27658 = vst [vmem:[#allocation30_spill] sm:$0xff] %v25345_v4  ;;  %v25349_v0 = vadd.f32 %v16500_v2, %v25110_v55  ;;  %v25351_v17 = vadd.f32 %v17183_v6, %v17182_v47  ;;  %11469 = vmatprep.mubr.bf16.mxu1 %v27661_v19  ;;  %v27663_v2 = vld [vmem:[#allocation52_spill] sm:$0xff]  ;;  %v27665_v19 = vld [vmem:[#allocation41_spill] sm:$0xff] }
 0xc68   : > { %27660 = vst [vmem:[#allocation88_spill] sm:$0xff] %v25351_v17  ;;  %v16501_v20 = vpop.f32.mrb[88].mxu1 }
 0xc69   : > { %v16502_v34 = vpop.f32.mrb[89].mxu1 }
 0xc6a   : > { %v16503_v59 = vadd.f32 %v16502_v34, %v16501_v20  ;;  %v17185_v25 = vpop.f32.mrb[112].mxu0  ;;  %v16504_v22 = vpop.f32.mrb[90].mxu1 }
 0xc6b   : > { %v17186_v35 = vpop.f32.mrb[113].mxu0  ;;  %v16505_v9 = vpop.f32.mrb[91].mxu1 }
 0xc6c   : > { %v25355_v23 = vadd.f32 %v16503_v59, %v25116_v54  ;;  %v25357_v11 = vadd.f32 %v17186_v35, %v17185_v25  ;;  %v16506_v21 = vadd.f32 %v16505_v9, %v16504_v22  ;;  %v17188_v7 = vpop.f32.mrb[114].mxu0 }
 0xc6d   : > { %v17189_v55 = vpop.f32.mrb[115].mxu0  ;;  %11470 = vmatmul.mubr.bf16.gmra.mrb[196].mxu1 %v27663_v2 }
 0xc6e   : > { %27662 = vst [vmem:[#allocation89_spill] sm:$0xff] %v25357_v11  ;;  %v25361_v47 = vadd.f32 %v16506_v21, %v25122_v13  ;;  %v25363_v6 = vadd.f32 %v17189_v55, %v17188_v7  ;;  %11477 = vmatprep.mubr.bf16.mxu1 %v27665_v19  ;;  %v27667_v21 = vld [vmem:[#allocation39_spill] sm:$0xff] }
 0xc6f   : > { %v27669_v19 = vld [vmem:[#allocation51_spill] sm:$0xff] }
 0xc70   : > { %27664 = vst [vmem:[#allocation32_spill] sm:$0xff] %v25363_v6  ;;  %v16507_v20 = vpop.f32.mrb[92].mxu1 }
 0xc71   : > { %v16508_v34 = vpop.f32.mrb[93].mxu1 }
 0xc72   : > { %v16509_v17 = vadd.f32 %v16508_v34, %v16507_v20  ;;  %v17191_v4 = vpop.f32.mrb[116].mxu0  ;;  %v16510_v54 = vpop.f32.mrb[94].mxu1 }
 0xc73   : > { %v17192_v59 = vpop.f32.mrb[117].mxu0  ;;  %v16511_v25 = vpop.f32.mrb[95].mxu1 }
 0xc74   : > { %v25367_v22 = vadd.f32 %v16509_v17, %v25128_v43  ;;  %v25369_v35 = vadd.f32 %v17192_v59, %v17191_v4  ;;  %v16512_v9 = vadd.f32 %v16511_v25, %v16510_v54  ;;  %v17194_v2 = vpop.f32.mrb[118].mxu0 }
 0xc75   : > { %v17195_v13 = vpop.f32.mrb[119].mxu0  ;;  %11478 = vmatmul.mubr.bf16.gmra.mrb[200].mxu1 %v27667_v21 }
 0xc76   : > { %27666 = vst [vmem:[#allocation34_spill] sm:$0xff] %v25369_v35  ;;  %v25373_v7 = vadd.f32 %v16512_v9, %v25134_v38  ;;  %v25375_v55 = vadd.f32 %v17195_v13, %v17194_v2  ;;  %11485 = vmatprep.mubr.bf16.mxu1 %v27669_v19  ;;  %v27670_v9 = vld [vmem:[#allocation47_spill] sm:$0xff]  ;;  %v27672_v19 = vld [vmem:[#allocation38_spill] sm:$0xff] }
 0xc78   : > { %27668 = vst [vmem:[#allocation90_spill] sm:$0xff] %v25375_v55  ;;  %v16513_v20 = vpop.f32.mrb[96].mxu1 }
 0xc79   : > { %v16514_v34 = vpop.f32.mrb[97].mxu1 }
 0xc7a   : > { %v16515_v6 = vadd.f32 %v16514_v34, %v16513_v20  ;;  %v17197_v11 = vpop.f32.mrb[120].mxu0  ;;  %v16516_v43 = vpop.f32.mrb[98].mxu1 }
 0xc7b   : > { %v17198_v17 = vpop.f32.mrb[121].mxu0  ;;  %v16517_v4 = vpop.f32.mrb[99].mxu1 }
 0xc7c   : > { %v25379_v54 = vadd.f32 %v16515_v6, %v25140_v1  ;;  %v25381_v59 = vadd.f32 %v17198_v17, %v17197_v11  ;;  %v16518_v25 = vadd.f32 %v16517_v4, %v16516_v43  ;;  %v17200_v21 = vpop.f32.mrb[122].mxu0  ;;  %v27673_v43 = vld [vmem:[#allocation36_spill] sm:$0xff] }
 0xc7d   : > { %v17201_v38 = vpop.f32.mrb[123].mxu0  ;;  %11486 = vmatmul.mubr.bf16.gmra.mrb[204].mxu1 %v27670_v9 }
 0xc7e   : > { %v25385_v2 = vadd.f32 %v16518_v25, %v25146_v28  ;;  %v25387_v13 = vadd.f32 %v17201_v38, %v17200_v21  ;;  %11493 = vmatprep.mubr.bf16.mxu1 %v27672_v19  ;;  %v27674_v28 = vld [vmem:[#allocation56_spill] sm:$0xff] }
 0xc80   : > { %27671 = vst [vmem:[#allocation80_spill] sm:$0xff] %v25387_v13  ;;  %v16519_v20 = vpop.f32.mrb[100].mxu1 }
 0xc81   : > { %v16520_v34 = vpop.f32.mrb[101].mxu1 }
 0xc82   : > { %v16521_v55 = vadd.f32 %v16520_v34, %v16519_v20  ;;  %v16522_v35 = vpop.f32.mrb[102].mxu1  ;;  %v27675_v34 = vld [vmem:[#allocation46_spill] sm:$0xff] }
 0xc83   : > { %v16523_v1 = vpop.f32.mrb[103].mxu1 }
 0xc84   : > { %v25391_v11 = vadd.f32 %v16521_v55, %v25152_v24  ;;  %v16524_v6 = vadd.f32 %v16523_v1, %v16522_v35  ;;  %v27676_v35 = vld [vmem:[#allocation66_spill] sm:$0xff] }
 0xc85   : > { %11494 = vmatmul.mubr.bf16.gmra.mrb[208].mxu1 %v27673_v43 }
 0xc86   : > { %v25395_v17 = vadd.f32 %v16524_v6, %v25158_v29  ;;  %11501 = vmatprep.mubr.bf16.mxu1 %v27674_v28 }
 0xc88   : > { %v16525_v4 = vpop.f32.mrb[104].mxu1 }
 0xc89   : > { %v16526_v25 = vpop.f32.mrb[105].mxu1 }
 0xc8a   : > { %v16527_v21 = vadd.f32 %v16526_v25, %v16525_v4  ;;  %v16528_v38 = vpop.f32.mrb[106].mxu1  ;;  %v27677_v25 = vld [vmem:[#allocation64_spill] sm:$0xff] }
 0xc8b   : > { %v16529_v9 = vpop.f32.mrb[107].mxu1 }
 0xc8c   : > { %v25399_v19 = vadd.f32 %v16527_v21, %v25164_v16  ;;  %v16530_v20 = vadd.f32 %v16529_v9, %v16528_v38  ;;  %v27678_v21 = vld [vmem:[#allocation16_spill] sm:$0xff] }
 0xc8d   : > { %11502 = vmatmul.mubr.bf16.gmra.mrb[212].mxu1 %v27675_v34 }
 0xc8e   : > { %v25403_v24 = vadd.f32 %v16530_v20, %v25170_v15  ;;  %11509 = vmatprep.mubr.bf16.mxu1 %v27676_v35 }
 0xc90   : > { %v16531_v29 = vpop.f32.mrb[108].mxu1 }
 0xc91   : > { %v16532_v55 = vpop.f32.mrb[109].mxu1 }
 0xc92   : > { %v16533_v1 = vadd.f32 %v16532_v55, %v16531_v29  ;;  %v16534_v6 = vpop.f32.mrb[110].mxu1  ;;  %v27679_v55 = vld [vmem:[#allocation15_spill] sm:$0xff] }
 0xc93   : > { %v16535_v43 = vpop.f32.mrb[111].mxu1 }
 0xc94   : > { %v25407_v28 = vadd.f32 %v16533_v1, %v25176_v8  ;;  %v16536_v4 = vadd.f32 %v16535_v43, %v16534_v6  ;;  %v27680_v1 = vld [vmem:[#allocation24_spill] sm:$0xff]  ;;  %v27681_v6 = vld [vmem:[#allocation21_spill] sm:$0xff] }
 0xc95   : > { %11510 = vmatmul.mubr.bf16.gmra.mrb[216].mxu1 %v27677_v25 }
 0xc96   : > { %v25411_v16 = vadd.f32 %v16536_v4, %v25182_v44  ;;  %11517 = vmatprep.mubr.bf16.mxu1 %v27678_v21  ;;  %v27682_v4 = vld [vmem:[#allocation26_spill] sm:$0xff] }
 0xc98   : > { %v16553_v15 = vpop.f32.mrb[112].mxu1 }
 0xc99   : > { %v16554_v38 = vpop.f32.mrb[113].mxu1 }
 0xc9a   : > { %v16555_v9 = vadd.f32 %v16554_v38, %v16553_v15  ;;  %v16556_v20 = vpop.f32.mrb[114].mxu1 }
 0xc9b   : > { %v16557_v34 = vpop.f32.mrb[115].mxu1 }
 0xc9c   : > { %v11110_v35 = vadd.f32 %v16555_v9, %v25188_v18  ;;  %v16558_v29 = vadd.f32 %v16557_v34, %v16556_v20  ;;  %v27683_v20 = vld [vmem:[#allocation23_spill] sm:$0xff] }
 0xc9d   : > { %11518 = vmatmul.mubr.bf16.gmra.mrb[220].mxu1 %v27679_v55  ;;  %v27684_v34 = vld [vmem:[#allocation31_spill] sm:$0xff] }
 0xc9e   : > { %v11113_v8 = vadd.f32 %v16558_v29, %v25194_v50  ;;  %11525 = vmatprep.mubr.bf16.mxu1 %v27680_v1  ;;  %v25419_v43 = vadd.f32 %v27681_v6, %v11110_v35  ;;  %v27685_v29 = vld [vmem:[#allocation91_spill] sm:$0xff]  ;;  %v27686_v1 = vld [vmem:[#allocation92_spill] sm:$0xff] }
 0xca0   : > { %v16559_v44 = vpop.f32.mrb[116].mxu1  ;;  %v25422_v25 = vadd.f32 %v27682_v4, %v11113_v8 }
 0xca1   : > { %v16560_v21 = vpop.f32.mrb[117].mxu1 }
 0xca2   : > { %v16561_v15 = vadd.f32 %v16560_v21, %v16559_v44  ;;  %v16562_v38 = vpop.f32.mrb[118].mxu1 }
 0xca3   : > { %v16563_v13 = vpop.f32.mrb[119].mxu1 }
 0xca4   : > { %v11118_v18 = vadd.f32 %v16561_v15, %v25200_v27  ;;  %v16564_v9 = vadd.f32 %v16563_v13, %v16562_v38  ;;  %v27687_v15 = vld [vmem:[#allocation29_spill] sm:$0xff] }
 0xca5   : > { %11526 = vmatmul.mubr.bf16.gmra.mrb[224].mxu1 %v27683_v20  ;;  %v27688_v38 = vld [vmem:[#allocation93_spill] sm:$0xff]  ;;  %v27689_v20 = vld [vmem:[#allocation94_spill] sm:$0xff] }
 0xca6   : > { %v11121_v50 = vadd.f32 %v16564_v9, %v25206_v42  ;;  %11533 = vmatprep.mubr.bf16.mxu1 %v27684_v34  ;;  %v25429_v35 = vadd.f32 %v27685_v29, %v11118_v18 }
 0xca8   : > { %v16565_v55 = vpop.f32.mrb[120].mxu1  ;;  %v25432_v8 = vadd.f32 %v27686_v1, %v11121_v50 }
 0xca9   : > { %v16566_v6 = vpop.f32.mrb[121].mxu1 }
 0xcaa   : > { %v16567_v44 = vadd.f32 %v16566_v6, %v16565_v55  ;;  %v16568_v4 = vpop.f32.mrb[122].mxu1 }
 0xcab   : > { %v16569_v21 = vpop.f32.mrb[123].mxu1 }
 0xcac   : > { %v11126_v27 = vadd.f32 %v16567_v44, %v25212_v31  ;;  %v16570_v13 = vadd.f32 %v16569_v21, %v16568_v4  ;;  %v27690_v44 = vld [vmem:[#allocation37_spill] sm:$0xff]  ;;  %v27692_v4 = vld [vmem:[#allocation95_spill] sm:$0xff] }
 0xcad   : > { %11534 = vmatmul.mubr.bf16.gmra.mrb[228].mxu1 %v24904_v58 }
 0xcae   : > { %v11129_v42 = vadd.f32 %v16570_v13, %v25218_v40  ;;  %11541 = vmatprep.mubr.bf16.mxu1 %v27687_v15  ;;  %v25439_v18 = vadd.f32 %v27688_v38, %v11126_v27  ;;  %v27691_v40 = vld [vmem:[#allocation65_spill] sm:$0xff]  ;;  %v27693_v13 = vld [vmem:[#allocation40_spill] sm:$0xff] }
 0xcb0   : > { %v16571_v9 = vpop.f32.mrb[124].mxu1  ;;  %v25442_v50 = vadd.f32 %v27689_v20, %v11129_v42 }
 0xcb1   : > { %v16572_v34 = vpop.f32.mrb[125].mxu1 }
 0xcb2   : > { %v16573_v29 = vadd.f32 %v16572_v34, %v16571_v9  ;;  %v16574_v55 = vpop.f32.mrb[126].mxu1 }
 0xcb3   : > { %v16575_v1 = vpop.f32.mrb[127].mxu1 }
 0xcb4   : > { %v11134_v31 = vadd.f32 %v16573_v29, %v25224_v39  ;;  %v16576_v6 = vadd.f32 %v16575_v1, %v16574_v55  ;;  %v27694_v29 = vld [vmem:[#allocation71_spill] sm:$0xff]  ;;  %v27695_v55 = vld [vmem:[#allocation96_spill] sm:$0xff] }
 0xcb5   : > { %11542 = vmatmul.mubr.bf16.gmra.mrb[232].mxu1 %v27690_v44 }
 0xcb6   : > { %v11137_v58 = vadd.f32 %v16576_v6, %v25230_v57  ;;  %11549 = vmatprep.mubr.bf16.mxu1 %v27691_v40  ;;  %v25449_v21 = vadd.f32 %v27692_v4, %v11134_v31  ;;  %v27696_v6 = vld [vmem:[#allocation97_spill] sm:$0xff] }
 0xcb8   : > { %v16577_v27 = vpop.f32.mrb[128].mxu1  ;;  %v25452_v42 = vadd.f32 %v27693_v13, %v11137_v58 }
 0xcb9   : > { %v16578_v15 = vpop.f32.mrb[129].mxu1 }
 0xcba   : > { %v16579_v38 = vadd.f32 %v16578_v15, %v16577_v27  ;;  %v16580_v9 = vpop.f32.mrb[130].mxu1  ;;  %v27697_v15 = vld [vmem:[#allocation70_spill] sm:$0xff] }
 0xcbb   : > { %v16581_v20 = vpop.f32.mrb[131].mxu1 }
 0xcbc   : > { %v11142_v39 = vadd.f32 %v16579_v38, %v25236_v3  ;;  %v16582_v34 = vadd.f32 %v16581_v20, %v16580_v9  ;;  %v27699_v38 = vld [vmem:[#allocation99_spill] sm:$0xff] }
 0xcbd   : > { %11550 = vmatmul.mubr.bf16.gmra.mrb[236].mxu1 %v24950_v60 }
 0xcbe   : > { %v11145_v57 = vadd.f32 %v16582_v34, %v25242_v32  ;;  %12232 = vmatprep.mubr.bf16.mxu1 %v27694_v29  ;;  %v25459_v1 = vadd.f32 %v27695_v55, %v11142_v39  ;;  %v27698_v32 = vld [vmem:[#allocation77_spill] sm:$0xff]  ;;  %v27700_v39 = vld [vmem:[#allocation100_spill] sm:$0xff] }
 0xcc0   : > { %v16583_v31 = vpop.f32.mrb[132].mxu1  ;;  %v25462_v44 = vadd.f32 %v27696_v6, %v11145_v57 }
 0xcc1   : > { %v16584_v58 = vpop.f32.mrb[133].mxu1 }
 0xcc2   : > { %v16585_v40 = vadd.f32 %v16584_v58, %v16583_v31  ;;  %v16586_v4 = vpop.f32.mrb[134].mxu1  ;;  %v27701_v58 = vld [vmem:[#allocation76_spill] sm:$0xff] }
 0xcc3   : > { %v16587_v27 = vpop.f32.mrb[135].mxu1 }
 0xcc4   : > { %v11150_v3 = vadd.f32 %v16585_v40, %v25256_v33  ;;  %v16588_v13 = vadd.f32 %v16587_v27, %v16586_v4  ;;  %v27702_v40 = vld [vmem:[#allocation81_spill] sm:$0xff]  ;;  %v27703_v4 = vld [vmem:[#allocation75_spill] sm:$0xff] }
 0xcc5   : > { %12233 = vmatmul.mubr.bf16.vlgmr.msra.gmra.mrb[240].mxu1 %v27697_v15 }
 0xcc6   : > { %v11153_v60 = vadd.f32 %v16588_v13, %v25262_v41  ;;  %12240 = vmatprep.mubr.bf16.mxu1 %v27698_v32  ;;  %v25469_v9 = vadd.f32 %v27699_v38, %v11150_v3  ;;  %v27704_v13 = vld [vmem:[#allocation74_spill] sm:$0xff] }
 0xcc8   : > { %v16589_v20 = vpop.f32.mrb[136].mxu1  ;;  %v25472_v34 = vadd.f32 %v27700_v39, %v11153_v60 }
 0xcc9   : > { %v16590_v57 = vpop.f32.mrb[137].mxu1 }
 0xcca   : > { %v16591_v29 = vadd.f32 %v16590_v57, %v16589_v20  ;;  %v16592_v55 = vpop.f32.mrb[138].mxu1  ;;  %v27705_v57 = vld [vmem:[#allocation18_spill] sm:$0xff] }
 0xccb   : > { %v16593_v31 = vpop.f32.mrb[139].mxu1 }
 0xccc   : > { %v11158_v33 = vadd.f32 %v16591_v29, %v25280_v61  ;;  %v16594_v6 = vadd.f32 %v16593_v31, %v16592_v55  ;;  %v27706_v29 = vld [vmem:[#allocation50_spill] sm:$0xff]  ;;  %v27707_v55 = vld [vmem:[#allocation83_spill] sm:$0xff] }
 0xccd   : > { %12241 = vmatmul.mubr.bf16.gmra.mrb[244].mxu1 %v27701_v58 }
 0xcce   : > { %v11161_v41 = vadd.f32 %v16594_v6, %v25286_v46  ;;  %12248 = vmatprep.mubr.bf16.mxu1 %v27702_v40  ;;  %v25479_v27 = vadd.f32 %v27703_v4, %v11158_v33  ;;  %v27708_v6 = vld [vmem:[#allocation103_spill] sm:$0xff] }
 0xcd0   : > { %v16595_v3 = vpop.f32.mrb[140].mxu1  ;;  %v25482_v15 = vadd.f32 %v27704_v13, %v11161_v41 }
 0xcd1   : > { %v16596_v60 = vpop.f32.mrb[141].mxu1 }
 0xcd2   : > { %v16597_v32 = vadd.f32 %v16596_v60, %v16595_v3  ;;  %v16598_v38 = vpop.f32.mrb[142].mxu1  ;;  %v27709_v60 = vld [vmem:[#allocation48_spill] sm:$0xff] }
 0xcd3   : > { %v16599_v20 = vpop.f32.mrb[143].mxu1 }
 0xcd4   : > { %v11166_v61 = vadd.f32 %v16597_v32, %v25304_v63  ;;  %v16600_v39 = vadd.f32 %v16599_v20, %v16598_v38  ;;  %v27710_v32 = vld [vmem:[#allocation12_spill] sm:$0xff] }
 0xcd5   : > { %12249 = vmatmul.mubr.bf16.gmra.mrb[248].mxu1 %v27705_v57  ;;  %v27711_v38 = vld [vmem:[#allocation104_spill] sm:$0xff] }
 0xcd6   : > { %v11169_v46 = vadd.f32 %v16600_v39, %v25310_v10  ;;  %12256 = vmatprep.mubr.bf16.mxu1 %v27706_v29  ;;  %v25489_v31 = vadd.f32 %v27707_v55, %v11166_v61  ;;  %v27712_v39 = vld [vmem:[#allocation105_spill] sm:$0xff] }
 0xcd8   : > { %v16601_v33 = vpop.f32.mrb[144].mxu1  ;;  %v25492_v58 = vadd.f32 %v27708_v6, %v11169_v46 }
 0xcd9   : > { %v16602_v41 = vpop.f32.mrb[145].mxu1 }
 0xcda   : > { %v16603_v40 = vadd.f32 %v16602_v41, %v16601_v33  ;;  %v16604_v4 = vpop.f32.mrb[146].mxu1  ;;  %v27713_v41 = vld [vmem:[#allocation11_spill] sm:$0xff] }
 0xcdb   : > { %v16605_v3 = vpop.f32.mrb[147].mxu1 }
 0xcdc   : > { %v11174_v63 = vadd.f32 %v16603_v40, %v25328_v26  ;;  %v16606_v13 = vadd.f32 %v16605_v3, %v16604_v4  ;;  %v27714_v40 = vld [vmem:[#allocation45_spill] sm:$0xff]  ;;  %v27715_v4 = vld [vmem:[#allocation106_spill] sm:$0xff] }
 0xcdd   : > { %12257 = vmatmul.mubr.bf16.gmra.mrb[252].mxu1 %v27709_v60 }
 0xcde   : > { %v11177_v10 = vadd.f32 %v16606_v13, %v25334_v36  ;;  %12264 = vmatprep.mubr.bf16.mxu1 %v27710_v32  ;;  %v25499_v20 = vadd.f32 %v27711_v38, %v11174_v63  ;;  %v27716_v13 = vld [vmem:[#allocation107_spill] sm:$0xff] }
 0xce0   : > { %v16607_v61 = vpop.f32.mrb[148].mxu1  ;;  %v25502_v57 = vadd.f32 %v27712_v39, %v11177_v10 }
 0xce1   : > { %v16608_v46 = vpop.f32.mrb[149].mxu1 }
 0xce2   : > { %v16609_v29 = vadd.f32 %v16608_v46, %v16607_v61  ;;  %v16610_v55 = vpop.f32.mrb[150].mxu1  ;;  %v27717_v46 = vld [vmem:[#allocation43_spill] sm:$0xff] }
 0xce3   : > { %v16611_v33 = vpop.f32.mrb[151].mxu1 }
 0xce4   : > { %v11182_v26 = vadd.f32 %v16609_v29, %v25343_v37  ;;  %v16612_v6 = vadd.f32 %v16611_v33, %v16610_v55  ;;  %v27718_v29 = vld [vmem:[#allocation57_spill] sm:$0xff]  ;;  %v27719_v55 = vld [vmem:[#allocation108_spill] sm:$0xff] }
 0xce5   : > { %12265 = vmatmul.mubr.bf16.gmra.mrb[0].mxu1 %v27713_v41 }
 0xce6   : > { %v11185_v36 = vadd.f32 %v16612_v6, %v25349_v0  ;;  %12272 = vmatprep.mubr.bf16.mxu1 %v27714_v40  ;;  %v25509_v3 = vadd.f32 %v27715_v4, %v11182_v26  ;;  %v27720_v6 = vld [vmem:[#allocation109_spill] sm:$0xff] }
 0xce8   : > { %v16613_v63 = vpop.f32.mrb[152].mxu1  ;;  %v25512_v60 = vadd.f32 %v27716_v13, %v11185_v36  ;;  %v19656_v36 = vld [vmem:[%s26861_s9 + $0x140] sm:$0xff]  }
 0xce9   : > { %v16614_v10 = vpop.f32.mrb[153].mxu1  ;;  %17617 = vmatprep.subr.bf16.mxu0 %v19656_v36 }
 0xcea   : > { %v16615_v32 = vadd.f32 %v16614_v10, %v16613_v63  ;;  %v16616_v38 = vpop.f32.mrb[154].mxu1  ;;  %17618 = vmatpush3.bf16.msra.mxu0 %v19656_v36  ;;  %v27721_v10 = vld [vmem:[#allocation55_spill] sm:$0xff] }
 0xceb   : > { %v16617_v61 = vpop.f32.mrb[155].mxu1 }
 0xcec   : > { %v11190_v37 = vadd.f32 %v16615_v32, %v25355_v23  ;;  %v16618_v39 = vadd.f32 %v16617_v61, %v16616_v38  ;;  %v27722_v38 = vld [vmem:[#allocation44_spill] sm:$0xff]  ;;  %v27723_v61 = vld [vmem:[#allocation110_spill] sm:$0xff] }
 0xced   : > { %12273 = vmatmul.mubr.bf16.gmra.mrb[4].mxu1 %v27717_v46  ;;  %v27724_v46 = vld [vmem:[#allocation111_spill] sm:$0xff] }
 0xcee   : > { %v11193_v0 = vadd.f32 %v16618_v39, %v25361_v47  ;;  %12280 = vmatprep.mubr.bf16.mxu1 %v27718_v29  ;;  %v25519_v33 = vadd.f32 %v27719_v55, %v11190_v37 }
 0xcf0   : > { %v16619_v26 = vpop.f32.mrb[156].mxu1  ;;  %v25522_v41 = vadd.f32 %v27720_v6, %v11193_v0 }
 0xcf1   : > { %v16620_v40 = vpop.f32.mrb[157].mxu1 }
 0xcf2   : > { %v16621_v23 = vadd.f32 %v16620_v40, %v16619_v26  ;;  %v16622_v4 = vpop.f32.mrb[158].mxu1  ;;  %v27725_v40 = vld [vmem:[#allocation42_spill] sm:$0xff] }
 0xcf3   : > { %v16623_v63 = vpop.f32.mrb[159].mxu1 }
 0xcf4   : > { %v11198_v47 = vadd.f32 %v16621_v23, %v25367_v22  ;;  %v16624_v13 = vadd.f32 %v16623_v63, %v16622_v4  ;;  %v27726_v23 = vld [vmem:[#allocation60_spill] sm:$0xff] }
 0xcf5   : > { %12281 = vmatmul.mubr.bf16.gmra.mrb[8].mxu1 %v27721_v10  ;;  %v27727_v4 = vld [vmem:[#allocation112_spill] sm:$0xff] }
 0xcf6   : > { %v11201_v32 = vadd.f32 %v16624_v13, %v25373_v7  ;;  %12288 = vmatprep.mubr.bf16.mxu1 %v27722_v38  ;;  %v25532_v37 = vadd.f32 %v27723_v61, %v11198_v47  ;;  %v27728_v13 = vld [vmem:[#allocation113_spill] sm:$0xff] }
 0xcf8   : > { %v16625_v39 = vpop.f32.mrb[160].mxu1  ;;  %v25535_v0 = vadd.f32 %v27724_v46, %v11201_v32  ;;  %v19657_v32 = vld [vmem:[%s26861_s9 + $0x148] sm:$0xff]  }
 0xcf9   : > { %v16626_v29 = vpop.f32.mrb[161].mxu1  ;;  %17619 = vmatprep.subr.bf16.mxu0 %v19657_v32 }
 0xcfa   : > { %v16627_v55 = vadd.f32 %v16626_v29, %v16625_v39  ;;  %v16628_v26 = vpop.f32.mrb[162].mxu1  ;;  %17620 = vmatpush3.bf16.msra.mxu0 %v19657_v32  ;;  %v27729_v29 = vld [vmem:[#allocation58_spill] sm:$0xff] }
 0xcfb   : > { %v16629_v6 = vpop.f32.mrb[163].mxu1 }
 0xcfc   : > { %v11206_v22 = vadd.f32 %v16627_v55, %v25379_v54  ;;  %v16630_v36 = vadd.f32 %v16629_v6, %v16628_v26  ;;  %v27730_v26 = vld [vmem:[#allocation14_spill] sm:$0xff] }
 0xcfd   : > { %12289 = vmatmul.mubr.bf16.gmra.mrb[12].mxu1 %v27725_v40  ;;  %v27731_v6 = vld [vmem:[#allocation114_spill] sm:$0xff]  ;;  %v27732_v40 = vld [vmem:[#allocation115_spill] sm:$0xff] }
 0xcfe   : > { %v11209_v7 = vadd.f32 %v16630_v36, %v25385_v2  ;;  %12296 = vmatprep.mubr.bf16.mxu1 %v27726_v23  ;;  %v25542_v63 = vadd.f32 %v27727_v4, %v11206_v22 }
 0xd00   : > { %v16631_v47 = vpop.f32.mrb[164].mxu1  ;;  %v25545_v10 = vadd.f32 %v27728_v13, %v11209_v7 }
 0xd01   : > { %v16632_v38 = vpop.f32.mrb[165].mxu1 }
 0xd02   : > { %v16633_v54 = vadd.f32 %v16632_v38, %v16631_v47  ;;  %v16634_v61 = vpop.f32.mrb[166].mxu1  ;;  %v27733_v38 = vld [vmem:[#allocation13_spill] sm:$0xff] }
 0xd03   : > { %v16635_v39 = vpop.f32.mrb[167].mxu1 }
 0xd04   : > { %v11214_v2 = vadd.f32 %v16633_v54, %v25391_v11  ;;  %v16636_v46 = vadd.f32 %v16635_v39, %v16634_v61  ;;  %v27734_v54 = vld [vmem:[#allocation20_spill] sm:$0xff] }
 0xd05   : > { %12297 = vmatmul.mubr.bf16.gmra.mrb[16].mxu1 %v27729_v29  ;;  %v27735_v61 = vld [vmem:[#allocation116_spill] sm:$0xff] }
 0xd06   : > { %v11217_v55 = vadd.f32 %v16636_v46, %v25395_v17  ;;  %12304 = vmatprep.mubr.bf16.mxu1 %v27730_v26  ;;  %v25555_v22 = vadd.f32 %v27731_v6, %v11214_v2  ;;  %v27736_v46 = vld [vmem:[#allocation117_spill] sm:$0xff] }
 0xd08   : > { %v16637_v36 = vpop.f32.mrb[168].mxu1  ;;  %v25558_v7 = vadd.f32 %v27732_v40, %v11217_v55  ;;  %v19658_v55 = vld [vmem:[%s26861_s9 + $0x150] sm:$0xff]  }
 0xd09   : > { %v16638_v23 = vpop.f32.mrb[169].mxu1  ;;  %17621 = vmatprep.subr.bf16.mxu0 %v19658_v55 }
 0xd0a   : > { %v16639_v4 = vadd.f32 %v16638_v23, %v16637_v36  ;;  %v16640_v47 = vpop.f32.mrb[170].mxu1  ;;  %17622 = vmatpush3.bf16.msra.mxu0 %v19658_v55  ;;  %v19659_v23 = vld [vmem:[%s26861_s9 + $0x100] sm:$0xff]  }
 0xd0b   : > { %v16641_v13 = vpop.f32.mrb[171].mxu1  ;;  %17209 = vmatprep.subr.bf16.mxu1 %v19659_v23 }
 0xd0c   : > { %v11222_v11 = vadd.f32 %v16639_v4, %v25399_v19  ;;  %v16642_v32 = vadd.f32 %v16641_v13, %v16640_v47  ;;  %v19660_v4 = vld [vmem:[%s26861_s9 + $0xc0] sm:$0xff]   ;;  %v27737_v47 = vld [vmem:[#allocation19_spill] sm:$0xff] }
 0xd0d   : > { %12305 = vmatmul.mubr.bf16.gmra.mrb[20].mxu1 %v27733_v38 }
 0xd0e   : > { %v11225_v17 = vadd.f32 %v16642_v32, %v25403_v24  ;;  %12312 = vmatprep.mubr.bf16.mxu1 %v27734_v54  ;;  %v25565_v39 = vadd.f32 %v27735_v61, %v11222_v11  ;;  %v27738_v11 = vld [vmem:[#allocation27_spill] sm:$0xff]  ;;  %v27739_v32 = vld [vmem:[#allocation118_spill] sm:$0xff]  ;;  %17210 = vmatpush3.bf16.msra.mxu1 %v19660_v4 }
 0xd0f   : > { %v27740_v61 = vld [vmem:[#allocation119_spill] sm:$0xff] }
 0xd10   : > { %v16643_v2 = vpop.f32.mrb[172].mxu1  ;;  %v25568_v29 = vadd.f32 %v27736_v46, %v11225_v17  ;;  %v19662_v17 = vld [vmem:[%s26861_s9 + $0xc8] sm:$0xff]   ;;  %v27742_v4 = vld [vmem:[#allocation35_spill] sm:$0xff] }
 0xd11   : > { %v16644_v26 = vpop.f32.mrb[173].mxu1 }
 0xd12   : > { %v16645_v19 = vadd.f32 %v16644_v26, %v16643_v2  ;;  %v16646_v6 = vpop.f32.mrb[174].mxu1 }
 0xd13   : > { %v16647_v36 = vpop.f32.mrb[175].mxu1 }
 0xd14   : > { %v11230_v24 = vadd.f32 %v16645_v19, %v25407_v28  ;;  %v16648_v40 = vadd.f32 %v16647_v36, %v16646_v6  ;;  %v19661_v28 = vld [vmem:[%s26861_s9 + $0x108] sm:$0xff]   ;;  %v19663_v36 = vld [vmem:[%s26861_s9 + $0x110] sm:$0xff]  }
 0xd15   : > { %12313 = vmatmul.mubr.bf16.gmra.mrb[24].mxu1 %v27737_v47  ;;  %17211 = vmatprep.subr.bf16.mxu1 %v19661_v28  ;;  %v19665_v47 = vld [vmem:[%s26861_s9 + $0x118] sm:$0xff]  }
 0xd16   : > { %v11233_v13 = vadd.f32 %v16648_v40, %v25411_v16  ;;  %12320 = vmatprep.mubr.bf16.mxu1 %v27738_v11  ;;  %v25584_v38 = vadd.f32 %v27739_v32, %v11230_v24  ;;  %17212 = vmatpush3.bf16.msra.mxu1 %v19662_v17  ;;  %v27741_v24 = vld [vmem:[#allocation25_spill] sm:$0xff]  ;;  %v19664_v40 = vld [vmem:[%s26861_s9 + $0xd0] sm:$0xff]   ;;  %v19666_v11 = vld [vmem:[%s26861_s9 + $0xd8] sm:$0xff]  }
 0xd17   : > { %17213 = vmatprep.subr.bf16.mxu1 %v19663_v36  ;;  %v19670_v36 = vld [vmem:[%s26861_s9 + $0x128] sm:$0xff]  }
 0xd18   : > { %v16777_v54 = vpop.f32.mrb[176].mxu1  ;;  %v25593_v2 = vadd.f32 %v27740_v61, %v11233_v13  ;;  %v19668_v61 = vld [vmem:[%s26861_s9 + $0x120] sm:$0xff]  }
 0xd19   : > { %v16778_v16 = vpop.f32.mrb[177].mxu1 }
 0xd1a   : > { %v16779_v46 = vadd.f32 %v16778_v16, %v16777_v54  ;;  %v16780_v55 = vpop.f32.mrb[178].mxu1  ;;  %17214 = vmatpush3.bf16.msra.mxu1 %v19664_v40  ;;  %v27743_v16 = vld [vmem:[#allocation33_spill] sm:$0xff] }
 0xd1b   : > { %v16781_v26 = vpop.f32.mrb[179].mxu1  ;;  %17215 = vmatprep.subr.bf16.mxu1 %v19665_v47 }
 0xd1c   : > { %v25596_v19 = vadd.f32 %v16779_v46, %v25419_v43  ;;  %v16782_v6 = vadd.f32 %v16781_v26, %v16780_v55  ;;  %v19669_v46 = vld [vmem:[%s26861_s9 + $0xe0] sm:$0xff]   ;;  %v27744_v26 = vld [vmem:[#allocation59_spill] sm:$0xff] }
 0xd1d   : > { %12321 = vmatmul.mubr.bf16.gmra.mrb[28].mxu1 %v27741_v24 }
 0xd1e   : > { %v25606_v23 = vadd.f32 %v16782_v6, %v25422_v25  ;;  %12328 = vmatprep.mubr.bf16.mxu1 %v27742_v4  ;;  %17216 = vmatpush3.bf16.msra.mxu1 %v19666_v11  ;;  %v19672_v11 = vld [vmem:[%s26861_s9 + $0x130] sm:$0xff]  }
 0xd1f   : > { %17217 = vmatprep.subr.bf16.mxu1 %v19668_v61 }
 0xd20   : > { %v16783_v43 = vpop.f32.mrb[180].mxu1 }
 0xd21   : > { %v16784_v13 = vpop.f32.mrb[181].mxu1 }
 0xd22   : > { %v16785_v32 = vadd.f32 %v16784_v13, %v16783_v43  ;;  %v16786_v28 = vpop.f32.mrb[182].mxu1  ;;  %17218 = vmatpush3.bf16.msra.mxu1 %v19669_v46  ;;  %v19676_v46 = vld [vmem:[%s26861_s9 + $0x168] sm:$0xff]  }
 0xd23   : > { %v16787_v17 = vpop.f32.mrb[183].mxu1  ;;  %17219 = vmatprep.subr.bf16.mxu1 %v19670_v36 }
 0xd24   : > { %v25616_v25 = vadd.f32 %v16785_v32, %v25429_v35  ;;  %v16788_v54 = vadd.f32 %v16787_v17, %v16786_v28  ;;  %v19667_v35 = vld [vmem:[%s26861_s9 + $0x158] sm:$0xff]   ;;  %v19673_v32 = vld [vmem:[%s26861_s9 + $0x160] sm:$0xff]   ;;  %v27745_v28 = vld [vmem:[#allocation53_spill] sm:$0xff] }
 0xd25   : > { %12329 = vmatmul.mubr.bf16.gmra.mrb[32].mxu1 %v27743_v16  ;;  %17623 = vmatprep.subr.bf16.mxu0 %v19667_v35  ;;  %v19674_v17 = vld [vmem:[%s26861_s9 + $0xf0] sm:$0xff]   ;;  %v19675_v16 = vld [vmem:[%s26861_s9 + $0x138] sm:$0xff]  }
 0xd26   : > { %v25626_v55 = vadd.f32 %v16788_v54, %v25432_v8  ;;  %12336 = vmatprep.mubr.bf16.mxu1 %v27744_v26  ;;  %17624 = vmatpush3.bf16.msra.mxu0 %v19667_v35  ;;  %v19671_v8 = vld [vmem:[%s26861_s9 + $0xe8] sm:$0xff]  }
 0xd27   : > { %17220 = vmatpush3.bf16.msra.mxu1 %v19671_v8  ;;  %17625 = vmatprep.subr.bf16.mxu0 %v19673_v32 }
 0xd28   : > { %v16789_v6 = vpop.f32.mrb[184].mxu1  ;;  %17221 = vmatprep.subr.bf16.mxu1 %v19672_v11 }
 0xd29   : > { %v16790_v24 = vpop.f32.mrb[185].mxu1 }
 0xd2a   : > { %v16791_v40 = vadd.f32 %v16790_v24, %v16789_v6  ;;  %v16792_v4 = vpop.f32.mrb[186].mxu1  ;;  %17626 = vmatpush3.bf16.msra.mxu0 %v19673_v32 }
 0xd2b   : > { %v16793_v43 = vpop.f32.mrb[187].mxu1  ;;  %17222 = vmatpush3.bf16.msra.mxu1 %v19674_v17  ;;  %17627 = vmatprep.subr.bf16.mxu0 %v19676_v46 }
 0xd2c   : > { %v25639_v47 = vadd.f32 %v16791_v40, %v25439_v18  ;;  %v16794_v13 = vadd.f32 %v16793_v43, %v16792_v4  ;;  %v27746_v18 = vld [vmem:[#allocation68_spill] sm:$0xff]  ;;  %17223 = vmatprep.subr.bf16.mxu1 %v19675_v16  ;;  %v19678_v40 = vld [vmem:[%s26861_s9 + $0x170] sm:$0xff]   ;;  %v27747_v4 = vld [vmem:[#allocation67_spill] sm:$0xff] }
 0xd2d   : > { %12337 = vmatmul.mubr.bf16.gmra.mrb[36].mxu1 %v27745_v28 }
 0xd2e   : > { %v25652_v54 = vadd.f32 %v16794_v13, %v25442_v50  ;;  %12344 = vmatprep.mubr.bf16.mxu1 %v27746_v18  ;;  %v19677_v50 = vld [vmem:[%s26861_s9 + $0xf8] sm:$0xff]   ;;  %17628 = vmatpush3.bf16.msra.mxu0 %v19676_v46 }
 0xd2f   : > { %17224 = vmatpush3.bf16.msra.mxu1 %v19677_v50  ;;  %17629 = vmatprep.subr.bf16.mxu0 %v19678_v40 }
 0xd30   : > { %v16795_v61 = vpop.f32.mrb[188].mxu1 }
 0xd31   : > { %v16796_v26 = vpop.f32.mrb[189].mxu1 }
 0xd32   : > { %v16797_v35 = vadd.f32 %v16796_v26, %v16795_v61  ;;  %v16798_v6 = vpop.f32.mrb[190].mxu1  ;;  %17630 = vmatpush3.bf16.msra.mxu0 %v19678_v40 }
 0xd33   : > { %v16799_v36 = vpop.f32.mrb[191].mxu1 }
 0xd34   : > { %v25665_v24 = vadd.f32 %v16797_v35, %v25449_v21  ;;  %v16800_v8 = vadd.f32 %v16799_v36, %v16798_v6  ;;  %v19679_v21 = vld [vmem:[%s26861_s9 + $0x178] sm:$0xff]  }
 0xd35   : > { %12345 = vmatmul.mubr.bf16.gmra.mrb[40].mxu1 %v27747_v4  ;;  %17631 = vmatprep.subr.bf16.mxu0 %v19679_v21 }
 0xd36   : > { %v25672_v43 = vadd.f32 %v16800_v8, %v25452_v42  ;;  %12352 = vmatprep.mubr.bf16.mxu1 %v25246_v30  ;;  %17632 = vmatpush3.bf16.msra.mxu0 %v19679_v21 }
 0xd38   : > { %v16801_v13 = vpop.f32.mrb[192].mxu1 }
 0xd39   : > { %v16802_v11 = vpop.f32.mrb[193].mxu1 }
 0xd3a   : > { %v16803_v32 = vadd.f32 %v16802_v11, %v16801_v13  ;;  %v16804_v28 = vpop.f32.mrb[194].mxu1 }
 0xd3b   : > { %v16805_v17 = vpop.f32.mrb[195].mxu1 }
 0xd3c   : > { %v25679_v18 = vadd.f32 %v16803_v32, %v25459_v1  ;;  %v16806_v61 = vadd.f32 %v16805_v17, %v16804_v28 }
 0xd3d   : > { %12353 = vmatmul.mubr.bf16.gmra.mrb[44].mxu1 %v25246_v30 }
 0xd3e   : > { %v25683_v42 = vadd.f32 %v16806_v61, %v25462_v44 }
 0xd40   : > { %v16807_v16 = vpop.f32.mrb[196].mxu1 }
 0xd41   : > { %v16808_v46 = vpop.f32.mrb[197].mxu1 }
 0xd42   : > { %v16809_v26 = vadd.f32 %v16808_v46, %v16807_v16  ;;  %v16810_v50 = vpop.f32.mrb[198].mxu1 }
 0xd43   : > { %v16811_v35 = vpop.f32.mrb[199].mxu1 }
 0xd44   : > { %v25686_v6 = vadd.f32 %v16809_v26, %v25469_v9  ;;  %v16812_v36 = vadd.f32 %v16811_v35, %v16810_v50 }
 0xd46   : > { %v25689_v8 = vadd.f32 %v16812_v36, %v25472_v34 }
 0xd48   : > { %v16813_v1 = vpop.f32.mrb[200].mxu1 }
 0xd49   : > { %v16814_v40 = vpop.f32.mrb[201].mxu1 }
 0xd4a   : > { %v16815_v4 = vadd.f32 %v16814_v40, %v16813_v1  ;;  %v16816_v13 = vpop.f32.mrb[202].mxu1 }
 0xd4b   : > { %v16817_v30 = vpop.f32.mrb[203].mxu1 }
 0xd4c   : > { %v25692_v44 = vadd.f32 %v16815_v4, %v25479_v27  ;;  %v16818_v21 = vadd.f32 %v16817_v30, %v16816_v13 }
 0xd4e   : > { %v25695_v11 = vadd.f32 %v16818_v21, %v25482_v15 }
 0xd50   : > { %v16819_v32 = vpop.f32.mrb[204].mxu1 }
 0xd51   : > { %v16820_v28 = vpop.f32.mrb[205].mxu1 }
 0xd52   : > { %v16821_v9 = vadd.f32 %v16820_v28, %v16819_v32  ;;  %v16822_v17 = vpop.f32.mrb[206].mxu1 }
 0xd53   : > { %v16823_v61 = vpop.f32.mrb[207].mxu1 }
 0xd54   : > { %v25698_v34 = vadd.f32 %v16821_v9, %v25489_v31  ;;  %v16824_v16 = vadd.f32 %v16823_v61, %v16822_v17 }
 0xd56   : > { %v25701_v46 = vadd.f32 %v16824_v16, %v25492_v58 }
 0xd58   : > { %v16825_v26 = vpop.f32.mrb[208].mxu1 }
 0xd59   : > { %v16826_v50 = vpop.f32.mrb[209].mxu1 }
 0xd5a   : > { %v16827_v27 = vadd.f32 %v16826_v50, %v16825_v26  ;;  %v16828_v35 = vpop.f32.mrb[210].mxu1 }
 0xd5b   : > { %v16829_v36 = vpop.f32.mrb[211].mxu1 }
 0xd5c   : > { %v25704_v15 = vadd.f32 %v16827_v27, %v25499_v20  ;;  %v16830_v1 = vadd.f32 %v16829_v36, %v16828_v35 }
 0xd5e   : > { %v25707_v40 = vadd.f32 %v16830_v1, %v25502_v57 }
 0xd60   : > { %v16831_v4 = vpop.f32.mrb[212].mxu1 }
 0xd61   : > { %v16832_v13 = vpop.f32.mrb[213].mxu1 }
 0xd62   : > { %v16833_v31 = vadd.f32 %v16832_v13, %v16831_v4  ;;  %v16834_v30 = vpop.f32.mrb[214].mxu1 }
 0xd63   : > { %v16835_v21 = vpop.f32.mrb[215].mxu1 }
 0xd64   : > { %v25710_v58 = vadd.f32 %v16833_v31, %v25509_v3  ;;  %v16836_v32 = vadd.f32 %v16835_v21, %v16834_v30 }
 0xd66   : > { %v25713_v28 = vadd.f32 %v16836_v32, %v25512_v60 }
 0xd68   : > { %v16837_v9 = vpop.f32.mrb[216].mxu1 }
 0xd69   : > { %v16838_v17 = vpop.f32.mrb[217].mxu1 }
 0xd6a   : > { %v16839_v20 = vadd.f32 %v16838_v17, %v16837_v9  ;;  %v16840_v61 = vpop.f32.mrb[218].mxu1 }
 0xd6b   : > { %v16841_v16 = vpop.f32.mrb[219].mxu1 }
 0xd6c   : > { %v25716_v57 = vadd.f32 %v16839_v20, %v25519_v33  ;;  %v16842_v26 = vadd.f32 %v16841_v16, %v16840_v61  ;;  %v25730_v33 = vld [vmem:[%s26861_s9 + $0x80] sm:$0xff]  }
 0xd6d   : > { %17665 = vmatprep.subr.bf16.mxu0 %v25730_v33 }
 0xd6e   : > { %v25719_v50 = vadd.f32 %v16842_v26, %v25522_v41 }
 0xd70   : > { %v16843_v27 = vpop.f32.mrb[220].mxu1 }
 0xd71   : > { %v16844_v35 = vpop.f32.mrb[221].mxu1 }
 0xd72   : > { %v16845_v3 = vadd.f32 %v16844_v35, %v16843_v27  ;;  %v16846_v36 = vpop.f32.mrb[222].mxu1 }
 0xd73   : > { %v16847_v1 = vpop.f32.mrb[223].mxu1 }
 0xd74   : > { %v25722_v60 = vadd.f32 %v16845_v3, %v25532_v37  ;;  %v16848_v4 = vadd.f32 %v16847_v1, %v16846_v36 }
 0xd76   : > { %v25725_v13 = vadd.f32 %v16848_v4, %v25535_v0 }
 0xd78   : > { %v16849_v31 = vpop.f32.mrb[224].mxu1 }
 0xd79   : > { %v16850_v41 = vpop.f32.mrb[225].mxu1 }
 0xd7a   : > { %v16851_v30 = vadd.f32 %v16850_v41, %v16849_v31  ;;  %v16852_v21 = vpop.f32.mrb[226].mxu1 }
 0xd7b   : > { %v16853_v32 = vpop.f32.mrb[227].mxu1 }
 0xd7c   : > { %v25734_v9 = vadd.f32 %v16851_v30, %v25542_v63  ;;  %v16854_v37 = vadd.f32 %v16853_v32, %v16852_v21 }
 0xd7e   : > { %v25737_v17 = vadd.f32 %v16854_v37, %v25545_v10 }
 0xd80   : > { %v16855_v0 = vpop.f32.mrb[228].mxu1 }
 0xd81   : > { %v16856_v20 = vpop.f32.mrb[229].mxu1 }
 0xd82   : > { %v16857_v61 = vadd.f32 %v16856_v20, %v16855_v0  ;;  %v16858_v16 = vpop.f32.mrb[230].mxu1 }
 0xd83   : > { %v16859_v26 = vpop.f32.mrb[231].mxu1 }
 0xd84   : > { %v25740_v27 = vadd.f32 %v16857_v61, %v25555_v22  ;;  %v16860_v35 = vadd.f32 %v16859_v26, %v16858_v16  ;;  %v17203_v61 = vpop.f32.mrb[124].mxu0  ;;  %v19685_v16 = vld [vmem:[%s26861_s9 + $0x40] sm:$0xff]  }
 0xd85   : > { %17345 = vmatprep.subr.bf16.mxu1 %v19685_v16 }
 0xd86   : > { %v25743_v3 = vadd.f32 %v16860_v35, %v25558_v7 }
 0xd88   : > { %v16861_v36 = vpop.f32.mrb[232].mxu1 }
 0xd89   : > { %v16862_v1 = vpop.f32.mrb[233].mxu1 }
 0xd8a   : > { %v16863_v63 = vadd.f32 %v16862_v1, %v16861_v36  ;;  %v16864_v4 = vpop.f32.mrb[234].mxu1 }
 0xd8b   : > { %v16865_v31 = vpop.f32.mrb[235].mxu1 }
 0xd8c   : > { %v25746_v10 = vadd.f32 %v16863_v63, %v25565_v39  ;;  %v16866_v41 = vadd.f32 %v16865_v31, %v16864_v4  ;;  %v17204_v39 = vpop.f32.mrb[125].mxu0 }
 0xd8d   : > { %v25760_v1 = vadd.f32 %v17204_v39, %v17203_v61 }
 0xd8e   : > { %v25749_v30 = vadd.f32 %v16866_v41, %v25568_v29  ;;  %v17206_v29 = vpop.f32.mrb[126].mxu0 }
 0xd8f   : > { %v17207_v35 = vpop.f32.mrb[127].mxu0 }
 0xd90   : > { %v16867_v21 = vpop.f32.mrb[236].mxu1  ;;  %v25762_v63 = vadd.f32 %v17207_v35, %v17206_v29 }
 0xd91   : > { %v16868_v32 = vpop.f32.mrb[237].mxu1 }
 0xd92   : > { %v16869_v22 = vadd.f32 %v16868_v32, %v16867_v21  ;;  %v16870_v37 = vpop.f32.mrb[238].mxu1  ;;  %v27749_v21 = vld [vmem:[#allocation121_spill] sm:$0xff] }
 0xd93   : > { %v16871_v0 = vpop.f32.mrb[239].mxu1 }
 0xd94   : > { %v25752_v7 = vadd.f32 %v16869_v22, %v25584_v38  ;;  %v16872_v20 = vadd.f32 %v16871_v0, %v16870_v37  ;;  %v27750_v0 = vld [vmem:[#allocation123_spill] sm:$0xff] }
 0xd96   : > { %v25758_v26 = vadd.f32 %v16872_v20, %v25593_v2  ;;  %v25770_v20 = vld [vmem:[%s26860_s8] ss:$0 sm:$0xff] }
 0xd98   : > { %27748 = vst [vmem:[#allocation10_spill] sm:$0xff] %v25758_v26  ;;  %v17001_v36 = vpop.f32.mrb[240].mxu1 }
 0xd99   : > { %v17002_v38 = vpop.f32.mrb[241].mxu1 }
 0xd9a   : > { %v17003_v4 = vadd.f32 %v17002_v38, %v17001_v36  ;;  %v17004_v31 = vpop.f32.mrb[242].mxu1 }
 0xd9b   : > { %v17005_v41 = vpop.f32.mrb[243].mxu1 }
 0xd9c   : > { %v12235_v32 = vadd.f32 %v17003_v4, %v27749_v21  ;;  %v17006_v22 = vadd.f32 %v17005_v41, %v17004_v31  ;;  %v27751_v41 = vld [vmem:[#allocation124_spill] sm:$0xff] }
 0xd9e   : > { %v12396_v37 = vadd.f32 %v25166_v45, %v12235_v32  ;;  %v12238_v2 = vadd.f32 %v17006_v22, %v27750_v0 }
 0xda0   : > { %v12522_v61 = vadd.f32 %v12396_v37, %v25596_v19  ;;  %v12399_v16 = vadd.f32 %v25172_v52, %v12238_v2  ;;  %v17007_v39 = vpop.f32.mrb[244].mxu1  ;;  %v27752_v37 = vld [vmem:[#allocation126_spill] sm:$0xff] }
 0xda1   : > { %v17008_v29 = vpop.f32.mrb[245].mxu1 }
 0xda2   : > { %v12561_v35 = vadd.f32 %v25770_v20, %v12522_v61  ;;  %v12523_v36 = vadd.f32 %v12399_v16, %v25606_v23  ;;  %v17009_v38 = vadd.f32 %v17008_v29, %v17007_v39  ;;  %v17010_v4 = vpop.f32.mrb[246].mxu1 }
 0xda3   : > { %v17011_v45 = vpop.f32.mrb[247].mxu1 }
 0xda4   : > { %v12562_v31 = vadd.f32 %v25770_v20, %v12523_v36  ;;  %v12243_v21 = vadd.f32 %v17009_v38, %v27751_v41  ;;  %v17012_v32 = vadd.f32 %v17011_v45, %v17010_v4  ;;  %v12593_v22 = vmax.f32 %v12561_v35, 0.0 }
 0xda6   : > { %v12594_v0 = vmax.f32 %v12562_v31, 0.0  ;;  %v12404_v19 = vadd.f32 %v25178_v48, %v12243_v21  ;;  %v12246_v52 = vadd.f32 %v17012_v32, %v27752_v37 }
 0xda8   : > { %v12524_v2 = vadd.f32 %v12404_v19, %v25616_v25  ;;  %v12407_v61 = vadd.f32 %v25184_v53, %v12246_v52  ;;  %v17013_v26 = vpop.f32.mrb[248].mxu1  ;;  %v25782_v23 = vpack.c.bf16 %v12594_v0, %v12593_v22  ;;  %v27753_v53 = vld [vmem:[#allocation127_spill] sm:$0xff]  ;;  %v27754_v0 = vld [vmem:[#allocation128_spill] sm:$0xff] }
 0xda9   : > { %v17014_v16 = vpop.f32.mrb[249].mxu1  ;;  %v19686_v52 = vld [vmem:[%s26861_s9] sm:$0xff]  }
 0xdaa   : > { %v12563_v39 = vadd.f32 %v25770_v20, %v12524_v2  ;;  %v12525_v29 = vadd.f32 %v12407_v61, %v25626_v55  ;;  %v17015_v36 = vadd.f32 %v17014_v16, %v17013_v26  ;;  %v17016_v38 = vpop.f32.mrb[250].mxu1  ;;  %v12642_v35 = vshrl.u32 %v25782_v23, 16  ;;  %13266 = vmatprep.mubr.bf16.mxu1 %v25782_v23  ;;  %v19705_v16 = vld [vmem:[%s26861_s9 + $0x180] sm:$0xff]  }
 0xdab   : > { %v12645_v48 = vshll.u32 %v25782_v23, 16  ;;  %v17017_v4 = vpop.f32.mrb[251].mxu1 }
 0xdac   : > { %v12564_v25 = vadd.f32 %v25770_v20, %v12525_v29  ;;  %v12251_v45 = vadd.f32 %v17015_v36, %v27753_v53  ;;  %v12644_v31 = vrot.slane %v12642_v35, 7  ;;  %v17018_v41 = vadd.f32 %v17017_v4, %v17016_v38 }
 0xdad   : > { %v12785_v21 = vrot.slane %v12645_v48, 1  ;;  %v12595_v32 = vmax.f32 %v12563_v39, 0.0 }
 0xdae   : > { %v12596_v22 = vmax.f32 %v12564_v25, 0.0  ;;  %v12412_v55 = vadd.f32 %v25190_v12, %v12251_v45  ;;  %v12647_v26 = vor.u32 %v12645_v48, %v12644_v31  ;;  %v12254_v19 = vadd.f32 %v17018_v41, %v27754_v0  ;;  %v19687_v12 = vld [vmem:[%s26861_s9 + $0x48] sm:$0xff]  }
 0xdaf   : > { %v12786_v37 = vor.u32 %v12785_v21, %v12642_v35  ;;  %v19688_v41 = vld [vmem:[%s26861_s9 + $0x8] sm:$0xff]   ;;  %v27757_v21 = vld [vmem:[#allocation63_spill] sm:$0xff] }
 0xdb0   : > { %v25796_v2 = vpack.c.bf16 %v12596_v22, %v12595_v32  ;;  %v12526_v61 = vadd.f32 %v12412_v55, %v25639_v47  ;;  %v25801_v29 = vsel %vm20354_vm6, 0, %v12647_v26  ;;  %v17019_v39 = vpop.f32.mrb[252].mxu1  ;;  %v12415_v36 = vadd.f32 %v25196_v49, %v12254_v19  ;;  %v19690_v26 = vld [vmem:[%s26861_s9 + $0x50] sm:$0xff]   ;;  %v19706_v35 = vld [vmem:[%s26861_s9 + $0x1c8] sm:$0xff]  }
 0xdb1   : > { %v17020_v38 = vpop.f32.mrb[253].mxu1  ;;  %13267 = vmatmul.mubr.bf16.vlgmr.msra.gmra.mrb[48].mxu1 %v25801_v29  ;;  %v25810_v48 = vsel %vm20207_vm3, %v12786_v37, 0  ;;  %v27758_v37 = vld [vmem:[#allocation61_spill] sm:$0xff] }
 0xdb2   : > { %v17021_v4 = vadd.f32 %v17020_v38, %v17019_v39  ;;  %17633 = vmatprep.mubr.bf16.mxu0 %v25810_v48  ;;  %v17022_v47 = vpop.f32.mrb[254].mxu1  ;;  %13274 = vmatprep.mubr.bf16.mxu1 %v25796_v2  ;;  %v12649_v25 = vshrl.u32 %v25796_v2, 16  ;;  %v12652_v53 = vshll.u32 %v25796_v2, 16  ;;  %v12565_v45 = vadd.f32 %v25770_v20, %v12526_v61 }
 0xdb3   : > { %v12527_v49 = vadd.f32 %v12415_v36, %v25652_v54  ;;  %v17023_v31 = vpop.f32.mrb[255].mxu1  ;;  %17346 = vmatpush3.bf16.msra.mxu1 %v19686_v52 }
 0xdb4   : > { %v12259_v32 = vadd.f32 %v17021_v4, %v27757_v21  ;;  %v17024_v22 = vadd.f32 %v17023_v31, %v17022_v47  ;;  %v12651_v55 = vrot.slane %v12649_v25, 7  ;;  %17347 = vmatprep.subr.bf16.mxu1 %v19687_v12  ;;  %v12787_v19 = vrot.slane %v12652_v53, 1 }
 0xdb5   : > { %v12566_v0 = vadd.f32 %v25770_v20, %v12527_v49  ;;  %v12597_v39 = vmax.f32 %v12565_v45, 0.0 }
 0xdb6   : > { %v12420_v54 = vadd.f32 %v25202_v51, %v12259_v32  ;;  %v12262_v52 = vadd.f32 %v17024_v22, %v27758_v37  ;;  %v12654_v61 = vor.u32 %v12652_v53, %v12651_v55  ;;  %v12788_v38 = vor.u32 %v12787_v19, %v12649_v25  ;;  %v19681_v51 = vld [vmem:[%s26861_s9 + $0x88] sm:$0xff]   ;;  %v19691_v53 = vld [vmem:[%s26861_s9 + $0x10] sm:$0xff]  }
 0xdb7   : > { %v12598_v36 = vmax.f32 %v12566_v0, 0.0  ;;  %17348 = vmatpush3.bf16.msra.mxu1 %v19688_v41  ;;  %v27759_v19 = vld [vmem:[#allocation62_spill] sm:$0xff] }
 0xdb8   : > { %v12528_v4 = vadd.f32 %v12420_v54, %v25665_v24  ;;  %v12423_v12 = vadd.f32 %v25208_v5, %v12262_v52  ;;  %v17025_v47 = vpop.f32.mrb[0].mxu1  ;;  %v25832_v31 = vsel %vm20354_vm6, 0, %v12654_v61  ;;  %17349 = vmatprep.subr.bf16.mxu1 %v19690_v26  ;;  %v25845_v5 = vsel %vm20207_vm3, %v12788_v38, 0  ;;  %v19692_v24 = vld [vmem:[%s26861_s9 + $0x58] sm:$0xff]  }
 0xdb9   : > { %v25840_v25 = vpack.c.bf16 %v12598_v36, %v12597_v39  ;;  %v17026_v45 = vpop.f32.mrb[1].mxu1  ;;  %13275 = vmatmul.mubr.bf16.gmra.mrb[52].mxu1 %v25832_v31  ;;  %17634 = vmatmul.mubr.bf16.vlgmr.msra.gmra.mrb[128].mxu0 %v25845_v5  ;;  %v19693_v52 = vld [vmem:[%s26861_s9 + $0x18] sm:$0xff]  }
 0xdba   : > { %v12567_v49 = vadd.f32 %v25770_v20, %v12528_v4  ;;  %v12529_v41 = vadd.f32 %v12423_v12, %v25672_v43  ;;  %v17027_v21 = vadd.f32 %v17026_v45, %v17025_v47  ;;  %v17028_v32 = vpop.f32.mrb[2].mxu1  ;;  %17666 = vmatpush3.bf16.msra.mxu0 %v25730_v33  ;;  %v19682_v43 = vld [vmem:[%s26861_s9 + $0x90] sm:$0xff]   ;;  %v19695_v33 = vld [vmem:[%s26861_s9 + $0x60] sm:$0xff]   ;;  %v27760_v12 = vld [vmem:[#allocation129_spill] sm:$0xff] }
 0xdbb   : > { %13282 = vmatprep.mubr.bf16.mxu1 %v25840_v25  ;;  %v17029_v22 = vpop.f32.mrb[3].mxu1  ;;  %v12656_v55 = vshrl.u32 %v25840_v25, 16  ;;  %v12659_v26 = vshll.u32 %v25840_v25, 16  ;;  %17667 = vmatprep.subr.bf16.mxu0 %v19681_v51 }
 0xdbc   : > { %v12568_v0 = vadd.f32 %v25770_v20, %v12529_v41  ;;  %v12267_v54 = vadd.f32 %v17027_v21, %v27759_v19  ;;  %v17030_v37 = vadd.f32 %v17029_v22, %v17028_v32  ;;  %17350 = vmatpush3.bf16.msra.mxu1 %v19691_v53  ;;  %v12599_v36 = vmax.f32 %v12567_v49, 0.0  ;;  %v19683_v49 = vld [vmem:[%s26861_s9 + $0x98] sm:$0xff]  }
 0xdbd   : > { %v12658_v61 = vrot.slane %v12656_v55, 7  ;;  %v12789_v39 = vrot.slane %v12659_v26, 1  ;;  %17351 = vmatprep.subr.bf16.mxu1 %v19692_v24 }
 0xdbe   : > { %v12600_v38 = vmax.f32 %v12568_v0, 0.0  ;;  %v12428_v4 = vadd.f32 %v25214_v62, %v12267_v54  ;;  %v12270_v47 = vadd.f32 %v17030_v37, %v27760_v12  ;;  %17668 = vmatpush3.bf16.msra.mxu0 %v19681_v51  ;;  %v19696_v62 = vld [vmem:[%s26861_s9 + $0x20] sm:$0xff]  }
 0xdbf   : > { %v12661_v45 = vor.u32 %v12659_v26, %v12658_v61  ;;  %v12790_v41 = vor.u32 %v12789_v39, %v12656_v55  ;;  %17669 = vmatprep.subr.bf16.mxu0 %v19682_v43  ;;  %v27761_v39 = vld [vmem:[#allocation130_spill] sm:$0xff] }
 0xdc0   : > { %v25870_v53 = vpack.c.bf16 %v12600_v38, %v12599_v36  ;;  %v12530_v21 = vadd.f32 %v12428_v4, %v25679_v18  ;;  %v12431_v32 = vadd.f32 %v25220_v56, %v12270_v47  ;;  %v17031_v24 = vpop.f32.mrb[4].mxu1  ;;  %17352 = vmatpush3.bf16.msra.mxu1 %v19693_v52  ;;  %v19697_v56 = vld [vmem:[%s26861_s9 + $0x68] sm:$0xff]  }
 0xdc1   : > { %v17032_v22 = vpop.f32.mrb[5].mxu1  ;;  %v25882_v51 = vsel %vm20354_vm6, 0, %v12661_v45  ;;  %v25886_v18 = vsel %vm20207_vm3, %v12790_v41, 0  ;;  %17353 = vmatprep.subr.bf16.mxu1 %v19695_v33  ;;  %v19698_v38 = vld [vmem:[%s26861_s9 + $0x28] sm:$0xff]  }
 0xdc2   : > { %v12569_v55 = vadd.f32 %v25770_v20, %v12530_v21  ;;  %v12531_v26 = vadd.f32 %v12431_v32, %v25683_v42  ;;  %v17033_v0 = vadd.f32 %v17032_v22, %v17031_v24  ;;  %13283 = vmatmul.mubr.bf16.gmra.mrb[56].mxu1 %v25882_v51  ;;  %17637 = vmatprep.mubr.bf16.mxu0 %v25886_v18  ;;  %v17034_v19 = vpop.f32.mrb[6].mxu1  ;;  %v12663_v54 = vshrl.u32 %v25870_v53, 16  ;;  %v19684_v42 = vld [vmem:[%s26861_s9 + $0xa0] sm:$0xff]   ;;  %v27762_v21 = vld [vmem:[#allocation131_spill] sm:$0xff] }
 0xdc3   : > { %13290 = vmatprep.mubr.bf16.mxu1 %v25870_v53  ;;  %v17035_v37 = vpop.f32.mrb[7].mxu1  ;;  %v12666_v52 = vshll.u32 %v25870_v53, 16  ;;  %17670 = vmatpush3.bf16.msra.mxu0 %v19682_v43  ;;  %v19700_v43 = vld [vmem:[%s26861_s9 + $0x70] sm:$0xff]  }
 0xdc4   : > { %v12570_v61 = vadd.f32 %v25770_v20, %v12531_v26  ;;  %v12275_v33 = vadd.f32 %v17033_v0, %v27761_v39  ;;  %v17036_v36 = vadd.f32 %v17035_v37, %v17034_v19  ;;  %17671 = vmatprep.subr.bf16.mxu0 %v19683_v49  ;;  %17354 = vmatpush3.bf16.msra.mxu1 %v19696_v62  ;;  %v12665_v4 = vrot.slane %v12663_v54, 7  ;;  %v27763_v0 = vld [vmem:[#allocation120_spill] sm:$0xff] }
 0xdc5   : > { %v12791_v12 = vrot.slane %v12666_v52, 1  ;;  %17355 = vmatprep.subr.bf16.mxu1 %v19697_v56  ;;  %v12601_v47 = vmax.f32 %v12569_v55, 0.0  ;;  %v19689_v55 = vld [vmem:[%s26861_s9 + $0xa8] sm:$0xff]  }
 0xdc6   : > { %v12602_v45 = vmax.f32 %v12570_v61, 0.0  ;;  %v12436_v41 = vadd.f32 %v25226_v14, %v12275_v33  ;;  %v12278_v32 = vadd.f32 %v17036_v36, %v27762_v21  ;;  %v12668_v24 = vor.u32 %v12666_v52, %v12665_v4  ;;  %v19701_v14 = vld [vmem:[%s26861_s9 + $0x30] sm:$0xff]  }
 0xdc7   : > { %v12792_v22 = vor.u32 %v12791_v12, %v12663_v54  ;;  %17672 = vmatpush3.bf16.msra.mxu0 %v19683_v49  ;;  %v19702_v54 = vld [vmem:[%s26861_s9 + $0x78] sm:$0xff]  }
 0xdc8   : > { %v25911_v62 = vpack.c.bf16 %v12602_v45, %v12601_v47  ;;  %v12532_v26 = vadd.f32 %v12436_v41, %v25686_v6  ;;  %v12439_v19 = vadd.f32 %v27763_v0, %v12278_v32  ;;  %v17037_v56 = vpop.f32.mrb[8].mxu1  ;;  %17673 = vmatprep.subr.bf16.mxu0 %v19684_v42  ;;  %17356 = vmatpush3.bf16.msra.mxu1 %v19698_v38  ;;  %v25923_v49 = vsel %vm20354_vm6, 0, %v12668_v24  ;;  %v19703_v41 = vld [vmem:[%s26861_s9 + $0x38] sm:$0xff]   ;;  %v27766_v0 = vld [vmem:[#allocation133_spill] sm:$0xff] }
 0xdc9   : > { %v17038_v37 = vpop.f32.mrb[9].mxu1  ;;  %v25927_v6 = vsel %vm20207_vm3, %v12792_v22, 0  ;;  %17357 = vmatprep.subr.bf16.mxu1 %v19700_v43  ;;  %v27764_v43 = vld [vmem:[#allocation132_spill] sm:$0xff]  ;;  %v27765_v22 = vld [vmem:[#allocation17_spill] sm:$0xff] }
 0xdca   : > { %v12571_v52 = vadd.f32 %v25770_v20, %v12532_v26  ;;  %v12533_v61 = vadd.f32 %v12439_v19, %v25689_v8  ;;  %v17039_v39 = vadd.f32 %v17038_v37, %v17037_v56  ;;  %13291 = vmatmul.mubr.bf16.gmra.mrb[60].mxu1 %v25923_v49  ;;  %17638 = vmatmul.mubr.bf16.gmra.mrb[132].mxu0 %v25927_v6  ;;  %v17040_v33 = vpop.f32.mrb[10].mxu1  ;;  %v12670_v36 = vshrl.u32 %v25911_v62, 16  ;;  %v19694_v8 = vld [vmem:[%s26861_s9 + $0xb0] sm:$0xff]  }
 0xdcb   : > { %13298 = vmatprep.mubr.bf16.mxu1 %v25911_v62  ;;  %v17041_v38 = vpop.f32.mrb[11].mxu1  ;;  %v12673_v4 = vshll.u32 %v25911_v62, 16  ;;  %17674 = vmatpush3.bf16.msra.mxu0 %v19684_v42 }
 0xdcc   : > { %v12572_v12 = vadd.f32 %v25770_v20, %v12533_v61  ;;  %v12283_v47 = vadd.f32 %v17039_v39, %v27764_v43  ;;  %v17042_v45 = vadd.f32 %v17041_v38, %v17040_v33  ;;  %17675 = vmatprep.subr.bf16.mxu0 %v19689_v55  ;;  %17358 = vmatpush3.bf16.msra.mxu1 %v19701_v14  ;;  %v12672_v21 = vrot.slane %v12670_v36, 7  ;;  %v27767_v39 = vld [vmem:[#allocation122_spill] sm:$0xff] }
 0xdcd   : > { %v12793_v32 = vrot.slane %v12673_v4, 1  ;;  %17359 = vmatprep.subr.bf16.mxu1 %v19702_v54  ;;  %v12603_v24 = vmax.f32 %v12571_v52, 0.0  ;;  %v19699_v54 = vld [vmem:[%s26861_s9 + $0xb8] sm:$0xff]  }
 0xdce   : > { %v12604_v42 = vmax.f32 %v12572_v12, 0.0  ;;  %v12444_v26 = vadd.f32 %v27765_v22, %v12283_v47  ;;  %v12286_v19 = vadd.f32 %v17042_v45, %v27766_v0  ;;  %v12675_v56 = vor.u32 %v12673_v4, %v12672_v21 }
 0xdcf   : > { %v12794_v37 = vor.u32 %v12793_v32, %v12670_v36  ;;  %17676 = vmatpush3.bf16.msra.mxu0 %v19689_v55  ;;  %v27768_v32 = vld [vmem:[#allocation134_spill] sm:$0xff] }
 0xdd0   : > { %v25949_v61 = vpack.c.bf16 %v12604_v42, %v12603_v24  ;;  %v12534_v14 = vadd.f32 %v12444_v26, %v25692_v44  ;;  %v12447_v33 = vadd.f32 %v27767_v39, %v12286_v19  ;;  %v17043_v38 = vpop.f32.mrb[12].mxu1  ;;  %17677 = vmatprep.subr.bf16.mxu0 %v19694_v8  ;;  %17360 = vmatpush3.bf16.msra.mxu1 %v19703_v41  ;;  %v25958_v12 = vsel %vm20354_vm6, 0, %v12675_v56  ;;  %v27769_v56 = vld [vmem:[#allocation22_spill] sm:$0xff] }
 0xdd1   : > { %v17044_v52 = vpop.f32.mrb[13].mxu1  ;;  %v25962_v55 = vsel %vm20207_vm3, %v12794_v37, 0 }
 0xdd2   : > { %v12573_v44 = vadd.f32 %v25770_v20, %v12534_v14  ;;  %v12535_v36 = vadd.f32 %v12447_v33, %v25695_v11  ;;  %v17045_v4 = vadd.f32 %v17044_v52, %v17043_v38  ;;  %13299 = vmatmul.mubr.bf16.gmra.mrb[64].mxu1 %v25958_v12  ;;  %17641 = vmatprep.mubr.bf16.mxu0 %v25962_v55  ;;  %v17046_v43 = vpop.f32.mrb[14].mxu1  ;;  %v12677_v47 = vshrl.u32 %v25949_v61, 16  ;;  %v19704_v11 = vld [vmem:[%s26861_s9 + $0x1c0] sm:$0xff]   ;;  %v27770_v14 = vld [vmem:[#allocation135_spill] sm:$0xff] }
 0xdd3   : > { %13306 = vmatprep.mubr.bf16.mxu1 %v25949_v61  ;;  %v17047_v45 = vpop.f32.mrb[15].mxu1  ;;  %v12680_v41 = vshll.u32 %v25949_v61, 16  ;;  %17678 = vmatpush3.bf16.msra.mxu0 %v19694_v8 }
 0xdd4   : > { %v12574_v21 = vadd.f32 %v25770_v20, %v12535_v36  ;;  %v12291_v24 = vadd.f32 %v17045_v4, %v27768_v32  ;;  %v17048_v42 = vadd.f32 %v17047_v45, %v17046_v43  ;;  %17679 = vmatprep.subr.bf16.mxu0 %v19699_v54  ;;  %v12679_v22 = vrot.slane %v12677_v47, 7  ;;  %v27772_v36 = vld [vmem:[#allocation49_spill] sm:$0xff] }
 0xdd5   : > { %v12795_v26 = vrot.slane %v12680_v41, 1  ;;  %v12605_v0 = vmax.f32 %v12573_v44, 0.0 }
 0xdd6   : > { %v12606_v19 = vmax.f32 %v12574_v21, 0.0  ;;  %v12452_v37 = vadd.f32 %v27769_v56, %v12291_v24  ;;  %v12294_v39 = vadd.f32 %v17048_v42, %v27770_v14  ;;  %v12682_v33 = vor.u32 %v12680_v41, %v12679_v22  ;;  %v27774_v22 = vld [vmem:[#allocation72_spill] sm:$0xff] }
 0xdd7   : > { %v12796_v8 = vor.u32 %v12795_v26, %v12677_v47  ;;  %17680 = vmatpush3.bf16.msra.mxu0 %v19699_v54  ;;  %v27775_v14 = vld [vmem:[#allocation84_spill] sm:$0xff] }
 0xdd8   : > { %v25978_v38 = vpack.c.bf16 %v12606_v19, %v12605_v0  ;;  %v12536_v52 = vadd.f32 %v12452_v37, %v25698_v34  ;;  %v12455_v4 = vadd.f32 %v27772_v36, %v12294_v39  ;;  %v17049_v43 = vpop.f32.mrb[16].mxu1  ;;  %17481 = vmatprep.subr.bf16.mxu0 %v19704_v11  ;;  %v25984_v44 = vsel %vm20354_vm6, 0, %v12682_v33  ;;  %v27776_v33 = vld [vmem:[#allocation73_spill] sm:$0xff] }
 0xdd9   : > { %v17050_v45 = vpop.f32.mrb[17].mxu1  ;;  %27773 = vst [vmem:[#allocation101_spill] sm:$0xff] %v25984_v44  ;;  %v25988_v21 = vsel %vm20207_vm3, %v12796_v8, 0 }
 0xdda   : > { %27771 = vst [vmem:[#allocation98_spill] sm:$0xff] %v25978_v38  ;;  %v12575_v47 = vadd.f32 %v25770_v20, %v12536_v52  ;;  %v12537_v54 = vadd.f32 %v12455_v4, %v25701_v46  ;;  %v17051_v41 = vadd.f32 %v17050_v45, %v17049_v43  ;;  %13307 = vmatmul.mubr.bf16.gmra.mrb[68].mxu1 %v25984_v44  ;;  %v17052_v34 = vpop.f32.mrb[18].mxu1  ;;  %v12684_v32 = vshrl.u32 %v25978_v38, 16  ;;  %v27778_v45 = vld [vmem:[#allocation125_spill] sm:$0xff] }
 0xddb   : > { %17642 = vmatmul.mubr.bf16.gmra.mrb[136].mxu0 %v25988_v21  ;;  %13314 = vmatprep.mubr.bf16.mxu1 %v25978_v38  ;;  %v17053_v24 = vpop.f32.mrb[19].mxu1  ;;  %v12687_v42 = vshll.u32 %v25978_v38, 16 }
 0xddc   : > { %v12576_v11 = vadd.f32 %v25770_v20, %v12537_v54  ;;  %v12299_v26 = vadd.f32 %v17051_v41, %v27774_v22  ;;  %v17054_v0 = vadd.f32 %v17053_v24, %v17052_v34  ;;  %v12686_v19 = vrot.slane %v12684_v32, 7 }
 0xddd   : > { %v12797_v46 = vrot.slane %v12687_v42, 1  ;;  %v12607_v56 = vmax.f32 %v12575_v47, 0.0 }
 0xdde   : > { %v12608_v37 = vmax.f32 %v12576_v11, 0.0  ;;  %v12460_v39 = vadd.f32 %v27775_v14, %v12299_v26  ;;  %v12302_v8 = vadd.f32 %v17054_v0, %v27776_v33  ;;  %v12689_v52 = vor.u32 %v12687_v42, %v12686_v19  ;;  %v27779_v0 = vld [vmem:[#allocation78_spill] sm:$0xff] }
 0xddf   : > { %v12798_v36 = vor.u32 %v12797_v46, %v12684_v32 }
 0xde0   : > { %v26001_v4 = vpack.c.bf16 %v12608_v37, %v12607_v56  ;;  %v12538_v43 = vadd.f32 %v12460_v39, %v25704_v15  ;;  %v12463_v38 = vadd.f32 %v27778_v45, %v12302_v8  ;;  %v17055_v54 = vpop.f32.mrb[20].mxu1  ;;  %v26007_v41 = vsel %vm20354_vm6, 0, %v12689_v52  ;;  %v27780_v37 = vld [vmem:[#allocation85_spill] sm:$0xff]  ;;  %v27781_v39 = vld [vmem:[#allocation136_spill] sm:$0xff]  ;;  %v27783_v45 = vld [vmem:[#allocation86_spill] sm:$0xff] }
 0xde1   : > { %v17056_v44 = vpop.f32.mrb[21].mxu1  ;;  %v26011_v47 = vsel %vm20207_vm3, %v12798_v36, 0 }
 0xde2   : > { %27777 = vst [vmem:[#allocation102_spill] sm:$0xff] %v26001_v4  ;;  %v12577_v34 = vadd.f32 %v25770_v20, %v12538_v43  ;;  %v12539_v32 = vadd.f32 %v12463_v38, %v25707_v40  ;;  %v17057_v24 = vadd.f32 %v17056_v44, %v17055_v54  ;;  %13315 = vmatmul.mubr.bf16.gmra.mrb[72].mxu1 %v26007_v41  ;;  %v17058_v15 = vpop.f32.mrb[22].mxu1  ;;  %v12691_v42 = vshrl.u32 %v26001_v4, 16 }
 0xde3   : > { %17645 = vmatprep.mubr.bf16.mxu0 %v26011_v47  ;;  %13322 = vmatprep.mubr.bf16.mxu1 %v26001_v4  ;;  %v17059_v11 = vpop.f32.mrb[23].mxu1  ;;  %v12694_v22 = vshll.u32 %v26001_v4, 16 }
 0xde4   : > { %v12578_v26 = vadd.f32 %v25770_v20, %v12539_v32  ;;  %v12307_v19 = vadd.f32 %v17057_v24, %v27779_v0  ;;  %v17060_v46 = vadd.f32 %v17059_v11, %v17058_v15  ;;  %v12693_v56 = vrot.slane %v12691_v42, 7 }
 0xde5   : > { %v12799_v40 = vrot.slane %v12694_v22, 1  ;;  %v12609_v38 = vmax.f32 %v12577_v34, 0.0 }
 0xde6   : > { %v12610_v44 = vmax.f32 %v12578_v26, 0.0  ;;  %v12468_v14 = vadd.f32 %v27780_v37, %v12307_v19  ;;  %v12310_v33 = vadd.f32 %v17060_v46, %v27781_v39  ;;  %v12696_v8 = vor.u32 %v12694_v22, %v12693_v56  ;;  %v27784_v46 = vld [vmem:[#allocation137_spill] sm:$0xff]  ;;  %v27785_v37 = vld [vmem:[#allocation87_spill] sm:$0xff]  ;;  %v27786_v39 = vld [vmem:[#allocation138_spill] sm:$0xff] }
 0xde7   : > { %v12800_v52 = vor.u32 %v12799_v40, %v12691_v42 }
 0xde8   : > { %v26024_v36 = vpack.c.bf16 %v12610_v44, %v12609_v38  ;;  %v12540_v43 = vadd.f32 %v12468_v14, %v25710_v58  ;;  %v12471_v54 = vadd.f32 %v27783_v45, %v12310_v33  ;;  %v17061_v32 = vpop.f32.mrb[24].mxu1  ;;  %v26030_v24 = vsel %vm20354_vm6, 0, %v12696_v8 }
 0xde9   : > { %v17062_v4 = vpop.f32.mrb[25].mxu1  ;;  %v26034_v34 = vsel %vm20207_vm3, %v12800_v52, 0 }
 0xdea   : > { %27782 = vst [vmem:[#allocation69_spill] sm:$0xff] %v26024_v36  ;;  %v12579_v15 = vadd.f32 %v25770_v20, %v12540_v43  ;;  %v12541_v42 = vadd.f32 %v12471_v54, %v25713_v28  ;;  %v17063_v11 = vadd.f32 %v17062_v4, %v17061_v32  ;;  %13323 = vmatmul.mubr.bf16.gmra.mrb[76].mxu1 %v26030_v24  ;;  %v17064_v58 = vpop.f32.mrb[26].mxu1  ;;  %v12698_v22 = vshrl.u32 %v26024_v36, 16  ;;  %v27788_v54 = vld [vmem:[#allocation28_spill] sm:$0xff] }
 0xdeb   : > { %17646 = vmatmul.mubr.bf16.gmra.mrb[144].mxu0 %v26034_v34  ;;  %13330 = vmatprep.mubr.bf16.mxu1 %v26024_v36  ;;  %v17065_v26 = vpop.f32.mrb[27].mxu1  ;;  %v12701_v0 = vshll.u32 %v26024_v36, 16 }
 0xdec   : > { %v12580_v19 = vadd.f32 %v25770_v20, %v12541_v42  ;;  %v12315_v56 = vadd.f32 %v17063_v11, %v27784_v46  ;;  %v17066_v40 = vadd.f32 %v17065_v26, %v17064_v58  ;;  %v12700_v38 = vrot.slane %v12698_v22, 7 }
 0xded   : > { %v12801_v28 = vrot.slane %v12701_v0, 1  ;;  %v12611_v4 = vmax.f32 %v12579_v15, 0.0 }
 0xdee   : > { %v12612_v44 = vmax.f32 %v12580_v19, 0.0  ;;  %v12476_v14 = vadd.f32 %v27785_v37, %v12315_v56  ;;  %v12318_v33 = vadd.f32 %v17066_v40, %v27786_v39  ;;  %v12703_v8 = vor.u32 %v12701_v0, %v12700_v38  ;;  %v27789_v40 = vld [vmem:[#allocation139_spill] sm:$0xff]  ;;  %v27790_v37 = vld [vmem:[#allocation30_spill] sm:$0xff]  ;;  %v27791_v39 = vld [vmem:[#allocation140_spill] sm:$0xff] }
 0xdef   : > { %v12802_v52 = vor.u32 %v12801_v28, %v12698_v22 }
 0xdf0   : > { %v26047_v43 = vpack.c.bf16 %v12612_v44, %v12611_v4  ;;  %v12542_v45 = vadd.f32 %v12476_v14, %v25716_v57  ;;  %v12479_v32 = vadd.f32 %v27788_v54, %v12318_v33  ;;  %v17067_v42 = vpop.f32.mrb[28].mxu1  ;;  %v26053_v11 = vsel %vm20354_vm6, 0, %v12703_v8 }
 0xdf1   : > { %v17068_v36 = vpop.f32.mrb[29].mxu1  ;;  %v26057_v15 = vsel %vm20207_vm3, %v12802_v52, 0 }
 0xdf2   : > { %27787 = vst [vmem:[#allocation79_spill] sm:$0xff] %v26047_v43  ;;  %v12581_v58 = vadd.f32 %v25770_v20, %v12542_v45  ;;  %v12543_v22 = vadd.f32 %v12479_v32, %v25719_v50  ;;  %v17069_v26 = vadd.f32 %v17068_v36, %v17067_v42  ;;  %13331 = vmatmul.mubr.bf16.gmra.mrb[80].mxu1 %v26053_v11  ;;  %v17070_v57 = vpop.f32.mrb[30].mxu1  ;;  %v12705_v0 = vshrl.u32 %v26047_v43, 16  ;;  %v27793_v32 = vld [vmem:[#allocation88_spill] sm:$0xff] }
 0xdf3   : > { %17649 = vmatprep.mubr.bf16.mxu0 %v26057_v15  ;;  %13338 = vmatprep.mubr.bf16.mxu1 %v26047_v43  ;;  %v17071_v19 = vpop.f32.mrb[31].mxu1  ;;  %v12708_v46 = vshll.u32 %v26047_v43, 16 }
 0xdf4   : > { %v12582_v56 = vadd.f32 %v25770_v20, %v12543_v22  ;;  %v12323_v38 = vadd.f32 %v17069_v26, %v27789_v40  ;;  %v17072_v28 = vadd.f32 %v17071_v19, %v17070_v57  ;;  %v12707_v4 = vrot.slane %v12705_v0, 7 }
 0xdf5   : > { %v12803_v50 = vrot.slane %v12708_v46, 1  ;;  %v12613_v36 = vmax.f32 %v12581_v58, 0.0 }
 0xdf6   : > { %v12614_v44 = vmax.f32 %v12582_v56, 0.0  ;;  %v12484_v14 = vadd.f32 %v27790_v37, %v12323_v38  ;;  %v12326_v33 = vadd.f32 %v17072_v28, %v27791_v39  ;;  %v12710_v8 = vor.u32 %v12708_v46, %v12707_v4  ;;  %v27794_v28 = vld [vmem:[#allocation141_spill] sm:$0xff]  ;;  %v27796_v39 = vld [vmem:[#allocation142_spill] sm:$0xff] }
 0xdf7   : > { %v12804_v52 = vor.u32 %v12803_v50, %v12705_v0  ;;  %v27795_v37 = vld [vmem:[#allocation89_spill] sm:$0xff] }
 0xdf8   : > { %v26070_v45 = vpack.c.bf16 %v12614_v44, %v12613_v36  ;;  %v12544_v54 = vadd.f32 %v12484_v14, %v25722_v60  ;;  %v12487_v42 = vadd.f32 %v27793_v32, %v12326_v33  ;;  %v17073_v22 = vpop.f32.mrb[32].mxu1  ;;  %v26076_v26 = vsel %vm20354_vm6, 0, %v12710_v8 }
 0xdf9   : > { %v17074_v43 = vpop.f32.mrb[33].mxu1  ;;  %v26080_v58 = vsel %vm20207_vm3, %v12804_v52, 0 }
 0xdfa   : > { %27792 = vst [vmem:[#allocation82_spill] sm:$0xff] %v26070_v45  ;;  %v12583_v57 = vadd.f32 %v25770_v20, %v12544_v54  ;;  %v12545_v0 = vadd.f32 %v12487_v42, %v25725_v13  ;;  %v17075_v19 = vadd.f32 %v17074_v43, %v17073_v22  ;;  %13339 = vmatmul.mubr.bf16.gmra.mrb[84].mxu1 %v26076_v26  ;;  %v17076_v60 = vpop.f32.mrb[34].mxu1  ;;  %v12712_v46 = vshrl.u32 %v26070_v45, 16  ;;  %v27798_v42 = vld [vmem:[#allocation32_spill] sm:$0xff] }
 0xdfb   : > { %17650 = vmatmul.mubr.bf16.gmra.mrb[140].mxu0 %v26080_v58  ;;  %13346 = vmatprep.mubr.bf16.mxu1 %v26070_v45  ;;  %v17077_v56 = vpop.f32.mrb[35].mxu1  ;;  %v12715_v40 = vshll.u32 %v26070_v45, 16 }
 0xdfc   : > { %v12584_v38 = vadd.f32 %v25770_v20, %v12545_v0  ;;  %v12331_v4 = vadd.f32 %v17075_v19, %v27794_v28  ;;  %v17078_v50 = vadd.f32 %v17077_v56, %v17076_v60  ;;  %v12714_v36 = vrot.slane %v12712_v46, 7 }
 0xdfd   : > { %v12805_v13 = vrot.slane %v12715_v40, 1  ;;  %v12615_v43 = vmax.f32 %v12583_v57, 0.0 }
 0xdfe   : > { %v12616_v44 = vmax.f32 %v12584_v38, 0.0  ;;  %v12492_v14 = vadd.f32 %v27795_v37, %v12331_v4  ;;  %v12334_v33 = vadd.f32 %v17078_v50, %v27796_v39  ;;  %v12717_v8 = vor.u32 %v12715_v40, %v12714_v36  ;;  %v27799_v50 = vld [vmem:[#allocation143_spill] sm:$0xff]  ;;  %v27800_v37 = vld [vmem:[#allocation34_spill] sm:$0xff]  ;;  %v27801_v39 = vld [vmem:[#allocation144_spill] sm:$0xff] }
 0xdff   : > { %v12806_v52 = vor.u32 %v12805_v13, %v12712_v46 }
 0xe00   : > { %v26093_v54 = vpack.c.bf16 %v12616_v44, %v12615_v43  ;;  %v12546_v32 = vadd.f32 %v12492_v14, %v25734_v9  ;;  %v12495_v22 = vadd.f32 %v27798_v42, %v12334_v33  ;;  %v17079_v0 = vpop.f32.mrb[36].mxu1  ;;  %v26099_v19 = vsel %vm20354_vm6, 0, %v12717_v8 }
 0xe01   : > { %v17080_v45 = vpop.f32.mrb[37].mxu1  ;;  %v26103_v57 = vsel %vm20207_vm3, %v12806_v52, 0 }
 0xe02   : > { %27797 = vst [vmem:[#allocation54_spill] sm:$0xff] %v26093_v54  ;;  %v12585_v60 = vadd.f32 %v25770_v20, %v12546_v32  ;;  %v12547_v46 = vadd.f32 %v12495_v22, %v25737_v17  ;;  %v17081_v56 = vadd.f32 %v17080_v45, %v17079_v0  ;;  %13347 = vmatmul.mubr.bf16.gmra.mrb[88].mxu1 %v26099_v19  ;;  %v17082_v9 = vpop.f32.mrb[38].mxu1  ;;  %v12719_v40 = vshrl.u32 %v26093_v54, 16  ;;  %v27802_v22 = vld [vmem:[#allocation90_spill] sm:$0xff] }
 0xe03   : > { %17653 = vmatprep.mubr.bf16.mxu0 %v26103_v57  ;;  %13354 = vmatprep.mubr.bf16.mxu1 %v26093_v54  ;;  %v17083_v38 = vpop.f32.mrb[39].mxu1  ;;  %v12722_v28 = vshll.u32 %v26093_v54, 16 }
 0xe04   : > { %v12586_v4 = vadd.f32 %v25770_v20, %v12547_v46  ;;  %v12339_v36 = vadd.f32 %v17081_v56, %v27799_v50  ;;  %v17084_v13 = vadd.f32 %v17083_v38, %v17082_v9  ;;  %v12721_v43 = vrot.slane %v12719_v40, 7 }
 0xe05   : > { %v12807_v17 = vrot.slane %v12722_v28, 1  ;;  %v12617_v45 = vmax.f32 %v12585_v60, 0.0 }
 0xe06   : > { %v12618_v44 = vmax.f32 %v12586_v4, 0.0  ;;  %v12500_v14 = vadd.f32 %v27800_v37, %v12339_v36  ;;  %v12342_v33 = vadd.f32 %v17084_v13, %v27801_v39  ;;  %v12724_v8 = vor.u32 %v12722_v28, %v12721_v43  ;;  %v27803_v13 = vld [vmem:[#allocation145_spill] sm:$0xff] }
 0xe07   : > { %v12808_v52 = vor.u32 %v12807_v17, %v12719_v40 }
 0xe08   : > { %v26116_v32 = vpack.c.bf16 %v12618_v44, %v12617_v45  ;;  %v12548_v42 = vadd.f32 %v12500_v14, %v25740_v27  ;;  %v12503_v0 = vadd.f32 %v27802_v22, %v12342_v33  ;;  %v17085_v46 = vpop.f32.mrb[40].mxu1  ;;  %v26122_v56 = vsel %vm20354_vm6, 0, %v12724_v8  ;;  %v27804_v14 = vld [vmem:[#allocation146_spill] sm:$0xff]  ;;  %v27805_v22 = vld [vmem:[#allocation80_spill] sm:$0xff] }
 0xe09   : > { %v17086_v54 = vpop.f32.mrb[41].mxu1  ;;  %v26126_v60 = vsel %vm20207_vm3, %v12808_v52, 0 }
 0xe0a   : > { %v12587_v9 = vadd.f32 %v25770_v20, %v12548_v42  ;;  %v12549_v40 = vadd.f32 %v12503_v0, %v25743_v3  ;;  %v17087_v38 = vadd.f32 %v17086_v54, %v17085_v46  ;;  %13355 = vmatmul.mubr.bf16.gmra.mrb[92].mxu1 %v26122_v56  ;;  %17654 = vmatmul.mubr.bf16.gmra.mrb[148].mxu0 %v26126_v60  ;;  %v17088_v27 = vpop.f32.mrb[42].mxu1  ;;  %v12726_v28 = vshrl.u32 %v26116_v32, 16 }
 0xe0b   : > { %13362 = vmatprep.mubr.bf16.mxu1 %v26116_v32  ;;  %v17089_v4 = vpop.f32.mrb[43].mxu1  ;;  %v12729_v50 = vshll.u32 %v26116_v32, 16 }
 0xe0c   : > { %v12588_v36 = vadd.f32 %v25770_v20, %v12549_v40  ;;  %v12347_v43 = vadd.f32 %v17087_v38, %v27803_v13  ;;  %v17090_v17 = vadd.f32 %v17089_v4, %v17088_v27  ;;  %v12728_v45 = vrot.slane %v12726_v28, 7 }
 0xe0d   : > { %v12809_v3 = vrot.slane %v12729_v50, 1  ;;  %v12619_v54 = vmax.f32 %v12587_v9, 0.0 }
 0xe0e   : > { %v12620_v44 = vmax.f32 %v12588_v36, 0.0  ;;  %v12508_v37 = vadd.f32 %v25381_v59, %v12347_v43  ;;  %v12350_v39 = vadd.f32 %v17090_v17, %v27804_v14  ;;  %v12731_v33 = vor.u32 %v12729_v50, %v12728_v45  ;;  %v27806_v43 = vld [vmem:[#allocation147_spill] sm:$0xff]  ;;  %v27807_v14 = vld [vmem:[#allocation148_spill] sm:$0xff] }
 0xe0f   : > { %v12810_v8 = vor.u32 %v12809_v3, %v12726_v28 }
 0xe10   : > { %v26139_v52 = vpack.c.bf16 %v12620_v44, %v12619_v54  ;;  %v12550_v42 = vadd.f32 %v12508_v37, %v25746_v10  ;;  %v12511_v0 = vadd.f32 %v27805_v22, %v12350_v39  ;;  %v17091_v46 = vpop.f32.mrb[44].mxu1  ;;  %v26145_v38 = vsel %vm20354_vm6, 0, %v12731_v33 }
 0xe11   : > { %v17092_v40 = vpop.f32.mrb[45].mxu1  ;;  %v26149_v9 = vsel %vm20207_vm3, %v12810_v8, 0 }
 0xe12   : > { %v12589_v59 = vadd.f32 %v25770_v20, %v12550_v42  ;;  %v12551_v27 = vadd.f32 %v12511_v0, %v25749_v30  ;;  %v17093_v28 = vadd.f32 %v17092_v40, %v17091_v46  ;;  %13363 = vmatmul.mubr.bf16.gmra.mrb[96].mxu1 %v26145_v38  ;;  %17657 = vmatprep.mubr.bf16.mxu0 %v26149_v9  ;;  %v17094_v10 = vpop.f32.mrb[46].mxu1  ;;  %v12733_v4 = vshrl.u32 %v26139_v52, 16 }
 0xe13   : > { %13370 = vmatprep.mubr.bf16.mxu1 %v26139_v52  ;;  %v17095_v50 = vpop.f32.mrb[47].mxu1  ;;  %v12736_v36 = vshll.u32 %v26139_v52, 16 }
 0xe14   : > { %v12590_v13 = vadd.f32 %v25770_v20, %v12551_v27  ;;  %v12355_v17 = vadd.f32 %v17093_v28, %v27806_v43  ;;  %v17096_v45 = vadd.f32 %v17095_v50, %v17094_v10  ;;  %v12735_v3 = vrot.slane %v12733_v4, 7 }
 0xe15   : > { %v12811_v30 = vrot.slane %v12736_v36, 1  ;;  %v12621_v54 = vmax.f32 %v12589_v59, 0.0  ;;  %v27808_v59 = vld [vmem:[#allocation10_spill] sm:$0xff] }
 0xe16   : > { %v12622_v44 = vmax.f32 %v12590_v13, 0.0  ;;  %v12516_v37 = vadd.f32 %v25760_v1, %v12355_v17  ;;  %v12358_v39 = vadd.f32 %v17096_v45, %v27807_v14  ;;  %v12738_v33 = vor.u32 %v12736_v36, %v12735_v3 }
 0xe17   : > { %v12812_v8 = vor.u32 %v12811_v30, %v12733_v4 }
 0xe18   : > { %v26162_v42 = vpack.c.bf16 %v12622_v44, %v12621_v54  ;;  %v12552_v22 = vadd.f32 %v12516_v37, %v25752_v7  ;;  %v12519_v0 = vadd.f32 %v25762_v63, %v12358_v39  ;;  %v26168_v46 = vsel %vm20354_vm6, 0, %v12738_v33 }
 0xe19   : > { %v26172_v40 = vsel %vm20207_vm3, %v12812_v8, 0  ;;  %v26207_v8 = vld [vmem:[#allocation2] sm:$0xff] }
 0xe1a   : > { %v12591_v1 = vadd.f32 %v25770_v20, %v12552_v22  ;;  %v12553_v27 = vadd.f32 %v12519_v0, %v27808_v59  ;;  %13371 = vmatmul.mubr.bf16.gmra.mrb[100].mxu1 %v26168_v46  ;;  %17658 = vmatmul.mubr.bf16.gmra.mrb[152].mxu0 %v26172_v40  ;;  %v12740_v7 = vshrl.u32 %v26162_v42, 16  ;;  %v12743_v63 = vshll.u32 %v26162_v42, 16  ;;  %v19707_v22 = vld [vmem:[%s26861_s9 + $0x188] sm:$0xff]   ;;  %v19708_v0 = vld [vmem:[%s26861_s9 + $0x1d0] sm:$0xff]   ;;  %v19712_v59 = vld [vmem:[%s26861_s9 + $0x1e0] sm:$0xff]  }
 0xe1b   : > { %13378 = vmatprep.mubr.bf16.mxu1 %v26162_v42 }
 0xe1c   : > { %v12592_v28 = vadd.f32 %v25770_v20, %v12553_v27  ;;  %v12742_v10 = vrot.slane %v12740_v7, 7  ;;  %v12813_v4 = vrot.slane %v12743_v63, 1  ;;  %v12623_v50 = vmax.f32 %v12591_v1, 0.0  ;;  %v19710_v1 = vld [vmem:[%s26861_s9 + $0x1d8] sm:$0xff]   ;;  %v19713_v27 = vld [vmem:[%s26861_s9 + $0x1a0] sm:$0xff]  }
 0xe1e   : > { %v12624_v36 = vmax.f32 %v12592_v28, 0.0  ;;  %v12745_v13 = vor.u32 %v12743_v63, %v12742_v10  ;;  %v12814_v43 = vor.u32 %v12813_v4, %v12740_v7  ;;  %v19715_v7 = vld [vmem:[%s26861_s9 + $0x1a8] sm:$0xff]   ;;  %v19716_v63 = vld [vmem:[%s26861_s9 + $0x1f0] sm:$0xff]   ;;  %v19718_v10 = vld [vmem:[%s26861_s9 + $0x1f8] sm:$0xff]  }
 0xe1f   : > { %v19717_v28 = vld [vmem:[%s26861_s9 + $0x1b0] sm:$0xff]   ;;  %v19719_v4 = vld [vmem:[%s26861_s9 + $0x1b8] sm:$0xff]  }
 0xe20   : > { %v26184_v17 = vsel %vm20354_vm6, 0, %v12745_v13  ;;  %v26188_v45 = vsel %vm20207_vm3, %v12814_v43, 0  ;;  %v26190_v3 = vpack.c.bf16 %v12624_v36, %v12623_v50  ;;  %v19720_v50 = vld [vmem:[%s26861_s9 + $0x200] sm:$0xff]   ;;  %v27809_v36 = vld [vmem:[#allocation101_spill] sm:$0xff]  ;;  %v27810_v13 = vld [vmem:[#allocation98_spill] sm:$0xff] }
 0xe21   : > { %17661 = vmatprep.mubr.bf16.mxu0 %v26188_v45  ;;  %v27811_v43 = vld [vmem:[#allocation102_spill] sm:$0xff] }
 0xe22   : > { %13379 = vmatmul.mubr.bf16.gmra.mrb[104].mxu1 %v26184_v17  ;;  %v12747_v20 = vshrl.u32 %v26190_v3, 16  ;;  %v12750_v30 = vshll.u32 %v26190_v3, 16 }
 0xe23   : > { %13386 = vmatprep.mubr.bf16.mxu1 %v26190_v3 }
 0xe24   : > { %v12749_v54 = vrot.slane %v12747_v20, 7  ;;  %v12815_v44 = vrot.slane %v12750_v30, 1 }
 0xe26   : > { %v12752_v37 = vor.u32 %v12750_v30, %v12749_v54  ;;  %v12816_v14 = vor.u32 %v12815_v44, %v12747_v20  ;;  %v19721_v20 = vld [vmem:[%s26861_s9 + $0x208] sm:$0xff]   ;;  %v19722_v54 = vld [vmem:[%s26861_s9 + $0x210] sm:$0xff]  }
 0xe27   : > { %v27812_v30 = vld [vmem:[#allocation69_spill] sm:$0xff] }
 0xe28   : > { %v26199_v39 = vsel %vm20354_vm6, 0, %v12752_v37  ;;  %v26203_v33 = vsel %vm20207_vm3, %v12816_v14, 0  ;;  %v19725_v44 = vld [vmem:[%s26861_s9 + $0x228] sm:$0xff]   ;;  %v19726_v37 = vld [vmem:[%s26861_s9 + $0x230] sm:$0xff]  }
 0xe29   : > { %17662 = vmatmul.mubr.bf16.gmra.mrb[156].mxu0 %v26203_v33 }
 0xe2a   : > { %13387 = vmatmul.mubr.bf16.gmra.mrb[108].mxu1 %v26199_v39  ;;  %17681 = vmatprep.mubr.bf16.mxu0 %v26207_v8 }
 0xe2b   : > { %13732 = vmatprep.mubr.bf16.mxu1 %v26207_v8 }
 0xe31   : > { %17682 = vmatmul.mubr.bf16.vlgmr.msra.gmra.mrb[128].mxu0 %v25810_v48  ;;  %v19709_v48 = vld [vmem:[%s26861_s9 + $0x190] sm:$0xff]  }
 0xe32   : > { %13733 = vmatmul.mubr.bf16.vlgmr.msra.gmra.mrb[112].mxu1 %v26207_v8  ;;  %17482 = vmatpush3.bf16.msra.mxu0 %v19705_v16 }
 0xe33   : > { %13740 = vmatprep.mubr.bf16.mxu1 %v25782_v23  ;;  %17685 = vmatprep.mubr.bf16.mxu0 %v25845_v5  ;;  %v19711_v23 = vld [vmem:[%s26861_s9 + $0x198] sm:$0xff]  }
 0xe34   : > { %17483 = vmatprep.subr.bf16.mxu0 %v19706_v35 }
 0xe36   : > { %17484 = vmatpush3.bf16.msra.mxu0 %v19707_v22 }
 0xe37   : > { %17485 = vmatprep.subr.bf16.mxu0 %v19708_v0  ;;  %v27815_v0 = vld [vmem:[#allocation54_spill] sm:$0xff] }
 0xe39   : > { %17686 = vmatmul.mubr.bf16.gmra.mrb[132].mxu0 %v25886_v18 }
 0xe3a   : > { %13741 = vmatmul.mubr.bf16.gmra.mrb[116].mxu1 %v25801_v29  ;;  %17689 = vmatprep.mubr.bf16.mxu0 %v25927_v6  ;;  %v19714_v29 = vld [vmem:[%s26861_s9 + $0x1e8] sm:$0xff]  }
 0xe3b   : > { %13748 = vmatprep.mubr.bf16.mxu1 %v25796_v2  ;;  %17486 = vmatpush3.bf16.msra.mxu0 %v19709_v48 }
 0xe3c   : > { %17487 = vmatprep.subr.bf16.mxu0 %v19710_v1 }
 0xe3f   : > { %17488 = vmatpush3.bf16.msra.mxu0 %v19711_v23 }
 0xe40   : > { %17489 = vmatprep.subr.bf16.mxu0 %v19712_v59 }
 0xe41   : > { %17690 = vmatmul.mubr.bf16.gmra.mrb[136].mxu0 %v25962_v55 }
 0xe42   : > { %13749 = vmatmul.mubr.bf16.gmra.mrb[120].mxu1 %v25832_v31  ;;  %17693 = vmatprep.mubr.bf16.mxu0 %v25988_v21 }
 0xe43   : > { %13756 = vmatprep.mubr.bf16.mxu1 %v25840_v25  ;;  %17490 = vmatpush3.bf16.msra.mxu0 %v19713_v27 }
 0xe44   : > { %17491 = vmatprep.subr.bf16.mxu0 %v19714_v29 }
 0xe47   : > { %17492 = vmatpush3.bf16.msra.mxu0 %v19715_v7 }
 0xe48   : > { %17493 = vmatprep.subr.bf16.mxu0 %v19716_v63 }
 0xe49   : > { %17694 = vmatmul.mubr.bf16.gmra.mrb[144].mxu0 %v26011_v47 }
 0xe4a   : > { %13757 = vmatmul.mubr.bf16.gmra.mrb[124].mxu1 %v25882_v51  ;;  %17697 = vmatprep.mubr.bf16.mxu0 %v26034_v34 }
 0xe4b   : > { %13764 = vmatprep.mubr.bf16.mxu1 %v25870_v53  ;;  %17494 = vmatpush3.bf16.msra.mxu0 %v19717_v28 }
 0xe4c   : > { %17495 = vmatprep.subr.bf16.mxu0 %v19718_v10 }
 0xe4f   : > { %17496 = vmatpush3.bf16.msra.mxu0 %v19719_v4 }
 0xe50   : > { %17713 = vmatprep.subr.bf16.mxu0 %v19720_v50 }
 0xe51   : > { %17698 = vmatmul.mubr.bf16.gmra.mrb[140].mxu0 %v26057_v15 }
 0xe52   : > { %13765 = vmatmul.mubr.bf16.gmra.mrb[128].mxu1 %v25923_v49  ;;  %17701 = vmatprep.mubr.bf16.mxu0 %v26080_v58 }
 0xe53   : > { %13772 = vmatprep.mubr.bf16.mxu1 %v25911_v62 }
 0xe59   : > { %17702 = vmatmul.mubr.bf16.gmra.mrb[148].mxu0 %v26103_v57 }
 0xe5a   : > { %13773 = vmatmul.mubr.bf16.gmra.mrb[132].mxu1 %v25958_v12  ;;  %17705 = vmatprep.mubr.bf16.mxu0 %v26126_v60 }
 0xe5b   : > { %13780 = vmatprep.mubr.bf16.mxu1 %v25949_v61 }
 0xe61   : > { %17706 = vmatmul.mubr.bf16.gmra.mrb[152].mxu0 %v26149_v9 }
 0xe62   : > { %13781 = vmatmul.mubr.bf16.gmra.mrb[136].mxu1 %v27809_v36  ;;  %17709 = vmatprep.mubr.bf16.mxu0 %v26172_v40 }
 0xe63   : > { %13788 = vmatprep.mubr.bf16.mxu1 %v27810_v13 }
 0xe69   : > { %17710 = vmatmul.mubr.bf16.gmra.mrb[156].mxu0 %v26188_v45 }
 0xe6a   : > { %13789 = vmatmul.mubr.bf16.gmra.mrb[140].mxu1 %v26007_v41  ;;  %14295 = vmatprep.mubr.bf16.mxu0 %v25796_v2  ;;  %v19723_v2 = vld [vmem:[%s26861_s9 + $0x218] sm:$0xff]  }
 0xe6b   : > { %13796 = vmatprep.mubr.bf16.mxu1 %v27811_v43 }
 0xe71   : > { %14296 = vmatmul.mubr.bf16.vlgmr.msra.gmra.mrb[160].mxu0 %v25832_v31  ;;  %v27813_v31 = vld [vmem:[#allocation79_spill] sm:$0xff] }
 0xe72   : > { %13797 = vmatmul.mubr.bf16.gmra.mrb[144].mxu1 %v26030_v24  ;;  %17714 = vmatpush3.bf16.msra.mxu0 %v19720_v50 }
 0xe73   : > { %13804 = vmatprep.mubr.bf16.mxu1 %v27812_v30  ;;  %14303 = vmatprep.mubr.bf16.mxu0 %v25840_v25  ;;  %v19724_v25 = vld [vmem:[%s26861_s9 + $0x220] sm:$0xff]  }
 0xe74   : > { %17715 = vmatprep.subr.bf16.mxu0 %v19721_v20 }
 0xe76   : > { %17716 = vmatpush3.bf16.msra.mxu0 %v19721_v20 }
 0xe77   : > { %17717 = vmatprep.subr.bf16.mxu0 %v19722_v54 }
 0xe79   : > { %14304 = vmatmul.mubr.bf16.gmra.mrb[164].mxu0 %v25882_v51 }
 0xe7a   : > { %13805 = vmatmul.mubr.bf16.gmra.mrb[148].mxu1 %v26053_v11  ;;  %14311 = vmatprep.mubr.bf16.mxu0 %v25870_v53  ;;  %v27814_v53 = vld [vmem:[#allocation82_spill] sm:$0xff] }
 0xe7b   : > { %13812 = vmatprep.mubr.bf16.mxu1 %v27813_v31  ;;  %17718 = vmatpush3.bf16.msra.mxu0 %v19722_v54 }
 0xe7c   : > { %17719 = vmatprep.subr.bf16.mxu0 %v19723_v2 }
 0xe7f   : > { %17720 = vmatpush3.bf16.msra.mxu0 %v19723_v2 }
 0xe80   : > { %17721 = vmatprep.subr.bf16.mxu0 %v19724_v25 }
 0xe81   : > { %14312 = vmatmul.mubr.bf16.gmra.mrb[168].mxu0 %v25923_v49 }
 0xe82   : > { %13813 = vmatmul.mubr.bf16.gmra.mrb[152].mxu1 %v26076_v26  ;;  %14319 = vmatprep.mubr.bf16.mxu0 %v25911_v62  ;;  %v19727_v62 = vld [vmem:[%s26861_s9 + $0x238] sm:$0xff]  }
 0xe83   : > { %13820 = vmatprep.mubr.bf16.mxu1 %v27814_v53  ;;  %17722 = vmatpush3.bf16.msra.mxu0 %v19724_v25 }
 0xe84   : > { %v17225_v51 = vpop.f32.mrb[48].mxu1  ;;  %17723 = vmatprep.subr.bf16.mxu0 %v19725_v44 }
 0xe85   : > { %v17226_v14 = vpop.f32.mrb[49].mxu1 }
 0xe86   : > { %v26321_v16 = vadd.f32 %v17226_v14, %v17225_v51  ;;  %v17228_v35 = vpop.f32.mrb[50].mxu1 }
 0xe87   : > { %v17229_v22 = vpop.f32.mrb[51].mxu1  ;;  %17724 = vmatpush3.bf16.msra.mxu0 %v19725_v44 }
 0xe88   : > { %v26323_v49 = vadd.f32 %v17229_v22, %v17228_v35  ;;  %17725 = vmatprep.subr.bf16.mxu0 %v19726_v37 }
 0xe89   : > { %14320 = vmatmul.mubr.bf16.gmra.mrb[172].mxu0 %v25958_v12 }
 0xe8a   : > { %13821 = vmatmul.mubr.bf16.gmra.mrb[156].mxu1 %v26099_v19  ;;  %14327 = vmatprep.mubr.bf16.mxu0 %v25949_v61 }
 0xe8b   : > { %13828 = vmatprep.mubr.bf16.mxu1 %v27815_v0  ;;  %17726 = vmatpush3.bf16.msra.mxu0 %v19726_v37 }
 0xe8c   : > { %v17231_v48 = vpop.f32.mrb[52].mxu1  ;;  %17727 = vmatprep.subr.bf16.mxu0 %v19727_v62 }
 0xe8d   : > { %v17232_v1 = vpop.f32.mrb[53].mxu1 }
 0xe8e   : > { %v26332_v23 = vadd.f32 %v17232_v1, %v17231_v48  ;;  %v17234_v59 = vpop.f32.mrb[54].mxu1 }
 0xe8f   : > { %v17235_v27 = vpop.f32.mrb[55].mxu1  ;;  %17728 = vmatpush3.bf16.msra.mxu0 %v19727_v62 }
 0xe90   : > { %v26334_v29 = vadd.f32 %v17235_v27, %v17234_v59 }
 0xe91   : > { %14328 = vmatmul.mubr.bf16.gmra.mrb[176].mxu0 %v27809_v36 }
 0xe92   : > { %13829 = vmatmul.mubr.bf16.gmra.mrb[160].mxu1 %v26122_v56  ;;  %14335 = vmatprep.mubr.bf16.mxu0 %v27810_v13 }
 0xe93   : > { %13836 = vmatprep.mubr.bf16.mxu1 %v26116_v32 }
 0xe95   : > { %v17237_v61 = vpop.f32.mrb[56].mxu1 }
 0xe96   : > { %v17238_v12 = vpop.f32.mrb[57].mxu1 }
 0xe97   : > { %v26340_v7 = vadd.f32 %v17238_v12, %v17237_v61  ;;  %v17240_v63 = vpop.f32.mrb[58].mxu1 }
 0xe98   : > { %v17241_v28 = vpop.f32.mrb[59].mxu1 }
 0xe99   : > { %v26342_v10 = vadd.f32 %v17241_v28, %v17240_v63  ;;  %14336 = vmatmul.mubr.bf16.gmra.mrb[180].mxu0 %v26007_v41 }
 0xe9a   : > { %13837 = vmatmul.mubr.bf16.gmra.mrb[164].mxu1 %v26145_v38  ;;  %14343 = vmatprep.mubr.bf16.mxu0 %v27811_v43 }
 0xe9b   : > { %13844 = vmatprep.mubr.bf16.mxu1 %v26139_v52 }
 0xe9d   : > { %v17243_v4 = vpop.f32.mrb[60].mxu1 }
 0xe9e   : > { %v17244_v50 = vpop.f32.mrb[61].mxu1 }
 0xe9f   : > { %v26348_v36 = vadd.f32 %v17244_v50, %v17243_v4  ;;  %v17246_v13 = vpop.f32.mrb[62].mxu1 }
 0xea0   : > { %v17247_v20 = vpop.f32.mrb[63].mxu1 }
 0xea1   : > { %v26350_v54 = vadd.f32 %v17247_v20, %v17246_v13  ;;  %14344 = vmatmul.mubr.bf16.gmra.mrb[184].mxu0 %v26030_v24 }
 0xea2   : > { %13845 = vmatmul.mubr.bf16.gmra.mrb[168].mxu1 %v26168_v46  ;;  %14351 = vmatprep.mubr.bf16.mxu0 %v27812_v30 }
 0xea3   : > { %13852 = vmatprep.mubr.bf16.mxu1 %v26162_v42 }
 0xea5   : > { %v17249_v41 = vpop.f32.mrb[64].mxu1 }
 0xea6   : > { %v17250_v43 = vpop.f32.mrb[65].mxu1 }
 0xea7   : > { %v26356_v2 = vadd.f32 %v17250_v43, %v17249_v41  ;;  %v17252_v25 = vpop.f32.mrb[66].mxu1 }
 0xea8   : > { %v17253_v44 = vpop.f32.mrb[67].mxu1 }
 0xea9   : > { %v26358_v51 = vadd.f32 %v17253_v44, %v17252_v25  ;;  %14352 = vmatmul.mubr.bf16.gmra.mrb[188].mxu0 %v26053_v11 }
 0xeaa   : > { %13853 = vmatmul.mubr.bf16.gmra.mrb[172].mxu1 %v26184_v17  ;;  %14359 = vmatprep.mubr.bf16.mxu0 %v27813_v31 }
 0xead   : > { %v17255_v24 = vpop.f32.mrb[68].mxu1 }
 0xeae   : > { %v17256_v37 = vpop.f32.mrb[69].mxu1 }
 0xeaf   : > { %v26363_v14 = vadd.f32 %v17256_v37, %v17255_v24  ;;  %v17258_v30 = vpop.f32.mrb[70].mxu1 }
 0xeb0   : > { %v17259_v35 = vpop.f32.mrb[71].mxu1 }
 0xeb1   : > { %v26365_v22 = vadd.f32 %v17259_v35, %v17258_v30  ;;  %14360 = vmatmul.mubr.bf16.gmra.mrb[192].mxu0 %v26076_v26 }
 0xeb2   : > { %14367 = vmatprep.mubr.bf16.mxu0 %v27814_v53 }
 0xeb5   : > { %v17261_v62 = vpop.f32.mrb[72].mxu1 }
 0xeb6   : > { %v17262_v48 = vpop.f32.mrb[73].mxu1 }
 0xeb7   : > { %v26369_v1 = vadd.f32 %v17262_v48, %v17261_v62  ;;  %v17264_v11 = vpop.f32.mrb[74].mxu1 }
 0xeb8   : > { %v17265_v59 = vpop.f32.mrb[75].mxu1 }
 0xeb9   : > { %v26371_v27 = vadd.f32 %v17265_v59, %v17264_v11  ;;  %14368 = vmatmul.mubr.bf16.gmra.mrb[196].mxu0 %v26099_v19 }
 0xeba   : > { %14375 = vmatprep.mubr.bf16.mxu0 %v27815_v0 }
 0xebd   : > { %v17267_v31 = vpop.f32.mrb[76].mxu1 }
 0xebe   : > { %v17268_v61 = vpop.f32.mrb[77].mxu1 }
 0xebf   : > { %v26375_v12 = vadd.f32 %v17268_v61, %v17267_v31  ;;  %v17270_v63 = vpop.f32.mrb[78].mxu1 }
 0xec0   : > { %v17271_v26 = vpop.f32.mrb[79].mxu1 }
 0xec1   : > { %v26377_v28 = vadd.f32 %v17271_v26, %v17270_v63  ;;  %14376 = vmatmul.mubr.bf16.gmra.mrb[200].mxu0 %v26122_v56 }
 0xec2   : > { %14383 = vmatprep.mubr.bf16.mxu0 %v26116_v32 }
 0xec5   : > { %v17273_v53 = vpop.f32.mrb[80].mxu1 }
 0xec6   : > { %v17274_v4 = vpop.f32.mrb[81].mxu1 }
 0xec7   : > { %v26381_v50 = vadd.f32 %v17274_v4, %v17273_v53  ;;  %v17276_v13 = vpop.f32.mrb[82].mxu1 }
 0xec8   : > { %v17277_v19 = vpop.f32.mrb[83].mxu1 }
 0xec9   : > { %v26383_v20 = vadd.f32 %v17277_v19, %v17276_v13  ;;  %14384 = vmatmul.mubr.bf16.gmra.mrb[204].mxu0 %v26145_v38 }
 0xeca   : > { %14391 = vmatprep.mubr.bf16.mxu0 %v26139_v52 }
 0xecd   : > { %v17279_v0 = vpop.f32.mrb[84].mxu1 }
 0xece   : > { %v17280_v41 = vpop.f32.mrb[85].mxu1 }
 0xecf   : > { %v26387_v43 = vadd.f32 %v17280_v41, %v17279_v0  ;;  %v17282_v25 = vpop.f32.mrb[86].mxu1 }
 0xed0   : > { %v17283_v56 = vpop.f32.mrb[87].mxu1 }
 0xed1   : > { %v26389_v44 = vadd.f32 %v17283_v56, %v17282_v25  ;;  %14392 = vmatmul.mubr.bf16.gmra.mrb[208].mxu0 %v26168_v46 }
 0xed2   : > { %14399 = vmatprep.mubr.bf16.mxu0 %v26162_v42 }
 0xed5   : > { %v17285_v32 = vpop.f32.mrb[88].mxu1 }
 0xed6   : > { %v17286_v24 = vpop.f32.mrb[89].mxu1 }
 0xed7   : > { %v26393_v37 = vadd.f32 %v17286_v24, %v17285_v32  ;;  %v17288_v30 = vpop.f32.mrb[90].mxu1 }
 0xed8   : > { %v17289_v38 = vpop.f32.mrb[91].mxu1 }
 0xed9   : > { %v26395_v35 = vadd.f32 %v17289_v38, %v17288_v30  ;;  %14400 = vmatmul.mubr.bf16.gmra.mrb[212].mxu0 %v26184_v17 }
 0xeda   : > { %14407 = vmatprep.mubr.bf16.mxu0 %v26190_v3 }
 0xedd   : > { %v17291_v52 = vpop.f32.mrb[92].mxu1 }
 0xede   : > { %v17292_v62 = vpop.f32.mrb[93].mxu1 }
 0xedf   : > { %v26399_v48 = vadd.f32 %v17292_v62, %v17291_v52  ;;  %v17294_v11 = vpop.f32.mrb[94].mxu1 }
 0xee0   : > { %v17295_v46 = vpop.f32.mrb[95].mxu1 }
 0xee1   : > { %v26401_v59 = vadd.f32 %v17295_v46, %v17294_v11  ;;  %14408 = vmatmul.mubr.bf16.gmra.mrb[216].mxu0 %v26199_v39 }
 0xee2   : > { %14415 = vmatprep.mubr.bf16.mxu0 %v26207_v8 }
 0xee5   : > { %v17297_v42 = vpop.f32.mrb[96].mxu1 }
 0xee6   : > { %v17298_v31 = vpop.f32.mrb[97].mxu1 }
 0xee7   : > { %v26405_v61 = vadd.f32 %v17298_v31, %v17297_v42  ;;  %v17300_v63 = vpop.f32.mrb[98].mxu1 }
 0xee8   : > { %v17301_v17 = vpop.f32.mrb[99].mxu1 }
 0xee9   : > { %v26407_v26 = vadd.f32 %v17301_v17, %v17300_v63  ;;  %14416 = vmatmul.mubr.bf16.gmra.mrb[220].mxu0 %v26207_v8 }
 0xeea   : > { %17729 = vmatprep.mubr.bf16.mxu0 %v25845_v5 }
 0xeed   : > { %v17303_v3 = vpop.f32.mrb[100].mxu1 }
 0xeee   : > { %v17304_v53 = vpop.f32.mrb[101].mxu1 }
 0xeef   : > { %v26411_v4 = vadd.f32 %v17304_v53, %v17303_v3  ;;  %v17306_v13 = vpop.f32.mrb[102].mxu1 }
 0xef0   : > { %v17307_v39 = vpop.f32.mrb[103].mxu1 }
 0xef1   : > { %v26413_v19 = vadd.f32 %v17307_v39, %v17306_v13  ;;  %17730 = vmatmul.mubr.bf16.vlgmr.msra.gmra.mrb[128].mxu0 %v25886_v18 }
 0xef2   : > { %17733 = vmatprep.mubr.bf16.mxu0 %v25927_v6 }
 0xef5   : > { %v17309_v0 = vpop.f32.mrb[104].mxu1 }
 0xef6   : > { %v17310_v41 = vpop.f32.mrb[105].mxu1 }
 0xef7   : > { %v26417_v25 = vadd.f32 %v17310_v41, %v17309_v0  ;;  %v17312_v56 = vpop.f32.mrb[106].mxu1 }
 0xef8   : > { %v17313_v32 = vpop.f32.mrb[107].mxu1 }
 0xef9   : > { %v26419_v24 = vadd.f32 %v17313_v32, %v17312_v56  ;;  %17734 = vmatmul.mubr.bf16.gmra.mrb[132].mxu0 %v25962_v55 }
 0xefa   : > { %17737 = vmatprep.mubr.bf16.mxu0 %v25988_v21 }
 0xefd   : > { %v17315_v5 = vpop.f32.mrb[108].mxu1 }
 0xefe   : > { %v17316_v30 = vpop.f32.mrb[109].mxu1 }
 0xeff   : > { %v26423_v38 = vadd.f32 %v17316_v30, %v17315_v5  ;;  %v17318_v52 = vpop.f32.mrb[110].mxu1 }
 0xf00   : > { %v17319_v18 = vpop.f32.mrb[111].mxu1 }
 0xf01   : > { %v26425_v62 = vadd.f32 %v17319_v18, %v17318_v52  ;;  %17738 = vmatmul.mubr.bf16.gmra.mrb[136].mxu0 %v26011_v47 }
 0xf02   : > { %17741 = vmatprep.mubr.bf16.mxu0 %v26034_v34 }
 0xf05   : > { %v17361_v6 = vpop.f32.mrb[112].mxu1 }
 0xf06   : > { %v17362_v11 = vpop.f32.mrb[113].mxu1 }
 0xf07   : > { %v17363_v46 = vadd.f32 %v17362_v11, %v17361_v6  ;;  %v17364_v42 = vpop.f32.mrb[114].mxu1 }
 0xf08   : > { %v17365_v31 = vpop.f32.mrb[115].mxu1 }
 0xf09   : > { %v26430_v55 = vadd.f32 %v17363_v46, %v26321_v16  ;;  %v17366_v21 = vadd.f32 %v17365_v31, %v17364_v42  ;;  %17742 = vmatmul.mubr.bf16.gmra.mrb[144].mxu0 %v26057_v15 }
 0xf0a   : > { %17745 = vmatprep.mubr.bf16.mxu0 %v26080_v58 }
 0xf0b   : > { %v26435_v63 = vadd.f32 %v17366_v21, %v26323_v49 }
 0xf0d   : > { %v17367_v17 = vpop.f32.mrb[116].mxu1 }
 0xf0e   : > { %v17368_v47 = vpop.f32.mrb[117].mxu1 }
 0xf0f   : > { %v17369_v3 = vadd.f32 %v17368_v47, %v17367_v17  ;;  %v17370_v34 = vpop.f32.mrb[118].mxu1 }
 0xf10   : > { %v17371_v53 = vpop.f32.mrb[119].mxu1 }
 0xf11   : > { %v26438_v13 = vadd.f32 %v17369_v3, %v26332_v23  ;;  %v17372_v39 = vadd.f32 %v17371_v53, %v17370_v34  ;;  %17746 = vmatmul.mubr.bf16.gmra.mrb[140].mxu0 %v26103_v57 }
 0xf12   : > { %17749 = vmatprep.mubr.bf16.mxu0 %v26126_v60 }
 0xf13   : > { %v26443_v15 = vadd.f32 %v17372_v39, %v26334_v29 }
 0xf15   : > { %v17373_v58 = vpop.f32.mrb[120].mxu1 }
 0xf16   : > { %v17374_v16 = vpop.f32.mrb[121].mxu1 }
 0xf17   : > { %v17375_v49 = vadd.f32 %v17374_v16, %v17373_v58  ;;  %v17376_v0 = vpop.f32.mrb[122].mxu1 }
 0xf18   : > { %v17377_v41 = vpop.f32.mrb[123].mxu1 }
 0xf19   : > { %v26446_v56 = vadd.f32 %v17375_v49, %v26340_v7  ;;  %v17378_v32 = vadd.f32 %v17377_v41, %v17376_v0  ;;  %17750 = vmatmul.mubr.bf16.gmra.mrb[148].mxu0 %v26149_v9 }
 0xf1a   : > { %17753 = vmatprep.mubr.bf16.mxu0 %v26172_v40 }
 0xf1b   : > { %v26451_v57 = vadd.f32 %v17378_v32, %v26342_v10 }
 0xf1d   : > { %v17379_v60 = vpop.f32.mrb[124].mxu1 }
 0xf1e   : > { %v17380_v23 = vpop.f32.mrb[125].mxu1 }
 0xf1f   : > { %v17381_v29 = vadd.f32 %v17380_v23, %v17379_v60  ;;  %v17382_v5 = vpop.f32.mrb[126].mxu1 }
 0xf20   : > { %v17383_v30 = vpop.f32.mrb[127].mxu1 }
 0xf21   : > { %v26454_v52 = vadd.f32 %v17381_v29, %v26348_v36  ;;  %v17384_v18 = vadd.f32 %v17383_v30, %v17382_v5  ;;  %17754 = vmatmul.mubr.bf16.gmra.mrb[152].mxu0 %v26188_v45 }
 0xf22   : > { %17757 = vmatprep.mubr.bf16.mxu0 %v26203_v33 }
 0xf23   : > { %v26459_v9 = vadd.f32 %v17384_v18, %v26350_v54 }
 0xf25   : > { %v17385_v40 = vpop.f32.mrb[128].mxu1 }
 0xf26   : > { %v17386_v7 = vpop.f32.mrb[129].mxu1 }
 0xf27   : > { %v17387_v10 = vadd.f32 %v17386_v7, %v17385_v40  ;;  %v17388_v6 = vpop.f32.mrb[130].mxu1 }
 0xf28   : > { %v17389_v11 = vpop.f32.mrb[131].mxu1 }
 0xf29   : > { %v26462_v46 = vadd.f32 %v17387_v10, %v26356_v2  ;;  %v17390_v42 = vadd.f32 %v17389_v11, %v17388_v6  ;;  %17758 = vmatmul.mubr.bf16.gmra.mrb[156].mxu0 %v26207_v8 }
 0xf2b   : > { %v26466_v36 = vadd.f32 %v17390_v42, %v26358_v51 }
 0xf2d   : > { %v17391_v45 = vpop.f32.mrb[132].mxu1 }
 0xf2e   : > { %v17392_v31 = vpop.f32.mrb[133].mxu1 }
 0xf2f   : > { %v17393_v33 = vadd.f32 %v17392_v31, %v17391_v45  ;;  %v17394_v21 = vpop.f32.mrb[134].mxu1 }
 0xf30   : > { %v17395_v54 = vpop.f32.mrb[135].mxu1 }
 0xf31   : > { %v26469_v17 = vadd.f32 %v17393_v33, %v26363_v14  ;;  %v17396_v47 = vadd.f32 %v17395_v54, %v17394_v21 }
 0xf33   : > { %v26472_v3 = vadd.f32 %v17396_v47, %v26365_v22 }
 0xf35   : > { %v17397_v2 = vpop.f32.mrb[136].mxu1 }
 0xf36   : > { %v17398_v34 = vpop.f32.mrb[137].mxu1 }
 0xf37   : > { %v17399_v53 = vadd.f32 %v17398_v34, %v17397_v2  ;;  %v17400_v39 = vpop.f32.mrb[138].mxu1 }
 0xf38   : > { %v17401_v8 = vpop.f32.mrb[139].mxu1 }
 0xf39   : > { %v26475_v51 = vadd.f32 %v17399_v53, %v26369_v1  ;;  %v17402_v58 = vadd.f32 %v17401_v8, %v17400_v39 }
 0xf3b   : > { %v26478_v16 = vadd.f32 %v17402_v58, %v26371_v27 }
 0xf3d   : > { %v17403_v49 = vpop.f32.mrb[140].mxu1 }
 0xf3e   : > { %v17404_v0 = vpop.f32.mrb[141].mxu1 }
 0xf3f   : > { %v17405_v14 = vadd.f32 %v17404_v0, %v17403_v49  ;;  %v17406_v41 = vpop.f32.mrb[142].mxu1 }
 0xf40   : > { %v17407_v32 = vpop.f32.mrb[143].mxu1 }
 0xf41   : > { %v26481_v22 = vadd.f32 %v17405_v14, %v26375_v12  ;;  %v17408_v60 = vadd.f32 %v17407_v32, %v17406_v41 }
 0xf43   : > { %v26484_v23 = vadd.f32 %v17408_v60, %v26377_v28 }
 0xf44   : > { %v17497_v29 = vpop.f32.mrb[160].mxu0 }
 0xf45   : > { %v17409_v5 = vpop.f32.mrb[144].mxu1  ;;  %v17498_v1 = vpop.f32.mrb[161].mxu0 }
 0xf46   : > { %v17410_v30 = vpop.f32.mrb[145].mxu1  ;;  %v17499_v18 = vadd.f32 %v17498_v1, %v17497_v29  ;;  %v17500_v40 = vpop.f32.mrb[162].mxu0 }
 0xf47   : > { %v17411_v27 = vadd.f32 %v17410_v30, %v17409_v5  ;;  %v17412_v7 = vpop.f32.mrb[146].mxu1  ;;  %v17501_v10 = vpop.f32.mrb[163].mxu0 }
 0xf48   : > { %v17413_v6 = vpop.f32.mrb[147].mxu1  ;;  %v17502_v11 = vadd.f32 %v17501_v10, %v17500_v40  ;;  %v26487_v42 = vadd.f32 %v26430_v55, %v17499_v18 }
 0xf49   : > { %v26490_v12 = vadd.f32 %v17411_v27, %v26381_v50  ;;  %v17414_v45 = vadd.f32 %v17413_v6, %v17412_v7 }
 0xf4a   : > { %v26493_v28 = vadd.f32 %v26435_v63, %v17502_v11 }
 0xf4b   : > { %v26496_v31 = vadd.f32 %v17414_v45, %v26383_v20 }
 0xf4c   : > { %v17503_v33 = vpop.f32.mrb[164].mxu0 }
 0xf4d   : > { %v17415_v21 = vpop.f32.mrb[148].mxu1  ;;  %v17504_v54 = vpop.f32.mrb[165].mxu0 }
 0xf4e   : > { %v17416_v47 = vpop.f32.mrb[149].mxu1  ;;  %v17505_v2 = vadd.f32 %v17504_v54, %v17503_v33  ;;  %v17506_v34 = vpop.f32.mrb[166].mxu0 }
 0xf4f   : > { %v17417_v53 = vadd.f32 %v17416_v47, %v17415_v21  ;;  %v17418_v39 = vpop.f32.mrb[150].mxu1  ;;  %v17507_v55 = vpop.f32.mrb[167].mxu0 }
 0xf50   : > { %v17419_v8 = vpop.f32.mrb[151].mxu1  ;;  %v17508_v58 = vadd.f32 %v17507_v55, %v17506_v34  ;;  %v26499_v50 = vadd.f32 %v26438_v13, %v17505_v2 }
 0xf51   : > { %v26502_v63 = vadd.f32 %v17417_v53, %v26387_v43  ;;  %v17420_v49 = vadd.f32 %v17419_v8, %v17418_v39 }
 0xf52   : > { %v26505_v20 = vadd.f32 %v26443_v15, %v17508_v58 }
 0xf53   : > { %v26508_v0 = vadd.f32 %v17420_v49, %v26389_v44 }
 0xf54   : > { %v17509_v14 = vpop.f32.mrb[168].mxu0 }
 0xf55   : > { %v17421_v41 = vpop.f32.mrb[152].mxu1  ;;  %v17510_v32 = vpop.f32.mrb[169].mxu0 }
 0xf56   : > { %v17422_v60 = vpop.f32.mrb[153].mxu1  ;;  %v17511_v29 = vadd.f32 %v17510_v32, %v17509_v14  ;;  %v17512_v5 = vpop.f32.mrb[170].mxu0 }
 0xf57   : > { %v17423_v1 = vadd.f32 %v17422_v60, %v17421_v41  ;;  %v17424_v30 = vpop.f32.mrb[154].mxu1  ;;  %v17513_v13 = vpop.f32.mrb[171].mxu0 }
 0xf58   : > { %v17425_v18 = vpop.f32.mrb[155].mxu1  ;;  %v17514_v40 = vadd.f32 %v17513_v13, %v17512_v5  ;;  %v26511_v43 = vadd.f32 %v26446_v56, %v17511_v29 }
 0xf59   : > { %v26514_v15 = vadd.f32 %v17423_v1, %v26393_v37  ;;  %v17426_v27 = vadd.f32 %v17425_v18, %v17424_v30 }
 0xf5a   : > { %v26517_v44 = vadd.f32 %v26451_v57, %v17514_v40 }
 0xf5b   : > { %v26520_v7 = vadd.f32 %v17426_v27, %v26395_v35 }
 0xf5c   : > { %v17515_v10 = vpop.f32.mrb[172].mxu0 }
 0xf5d   : > { %v17427_v6 = vpop.f32.mrb[156].mxu1  ;;  %v17516_v11 = vpop.f32.mrb[173].mxu0 }
 0xf5e   : > { %v17428_v45 = vpop.f32.mrb[157].mxu1  ;;  %v17517_v33 = vadd.f32 %v17516_v11, %v17515_v10  ;;  %v17518_v21 = vpop.f32.mrb[174].mxu0 }
 0xf5f   : > { %v17429_v54 = vadd.f32 %v17428_v45, %v17427_v6  ;;  %v17430_v47 = vpop.f32.mrb[158].mxu1  ;;  %v17519_v56 = vpop.f32.mrb[175].mxu0 }
 0xf60   : > { %v17431_v2 = vpop.f32.mrb[159].mxu1  ;;  %v17520_v34 = vadd.f32 %v17519_v56, %v17518_v21  ;;  %v26523_v37 = vadd.f32 %v26454_v52, %v17517_v33 }
 0xf61   : > { %v26526_v57 = vadd.f32 %v17429_v54, %v26399_v48  ;;  %v17432_v53 = vadd.f32 %v17431_v2, %v17430_v47 }
 0xf62   : > { %v26529_v35 = vadd.f32 %v26459_v9, %v17520_v34 }
 0xf63   : > { %v26532_v39 = vadd.f32 %v17432_v53, %v26401_v59 }
 0xf64   : > { %v17521_v55 = vpop.f32.mrb[176].mxu0 }
 0xf65   : > { %v17433_v8 = vpop.f32.mrb[160].mxu1  ;;  %v17522_v58 = vpop.f32.mrb[177].mxu0 }
 0xf66   : > { %v17434_v49 = vpop.f32.mrb[161].mxu1  ;;  %v17523_v14 = vadd.f32 %v17522_v58, %v17521_v55  ;;  %v17524_v41 = vpop.f32.mrb[178].mxu0 }
 0xf67   : > { %v17435_v32 = vadd.f32 %v17434_v49, %v17433_v8  ;;  %v17436_v60 = vpop.f32.mrb[162].mxu1  ;;  %v17525_v52 = vpop.f32.mrb[179].mxu0 }
 0xf68   : > { %v17437_v29 = vpop.f32.mrb[163].mxu1  ;;  %v17526_v5 = vadd.f32 %v17525_v52, %v17524_v41  ;;  %v26535_v48 = vadd.f32 %v26462_v46, %v17523_v14 }
 0xf69   : > { %v26538_v9 = vadd.f32 %v17435_v32, %v26405_v61  ;;  %v17438_v1 = vadd.f32 %v17437_v29, %v17436_v60 }
 0xf6a   : > { %v26541_v59 = vadd.f32 %v26466_v36, %v17526_v5 }
 0xf6b   : > { %v26544_v30 = vadd.f32 %v17438_v1, %v26407_v26 }
 0xf6c   : > { %v17527_v13 = vpop.f32.mrb[180].mxu0 }
 0xf6d   : > { %v17439_v18 = vpop.f32.mrb[164].mxu1  ;;  %v17528_v40 = vpop.f32.mrb[181].mxu0 }
 0xf6e   : > { %v17440_v27 = vpop.f32.mrb[165].mxu1  ;;  %v17529_v10 = vadd.f32 %v17528_v40, %v17527_v13  ;;  %v17530_v6 = vpop.f32.mrb[182].mxu0 }
 0xf6f   : > { %v17441_v11 = vadd.f32 %v17440_v27, %v17439_v18  ;;  %v17442_v45 = vpop.f32.mrb[166].mxu1  ;;  %v17531_v46 = vpop.f32.mrb[183].mxu0 }
 0xf70   : > { %v17443_v33 = vpop.f32.mrb[167].mxu1  ;;  %v17532_v21 = vadd.f32 %v17531_v46, %v17530_v6  ;;  %v26547_v61 = vadd.f32 %v26469_v17, %v17529_v10 }
 0xf71   : > { %v26550_v36 = vadd.f32 %v17441_v11, %v26411_v4  ;;  %v17444_v54 = vadd.f32 %v17443_v33, %v17442_v45 }
 0xf72   : > { %v26553_v26 = vadd.f32 %v26472_v3, %v17532_v21 }
 0xf73   : > { %v26556_v47 = vadd.f32 %v17444_v54, %v26413_v19 }
 0xf74   : > { %v17533_v56 = vpop.f32.mrb[184].mxu0 }
 0xf75   : > { %v17445_v2 = vpop.f32.mrb[168].mxu1  ;;  %v17534_v34 = vpop.f32.mrb[185].mxu0 }
 0xf76   : > { %v17446_v53 = vpop.f32.mrb[169].mxu1  ;;  %v17535_v55 = vadd.f32 %v17534_v34, %v17533_v56  ;;  %v17536_v8 = vpop.f32.mrb[186].mxu0 }
 0xf77   : > { %v17447_v58 = vadd.f32 %v17446_v53, %v17445_v2  ;;  %v17448_v49 = vpop.f32.mrb[170].mxu1  ;;  %v17537_v17 = vpop.f32.mrb[187].mxu0 }
 0xf78   : > { %v17449_v14 = vpop.f32.mrb[171].mxu1  ;;  %v17538_v41 = vadd.f32 %v17537_v17, %v17536_v8  ;;  %v26559_v4 = vadd.f32 %v26475_v51, %v17535_v55 }
 0xf79   : > { %v26562_v3 = vadd.f32 %v17447_v58, %v26417_v25  ;;  %v17450_v32 = vadd.f32 %v17449_v14, %v17448_v49 }
 0xf7a   : > { %v26565_v19 = vadd.f32 %v26478_v16, %v17538_v41 }
 0xf7b   : > { %v26568_v60 = vadd.f32 %v17450_v32, %v26419_v24 }
 0xf7c   : > { %v17539_v52 = vpop.f32.mrb[188].mxu0 }
 0xf7d   : > { %v17451_v29 = vpop.f32.mrb[172].mxu1  ;;  %v17540_v5 = vpop.f32.mrb[189].mxu0 }
 0xf7e   : > { %v17452_v1 = vpop.f32.mrb[173].mxu1  ;;  %v17541_v13 = vadd.f32 %v17540_v5, %v17539_v52  ;;  %v17542_v18 = vpop.f32.mrb[190].mxu0 }
 0xf7f   : > { %v17453_v40 = vadd.f32 %v17452_v1, %v17451_v29  ;;  %v17454_v27 = vpop.f32.mrb[174].mxu1  ;;  %v17543_v51 = vpop.f32.mrb[191].mxu0 }
 0xf80   : > { %v17455_v10 = vpop.f32.mrb[175].mxu1  ;;  %v17544_v6 = vadd.f32 %v17543_v51, %v17542_v18  ;;  %v26571_v25 = vadd.f32 %v26481_v22, %v17541_v13 }
 0xf81   : > { %v26574_v16 = vadd.f32 %v17453_v40, %v26423_v38  ;;  %v17456_v11 = vadd.f32 %v17455_v10, %v17454_v27 }
 0xf82   : > { %v26577_v24 = vadd.f32 %v26484_v23, %v17544_v6 }
 0xf83   : > { %v26580_v45 = vadd.f32 %v17456_v11, %v26425_v62 }
 0xf84   : > { %v17545_v46 = vpop.f32.mrb[192].mxu0 }
 0xf85   : > { %v17546_v33 = vpop.f32.mrb[193].mxu0 }
 0xf86   : > { %v17547_v21 = vadd.f32 %v17546_v33, %v17545_v46  ;;  %v17548_v54 = vpop.f32.mrb[194].mxu0 }
 0xf87   : > { %v17549_v56 = vpop.f32.mrb[195].mxu0 }
 0xf88   : > { %v17550_v2 = vadd.f32 %v17549_v56, %v17548_v54  ;;  %v26583_v34 = vadd.f32 %v26490_v12, %v17547_v21 }
 0xf8a   : > { %v26586_v22 = vadd.f32 %v26496_v31, %v17550_v2 }
 0xf8c   : > { %v17551_v38 = vpop.f32.mrb[196].mxu0 }
 0xf8d   : > { %v17552_v53 = vpop.f32.mrb[197].mxu0 }
 0xf8e   : > { %v17553_v55 = vadd.f32 %v17552_v53, %v17551_v38  ;;  %v17554_v23 = vpop.f32.mrb[198].mxu0 }
 0xf8f   : > { %v17555_v8 = vpop.f32.mrb[199].mxu0 }
 0xf90   : > { %v17556_v58 = vadd.f32 %v17555_v8, %v17554_v23  ;;  %v26589_v62 = vadd.f32 %v26502_v63, %v17553_v55 }
 0xf92   : > { %v26592_v49 = vadd.f32 %v26508_v0, %v17556_v58 }
 0xf94   : > { %v17557_v17 = vpop.f32.mrb[200].mxu0 }
 0xf95   : > { %v17558_v14 = vpop.f32.mrb[201].mxu0 }
 0xf96   : > { %v17559_v41 = vadd.f32 %v17558_v14, %v17557_v17  ;;  %v17560_v12 = vpop.f32.mrb[202].mxu0 }
 0xf97   : > { %v17561_v32 = vpop.f32.mrb[203].mxu0 }
 0xf98   : > { %v17562_v52 = vadd.f32 %v17561_v32, %v17560_v12  ;;  %v26595_v31 = vadd.f32 %v26514_v15, %v17559_v41 }
 0xf9a   : > { %v26598_v29 = vadd.f32 %v26520_v7, %v17562_v52 }
 0xf9c   : > { %v17563_v5 = vpop.f32.mrb[204].mxu0 }
 0xf9d   : > { %v17564_v1 = vpop.f32.mrb[205].mxu0 }
 0xf9e   : > { %v17565_v13 = vadd.f32 %v17564_v1, %v17563_v5  ;;  %v17566_v63 = vpop.f32.mrb[206].mxu0 }
 0xf9f   : > { %v17567_v18 = vpop.f32.mrb[207].mxu0 }
 0xfa0   : > { %v17568_v40 = vadd.f32 %v17567_v18, %v17566_v63  ;;  %v26601_v0 = vadd.f32 %v26526_v57, %v17565_v13 }
 0xfa2   : > { %v26604_v27 = vadd.f32 %v26532_v39, %v17568_v40 }
 0xfa4   : > { %v17569_v51 = vpop.f32.mrb[208].mxu0 }
 0xfa5   : > { %v17570_v10 = vpop.f32.mrb[209].mxu0 }
 0xfa6   : > { %v17571_v6 = vadd.f32 %v17570_v10, %v17569_v51  ;;  %v17572_v15 = vpop.f32.mrb[210].mxu0 }
 0xfa7   : > { %v17573_v11 = vpop.f32.mrb[211].mxu0 }
 0xfa8   : > { %v17574_v46 = vadd.f32 %v17573_v11, %v17572_v15  ;;  %v26607_v7 = vadd.f32 %v26538_v9, %v17571_v6 }
 0xfaa   : > { %v26610_v33 = vadd.f32 %v26544_v30, %v17574_v46  ;;  %v19786_v46 = vld [vmem:[%s20020_s13 + $0x10] sm:$0xff] }
 0xfac   : > { %v17575_v21 = vpop.f32.mrb[212].mxu0 }
 0xfad   : > { %v17576_v54 = vpop.f32.mrb[213].mxu0 }
 0xfae   : > { %v17577_v56 = vadd.f32 %v17576_v54, %v17575_v21  ;;  %v17578_v57 = vpop.f32.mrb[214].mxu0 }
 0xfaf   : > { %v17579_v2 = vpop.f32.mrb[215].mxu0 }
 0xfb0   : > { %v17580_v38 = vadd.f32 %v17579_v2, %v17578_v57  ;;  %v26613_v39 = vadd.f32 %v26550_v36, %v17577_v56  ;;  %v19787_v56 = vld [vmem:[%s20020_s13] sm:$0xff] }
 0xfb2   : > { %v26616_v53 = vadd.f32 %v26556_v47, %v17580_v38 }
 0xfb4   : > { %v17581_v55 = vpop.f32.mrb[216].mxu0 }
 0xfb5   : > { %v17582_v23 = vpop.f32.mrb[217].mxu0 }
 0xfb6   : > { %v17583_v9 = vadd.f32 %v17582_v23, %v17581_v55  ;;  %v17584_v8 = vpop.f32.mrb[218].mxu0 }
 0xfb7   : > { %v17585_v58 = vpop.f32.mrb[219].mxu0 }
 0xfb8   : > { %v17586_v30 = vadd.f32 %v17585_v58, %v17584_v8  ;;  %v26619_v17 = vadd.f32 %v26562_v3, %v17583_v9  ;;  %v26634_v3 = vld [vmem:[%s26862_s10] ss:$0 sm:$0xff]  ;;  %v19789_v9 = vld [vmem:[%s20020_s13 + $0x8] sm:$0xff] }
 0xfba   : > { %v26622_v14 = vadd.f32 %v26568_v60, %v17586_v30 }
 0xfbc   : > { %v17587_v41 = vpop.f32.mrb[220].mxu0 }
 0xfbd   : > { %v17588_v36 = vpop.f32.mrb[221].mxu0 }
 0xfbe   : > { %v17589_v12 = vadd.f32 %v17588_v36, %v17587_v41  ;;  %v17590_v32 = vpop.f32.mrb[222].mxu0 }
 0xfbf   : > { %v17591_v47 = vpop.f32.mrb[223].mxu0 }
 0xfc0   : > { %v17592_v52 = vadd.f32 %v17591_v47, %v17590_v32  ;;  %v26625_v5 = vadd.f32 %v26574_v16, %v17589_v12 }
 0xfc2   : > { %v26628_v1 = vadd.f32 %v26580_v45, %v17592_v52 }
 0xfc4   : > { %v17731_v13 = vpop.f32.mrb[128].mxu0 }
 0xfc5   : > { %v17843_v60 = vadd.f32 %v26499_v50, %v17731_v13  ;;  %v14458_v63 = vpop.f32.mrb[129].mxu0 }
 0xfc6   : > { %v17846_v18 = vadd.f32 %v26487_v42, %v14458_v63  ;;  %v17732_v40 = vpop.f32.mrb[130].mxu0 }
 0xfc7   : > { %v14626_v16 = vadd.f32 %v17843_v60, %v26634_v3  ;;  %v17849_v45 = vadd.f32 %v26505_v20, %v17732_v40  ;;  %v14461_v51 = vpop.f32.mrb[131].mxu0  ;;  %v19790_v60 = vld [vmem:[%s20020_s13 + $0x30] sm:$0xff] }
 0xfc8   : > { %v14624_v10 = vadd.f32 %v17846_v18, %v26634_v3  ;;  %v17852_v6 = vadd.f32 %v26493_v28, %v14461_v51  ;;  %v19788_v28 = vld [vmem:[%s20020_s13 + $0x18] sm:$0xff]  ;;  %v19791_v18 = vld [vmem:[%s20020_s13 + $0x20] sm:$0xff] }
 0xfc9   : > { %v14658_v15 = vmax.f32 %v14626_v16, 0.0  ;;  %v14627_v50 = vadd.f32 %v17849_v45, %v26634_v3 }
 0xfca   : > { %v14656_v11 = vmax.f32 %v14624_v10, 0.0  ;;  %v14625_v42 = vadd.f32 %v17852_v6, %v26634_v3 }
 0xfcb   : > { %v14690_v21 = vadd.f32 %v19786_v46, %v14658_v15  ;;  %v14659_v54 = vmax.f32 %v14627_v50, 0.0  ;;  %v19793_v15 = vld [vmem:[%s20020_s13 + $0x28] sm:$0xff] }
 0xfcc   : > { %v14688_v57 = vadd.f32 %v19787_v56, %v14656_v11  ;;  %v14657_v2 = vmax.f32 %v14625_v42, 0.0  ;;  %v17735_v20 = vpop.f32.mrb[132].mxu0 }
 0xfcd   : > { %14722 = vst.msk [vmem:[%s26648_s0 + $0x10] sm:$0xff] %vm387_vm0, %v14690_v21  ;;  %v14691_v38 = vadd.f32 %v19788_v28, %v14659_v54  ;;  %v17855_v55 = vadd.f32 %v26523_v37, %v17735_v20  ;;  %v14474_v23 = vpop.f32.mrb[133].mxu0  ;;  %v19794_v28 = vld [vmem:[%s20020_s13 + $0x50] sm:$0xff] }
 0xfce   : > { %14720 = vst.msk [vmem:[%s26648_s0] sm:$0xff] %vm387_vm0, %v14688_v57  ;;  %v14689_v8 = vadd.f32 %v19789_v9, %v14657_v2  ;;  %v17858_v58 = vadd.f32 %v26511_v43, %v14474_v23  ;;  %v17736_v30 = vpop.f32.mrb[134].mxu0 }
 0xfcf   : > { %14723 = vst.msk [vmem:[%s26648_s0 + $0x18] sm:$0xff] %vm387_vm0, %v14691_v38  ;;  %v14630_v41 = vadd.f32 %v17855_v55, %v26634_v3  ;;  %v17861_v36 = vadd.f32 %v26529_v35, %v17736_v30  ;;  %v14477_v12 = vpop.f32.mrb[135].mxu0  ;;  %v19795_v55 = vld [vmem:[%s20020_s13 + $0x40] sm:$0xff] }
 0xfd0   : > { %14721 = vst.msk [vmem:[%s26648_s0 + $0x8] sm:$0xff] %vm387_vm0, %v14689_v8  ;;  %v14628_v37 = vadd.f32 %v17858_v58, %v26634_v3  ;;  %v17864_v32 = vadd.f32 %v26517_v44, %v14477_v12  ;;  %v19792_v44 = vld [vmem:[%s20020_s13 + $0x38] sm:$0xff] }
 0xfd1   : > { %v14662_v47 = vmax.f32 %v14630_v41, 0.0  ;;  %v14631_v43 = vadd.f32 %v17861_v36, %v26634_v3  ;;  %v19797_v36 = vld [vmem:[%s20020_s13 + $0x48] sm:$0xff] }
 0xfd2   : > { %v14660_v52 = vmax.f32 %v14628_v37, 0.0  ;;  %v14629_v13 = vadd.f32 %v17864_v32, %v26634_v3 }
 0xfd3   : > { %v14694_v63 = vadd.f32 %v19790_v60, %v14662_v47  ;;  %v14663_v35 = vmax.f32 %v14631_v43, 0.0 }
 0xfd4   : > { %v14692_v40 = vadd.f32 %v19791_v18, %v14660_v52  ;;  %v14661_v16 = vmax.f32 %v14629_v13, 0.0  ;;  %v17739_v45 = vpop.f32.mrb[136].mxu0  ;;  %v19798_v18 = vld [vmem:[%s20020_s13 + $0x70] sm:$0xff] }
 0xfd5   : > { %14726 = vst.msk [vmem:[%s26648_s0 + $0x30] sm:$0xff] %vm387_vm0, %v14694_v63  ;;  %v14695_v51 = vadd.f32 %v19792_v44, %v14663_v35  ;;  %v17867_v10 = vadd.f32 %v26547_v61, %v17739_v45  ;;  %v14490_v6 = vpop.f32.mrb[137].mxu0 }
 0xfd6   : > { %14724 = vst.msk [vmem:[%s26648_s0 + $0x20] sm:$0xff] %vm387_vm0, %v14692_v40  ;;  %v14693_v50 = vadd.f32 %v19793_v15, %v14661_v16  ;;  %v17870_v11 = vadd.f32 %v26535_v48, %v14490_v6  ;;  %v17740_v42 = vpop.f32.mrb[138].mxu0  ;;  %v19799_v16 = vld [vmem:[%s20020_s13 + $0x60] sm:$0xff] }
 0xfd7   : > { %14727 = vst.msk [vmem:[%s26648_s0 + $0x38] sm:$0xff] %vm387_vm0, %v14695_v51  ;;  %v14634_v46 = vadd.f32 %v17867_v10, %v26634_v3  ;;  %v17873_v21 = vadd.f32 %v26553_v26, %v17740_v42  ;;  %v14493_v54 = vpop.f32.mrb[139].mxu0 }
 0xfd8   : > { %14725 = vst.msk [vmem:[%s26648_s0 + $0x28] sm:$0xff] %vm387_vm0, %v14693_v50  ;;  %v14632_v61 = vadd.f32 %v17870_v11, %v26634_v3  ;;  %v17876_v56 = vadd.f32 %v26541_v59, %v14493_v54  ;;  %v19796_v59 = vld [vmem:[%s20020_s13 + $0x58] sm:$0xff]  ;;  %v19801_v50 = vld [vmem:[%s20020_s13 + $0x68] sm:$0xff] }
 0xfd9   : > { %v14666_v57 = vmax.f32 %v14634_v46, 0.0  ;;  %v14635_v48 = vadd.f32 %v17873_v21, %v26634_v3 }
 0xfda   : > { %v14664_v2 = vmax.f32 %v14632_v61, 0.0  ;;  %v14633_v20 = vadd.f32 %v17876_v56, %v26634_v3 }
 0xfdb   : > { %v14698_v38 = vadd.f32 %v19794_v28, %v14666_v57  ;;  %v14667_v26 = vmax.f32 %v14635_v48, 0.0 }
 0xfdc   : > { %v14696_v23 = vadd.f32 %v19795_v55, %v14664_v2  ;;  %v14665_v9 = vmax.f32 %v14633_v20, 0.0  ;;  %v17743_v8 = vpop.f32.mrb[144].mxu0  ;;  %v19802_v20 = vld [vmem:[%s20020_s13 + $0x90] sm:$0xff] }
 0xfdd   : > { %14730 = vst.msk [vmem:[%s26648_s0 + $0x50] sm:$0xff] %vm387_vm0, %v14698_v38  ;;  %v14699_v58 = vadd.f32 %v19796_v59, %v14667_v26  ;;  %v17879_v30 = vadd.f32 %v26571_v25, %v17743_v8  ;;  %v14506_v41 = vpop.f32.mrb[145].mxu0  ;;  %v19803_v38 = vld [vmem:[%s20020_s13 + $0x80] sm:$0xff] }
 0xfde   : > { %14728 = vst.msk [vmem:[%s26648_s0 + $0x40] sm:$0xff] %vm387_vm0, %v14696_v23  ;;  %v14697_v12 = vadd.f32 %v19797_v36, %v14665_v9  ;;  %v17882_v37 = vadd.f32 %v26559_v4, %v14506_v41  ;;  %v17744_v32 = vpop.f32.mrb[146].mxu0 }
 0xfdf   : > { %14731 = vst.msk [vmem:[%s26648_s0 + $0x58] sm:$0xff] %vm387_vm0, %v14699_v58  ;;  %v14638_v47 = vadd.f32 %v17879_v30, %v26634_v3  ;;  %v17885_v43 = vadd.f32 %v26577_v24, %v17744_v32  ;;  %v14509_v52 = vpop.f32.mrb[147].mxu0  ;;  %v19805_v58 = vld [vmem:[%s20020_s13 + $0x88] sm:$0xff] }
 0xfe0   : > { %14729 = vst.msk [vmem:[%s26648_s0 + $0x48] sm:$0xff] %vm387_vm0, %v14697_v12  ;;  %v14636_v25 = vadd.f32 %v17882_v37, %v26634_v3  ;;  %v17888_v13 = vadd.f32 %v26565_v19, %v14509_v52  ;;  %v19800_v19 = vld [vmem:[%s20020_s13 + $0x78] sm:$0xff] }
 0xfe1   : > { %v14670_v60 = vmax.f32 %v14638_v47, 0.0  ;;  %v14639_v4 = vadd.f32 %v17885_v43, %v26634_v3 }
 0xfe2   : > { %v14668_v63 = vmax.f32 %v14636_v25, 0.0  ;;  %v14637_v35 = vadd.f32 %v17888_v13, %v26634_v3  ;;  %v19806_v13 = vld [vmem:[%s20020_s13 + $0xb0] sm:$0xff] }
 0xfe3   : > { %v14702_v40 = vadd.f32 %v19798_v18, %v14670_v60  ;;  %v14671_v24 = vmax.f32 %v14639_v4, 0.0  ;;  %v19807_v4 = vld [vmem:[%s20020_s13 + $0xa0] sm:$0xff] }
 0xfe4   : > { %v14700_v45 = vadd.f32 %v19799_v16, %v14668_v63  ;;  %v14669_v44 = vmax.f32 %v14637_v35, 0.0  ;;  %v17747_v51 = vpop.f32.mrb[140].mxu0 }
 0xfe5   : > { %14734 = vst.msk [vmem:[%s26648_s0 + $0x70] sm:$0xff] %vm387_vm0, %v14702_v40  ;;  %v14703_v10 = vadd.f32 %v19800_v19, %v14671_v24  ;;  %v17891_v6 = vadd.f32 %v26589_v62, %v17747_v51  ;;  %v14522_v15 = vpop.f32.mrb[141].mxu0 }
 0xfe6   : > { %14732 = vst.msk [vmem:[%s26648_s0 + $0x60] sm:$0xff] %vm387_vm0, %v14700_v45  ;;  %v14701_v11 = vadd.f32 %v19801_v50, %v14669_v44  ;;  %v17894_v42 = vadd.f32 %v26583_v34, %v14522_v15  ;;  %v17748_v46 = vpop.f32.mrb[142].mxu0  ;;  %v19809_v45 = vld [vmem:[%s20020_s13 + $0xa8] sm:$0xff] }
 0xfe7   : > { %14735 = vst.msk [vmem:[%s26648_s0 + $0x78] sm:$0xff] %vm387_vm0, %v14703_v10  ;;  %v14642_v21 = vadd.f32 %v17891_v6, %v26634_v3  ;;  %v17897_v54 = vadd.f32 %v26592_v49, %v17748_v46  ;;  %v14525_v61 = vpop.f32.mrb[143].mxu0 }
 0xfe8   : > { %14733 = vst.msk [vmem:[%s26648_s0 + $0x68] sm:$0xff] %vm387_vm0, %v14701_v11  ;;  %v14640_v62 = vadd.f32 %v17894_v42, %v26634_v3  ;;  %v17900_v56 = vadd.f32 %v26586_v22, %v14525_v61  ;;  %v19804_v22 = vld [vmem:[%s20020_s13 + $0x98] sm:$0xff]  ;;  %v19811_v61 = vld [vmem:[%s20020_s13 + $0xc0] sm:$0xff] }
 0xfe9   : > { %v14674_v57 = vmax.f32 %v14642_v21, 0.0  ;;  %v14643_v34 = vadd.f32 %v17897_v54, %v26634_v3  ;;  %v19810_v21 = vld [vmem:[%s20020_s13 + $0xd0] sm:$0xff] }
 0xfea   : > { %v14672_v48 = vmax.f32 %v14640_v62, 0.0  ;;  %v14641_v2 = vadd.f32 %v17900_v56, %v26634_v3 }
 0xfeb   : > { %v14706_v28 = vadd.f32 %v19802_v20, %v14674_v57  ;;  %v14675_v49 = vmax.f32 %v14643_v34, 0.0  ;;  %v19813_v20 = vld [vmem:[%s20020_s13 + $0xc8] sm:$0xff] }
 0xfec   : > { %v14704_v26 = vadd.f32 %v19803_v38, %v14672_v48  ;;  %v14673_v55 = vmax.f32 %v14641_v2, 0.0  ;;  %v17751_v23 = vpop.f32.mrb[148].mxu0 }
 0xfed   : > { %14738 = vst.msk [vmem:[%s26648_s0 + $0x90] sm:$0xff] %vm387_vm0, %v14706_v28  ;;  %v14707_v9 = vadd.f32 %v19804_v22, %v14675_v49  ;;  %v17903_v8 = vadd.f32 %v26601_v0, %v17751_v23  ;;  %v14538_v59 = vpop.f32.mrb[149].mxu0 }
 0xfee   : > { %14736 = vst.msk [vmem:[%s26648_s0 + $0x80] sm:$0xff] %vm387_vm0, %v14704_v26  ;;  %v14705_v30 = vadd.f32 %v19805_v58, %v14673_v55  ;;  %v17906_v41 = vadd.f32 %v26595_v31, %v14538_v59  ;;  %v17752_v36 = vpop.f32.mrb[150].mxu0 }
 0xfef   : > { %14739 = vst.msk [vmem:[%s26648_s0 + $0x98] sm:$0xff] %vm387_vm0, %v14707_v9  ;;  %v14646_v12 = vadd.f32 %v17903_v8, %v26634_v3  ;;  %v17909_v37 = vadd.f32 %v26604_v27, %v17752_v36  ;;  %v14541_v32 = vpop.f32.mrb[151].mxu0 }
 0xff0   : > { %14737 = vst.msk [vmem:[%s26648_s0 + $0x88] sm:$0xff] %vm387_vm0, %v14705_v30  ;;  %v14644_v0 = vadd.f32 %v17906_v41, %v26634_v3  ;;  %v17912_v47 = vadd.f32 %v26598_v29, %v14541_v32  ;;  %v19808_v29 = vld [vmem:[%s20020_s13 + $0xb8] sm:$0xff]  ;;  %v19815_v41 = vld [vmem:[%s20020_s13 + $0xe0] sm:$0xff] }
 0xff1   : > { %v14678_v43 = vmax.f32 %v14646_v12, 0.0  ;;  %v14647_v31 = vadd.f32 %v17909_v37, %v26634_v3  ;;  %v19816_v12 = vld [vmem:[%s20020_s13 + $0xf8] sm:$0xff] }
 0xff2   : > { %v14676_v52 = vmax.f32 %v14644_v0, 0.0  ;;  %v14645_v25 = vadd.f32 %v17912_v47, %v26634_v3 }
 0xff3   : > { %v14710_v60 = vadd.f32 %v19806_v13, %v14678_v43  ;;  %v14679_v27 = vmax.f32 %v14647_v31, 0.0 }
 0xff4   : > { %v14708_v63 = vadd.f32 %v19807_v4, %v14676_v52  ;;  %v14677_v35 = vmax.f32 %v14645_v25, 0.0  ;;  %v17755_v18 = vpop.f32.mrb[152].mxu0 }
 0xff5   : > { %14742 = vst.msk [vmem:[%s26648_s0 + $0xb0] sm:$0xff] %vm387_vm0, %v14710_v60  ;;  %v14711_v40 = vadd.f32 %v19808_v29, %v14679_v27  ;;  %v17915_v24 = vadd.f32 %v26613_v39, %v17755_v18  ;;  %v14554_v16 = vpop.f32.mrb[153].mxu0 }
 0xff6   : > { %14740 = vst.msk [vmem:[%s26648_s0 + $0xa0] sm:$0xff] %vm387_vm0, %v14708_v63  ;;  %v14709_v44 = vadd.f32 %v19809_v45, %v14677_v35  ;;  %v17918_v51 = vadd.f32 %v26607_v7, %v14554_v16  ;;  %v17756_v19 = vpop.f32.mrb[154].mxu0 }
 0xff7   : > { %14743 = vst.msk [vmem:[%s26648_s0 + $0xb8] sm:$0xff] %vm387_vm0, %v14711_v40  ;;  %v14650_v10 = vadd.f32 %v17915_v24, %v26634_v3  ;;  %v17921_v6 = vadd.f32 %v26616_v53, %v17756_v19  ;;  %v14557_v15 = vpop.f32.mrb[155].mxu0 }
 0xff8   : > { %14741 = vst.msk [vmem:[%s26648_s0 + $0xa8] sm:$0xff] %vm387_vm0, %v14709_v44  ;;  %v14648_v39 = vadd.f32 %v17918_v51, %v26634_v3  ;;  %v17924_v50 = vadd.f32 %v26610_v33, %v14557_v15  ;;  %v19812_v33 = vld [vmem:[%s20020_s13 + $0xd8] sm:$0xff] }
 0xff9   : > { %v14682_v11 = vmax.f32 %v14650_v10, 0.0  ;;  %v14651_v7 = vadd.f32 %v17921_v6, %v26634_v3 }
 0xffa   : > { %v14680_v42 = vmax.f32 %v14648_v39, 0.0  ;;  %v14649_v46 = vadd.f32 %v17924_v50, %v26634_v3 }
 0xffb   : > { %v14714_v54 = vadd.f32 %v19810_v21, %v14682_v11  ;;  %v14683_v53 = vmax.f32 %v14651_v7, 0.0 }
 0xffc   : > { %v14712_v62 = vadd.f32 %v19811_v61, %v14680_v42  ;;  %v14681_v56 = vmax.f32 %v14649_v46, 0.0  ;;  %v17759_v57 = vpop.f32.mrb[156].mxu0 }
 0xffd   : > { %14746 = vst.msk [vmem:[%s26648_s0 + $0xd0] sm:$0xff] %vm387_vm0, %v14714_v54  ;;  %v14715_v34 = vadd.f32 %v19812_v33, %v14683_v53  ;;  %v17927_v48 = vadd.f32 %v26625_v5, %v17759_v57  ;;  %v14570_v2 = vpop.f32.mrb[157].mxu0 }
 0xffe   : > { %14744 = vst.msk [vmem:[%s26648_s0 + $0xc0] sm:$0xff] %vm387_vm0, %v14712_v62  ;;  %v14713_v28 = vadd.f32 %v19813_v20, %v14681_v56  ;;  %v17930_v49 = vadd.f32 %v26619_v17, %v14570_v2  ;;  %v17760_v38 = vpop.f32.mrb[158].mxu0 }
 0xfff   : > { %14747 = vst.msk [vmem:[%s26648_s0 + $0xd8] sm:$0xff] %vm387_vm0, %v14715_v34  ;;  %v14654_v26 = vadd.f32 %v17927_v48, %v26634_v3  ;;  %v17933_v55 = vadd.f32 %v26628_v1, %v17760_v38  ;;  %v14573_v23 = vpop.f32.mrb[159].mxu0  ;;  %v19814_v1 = vld [vmem:[%s20020_s13 + $0xf0] sm:$0xff] }
0x1000   : > { %14745 = vst.msk [vmem:[%s26648_s0 + $0xc8] sm:$0xff] %vm387_vm0, %v14713_v28  ;;  %v14652_v5 = vadd.f32 %v17930_v49, %v26634_v3  ;;  %v17936_v22 = vadd.f32 %v26622_v14, %v14573_v23 }
0x1001   : > { %v14686_v9 = vmax.f32 %v14654_v26, 0.0  ;;  %v14655_v17 = vadd.f32 %v17933_v55, %v26634_v3 }
0x1002   : > { %v14684_v8 = vmax.f32 %v14652_v5, 0.0  ;;  %v14653_v59 = vadd.f32 %v17936_v22, %v26634_v3  ;;  %v19817_v3 = vld [vmem:[%s20020_s13 + $0xe8] sm:$0xff] }
0x1003   : > { %v14718_v58 = vadd.f32 %v19814_v1, %v14686_v9  ;;  %v14687_v30 = vmax.f32 %v14655_v17, 0.0 }
0x1004   : > { %v14716_v36 = vadd.f32 %v19815_v41, %v14684_v8  ;;  %v14685_v14 = vmax.f32 %v14653_v59, 0.0 }
0x1005   : > { %14750 = vst.msk [vmem:[%s26648_s0 + $0xf0] sm:$0xff] %vm387_vm0, %v14718_v58  ;;  %v14719_v37 = vadd.f32 %v19816_v12, %v14687_v30 }
0x1006   : > { %14748 = vst.msk [vmem:[%s26648_s0 + $0xe0] sm:$0xff] %vm387_vm0, %v14716_v36  ;;  %v14717_v32 = vadd.f32 %v19817_v3, %v14685_v14 }
0x1007   : > { %14751 = vst.msk [vmem:[%s26648_s0 + $0xf8] sm:$0xff] %vm387_vm0, %v14719_v37 }
0x1008   : > { %14749 = vst.msk [vmem:[%s26648_s0 + $0xe8] sm:$0xff] %vm387_vm0, %v14717_v32 }
0x1009   : > { %19831 = shalt.err (!%p19828_p3)
}
0x100a   : > { %s19832_s13 = scalar_lea.hbm %s26798_s25, 4096  ;;  %s19836_s22 = scalar_lea.hbm %s26863_s11, 8192 }
0x100b   : > { %p19833_p4 = scmp.ne.s32.totalorder %s26798_s25, %s19832_s13  ;;  %p19837_p9 = scmp.lt.u32.totalorder %s26798_s25, %s26863_s11 }
0x100c   : > { %p19838_p10 = scmp.lt.u32.totalorder %s19836_s22, %s19832_s13  ;;  %p19840_p12 = scmp.lt.u32.totalorder %s19832_s13, %s26798_s25 }
0x100d   : > { %p19834_p7 = pnand %p19833_p4, %p19985_p5 }
0x100e   : > { %p19839_p11 = por %p19838_p10, %p19837_p9 }
0x100f   : > { %p19835_p8 = pneg %p19834_p7 }
0x1010   : > { %p19841_p13 = por %p19840_p12, %p19839_p11 }
0x1012   : > { %p19842_p0 = pnand %p19841_p13, %p19835_p8 }
0x1014   : > { %19845 = shalt.err (!%p19842_p0)
}
0x1015   : > { %s19885_s30 = smov 128   ;;  %s19886_s12 = smov 8  }
0x1016   : > { %18785 = dma.vmem_to_hbm [thread:$0]  (%p19985_p5), %s26800_s16, 4096, %s26798_s25, %s26811_s21, %s19885_s30, %s19885_s30, %s19886_s12  }
0x1017 PF: > { %p18791_p1 = scmp.ge.s32.totalorder %s19880_s20, 2  ;;  %s14781_s14 = sand.u32 1, %s19868_s17  }
0x1018   : > { %s14782_s13 = scalar_lea.sflag [#allocation6], %s14781_s14 }
0x1019   : > { %p18788_p2 = pnand %p18791_p1, %p19989_p6 }
0x101b   : > { %19863 = dma.done.wait (!%p18788_p2), %s14782_s13, 4096  }
0x101c   : > { %19865 = vsyncadd (!%p18788_p2), %s14782_s13, 4294963200  ;;  %p21_p3 = scmp.ge.s32.totalorder %s19972_s23, 4   ;;  %s27816_s17 = smov %s19872_s18 }
0x101d   : > { %s27817_s18 = smov %s19876_s19  ;;  %s27818_s19 = smov %s19983_s26 }
0x101e   : > { %s27819_s20 = smov %s19972_s23  ;;  %23 = sbr.rel (!%p21_p3) target bundleno = 5 (0x5), region = 118 }
0x1025   :  { %14787 = vsyncpa [#allocation6], 1 }
0x1026   :  { %14789 = vsyncpa [#allocation6 + $0x1], 1 }

</bundles_post_ra>
